<compile_context>
chip_gen: v7x
topology: tpu7x:2x2x1
jax: 0.10.0
libtpu: 0.0.40
codegen_flags: <defaults>
</compile_context>

<pallas_src>
from functools import partial

import numpy as np
import jax
import jax.numpy as jnp
from jax.experimental import pallas as pl
from jax.experimental.pallas import tpu as pltpu


# Tile caps: bf16 A (tm,tk) + bf16 W (tk,tn) double-buffered + f32 acc + out ~3 MiB.
_TM_CAP = 512
_TN_CAP = 256
_TK_CAP = 512


def _round_up(x, m):
    return (x + m - 1) // m * m


def _pad_and_tile(dim, mult, cap):
    """Return (padded_dim, tile): tile % mult == 0, tile <= ~cap, tile | padded_dim."""
    d0 = _round_up(dim, mult)
    n = max(1, -(-d0 // cap))              # ceil(d0 / cap)
    t = _round_up(-(-d0 // n), mult)       # ceil(d0 / n) rounded up to mult
    return t * n, t


# ----------------------------------------------------------------------------
# Pallas kernel: tiled (M,K)@(K,C) with fused bias + per-channel PReLU epilogue.
# ----------------------------------------------------------------------------
def _gemm_bias_act_kernel(a_ref, w_ref, b_ref, s_ref, o_ref, acc_ref, *, apply_act):
    k = pl.program_id(2)

    @pl.when(k == 0)
    def _():
        acc_ref[...] = jnp.zeros_like(acc_ref)

    acc_ref[...] += jnp.dot(a_ref[...], w_ref[...],
                            preferred_element_type=jnp.float32)

    @pl.when(k == pl.num_programs(2) - 1)
    def _():
        out = acc_ref[...] + b_ref[...]                 # (1, tn) broadcast over rows
        if apply_act:                                   # per-channel PReLU
            out = jnp.where(out >= 0.0, out, s_ref[...] * out)
        o_ref[...] = out.astype(o_ref.dtype)


def gemm_bias_act(A, layer, apply_act, out_dtype=jnp.bfloat16):
    """A:(M,K); layer holds precomputed padded bf16 weights / f32 bias / slopes."""
    M, K = A.shape
    Kp, Cp = layer["wm"].shape
    assert K == layer["k"], (K, layer["k"])
    tk, tn = layer["tk"], layer["tn"]
    Mp, tm = _pad_and_tile(M, 16, _TM_CAP)

    A_p = jnp.pad(A.astype(jnp.bfloat16), ((0, Mp - M), (0, Kp - K)))

    out = pl.pallas_call(
        partial(_gemm_bias_act_kernel, apply_act=apply_act),
        out_shape=jax.ShapeDtypeStruct((Mp, Cp), out_dtype),
        grid=(Mp // tm, Cp // tn, Kp // tk),
        in_specs=[
            pl.BlockSpec((tm, tk), lambda i, j, k: (i, k)),
            pl.BlockSpec((tk, tn), lambda i, j, k: (k, j)),
            pl.BlockSpec((1, tn), lambda i, j, k: (0, j)),
            pl.BlockSpec((1, tn), lambda i, j, k: (0, j)),
        ],
        out_specs=pl.BlockSpec((tm, tn), lambda i, j, k: (i, j)),
        scratch_shapes=[pltpu.VMEM((tm, tn), jnp.float32)],
        compiler_params=pltpu.CompilerParams(
            dimension_semantics=("parallel", "parallel", "arbitrary"),
            vmem_limit_bytes=32 * 1024 * 1024,
        ),
    )(A_p, layer["wm"], layer["b"], layer["s"])
    return out[:M, :layer["cout"]]


# ----------------------------------------------------------------------------
# im2col glue (plain JAX) + layer application
# ----------------------------------------------------------------------------
def _extract_patches(x, kh, kw, stride, pad):
    """x:(N,H,W,C) -> (N,Ho,Wo,kh*kw*C) patches, tap-major / channel-minor."""
    if pad:
        x = jnp.pad(x, ((0, 0), (pad, pad), (pad, pad), (0, 0)))
    _, Hp, Wp, _ = x.shape
    Ho = (Hp - kh) // stride + 1
    Wo = (Wp - kw) // stride + 1
    taps = []
    for i in range(kh):
        for j in range(kw):
            taps.append(x[:, i:i + stride * (Ho - 1) + 1:stride,
                             j:j + stride * (Wo - 1) + 1:stride, :])
    return jnp.concatenate(taps, axis=-1), Ho, Wo


def conv2d(x, layer, apply_act):
    """x NHWC -> NHWC; Conv2d(kh,kw,stride,pad) + bias (+ per-channel PReLU)."""
    N = x.shape[0]
    kh, kw = layer["kh"], layer["kw"]
    patches, Ho, Wo = _extract_patches(x, kh, kw, layer["stride"], layer["pad"])
    A = patches.reshape(N * Ho * Wo, kh * kw * layer["cin"])
    out = gemm_bias_act(A, layer, apply_act)
    return out.reshape(N, Ho, Wo, layer["cout"])


def conv_transpose2d(x, layer):
    """ConvTranspose2d(k=4, stride=2, pad=1) via 4-phase sub-pixel decomposition."""
    N, H, W, Cin = x.shape
    C = layer["cout_orig"]
    patches, Ho, Wo = _extract_patches(x, 2, 2, 1, 1)            # (N, H+1, W+1, 4*Cin)
    A = patches.reshape(N * Ho * Wo, 4 * Cin)
    G = gemm_bias_act(A, layer, apply_act=False).reshape(N, Ho, Wo, 4 * C)
    p00 = G[:, 0:H,     0:W,     0 * C:1 * C]
    p01 = G[:, 0:H,     1:W + 1, 1 * C:2 * C]
    p10 = G[:, 1:H + 1, 0:W,     2 * C:3 * C]
    p11 = G[:, 1:H + 1, 1:W + 1, 3 * C:4 * C]
    even = jnp.stack([p00, p01], axis=3).reshape(N, H, 2 * W, C)   # even output rows
    odd = jnp.stack([p10, p11], axis=3).reshape(N, H, 2 * W, C)    # odd output rows
    return jnp.stack([even, odd], axis=2).reshape(N, 2 * H, 2 * W, C)


# ----------------------------------------------------------------------------
# Parameter init: weights padded/transposed ONCE into GEMM-ready bf16 matrices.
# ----------------------------------------------------------------------------
def _finalize_layer(wm, b, s, **meta):
    K, C = wm.shape
    Kp, tk = _pad_and_tile(K, 128, _TK_CAP)
    Cp, tn = _pad_and_tile(C, 128, _TN_CAP)
    layer = dict(meta)
    layer.update(
        wm=jnp.pad(wm.astype(jnp.bfloat16), ((0, Kp - K), (0, Cp - C))),
        b=jnp.pad(b.astype(jnp.float32), (0, Cp - C)).reshape(1, Cp),
        s=jnp.pad(s.astype(jnp.float32), (0, Cp - C)).reshape(1, Cp),
        k=K, cout=C, tk=tk, tn=tn,
    )
    return layer


def _conv_layer(key, cin, cout, kh, kw, stride, pad, prelu):
    wkey, bkey = jax.random.split(key)
    fan_in, fan_out = cin * kh * kw, cout * kh * kw
    limit = float(np.sqrt(6.0 / (fan_in + fan_out)))               # xavier_uniform_
    w = jax.random.uniform(wkey, (cout, cin, kh, kw), jnp.float32, -limit, limit)
    bb = 1.0 / float(np.sqrt(fan_in))
    b = jax.random.uniform(bkey, (cout,), jnp.float32, -bb, bb)    # torch default bias
    # (K, Cout) with row ((i*kw+j)*Cin + ci) == w[co, ci, i, j]  (matches patch order)
    wm = jnp.transpose(w, (2, 3, 1, 0)).reshape(kh * kw * cin, cout)
    s = jnp.full((cout,), 0.25 if prelu else 0.0, jnp.float32)     # nn.PReLU(cout) init
    return _finalize_layer(wm, b, s, cin=cin, kh=kh, kw=kw, stride=stride, pad=pad)


def _convT_layer(key, cin, cout):
    """ConvTranspose2d(cin, cout, 4, stride=2, padding=1) as phase-stacked GEMM."""
    wkey, bkey = jax.random.split(key)
    fan_in, fan_out = cout * 16, cin * 16
    limit = float(np.sqrt(6.0 / (fan_in + fan_out)))
    w = jax.random.uniform(wkey, (cin, cout, 4, 4), jnp.float32, -limit, limit)
    bb = 1.0 / float(np.sqrt(fan_in))
    b = jax.random.uniform(bkey, (cout,), jnp.float32, -bb, bb)
    # out[2m+dy, 2l+dx, co] = b[co] + sum_{a,b,ci} xpad[m+dy+a, l+dx+b, ci]
    #                                   * w[ci, co, 3-dy-2a, 3-dx-2b]
    blocks = []
    for dy in (0, 1):
        for dx in (0, 1):
            taps = []
            for a in (0, 1):
                for b2 in (0, 1):
                    taps.append(w[:, :, 3 - dy - 2 * a, 3 - dx - 2 * b2])  # (cin, cout)
            blocks.append(jnp.concatenate(taps, axis=0))                   # (4*cin, cout)
    wm = jnp.concatenate(blocks, axis=1)                                   # (4*cin, 4*cout)
    b_eq = jnp.tile(b, 4)
    s = jnp.zeros((4 * cout,), jnp.float32)
    return _finalize_layer(wm, b_eq, s, cin=cin, cout_orig=cout)


def init_vxm_dense_params(key):
    """VxmDense defaults: Unet enc nf [16,32] (3 levels), dec [32,32],
    remaining [32,16,16]; flow = Conv(16 -> 3, 3x3, pad 1)."""
    keys = iter(jax.random.split(key, 32))
    enc_nf = [16, 32]
    dec_nf = [32, 32]
    final_nf = [32, 16, 16]

    params = {"enc": [], "dec": [], "remaining": []}
    prev = 2                                    # src_feats + trg_feats
    enc_channels = [prev]
    for nf in enc_nf:
        conv = _conv_layer(next(keys), prev, nf, 3, 3, 1, 1, prelu=True)     # ConvBlock
        prev = nf
        pool = _conv_layer(next(keys), prev, prev, 4, 4, 2, 1, prelu=False)  # pooling
        params["enc"].append({"conv": conv, "pool": pool})
        enc_channels.append(prev)
    skip_channels = enc_channels[::-1]          # np.flip(encoder_nfs) -> [32, 16, 2]
    for lvl, nf in enumerate(dec_nf):
        conv = _conv_layer(next(keys), prev, nf, 3, 3, 1, 1, prelu=True)
        prev = nf
        up = _convT_layer(next(keys), prev, prev)                            # upsampling
        params["dec"].append({"conv": conv, "up": up})
        prev += skip_channels[lvl]              # skip concat
    for nf in final_nf:
        params["remaining"].append(_conv_layer(next(keys), prev, nf, 3, 3, 1, 1, prelu=True))
        prev = nf
    params["flow"] = _conv_layer(next(keys), prev, 3, 3, 3, 1, 1, prelu=False)
    return params


# ----------------------------------------------------------------------------
# Forward pass (matches VxmDense.forward / Unet.forward)
# ----------------------------------------------------------------------------
def vxm_dense_forward(params, x):
    """x: (N, 2, H, W) NCHW -> flow field (N, 3, H, W)."""
    x = jnp.transpose(x, (0, 2, 3, 1)).astype(jnp.bfloat16)   # NHWC, bf16 activations
    history = []
    for lvl in params["enc"]:
        x = conv2d(x, lvl["conv"], apply_act=True)            # ConvBlock (3x3 + PReLU)
        history.append(x)
        x = conv2d(x, lvl["pool"], apply_act=False)           # 4x4 stride-2 conv
    for lvl in params["dec"]:
        x = conv2d(x, lvl["conv"], apply_act=True)
        x = conv_transpose2d(x, lvl["up"])                    # sub-pixel ConvTranspose
        x = jnp.concatenate([x, history.pop()], axis=-1)      # skip connection
    for layer in params["remaining"]:
        x = conv2d(x, layer, apply_act=True)
    x = conv2d(x, params["flow"], apply_act=False)            # flow head (no activation)
    return jnp.transpose(x, (0, 3, 1, 2)).astype(jnp.float32)  # back to NCHW


if __name__ == "__main__":
    key = jax.random.PRNGKey(0)
    pkey, xkey = jax.random.split(key)

    N, C_in, H, W = 2, 2, 16, 16            # source + target stacked on channel dim
    params = init_vxm_dense_params(pkey)
    x = jax.random.normal(xkey, (N, C_in, H, W), jnp.float32)

    fwd = jax.jit(partial(vxm_dense_forward, params))
    out = jax.block_until_ready(fwd(x))

    assert out.shape == (N, 3, H, W), out.shape
    assert out.dtype == jnp.float32
    assert bool(jnp.all(jnp.isfinite(out)))
    print("KERNEL_OK")
</pallas_src>

<mosaic_0001>
module attributes {stable_mosaic.version = 11 : i64} {
  func.func @_gemm_bias_act_kernel(%arg0: i32, %arg1: i32, %arg2: i32, %arg3: memref<512x128xbf16, #tpu.memory_space<vmem>>, %arg4: memref<128x128xbf16, #tpu.memory_space<vmem>>, %arg5: memref<1x128xf32, #tpu.memory_space<vmem>>, %arg6: memref<1x128xf32, #tpu.memory_space<vmem>>, %arg7: memref<512x128xbf16, #tpu.memory_space<vmem>>, %arg8: memref<512x128xf32, #tpu.memory_space<vmem>>) attributes {dimension_semantics = [#tpu.dimension_semantics<parallel>, #tpu.dimension_semantics<parallel>, #tpu.dimension_semantics<arbitrary>], iteration_bounds = array<i64: 1, 1, 1>, scalar_prefetch = 0 : i64, scratch_operands = 1 : i64, tpu.core_type = #tpu.core_type<tc>, window_params = [{transform_indices = @transform_0, window_bounds = array<i64: 512, 128>}, {transform_indices = @transform_1, window_bounds = array<i64: 128, 128>}, {transform_indices = @transform_2, window_bounds = array<i64: 1, 128>}, {transform_indices = @transform_3, window_bounds = array<i64: 1, 128>}, {transform_indices = @transform_4, window_bounds = array<i64: 512, 128>}]} {
    %c0_i32 = arith.constant 0 : i32
    %0 = arith.cmpi eq, %arg2, %c0_i32 : i32
    %1 = arith.extui %0 : i1 to i32
    %c0_i32_0 = arith.constant 0 : i32
    %2 = arith.cmpi ne, %1, %c0_i32_0 : i32
    scf.if %2 {
      %cst_10 = arith.constant 0.000000e+00 : f32
      %12 = vector.broadcast %cst_10 : f32 to vector<512x128xf32>
      %c0_11 = arith.constant 0 : index
      %c0_12 = arith.constant 0 : index
      %13 = vector.load %arg8[%c0_11, %c0_12] : memref<512x128xf32, #tpu.memory_space<vmem>>, vector<512x128xf32>
      tpu.vector_store %arg8[%c0_11, %c0_12], %12 {strides = array<i32>} : memref<512x128xf32, #tpu.memory_space<vmem>>, vector<512x128xf32>,
    } else {
    }
    %c0 = arith.constant 0 : index
    %c0_1 = arith.constant 0 : index
    %3 = vector.load %arg8[%c0, %c0_1] : memref<512x128xf32, #tpu.memory_space<vmem>>, vector<512x128xf32>
    %c0_2 = arith.constant 0 : index
    %c0_3 = arith.constant 0 : index
    %4 = vector.load %arg3[%c0_2, %c0_3] : memref<512x128xbf16, #tpu.memory_space<vmem>>, vector<512x128xbf16>
    %c0_4 = arith.constant 0 : index
    %c0_5 = arith.constant 0 : index
    %5 = vector.load %arg4[%c0_4, %c0_5] : memref<128x128xbf16, #tpu.memory_space<vmem>>, vector<128x128xbf16>
    %cst = arith.constant dense<0.000000e+00> : vector<512x128xf32>
    %6 = tpu.matmul %4, %5, %cst {dimension_numbers = #tpu.dot_dimension_numbers<[1], [0], [0], [1], [0, 0, 1, 1], [], []>} : vector<512x128xbf16>, vector<128x128xbf16>, vector<512x128xf32> -> vector<512x128xf32>
    %7 = arith.addf %3, %6 : vector<512x128xf32>
    %c0_6 = arith.constant 0 : index
    %c0_7 = arith.constant 0 : index
    %8 = vector.load %arg8[%c0_6, %c0_7] : memref<512x128xf32, #tpu.memory_space<vmem>>, vector<512x128xf32>
    tpu.vector_store %arg8[%c0_6, %c0_7], %7 {strides = array<i32>} : memref<512x128xf32, #tpu.memory_space<vmem>>, vector<512x128xf32>,
    %c0_i32_8 = arith.constant 0 : i32
    %9 = arith.cmpi eq, %arg2, %c0_i32_8 : i32
    %10 = arith.extui %9 : i1 to i32
    %c0_i32_9 = arith.constant 0 : i32
    %11 = arith.cmpi ne, %10, %c0_i32_9 : i32
    scf.if %11 {
      %c0_10 = arith.constant 0 : index
      %c0_11 = arith.constant 0 : index
      %12 = vector.load %arg8[%c0_10, %c0_11] : memref<512x128xf32, #tpu.memory_space<vmem>>, vector<512x128xf32>
      %c0_12 = arith.constant 0 : index
      %c0_13 = arith.constant 0 : index
      %13 = vector.load %arg5[%c0_12, %c0_13] : memref<1x128xf32, #tpu.memory_space<vmem>>, vector<1x128xf32>
      %14 = vector.broadcast %13 : vector<1x128xf32> to vector<512x128xf32>
      %15 = arith.addf %12, %14 : vector<512x128xf32>
      %cst_14 = arith.constant 0.000000e+00 : f32
      %16 = vector.broadcast %cst_14 : f32 to vector<512x128xf32>
      %17 = arith.cmpf oge, %15, %16 : vector<512x128xf32>
      %c0_15 = arith.constant 0 : index
      %c0_16 = arith.constant 0 : index
      %18 = vector.load %arg6[%c0_15, %c0_16] : memref<1x128xf32, #tpu.memory_space<vmem>>, vector<1x128xf32>
      %19 = vector.broadcast %18 : vector<1x128xf32> to vector<512x128xf32>
      %20 = arith.mulf %19, %15 : vector<512x128xf32>
      %21 = arith.select %17, %15, %20 : vector<512x128xi1>, vector<512x128xf32>
      %22 = arith.truncf %21 : vector<512x128xf32> to vector<512x128xbf16>
      %c0_17 = arith.constant 0 : index
      %c0_18 = arith.constant 0 : index
      %23 = vector.load %arg7[%c0_17, %c0_18] : memref<512x128xbf16, #tpu.memory_space<vmem>>, vector<512x128xbf16>
      tpu.vector_store %arg7[%c0_17, %c0_18], %22 {strides = array<i32>} : memref<512x128xbf16, #tpu.memory_space<vmem>>, vector<512x128xbf16>,
    } else {
    }
    return
  }
  func.func @transform_0(%arg0: i32, %arg1: i32, %arg2: i32) -> (i32, i32) {
    %c0_i32 = arith.constant 0 : i32
    return %arg0, %arg2 : i32, i32
  }
  func.func @transform_1(%arg0: i32, %arg1: i32, %arg2: i32) -> (i32, i32) {
    %c0_i32 = arith.constant 0 : i32
    return %arg2, %arg1 : i32, i32
  }
  func.func @transform_2(%arg0: i32, %arg1: i32, %arg2: i32) -> (i32, i32) {
    %c0_i32 = arith.constant 0 : i32
    %c0_i32_0 = arith.constant 0 : i32
    return %c0_i32, %arg1 : i32, i32
  }
  func.func @transform_3(%arg0: i32, %arg1: i32, %arg2: i32) -> (i32, i32) {
    %c0_i32 = arith.constant 0 : i32
    %c0_i32_0 = arith.constant 0 : i32
    return %c0_i32, %arg1 : i32, i32
  }
  func.func @transform_4(%arg0: i32, %arg1: i32, %arg2: i32) -> (i32, i32) {
    %c0_i32 = arith.constant 0 : i32
    return %arg0, %arg1 : i32, i32
  }
}

module attributes {stable_mosaic.version = 11 : i64} {
  func.func @_gemm_bias_act_kernel(%arg0: i32, %arg1: i32, %arg2: i32, %arg3: memref<128x256xbf16, #tpu.memory_space<vmem>>, %arg4: memref<256x128xbf16, #tpu.memory_space<vmem>>, %arg5: memref<1x128xf32, #tpu.memory_space<vmem>>, %arg6: memref<1x128xf32, #tpu.memory_space<vmem>>, %arg7: memref<128x128xbf16, #tpu.memory_space<vmem>>, %arg8: memref<128x128xf32, #tpu.memory_space<vmem>>) attributes {dimension_semantics = [#tpu.dimension_semantics<parallel>, #tpu.dimension_semantics<parallel>, #tpu.dimension_semantics<arbitrary>], iteration_bounds = array<i64: 1, 1, 1>, scalar_prefetch = 0 : i64, scratch_operands = 1 : i64, tpu.core_type = #tpu.core_type<tc>, window_params = [{transform_indices = @transform_0, window_bounds = array<i64: 128, 256>}, {transform_indices = @transform_1, window_bounds = array<i64: 256, 128>}, {transform_indices = @transform_2, window_bounds = array<i64: 1, 128>}, {transform_indices = @transform_3, window_bounds = array<i64: 1, 128>}, {transform_indices = @transform_4, window_bounds = array<i64: 128, 128>}]} {
    %c0_i32 = arith.constant 0 : i32
    %0 = arith.cmpi eq, %arg2, %c0_i32 : i32
    %1 = arith.extui %0 : i1 to i32
    %c0_i32_0 = arith.constant 0 : i32
    %2 = arith.cmpi ne, %1, %c0_i32_0 : i32
    scf.if %2 {
      %cst_10 = arith.constant 0.000000e+00 : f32
      %12 = vector.broadcast %cst_10 : f32 to vector<128x128xf32>
      %c0_11 = arith.constant 0 : index
      %c0_12 = arith.constant 0 : index
      %13 = vector.load %arg8[%c0_11, %c0_12] : memref<128x128xf32, #tpu.memory_space<vmem>>, vector<128x128xf32>
      tpu.vector_store %arg8[%c0_11, %c0_12], %12 {strides = array<i32>} : memref<128x128xf32, #tpu.memory_space<vmem>>, vector<128x128xf32>,
    } else {
    }
    %c0 = arith.constant 0 : index
    %c0_1 = arith.constant 0 : index
    %3 = vector.load %arg8[%c0, %c0_1] : memref<128x128xf32, #tpu.memory_space<vmem>>, vector<128x128xf32>
    %c0_2 = arith.constant 0 : index
    %c0_3 = arith.constant 0 : index
    %4 = vector.load %arg3[%c0_2, %c0_3] : memref<128x256xbf16, #tpu.memory_space<vmem>>, vector<128x256xbf16>
    %c0_4 = arith.constant 0 : index
    %c0_5 = arith.constant 0 : index
    %5 = vector.load %arg4[%c0_4, %c0_5] : memref<256x128xbf16, #tpu.memory_space<vmem>>, vector<256x128xbf16>
    %cst = arith.constant dense<0.000000e+00> : vector<128x128xf32>
    %6 = tpu.matmul %4, %5, %cst {dimension_numbers = #tpu.dot_dimension_numbers<[1], [0], [0], [1], [0, 0, 1, 1], [], []>} : vector<128x256xbf16>, vector<256x128xbf16>, vector<128x128xf32> -> vector<128x128xf32>
    %7 = arith.addf %3, %6 : vector<128x128xf32>
    %c0_6 = arith.constant 0 : index
    %c0_7 = arith.constant 0 : index
    %8 = vector.load %arg8[%c0_6, %c0_7] : memref<128x128xf32, #tpu.memory_space<vmem>>, vector<128x128xf32>
    tpu.vector_store %arg8[%c0_6, %c0_7], %7 {strides = array<i32>} : memref<128x128xf32, #tpu.memory_space<vmem>>, vector<128x128xf32>,
    %c0_i32_8 = arith.constant 0 : i32
    %9 = arith.cmpi eq, %arg2, %c0_i32_8 : i32
    %10 = arith.extui %9 : i1 to i32
    %c0_i32_9 = arith.constant 0 : i32
    %11 = arith.cmpi ne, %10, %c0_i32_9 : i32
    scf.if %11 {
      %c0_10 = arith.constant 0 : index
      %c0_11 = arith.constant 0 : index
      %12 = vector.load %arg8[%c0_10, %c0_11] : memref<128x128xf32, #tpu.memory_space<vmem>>, vector<128x128xf32>
      %c0_12 = arith.constant 0 : index
      %c0_13 = arith.constant 0 : index
      %13 = vector.load %arg5[%c0_12, %c0_13] : memref<1x128xf32, #tpu.memory_space<vmem>>, vector<1x128xf32>
      %14 = vector.broadcast %13 : vector<1x128xf32> to vector<128x128xf32>
      %15 = arith.addf %12, %14 : vector<128x128xf32>
      %16 = arith.truncf %15 : vector<128x128xf32> to vector<128x128xbf16>
      %c0_14 = arith.constant 0 : index
      %c0_15 = arith.constant 0 : index
      %17 = vector.load %arg7[%c0_14, %c0_15] : memref<128x128xbf16, #tpu.memory_space<vmem>>, vector<128x128xbf16>
      tpu.vector_store %arg7[%c0_14, %c0_15], %16 {strides = array<i32>} : memref<128x128xbf16, #tpu.memory_space<vmem>>, vector<128x128xbf16>,
    } else {
    }
    return
  }
  func.func @transform_0(%arg0: i32, %arg1: i32, %arg2: i32) -> (i32, i32) {
    %c0_i32 = arith.constant 0 : i32
    return %arg0, %arg2 : i32, i32
  }
  func.func @transform_1(%arg0: i32, %arg1: i32, %arg2: i32) -> (i32, i32) {
    %c0_i32 = arith.constant 0 : i32
    return %arg2, %arg1 : i32, i32
  }
  func.func @transform_2(%arg0: i32, %arg1: i32, %arg2: i32) -> (i32, i32) {
    %c0_i32 = arith.constant 0 : i32
    %c0_i32_0 = arith.constant 0 : i32
    return %c0_i32, %arg1 : i32, i32
  }
  func.func @transform_3(%arg0: i32, %arg1: i32, %arg2: i32) -> (i32, i32) {
    %c0_i32 = arith.constant 0 : i32
    %c0_i32_0 = arith.constant 0 : i32
    return %c0_i32, %arg1 : i32, i32
  }
  func.func @transform_4(%arg0: i32, %arg1: i32, %arg2: i32) -> (i32, i32) {
    %c0_i32 = arith.constant 0 : i32
    return %arg0, %arg1 : i32, i32
  }
}

module attributes {stable_mosaic.version = 11 : i64} {
  func.func @_gemm_bias_act_kernel(%arg0: i32, %arg1: i32, %arg2: i32, %arg3: memref<128x256xbf16, #tpu.memory_space<vmem>>, %arg4: memref<256x128xbf16, #tpu.memory_space<vmem>>, %arg5: memref<1x128xf32, #tpu.memory_space<vmem>>, %arg6: memref<1x128xf32, #tpu.memory_space<vmem>>, %arg7: memref<128x128xbf16, #tpu.memory_space<vmem>>, %arg8: memref<128x128xf32, #tpu.memory_space<vmem>>) attributes {dimension_semantics = [#tpu.dimension_semantics<parallel>, #tpu.dimension_semantics<parallel>, #tpu.dimension_semantics<arbitrary>], iteration_bounds = array<i64: 1, 1, 1>, scalar_prefetch = 0 : i64, scratch_operands = 1 : i64, tpu.core_type = #tpu.core_type<tc>, window_params = [{transform_indices = @transform_0, window_bounds = array<i64: 128, 256>}, {transform_indices = @transform_1, window_bounds = array<i64: 256, 128>}, {transform_indices = @transform_2, window_bounds = array<i64: 1, 128>}, {transform_indices = @transform_3, window_bounds = array<i64: 1, 128>}, {transform_indices = @transform_4, window_bounds = array<i64: 128, 128>}]} {
    %c0_i32 = arith.constant 0 : i32
    %0 = arith.cmpi eq, %arg2, %c0_i32 : i32
    %1 = arith.extui %0 : i1 to i32
    %c0_i32_0 = arith.constant 0 : i32
    %2 = arith.cmpi ne, %1, %c0_i32_0 : i32
    scf.if %2 {
      %cst_10 = arith.constant 0.000000e+00 : f32
      %12 = vector.broadcast %cst_10 : f32 to vector<128x128xf32>
      %c0_11 = arith.constant 0 : index
      %c0_12 = arith.constant 0 : index
      %13 = vector.load %arg8[%c0_11, %c0_12] : memref<128x128xf32, #tpu.memory_space<vmem>>, vector<128x128xf32>
      tpu.vector_store %arg8[%c0_11, %c0_12], %12 {strides = array<i32>} : memref<128x128xf32, #tpu.memory_space<vmem>>, vector<128x128xf32>,
    } else {
    }
    %c0 = arith.constant 0 : index
    %c0_1 = arith.constant 0 : index
    %3 = vector.load %arg8[%c0, %c0_1] : memref<128x128xf32, #tpu.memory_space<vmem>>, vector<128x128xf32>
    %c0_2 = arith.constant 0 : index
    %c0_3 = arith.constant 0 : index
    %4 = vector.load %arg3[%c0_2, %c0_3] : memref<128x256xbf16, #tpu.memory_space<vmem>>, vector<128x256xbf16>
    %c0_4 = arith.constant 0 : index
    %c0_5 = arith.constant 0 : index
    %5 = vector.load %arg4[%c0_4, %c0_5] : memref<256x128xbf16, #tpu.memory_space<vmem>>, vector<256x128xbf16>
    %cst = arith.constant dense<0.000000e+00> : vector<128x128xf32>
    %6 = tpu.matmul %4, %5, %cst {dimension_numbers = #tpu.dot_dimension_numbers<[1], [0], [0], [1], [0, 0, 1, 1], [], []>} : vector<128x256xbf16>, vector<256x128xbf16>, vector<128x128xf32> -> vector<128x128xf32>
    %7 = arith.addf %3, %6 : vector<128x128xf32>
    %c0_6 = arith.constant 0 : index
    %c0_7 = arith.constant 0 : index
    %8 = vector.load %arg8[%c0_6, %c0_7] : memref<128x128xf32, #tpu.memory_space<vmem>>, vector<128x128xf32>
    tpu.vector_store %arg8[%c0_6, %c0_7], %7 {strides = array<i32>} : memref<128x128xf32, #tpu.memory_space<vmem>>, vector<128x128xf32>,
    %c0_i32_8 = arith.constant 0 : i32
    %9 = arith.cmpi eq, %arg2, %c0_i32_8 : i32
    %10 = arith.extui %9 : i1 to i32
    %c0_i32_9 = arith.constant 0 : i32
    %11 = arith.cmpi ne, %10, %c0_i32_9 : i32
    scf.if %11 {
      %c0_10 = arith.constant 0 : index
      %c0_11 = arith.constant 0 : index
      %12 = vector.load %arg8[%c0_10, %c0_11] : memref<128x128xf32, #tpu.memory_space<vmem>>, vector<128x128xf32>
      %c0_12 = arith.constant 0 : index
      %c0_13 = arith.constant 0 : index
      %13 = vector.load %arg5[%c0_12, %c0_13] : memref<1x128xf32, #tpu.memory_space<vmem>>, vector<1x128xf32>
      %14 = vector.broadcast %13 : vector<1x128xf32> to vector<128x128xf32>
      %15 = arith.addf %12, %14 : vector<128x128xf32>
      %cst_14 = arith.constant 0.000000e+00 : f32
      %16 = vector.broadcast %cst_14 : f32 to vector<128x128xf32>
      %17 = arith.cmpf oge, %15, %16 : vector<128x128xf32>
      %c0_15 = arith.constant 0 : index
      %c0_16 = arith.constant 0 : index
      %18 = vector.load %arg6[%c0_15, %c0_16] : memref<1x128xf32, #tpu.memory_space<vmem>>, vector<1x128xf32>
      %19 = vector.broadcast %18 : vector<1x128xf32> to vector<128x128xf32>
      %20 = arith.mulf %19, %15 : vector<128x128xf32>
      %21 = arith.select %17, %15, %20 : vector<128x128xi1>, vector<128x128xf32>
      %22 = arith.truncf %21 : vector<128x128xf32> to vector<128x128xbf16>
      %c0_17 = arith.constant 0 : index
      %c0_18 = arith.constant 0 : index
      %23 = vector.load %arg7[%c0_17, %c0_18] : memref<128x128xbf16, #tpu.memory_space<vmem>>, vector<128x128xbf16>
      tpu.vector_store %arg7[%c0_17, %c0_18], %22 {strides = array<i32>} : memref<128x128xbf16, #tpu.memory_space<vmem>>, vector<128x128xbf16>,
    } else {
    }
    return
  }
  func.func @transform_0(%arg0: i32, %arg1: i32, %arg2: i32) -> (i32, i32) {
    %c0_i32 = arith.constant 0 : i32
    return %arg0, %arg2 : i32, i32
  }
  func.func @transform_1(%arg0: i32, %arg1: i32, %arg2: i32) -> (i32, i32) {
    %c0_i32 = arith.constant 0 : i32
    return %arg2, %arg1 : i32, i32
  }
  func.func @transform_2(%arg0: i32, %arg1: i32, %arg2: i32) -> (i32, i32) {
    %c0_i32 = arith.constant 0 : i32
    %c0_i32_0 = arith.constant 0 : i32
    return %c0_i32, %arg1 : i32, i32
  }
  func.func @transform_3(%arg0: i32, %arg1: i32, %arg2: i32) -> (i32, i32) {
    %c0_i32 = arith.constant 0 : i32
    %c0_i32_0 = arith.constant 0 : i32
    return %c0_i32, %arg1 : i32, i32
  }
  func.func @transform_4(%arg0: i32, %arg1: i32, %arg2: i32) -> (i32, i32) {
    %c0_i32 = arith.constant 0 : i32
    return %arg0, %arg1 : i32, i32
  }
}

module attributes {stable_mosaic.version = 11 : i64} {
  func.func @_gemm_bias_act_kernel(%arg0: i32, %arg1: i32, %arg2: i32, %arg3: memref<32x512xbf16, #tpu.memory_space<vmem>>, %arg4: memref<512x128xbf16, #tpu.memory_space<vmem>>, %arg5: memref<1x128xf32, #tpu.memory_space<vmem>>, %arg6: memref<1x128xf32, #tpu.memory_space<vmem>>, %arg7: memref<32x128xbf16, #tpu.memory_space<vmem>>, %arg8: memref<32x128xf32, #tpu.memory_space<vmem>>) attributes {dimension_semantics = [#tpu.dimension_semantics<parallel>, #tpu.dimension_semantics<parallel>, #tpu.dimension_semantics<arbitrary>], iteration_bounds = array<i64: 1, 1, 1>, scalar_prefetch = 0 : i64, scratch_operands = 1 : i64, tpu.core_type = #tpu.core_type<tc>, window_params = [{transform_indices = @transform_0, window_bounds = array<i64: 32, 512>}, {transform_indices = @transform_1, window_bounds = array<i64: 512, 128>}, {transform_indices = @transform_2, window_bounds = array<i64: 1, 128>}, {transform_indices = @transform_3, window_bounds = array<i64: 1, 128>}, {transform_indices = @transform_4, window_bounds = array<i64: 32, 128>}]} {
    %c0_i32 = arith.constant 0 : i32
    %0 = arith.cmpi eq, %arg2, %c0_i32 : i32
    %1 = arith.extui %0 : i1 to i32
    %c0_i32_0 = arith.constant 0 : i32
    %2 = arith.cmpi ne, %1, %c0_i32_0 : i32
    scf.if %2 {
      %cst_10 = arith.constant 0.000000e+00 : f32
      %12 = vector.broadcast %cst_10 : f32 to vector<32x128xf32>
      %c0_11 = arith.constant 0 : index
      %c0_12 = arith.constant 0 : index
      %13 = vector.load %arg8[%c0_11, %c0_12] : memref<32x128xf32, #tpu.memory_space<vmem>>, vector<32x128xf32>
      tpu.vector_store %arg8[%c0_11, %c0_12], %12 {strides = array<i32>} : memref<32x128xf32, #tpu.memory_space<vmem>>, vector<32x128xf32>,
    } else {
    }
    %c0 = arith.constant 0 : index
    %c0_1 = arith.constant 0 : index
    %3 = vector.load %arg8[%c0, %c0_1] : memref<32x128xf32, #tpu.memory_space<vmem>>, vector<32x128xf32>
    %c0_2 = arith.constant 0 : index
    %c0_3 = arith.constant 0 : index
    %4 = vector.load %arg3[%c0_2, %c0_3] : memref<32x512xbf16, #tpu.memory_space<vmem>>, vector<32x512xbf16>
    %c0_4 = arith.constant 0 : index
    %c0_5 = arith.constant 0 : index
    %5 = vector.load %arg4[%c0_4, %c0_5] : memref<512x128xbf16, #tpu.memory_space<vmem>>, vector<512x128xbf16>
    %cst = arith.constant dense<0.000000e+00> : vector<32x128xf32>
    %6 = tpu.matmul %4, %5, %cst {dimension_numbers = #tpu.dot_dimension_numbers<[1], [0], [0], [1], [0, 0, 1, 1], [], []>} : vector<32x512xbf16>, vector<512x128xbf16>, vector<32x128xf32> -> vector<32x128xf32>
    %7 = arith.addf %3, %6 : vector<32x128xf32>
    %c0_6 = arith.constant 0 : index
    %c0_7 = arith.constant 0 : index
    %8 = vector.load %arg8[%c0_6, %c0_7] : memref<32x128xf32, #tpu.memory_space<vmem>>, vector<32x128xf32>
    tpu.vector_store %arg8[%c0_6, %c0_7], %7 {strides = array<i32>} : memref<32x128xf32, #tpu.memory_space<vmem>>, vector<32x128xf32>,
    %c0_i32_8 = arith.constant 0 : i32
    %9 = arith.cmpi eq, %arg2, %c0_i32_8 : i32
    %10 = arith.extui %9 : i1 to i32
    %c0_i32_9 = arith.constant 0 : i32
    %11 = arith.cmpi ne, %10, %c0_i32_9 : i32
    scf.if %11 {
      %c0_10 = arith.constant 0 : index
      %c0_11 = arith.constant 0 : index
      %12 = vector.load %arg8[%c0_10, %c0_11] : memref<32x128xf32, #tpu.memory_space<vmem>>, vector<32x128xf32>
      %c0_12 = arith.constant 0 : index
      %c0_13 = arith.constant 0 : index
      %13 = vector.load %arg5[%c0_12, %c0_13] : memref<1x128xf32, #tpu.memory_space<vmem>>, vector<1x128xf32>
      %14 = vector.broadcast %13 : vector<1x128xf32> to vector<32x128xf32>
      %15 = arith.addf %12, %14 : vector<32x128xf32>
      %16 = arith.truncf %15 : vector<32x128xf32> to vector<32x128xbf16>
      %c0_14 = arith.constant 0 : index
      %c0_15 = arith.constant 0 : index
      %17 = vector.load %arg7[%c0_14, %c0_15] : memref<32x128xbf16, #tpu.memory_space<vmem>>, vector<32x128xbf16>
      tpu.vector_store %arg7[%c0_14, %c0_15], %16 {strides = array<i32>} : memref<32x128xbf16, #tpu.memory_space<vmem>>, vector<32x128xbf16>,
    } else {
    }
    return
  }
  func.func @transform_0(%arg0: i32, %arg1: i32, %arg2: i32) -> (i32, i32) {
    %c0_i32 = arith.constant 0 : i32
    return %arg0, %arg2 : i32, i32
  }
  func.func @transform_1(%arg0: i32, %arg1: i32, %arg2: i32) -> (i32, i32) {
    %c0_i32 = arith.constant 0 : i32
    return %arg2, %arg1 : i32, i32
  }
  func.func @transform_2(%arg0: i32, %arg1: i32, %arg2: i32) -> (i32, i32) {
    %c0_i32 = arith.constant 0 : i32
    %c0_i32_0 = arith.constant 0 : i32
    return %c0_i32, %arg1 : i32, i32
  }
  func.func @transform_3(%arg0: i32, %arg1: i32, %arg2: i32) -> (i32, i32) {
    %c0_i32 = arith.constant 0 : i32
    %c0_i32_0 = arith.constant 0 : i32
    return %c0_i32, %arg1 : i32, i32
  }
  func.func @transform_4(%arg0: i32, %arg1: i32, %arg2: i32) -> (i32, i32) {
    %c0_i32 = arith.constant 0 : i32
    return %arg0, %arg1 : i32, i32
  }
}

module attributes {stable_mosaic.version = 11 : i64} {
  func.func @_gemm_bias_act_kernel(%arg0: i32, %arg1: i32, %arg2: i32, %arg3: memref<32x384xbf16, #tpu.memory_space<vmem>>, %arg4: memref<384x128xbf16, #tpu.memory_space<vmem>>, %arg5: memref<1x128xf32, #tpu.memory_space<vmem>>, %arg6: memref<1x128xf32, #tpu.memory_space<vmem>>, %arg7: memref<32x128xbf16, #tpu.memory_space<vmem>>, %arg8: memref<32x128xf32, #tpu.memory_space<vmem>>) attributes {dimension_semantics = [#tpu.dimension_semantics<parallel>, #tpu.dimension_semantics<parallel>, #tpu.dimension_semantics<arbitrary>], iteration_bounds = array<i64: 1, 1, 1>, scalar_prefetch = 0 : i64, scratch_operands = 1 : i64, tpu.core_type = #tpu.core_type<tc>, window_params = [{transform_indices = @transform_0, window_bounds = array<i64: 32, 384>}, {transform_indices = @transform_1, window_bounds = array<i64: 384, 128>}, {transform_indices = @transform_2, window_bounds = array<i64: 1, 128>}, {transform_indices = @transform_3, window_bounds = array<i64: 1, 128>}, {transform_indices = @transform_4, window_bounds = array<i64: 32, 128>}]} {
    %c0_i32 = arith.constant 0 : i32
    %0 = arith.cmpi eq, %arg2, %c0_i32 : i32
    %1 = arith.extui %0 : i1 to i32
    %c0_i32_0 = arith.constant 0 : i32
    %2 = arith.cmpi ne, %1, %c0_i32_0 : i32
    scf.if %2 {
      %cst_10 = arith.constant 0.000000e+00 : f32
      %12 = vector.broadcast %cst_10 : f32 to vector<32x128xf32>
      %c0_11 = arith.constant 0 : index
      %c0_12 = arith.constant 0 : index
      %13 = vector.load %arg8[%c0_11, %c0_12] : memref<32x128xf32, #tpu.memory_space<vmem>>, vector<32x128xf32>
      tpu.vector_store %arg8[%c0_11, %c0_12], %12 {strides = array<i32>} : memref<32x128xf32, #tpu.memory_space<vmem>>, vector<32x128xf32>,
    } else {
    }
    %c0 = arith.constant 0 : index
    %c0_1 = arith.constant 0 : index
    %3 = vector.load %arg8[%c0, %c0_1] : memref<32x128xf32, #tpu.memory_space<vmem>>, vector<32x128xf32>
    %c0_2 = arith.constant 0 : index
    %c0_3 = arith.constant 0 : index
    %4 = vector.load %arg3[%c0_2, %c0_3] : memref<32x384xbf16, #tpu.memory_space<vmem>>, vector<32x384xbf16>
    %c0_4 = arith.constant 0 : index
    %c0_5 = arith.constant 0 : index
    %5 = vector.load %arg4[%c0_4, %c0_5] : memref<384x128xbf16, #tpu.memory_space<vmem>>, vector<384x128xbf16>
    %cst = arith.constant dense<0.000000e+00> : vector<32x128xf32>
    %6 = tpu.matmul %4, %5, %cst {dimension_numbers = #tpu.dot_dimension_numbers<[1], [0], [0], [1], [0, 0, 1, 1], [], []>} : vector<32x384xbf16>, vector<384x128xbf16>, vector<32x128xf32> -> vector<32x128xf32>
    %7 = arith.addf %3, %6 : vector<32x128xf32>
    %c0_6 = arith.constant 0 : index
    %c0_7 = arith.constant 0 : index
    %8 = vector.load %arg8[%c0_6, %c0_7] : memref<32x128xf32, #tpu.memory_space<vmem>>, vector<32x128xf32>
    tpu.vector_store %arg8[%c0_6, %c0_7], %7 {strides = array<i32>} : memref<32x128xf32, #tpu.memory_space<vmem>>, vector<32x128xf32>,
    %c0_i32_8 = arith.constant 0 : i32
    %9 = arith.cmpi eq, %arg2, %c0_i32_8 : i32
    %10 = arith.extui %9 : i1 to i32
    %c0_i32_9 = arith.constant 0 : i32
    %11 = arith.cmpi ne, %10, %c0_i32_9 : i32
    scf.if %11 {
      %c0_10 = arith.constant 0 : index
      %c0_11 = arith.constant 0 : index
      %12 = vector.load %arg8[%c0_10, %c0_11] : memref<32x128xf32, #tpu.memory_space<vmem>>, vector<32x128xf32>
      %c0_12 = arith.constant 0 : index
      %c0_13 = arith.constant 0 : index
      %13 = vector.load %arg5[%c0_12, %c0_13] : memref<1x128xf32, #tpu.memory_space<vmem>>, vector<1x128xf32>
      %14 = vector.broadcast %13 : vector<1x128xf32> to vector<32x128xf32>
      %15 = arith.addf %12, %14 : vector<32x128xf32>
      %cst_14 = arith.constant 0.000000e+00 : f32
      %16 = vector.broadcast %cst_14 : f32 to vector<32x128xf32>
      %17 = arith.cmpf oge, %15, %16 : vector<32x128xf32>
      %c0_15 = arith.constant 0 : index
      %c0_16 = arith.constant 0 : index
      %18 = vector.load %arg6[%c0_15, %c0_16] : memref<1x128xf32, #tpu.memory_space<vmem>>, vector<1x128xf32>
      %19 = vector.broadcast %18 : vector<1x128xf32> to vector<32x128xf32>
      %20 = arith.mulf %19, %15 : vector<32x128xf32>
      %21 = arith.select %17, %15, %20 : vector<32x128xi1>, vector<32x128xf32>
      %22 = arith.truncf %21 : vector<32x128xf32> to vector<32x128xbf16>
      %c0_17 = arith.constant 0 : index
      %c0_18 = arith.constant 0 : index
      %23 = vector.load %arg7[%c0_17, %c0_18] : memref<32x128xbf16, #tpu.memory_space<vmem>>, vector<32x128xbf16>
      tpu.vector_store %arg7[%c0_17, %c0_18], %22 {strides = array<i32>} : memref<32x128xbf16, #tpu.memory_space<vmem>>, vector<32x128xbf16>,
    } else {
    }
    return
  }
  func.func @transform_0(%arg0: i32, %arg1: i32, %arg2: i32) -> (i32, i32) {
    %c0_i32 = arith.constant 0 : i32
    return %arg0, %arg2 : i32, i32
  }
  func.func @transform_1(%arg0: i32, %arg1: i32, %arg2: i32) -> (i32, i32) {
    %c0_i32 = arith.constant 0 : i32
    return %arg2, %arg1 : i32, i32
  }
  func.func @transform_2(%arg0: i32, %arg1: i32, %arg2: i32) -> (i32, i32) {
    %c0_i32 = arith.constant 0 : i32
    %c0_i32_0 = arith.constant 0 : i32
    return %c0_i32, %arg1 : i32, i32
  }
  func.func @transform_3(%arg0: i32, %arg1: i32, %arg2: i32) -> (i32, i32) {
    %c0_i32 = arith.constant 0 : i32
    %c0_i32_0 = arith.constant 0 : i32
    return %c0_i32, %arg1 : i32, i32
  }
  func.func @transform_4(%arg0: i32, %arg1: i32, %arg2: i32) -> (i32, i32) {
    %c0_i32 = arith.constant 0 : i32
    return %arg0, %arg1 : i32, i32
  }
}

module attributes {stable_mosaic.version = 11 : i64} {
  func.func @_gemm_bias_act_kernel(%arg0: i32, %arg1: i32, %arg2: i32, %arg3: memref<64x128xbf16, #tpu.memory_space<vmem>>, %arg4: memref<128x128xbf16, #tpu.memory_space<vmem>>, %arg5: memref<1x128xf32, #tpu.memory_space<vmem>>, %arg6: memref<1x128xf32, #tpu.memory_space<vmem>>, %arg7: memref<64x128xbf16, #tpu.memory_space<vmem>>, %arg8: memref<64x128xf32, #tpu.memory_space<vmem>>) attributes {dimension_semantics = [#tpu.dimension_semantics<parallel>, #tpu.dimension_semantics<parallel>, #tpu.dimension_semantics<arbitrary>], iteration_bounds = array<i64: 1, 1, 1>, scalar_prefetch = 0 : i64, scratch_operands = 1 : i64, tpu.core_type = #tpu.core_type<tc>, window_params = [{transform_indices = @transform_0, window_bounds = array<i64: 64, 128>}, {transform_indices = @transform_1, window_bounds = array<i64: 128, 128>}, {transform_indices = @transform_2, window_bounds = array<i64: 1, 128>}, {transform_indices = @transform_3, window_bounds = array<i64: 1, 128>}, {transform_indices = @transform_4, window_bounds = array<i64: 64, 128>}]} {
    %c0_i32 = arith.constant 0 : i32
    %0 = arith.cmpi eq, %arg2, %c0_i32 : i32
    %1 = arith.extui %0 : i1 to i32
    %c0_i32_0 = arith.constant 0 : i32
    %2 = arith.cmpi ne, %1, %c0_i32_0 : i32
    scf.if %2 {
      %cst_10 = arith.constant 0.000000e+00 : f32
      %12 = vector.broadcast %cst_10 : f32 to vector<64x128xf32>
      %c0_11 = arith.constant 0 : index
      %c0_12 = arith.constant 0 : index
      %13 = vector.load %arg8[%c0_11, %c0_12] : memref<64x128xf32, #tpu.memory_space<vmem>>, vector<64x128xf32>
      tpu.vector_store %arg8[%c0_11, %c0_12], %12 {strides = array<i32>} : memref<64x128xf32, #tpu.memory_space<vmem>>, vector<64x128xf32>,
    } else {
    }
    %c0 = arith.constant 0 : index
    %c0_1 = arith.constant 0 : index
    %3 = vector.load %arg8[%c0, %c0_1] : memref<64x128xf32, #tpu.memory_space<vmem>>, vector<64x128xf32>
    %c0_2 = arith.constant 0 : index
    %c0_3 = arith.constant 0 : index
    %4 = vector.load %arg3[%c0_2, %c0_3] : memref<64x128xbf16, #tpu.memory_space<vmem>>, vector<64x128xbf16>
    %c0_4 = arith.constant 0 : index
    %c0_5 = arith.constant 0 : index
    %5 = vector.load %arg4[%c0_4, %c0_5] : memref<128x128xbf16, #tpu.memory_space<vmem>>, vector<128x128xbf16>
    %cst = arith.constant dense<0.000000e+00> : vector<64x128xf32>
    %6 = tpu.matmul %4, %5, %cst {dimension_numbers = #tpu.dot_dimension_numbers<[1], [0], [0], [1], [0, 0, 1, 1], [], []>} : vector<64x128xbf16>, vector<128x128xbf16>, vector<64x128xf32> -> vector<64x128xf32>
    %7 = arith.addf %3, %6 : vector<64x128xf32>
    %c0_6 = arith.constant 0 : index
    %c0_7 = arith.constant 0 : index
    %8 = vector.load %arg8[%c0_6, %c0_7] : memref<64x128xf32, #tpu.memory_space<vmem>>, vector<64x128xf32>
    tpu.vector_store %arg8[%c0_6, %c0_7], %7 {strides = array<i32>} : memref<64x128xf32, #tpu.memory_space<vmem>>, vector<64x128xf32>,
    %c0_i32_8 = arith.constant 0 : i32
    %9 = arith.cmpi eq, %arg2, %c0_i32_8 : i32
    %10 = arith.extui %9 : i1 to i32
    %c0_i32_9 = arith.constant 0 : i32
    %11 = arith.cmpi ne, %10, %c0_i32_9 : i32
    scf.if %11 {
      %c0_10 = arith.constant 0 : index
      %c0_11 = arith.constant 0 : index
      %12 = vector.load %arg8[%c0_10, %c0_11] : memref<64x128xf32, #tpu.memory_space<vmem>>, vector<64x128xf32>
      %c0_12 = arith.constant 0 : index
      %c0_13 = arith.constant 0 : index
      %13 = vector.load %arg5[%c0_12, %c0_13] : memref<1x128xf32, #tpu.memory_space<vmem>>, vector<1x128xf32>
      %14 = vector.broadcast %13 : vector<1x128xf32> to vector<64x128xf32>
      %15 = arith.addf %12, %14 : vector<64x128xf32>
      %16 = arith.truncf %15 : vector<64x128xf32> to vector<64x128xbf16>
      %c0_14 = arith.constant 0 : index
      %c0_15 = arith.constant 0 : index
      %17 = vector.load %arg7[%c0_14, %c0_15] : memref<64x128xbf16, #tpu.memory_space<vmem>>, vector<64x128xbf16>
      tpu.vector_store %arg7[%c0_14, %c0_15], %16 {strides = array<i32>} : memref<64x128xbf16, #tpu.memory_space<vmem>>, vector<64x128xbf16>,
    } else {
    }
    return
  }
  func.func @transform_0(%arg0: i32, %arg1: i32, %arg2: i32) -> (i32, i32) {
    %c0_i32 = arith.constant 0 : i32
    return %arg0, %arg2 : i32, i32
  }
  func.func @transform_1(%arg0: i32, %arg1: i32, %arg2: i32) -> (i32, i32) {
    %c0_i32 = arith.constant 0 : i32
    return %arg2, %arg1 : i32, i32
  }
  func.func @transform_2(%arg0: i32, %arg1: i32, %arg2: i32) -> (i32, i32) {
    %c0_i32 = arith.constant 0 : i32
    %c0_i32_0 = arith.constant 0 : i32
    return %c0_i32, %arg1 : i32, i32
  }
  func.func @transform_3(%arg0: i32, %arg1: i32, %arg2: i32) -> (i32, i32) {
    %c0_i32 = arith.constant 0 : i32
    %c0_i32_0 = arith.constant 0 : i32
    return %c0_i32, %arg1 : i32, i32
  }
  func.func @transform_4(%arg0: i32, %arg1: i32, %arg2: i32) -> (i32, i32) {
    %c0_i32 = arith.constant 0 : i32
    return %arg0, %arg1 : i32, i32
  }
}

module attributes {stable_mosaic.version = 11 : i64} {
  func.func @_gemm_bias_act_kernel(%arg0: i32, %arg1: i32, %arg2: i32, %arg3: memref<128x384xbf16, #tpu.memory_space<vmem>>, %arg4: memref<384x128xbf16, #tpu.memory_space<vmem>>, %arg5: memref<1x128xf32, #tpu.memory_space<vmem>>, %arg6: memref<1x128xf32, #tpu.memory_space<vmem>>, %arg7: memref<128x128xbf16, #tpu.memory_space<vmem>>, %arg8: memref<128x128xf32, #tpu.memory_space<vmem>>) attributes {dimension_semantics = [#tpu.dimension_semantics<parallel>, #tpu.dimension_semantics<parallel>, #tpu.dimension_semantics<arbitrary>], iteration_bounds = array<i64: 1, 1, 2>, scalar_prefetch = 0 : i64, scratch_operands = 1 : i64, tpu.core_type = #tpu.core_type<tc>, window_params = [{transform_indices = @transform_0, window_bounds = array<i64: 128, 384>}, {transform_indices = @transform_1, window_bounds = array<i64: 384, 128>}, {transform_indices = @transform_2, window_bounds = array<i64: 1, 128>}, {transform_indices = @transform_3, window_bounds = array<i64: 1, 128>}, {transform_indices = @transform_4, window_bounds = array<i64: 128, 128>}]} {
    %c0_i32 = arith.constant 0 : i32
    %0 = arith.cmpi eq, %arg2, %c0_i32 : i32
    %1 = arith.extui %0 : i1 to i32
    %c0_i32_0 = arith.constant 0 : i32
    %2 = arith.cmpi ne, %1, %c0_i32_0 : i32
    scf.if %2 {
      %cst_9 = arith.constant 0.000000e+00 : f32
      %12 = vector.broadcast %cst_9 : f32 to vector<128x128xf32>
      %c0_10 = arith.constant 0 : index
      %c0_11 = arith.constant 0 : index
      %13 = vector.load %arg8[%c0_10, %c0_11] : memref<128x128xf32, #tpu.memory_space<vmem>>, vector<128x128xf32>
      tpu.vector_store %arg8[%c0_10, %c0_11], %12 {strides = array<i32>} : memref<128x128xf32, #tpu.memory_space<vmem>>, vector<128x128xf32>,
    } else {
    }
    %c0 = arith.constant 0 : index
    %c0_1 = arith.constant 0 : index
    %3 = vector.load %arg8[%c0, %c0_1] : memref<128x128xf32, #tpu.memory_space<vmem>>, vector<128x128xf32>
    %c0_2 = arith.constant 0 : index
    %c0_3 = arith.constant 0 : index
    %4 = vector.load %arg3[%c0_2, %c0_3] : memref<128x384xbf16, #tpu.memory_space<vmem>>, vector<128x384xbf16>
    %c0_4 = arith.constant 0 : index
    %c0_5 = arith.constant 0 : index
    %5 = vector.load %arg4[%c0_4, %c0_5] : memref<384x128xbf16, #tpu.memory_space<vmem>>, vector<384x128xbf16>
    %cst = arith.constant dense<0.000000e+00> : vector<128x128xf32>
    %6 = tpu.matmul %4, %5, %cst {dimension_numbers = #tpu.dot_dimension_numbers<[1], [0], [0], [1], [0, 0, 1, 1], [], []>} : vector<128x384xbf16>, vector<384x128xbf16>, vector<128x128xf32> -> vector<128x128xf32>
    %7 = arith.addf %3, %6 : vector<128x128xf32>
    %c0_6 = arith.constant 0 : index
    %c0_7 = arith.constant 0 : index
    %8 = vector.load %arg8[%c0_6, %c0_7] : memref<128x128xf32, #tpu.memory_space<vmem>>, vector<128x128xf32>
    tpu.vector_store %arg8[%c0_6, %c0_7], %7 {strides = array<i32>} : memref<128x128xf32, #tpu.memory_space<vmem>>, vector<128x128xf32>,
    %c1_i32 = arith.constant 1 : i32
    %9 = arith.cmpi eq, %arg2, %c1_i32 : i32
    %10 = arith.extui %9 : i1 to i32
    %c0_i32_8 = arith.constant 0 : i32
    %11 = arith.cmpi ne, %10, %c0_i32_8 : i32
    scf.if %11 {
      %c0_9 = arith.constant 0 : index
      %c0_10 = arith.constant 0 : index
      %12 = vector.load %arg8[%c0_9, %c0_10] : memref<128x128xf32, #tpu.memory_space<vmem>>, vector<128x128xf32>
      %c0_11 = arith.constant 0 : index
      %c0_12 = arith.constant 0 : index
      %13 = vector.load %arg5[%c0_11, %c0_12] : memref<1x128xf32, #tpu.memory_space<vmem>>, vector<1x128xf32>
      %14 = vector.broadcast %13 : vector<1x128xf32> to vector<128x128xf32>
      %15 = arith.addf %12, %14 : vector<128x128xf32>
      %cst_13 = arith.constant 0.000000e+00 : f32
      %16 = vector.broadcast %cst_13 : f32 to vector<128x128xf32>
      %17 = arith.cmpf oge, %15, %16 : vector<128x128xf32>
      %c0_14 = arith.constant 0 : index
      %c0_15 = arith.constant 0 : index
      %18 = vector.load %arg6[%c0_14, %c0_15] : memref<1x128xf32, #tpu.memory_space<vmem>>, vector<1x128xf32>
      %19 = vector.broadcast %18 : vector<1x128xf32> to vector<128x128xf32>
      %20 = arith.mulf %19, %15 : vector<128x128xf32>
      %21 = arith.select %17, %15, %20 : vector<128x128xi1>, vector<128x128xf32>
      %22 = arith.truncf %21 : vector<128x128xf32> to vector<128x128xbf16>
      %c0_16 = arith.constant 0 : index
      %c0_17 = arith.constant 0 : index
      %23 = vector.load %arg7[%c0_16, %c0_17] : memref<128x128xbf16, #tpu.memory_space<vmem>>, vector<128x128xbf16>
      tpu.vector_store %arg7[%c0_16, %c0_17], %22 {strides = array<i32>} : memref<128x128xbf16, #tpu.memory_space<vmem>>, vector<128x128xbf16>,
    } else {
    }
    return
  }
  func.func @transform_0(%arg0: i32, %arg1: i32, %arg2: i32) -> (i32, i32) {
    %c0_i32 = arith.constant 0 : i32
    return %arg0, %arg2 : i32, i32
  }
  func.func @transform_1(%arg0: i32, %arg1: i32, %arg2: i32) -> (i32, i32) {
    %c0_i32 = arith.constant 0 : i32
    return %arg2, %arg1 : i32, i32
  }
  func.func @transform_2(%arg0: i32, %arg1: i32, %arg2: i32) -> (i32, i32) {
    %c0_i32 = arith.constant 0 : i32
    %c0_i32_0 = arith.constant 0 : i32
    return %c0_i32, %arg1 : i32, i32
  }
  func.func @transform_3(%arg0: i32, %arg1: i32, %arg2: i32) -> (i32, i32) {
    %c0_i32 = arith.constant 0 : i32
    %c0_i32_0 = arith.constant 0 : i32
    return %c0_i32, %arg1 : i32, i32
  }
  func.func @transform_4(%arg0: i32, %arg1: i32, %arg2: i32) -> (i32, i32) {
    %c0_i32 = arith.constant 0 : i32
    return %arg0, %arg1 : i32, i32
  }
}

module attributes {stable_mosaic.version = 11 : i64} {
  func.func @_gemm_bias_act_kernel(%arg0: i32, %arg1: i32, %arg2: i32, %arg3: memref<176x128xbf16, #tpu.memory_space<vmem>>, %arg4: memref<128x128xbf16, #tpu.memory_space<vmem>>, %arg5: memref<1x128xf32, #tpu.memory_space<vmem>>, %arg6: memref<1x128xf32, #tpu.memory_space<vmem>>, %arg7: memref<176x128xbf16, #tpu.memory_space<vmem>>, %arg8: memref<176x128xf32, #tpu.memory_space<vmem>>) attributes {dimension_semantics = [#tpu.dimension_semantics<parallel>, #tpu.dimension_semantics<parallel>, #tpu.dimension_semantics<arbitrary>], iteration_bounds = array<i64: 1, 1, 1>, scalar_prefetch = 0 : i64, scratch_operands = 1 : i64, tpu.core_type = #tpu.core_type<tc>, window_params = [{transform_indices = @transform_0, window_bounds = array<i64: 176, 128>}, {transform_indices = @transform_1, window_bounds = array<i64: 128, 128>}, {transform_indices = @transform_2, window_bounds = array<i64: 1, 128>}, {transform_indices = @transform_3, window_bounds = array<i64: 1, 128>}, {transform_indices = @transform_4, window_bounds = array<i64: 176, 128>}]} {
    %c0_i32 = arith.constant 0 : i32
    %0 = arith.cmpi eq, %arg2, %c0_i32 : i32
    %1 = arith.extui %0 : i1 to i32
    %c0_i32_0 = arith.constant 0 : i32
    %2 = arith.cmpi ne, %1, %c0_i32_0 : i32
    scf.if %2 {
      %cst_10 = arith.constant 0.000000e+00 : f32
      %12 = vector.broadcast %cst_10 : f32 to vector<176x128xf32>
      %c0_11 = arith.constant 0 : index
      %c0_12 = arith.constant 0 : index
      %13 = vector.load %arg8[%c0_11, %c0_12] : memref<176x128xf32, #tpu.memory_space<vmem>>, vector<176x128xf32>
      tpu.vector_store %arg8[%c0_11, %c0_12], %12 {strides = array<i32>} : memref<176x128xf32, #tpu.memory_space<vmem>>, vector<176x128xf32>,
    } else {
    }
    %c0 = arith.constant 0 : index
    %c0_1 = arith.constant 0 : index
    %3 = vector.load %arg8[%c0, %c0_1] : memref<176x128xf32, #tpu.memory_space<vmem>>, vector<176x128xf32>
    %c0_2 = arith.constant 0 : index
    %c0_3 = arith.constant 0 : index
    %4 = vector.load %arg3[%c0_2, %c0_3] : memref<176x128xbf16, #tpu.memory_space<vmem>>, vector<176x128xbf16>
    %c0_4 = arith.constant 0 : index
    %c0_5 = arith.constant 0 : index
    %5 = vector.load %arg4[%c0_4, %c0_5] : memref<128x128xbf16, #tpu.memory_space<vmem>>, vector<128x128xbf16>
    %cst = arith.constant dense<0.000000e+00> : vector<176x128xf32>
    %6 = tpu.matmul %4, %5, %cst {dimension_numbers = #tpu.dot_dimension_numbers<[1], [0], [0], [1], [0, 0, 1, 1], [], []>} : vector<176x128xbf16>, vector<128x128xbf16>, vector<176x128xf32> -> vector<176x128xf32>
    %7 = arith.addf %3, %6 : vector<176x128xf32>
    %c0_6 = arith.constant 0 : index
    %c0_7 = arith.constant 0 : index
    %8 = vector.load %arg8[%c0_6, %c0_7] : memref<176x128xf32, #tpu.memory_space<vmem>>, vector<176x128xf32>
    tpu.vector_store %arg8[%c0_6, %c0_7], %7 {strides = array<i32>} : memref<176x128xf32, #tpu.memory_space<vmem>>, vector<176x128xf32>,
    %c0_i32_8 = arith.constant 0 : i32
    %9 = arith.cmpi eq, %arg2, %c0_i32_8 : i32
    %10 = arith.extui %9 : i1 to i32
    %c0_i32_9 = arith.constant 0 : i32
    %11 = arith.cmpi ne, %10, %c0_i32_9 : i32
    scf.if %11 {
      %c0_10 = arith.constant 0 : index
      %c0_11 = arith.constant 0 : index
      %12 = vector.load %arg8[%c0_10, %c0_11] : memref<176x128xf32, #tpu.memory_space<vmem>>, vector<176x128xf32>
      %c0_12 = arith.constant 0 : index
      %c0_13 = arith.constant 0 : index
      %13 = vector.load %arg5[%c0_12, %c0_13] : memref<1x128xf32, #tpu.memory_space<vmem>>, vector<1x128xf32>
      %14 = vector.broadcast %13 : vector<1x128xf32> to vector<176x128xf32>
      %15 = arith.addf %12, %14 : vector<176x128xf32>
      %16 = arith.truncf %15 : vector<176x128xf32> to vector<176x128xbf16>
      %c0_14 = arith.constant 0 : index
      %c0_15 = arith.constant 0 : index
      %17 = vector.load %arg7[%c0_14, %c0_15] : memref<176x128xbf16, #tpu.memory_space<vmem>>, vector<176x128xbf16>
      tpu.vector_store %arg7[%c0_14, %c0_15], %16 {strides = array<i32>} : memref<176x128xbf16, #tpu.memory_space<vmem>>, vector<176x128xbf16>,
    } else {
    }
    return
  }
  func.func @transform_0(%arg0: i32, %arg1: i32, %arg2: i32) -> (i32, i32) {
    %c0_i32 = arith.constant 0 : i32
    return %arg0, %arg2 : i32, i32
  }
  func.func @transform_1(%arg0: i32, %arg1: i32, %arg2: i32) -> (i32, i32) {
    %c0_i32 = arith.constant 0 : i32
    return %arg2, %arg1 : i32, i32
  }
  func.func @transform_2(%arg0: i32, %arg1: i32, %arg2: i32) -> (i32, i32) {
    %c0_i32 = arith.constant 0 : i32
    %c0_i32_0 = arith.constant 0 : i32
    return %c0_i32, %arg1 : i32, i32
  }
  func.func @transform_3(%arg0: i32, %arg1: i32, %arg2: i32) -> (i32, i32) {
    %c0_i32 = arith.constant 0 : i32
    %c0_i32_0 = arith.constant 0 : i32
    return %c0_i32, %arg1 : i32, i32
  }
  func.func @transform_4(%arg0: i32, %arg1: i32, %arg2: i32) -> (i32, i32) {
    %c0_i32 = arith.constant 0 : i32
    return %arg0, %arg1 : i32, i32
  }
}

module attributes {stable_mosaic.version = 11 : i64} {
  func.func @_gemm_bias_act_kernel(%arg0: i32, %arg1: i32, %arg2: i32, %arg3: memref<512x512xbf16, #tpu.memory_space<vmem>>, %arg4: memref<512x128xbf16, #tpu.memory_space<vmem>>, %arg5: memref<1x128xf32, #tpu.memory_space<vmem>>, %arg6: memref<1x128xf32, #tpu.memory_space<vmem>>, %arg7: memref<512x128xbf16, #tpu.memory_space<vmem>>, %arg8: memref<512x128xf32, #tpu.memory_space<vmem>>) attributes {dimension_semantics = [#tpu.dimension_semantics<parallel>, #tpu.dimension_semantics<parallel>, #tpu.dimension_semantics<arbitrary>], iteration_bounds = array<i64: 1, 1, 1>, scalar_prefetch = 0 : i64, scratch_operands = 1 : i64, tpu.core_type = #tpu.core_type<tc>, window_params = [{transform_indices = @transform_0, window_bounds = array<i64: 512, 512>}, {transform_indices = @transform_1, window_bounds = array<i64: 512, 128>}, {transform_indices = @transform_2, window_bounds = array<i64: 1, 128>}, {transform_indices = @transform_3, window_bounds = array<i64: 1, 128>}, {transform_indices = @transform_4, window_bounds = array<i64: 512, 128>}]} {
    %c0_i32 = arith.constant 0 : i32
    %0 = arith.cmpi eq, %arg2, %c0_i32 : i32
    %1 = arith.extui %0 : i1 to i32
    %c0_i32_0 = arith.constant 0 : i32
    %2 = arith.cmpi ne, %1, %c0_i32_0 : i32
    scf.if %2 {
      %cst_10 = arith.constant 0.000000e+00 : f32
      %12 = vector.broadcast %cst_10 : f32 to vector<512x128xf32>
      %c0_11 = arith.constant 0 : index
      %c0_12 = arith.constant 0 : index
      %13 = vector.load %arg8[%c0_11, %c0_12] : memref<512x128xf32, #tpu.memory_space<vmem>>, vector<512x128xf32>
      tpu.vector_store %arg8[%c0_11, %c0_12], %12 {strides = array<i32>} : memref<512x128xf32, #tpu.memory_space<vmem>>, vector<512x128xf32>,
    } else {
    }
    %c0 = arith.constant 0 : index
    %c0_1 = arith.constant 0 : index
    %3 = vector.load %arg8[%c0, %c0_1] : memref<512x128xf32, #tpu.memory_space<vmem>>, vector<512x128xf32>
    %c0_2 = arith.constant 0 : index
    %c0_3 = arith.constant 0 : index
    %4 = vector.load %arg3[%c0_2, %c0_3] : memref<512x512xbf16, #tpu.memory_space<vmem>>, vector<512x512xbf16>
    %c0_4 = arith.constant 0 : index
    %c0_5 = arith.constant 0 : index
    %5 = vector.load %arg4[%c0_4, %c0_5] : memref<512x128xbf16, #tpu.memory_space<vmem>>, vector<512x128xbf16>
    %cst = arith.constant dense<0.000000e+00> : vector<512x128xf32>
    %6 = tpu.matmul %4, %5, %cst {dimension_numbers = #tpu.dot_dimension_numbers<[1], [0], [0], [1], [0, 0, 1, 1], [], []>} : vector<512x512xbf16>, vector<512x128xbf16>, vector<512x128xf32> -> vector<512x128xf32>
    %7 = arith.addf %3, %6 : vector<512x128xf32>
    %c0_6 = arith.constant 0 : index
    %c0_7 = arith.constant 0 : index
    %8 = vector.load %arg8[%c0_6, %c0_7] : memref<512x128xf32, #tpu.memory_space<vmem>>, vector<512x128xf32>
    tpu.vector_store %arg8[%c0_6, %c0_7], %7 {strides = array<i32>} : memref<512x128xf32, #tpu.memory_space<vmem>>, vector<512x128xf32>,
    %c0_i32_8 = arith.constant 0 : i32
    %9 = arith.cmpi eq, %arg2, %c0_i32_8 : i32
    %10 = arith.extui %9 : i1 to i32
    %c0_i32_9 = arith.constant 0 : i32
    %11 = arith.cmpi ne, %10, %c0_i32_9 : i32
    scf.if %11 {
      %c0_10 = arith.constant 0 : index
      %c0_11 = arith.constant 0 : index
      %12 = vector.load %arg8[%c0_10, %c0_11] : memref<512x128xf32, #tpu.memory_space<vmem>>, vector<512x128xf32>
      %c0_12 = arith.constant 0 : index
      %c0_13 = arith.constant 0 : index
      %13 = vector.load %arg5[%c0_12, %c0_13] : memref<1x128xf32, #tpu.memory_space<vmem>>, vector<1x128xf32>
      %14 = vector.broadcast %13 : vector<1x128xf32> to vector<512x128xf32>
      %15 = arith.addf %12, %14 : vector<512x128xf32>
      %cst_14 = arith.constant 0.000000e+00 : f32
      %16 = vector.broadcast %cst_14 : f32 to vector<512x128xf32>
      %17 = arith.cmpf oge, %15, %16 : vector<512x128xf32>
      %c0_15 = arith.constant 0 : index
      %c0_16 = arith.constant 0 : index
      %18 = vector.load %arg6[%c0_15, %c0_16] : memref<1x128xf32, #tpu.memory_space<vmem>>, vector<1x128xf32>
      %19 = vector.broadcast %18 : vector<1x128xf32> to vector<512x128xf32>
      %20 = arith.mulf %19, %15 : vector<512x128xf32>
      %21 = arith.select %17, %15, %20 : vector<512x128xi1>, vector<512x128xf32>
      %22 = arith.truncf %21 : vector<512x128xf32> to vector<512x128xbf16>
      %c0_17 = arith.constant 0 : index
      %c0_18 = arith.constant 0 : index
      %23 = vector.load %arg7[%c0_17, %c0_18] : memref<512x128xbf16, #tpu.memory_space<vmem>>, vector<512x128xbf16>
      tpu.vector_store %arg7[%c0_17, %c0_18], %22 {strides = array<i32>} : memref<512x128xbf16, #tpu.memory_space<vmem>>, vector<512x128xbf16>,
    } else {
    }
    return
  }
  func.func @transform_0(%arg0: i32, %arg1: i32, %arg2: i32) -> (i32, i32) {
    %c0_i32 = arith.constant 0 : i32
    return %arg0, %arg2 : i32, i32
  }
  func.func @transform_1(%arg0: i32, %arg1: i32, %arg2: i32) -> (i32, i32) {
    %c0_i32 = arith.constant 0 : i32
    return %arg2, %arg1 : i32, i32
  }
  func.func @transform_2(%arg0: i32, %arg1: i32, %arg2: i32) -> (i32, i32) {
    %c0_i32 = arith.constant 0 : i32
    %c0_i32_0 = arith.constant 0 : i32
    return %c0_i32, %arg1 : i32, i32
  }
  func.func @transform_3(%arg0: i32, %arg1: i32, %arg2: i32) -> (i32, i32) {
    %c0_i32 = arith.constant 0 : i32
    %c0_i32_0 = arith.constant 0 : i32
    return %c0_i32, %arg1 : i32, i32
  }
  func.func @transform_4(%arg0: i32, %arg1: i32, %arg2: i32) -> (i32, i32) {
    %c0_i32 = arith.constant 0 : i32
    return %arg0, %arg1 : i32, i32
  }
}

module attributes {stable_mosaic.version = 11 : i64} {
  func.func @_gemm_bias_act_kernel(%arg0: i32, %arg1: i32, %arg2: i32, %arg3: memref<512x384xbf16, #tpu.memory_space<vmem>>, %arg4: memref<384x128xbf16, #tpu.memory_space<vmem>>, %arg5: memref<1x128xf32, #tpu.memory_space<vmem>>, %arg6: memref<1x128xf32, #tpu.memory_space<vmem>>, %arg7: memref<512x128xbf16, #tpu.memory_space<vmem>>, %arg8: memref<512x128xf32, #tpu.memory_space<vmem>>) attributes {dimension_semantics = [#tpu.dimension_semantics<parallel>, #tpu.dimension_semantics<parallel>, #tpu.dimension_semantics<arbitrary>], iteration_bounds = array<i64: 1, 1, 1>, scalar_prefetch = 0 : i64, scratch_operands = 1 : i64, tpu.core_type = #tpu.core_type<tc>, window_params = [{transform_indices = @transform_0, window_bounds = array<i64: 512, 384>}, {transform_indices = @transform_1, window_bounds = array<i64: 384, 128>}, {transform_indices = @transform_2, window_bounds = array<i64: 1, 128>}, {transform_indices = @transform_3, window_bounds = array<i64: 1, 128>}, {transform_indices = @transform_4, window_bounds = array<i64: 512, 128>}]} {
    %c0_i32 = arith.constant 0 : i32
    %0 = arith.cmpi eq, %arg2, %c0_i32 : i32
    %1 = arith.extui %0 : i1 to i32
    %c0_i32_0 = arith.constant 0 : i32
    %2 = arith.cmpi ne, %1, %c0_i32_0 : i32
    scf.if %2 {
      %cst_10 = arith.constant 0.000000e+00 : f32
      %12 = vector.broadcast %cst_10 : f32 to vector<512x128xf32>
      %c0_11 = arith.constant 0 : index
      %c0_12 = arith.constant 0 : index
      %13 = vector.load %arg8[%c0_11, %c0_12] : memref<512x128xf32, #tpu.memory_space<vmem>>, vector<512x128xf32>
      tpu.vector_store %arg8[%c0_11, %c0_12], %12 {strides = array<i32>} : memref<512x128xf32, #tpu.memory_space<vmem>>, vector<512x128xf32>,
    } else {
    }
    %c0 = arith.constant 0 : index
    %c0_1 = arith.constant 0 : index
    %3 = vector.load %arg8[%c0, %c0_1] : memref<512x128xf32, #tpu.memory_space<vmem>>, vector<512x128xf32>
    %c0_2 = arith.constant 0 : index
    %c0_3 = arith.constant 0 : index
    %4 = vector.load %arg3[%c0_2, %c0_3] : memref<512x384xbf16, #tpu.memory_space<vmem>>, vector<512x384xbf16>
    %c0_4 = arith.constant 0 : index
    %c0_5 = arith.constant 0 : index
    %5 = vector.load %arg4[%c0_4, %c0_5] : memref<384x128xbf16, #tpu.memory_space<vmem>>, vector<384x128xbf16>
    %cst = arith.constant dense<0.000000e+00> : vector<512x128xf32>
    %6 = tpu.matmul %4, %5, %cst {dimension_numbers = #tpu.dot_dimension_numbers<[1], [0], [0], [1], [0, 0, 1, 1], [], []>} : vector<512x384xbf16>, vector<384x128xbf16>, vector<512x128xf32> -> vector<512x128xf32>
    %7 = arith.addf %3, %6 : vector<512x128xf32>
    %c0_6 = arith.constant 0 : index
    %c0_7 = arith.constant 0 : index
    %8 = vector.load %arg8[%c0_6, %c0_7] : memref<512x128xf32, #tpu.memory_space<vmem>>, vector<512x128xf32>
    tpu.vector_store %arg8[%c0_6, %c0_7], %7 {strides = array<i32>} : memref<512x128xf32, #tpu.memory_space<vmem>>, vector<512x128xf32>,
    %c0_i32_8 = arith.constant 0 : i32
    %9 = arith.cmpi eq, %arg2, %c0_i32_8 : i32
    %10 = arith.extui %9 : i1 to i32
    %c0_i32_9 = arith.constant 0 : i32
    %11 = arith.cmpi ne, %10, %c0_i32_9 : i32
    scf.if %11 {
      %c0_10 = arith.constant 0 : index
      %c0_11 = arith.constant 0 : index
      %12 = vector.load %arg8[%c0_10, %c0_11] : memref<512x128xf32, #tpu.memory_space<vmem>>, vector<512x128xf32>
      %c0_12 = arith.constant 0 : index
      %c0_13 = arith.constant 0 : index
      %13 = vector.load %arg5[%c0_12, %c0_13] : memref<1x128xf32, #tpu.memory_space<vmem>>, vector<1x128xf32>
      %14 = vector.broadcast %13 : vector<1x128xf32> to vector<512x128xf32>
      %15 = arith.addf %12, %14 : vector<512x128xf32>
      %cst_14 = arith.constant 0.000000e+00 : f32
      %16 = vector.broadcast %cst_14 : f32 to vector<512x128xf32>
      %17 = arith.cmpf oge, %15, %16 : vector<512x128xf32>
      %c0_15 = arith.constant 0 : index
      %c0_16 = arith.constant 0 : index
      %18 = vector.load %arg6[%c0_15, %c0_16] : memref<1x128xf32, #tpu.memory_space<vmem>>, vector<1x128xf32>
      %19 = vector.broadcast %18 : vector<1x128xf32> to vector<512x128xf32>
      %20 = arith.mulf %19, %15 : vector<512x128xf32>
      %21 = arith.select %17, %15, %20 : vector<512x128xi1>, vector<512x128xf32>
      %22 = arith.truncf %21 : vector<512x128xf32> to vector<512x128xbf16>
      %c0_17 = arith.constant 0 : index
      %c0_18 = arith.constant 0 : index
      %23 = vector.load %arg7[%c0_17, %c0_18] : memref<512x128xbf16, #tpu.memory_space<vmem>>, vector<512x128xbf16>
      tpu.vector_store %arg7[%c0_17, %c0_18], %22 {strides = array<i32>} : memref<512x128xbf16, #tpu.memory_space<vmem>>, vector<512x128xbf16>,
    } else {
    }
    return
  }
  func.func @transform_0(%arg0: i32, %arg1: i32, %arg2: i32) -> (i32, i32) {
    %c0_i32 = arith.constant 0 : i32
    return %arg0, %arg2 : i32, i32
  }
  func.func @transform_1(%arg0: i32, %arg1: i32, %arg2: i32) -> (i32, i32) {
    %c0_i32 = arith.constant 0 : i32
    return %arg2, %arg1 : i32, i32
  }
  func.func @transform_2(%arg0: i32, %arg1: i32, %arg2: i32) -> (i32, i32) {
    %c0_i32 = arith.constant 0 : i32
    %c0_i32_0 = arith.constant 0 : i32
    return %c0_i32, %arg1 : i32, i32
  }
  func.func @transform_3(%arg0: i32, %arg1: i32, %arg2: i32) -> (i32, i32) {
    %c0_i32 = arith.constant 0 : i32
    %c0_i32_0 = arith.constant 0 : i32
    return %c0_i32, %arg1 : i32, i32
  }
  func.func @transform_4(%arg0: i32, %arg1: i32, %arg2: i32) -> (i32, i32) {
    %c0_i32 = arith.constant 0 : i32
    return %arg0, %arg1 : i32, i32
  }
}

module attributes {stable_mosaic.version = 11 : i64} {
  func.func @_gemm_bias_act_kernel(%arg0: i32, %arg1: i32, %arg2: i32, %arg3: memref<512x256xbf16, #tpu.memory_space<vmem>>, %arg4: memref<256x128xbf16, #tpu.memory_space<vmem>>, %arg5: memref<1x128xf32, #tpu.memory_space<vmem>>, %arg6: memref<1x128xf32, #tpu.memory_space<vmem>>, %arg7: memref<512x128xbf16, #tpu.memory_space<vmem>>, %arg8: memref<512x128xf32, #tpu.memory_space<vmem>>) attributes {dimension_semantics = [#tpu.dimension_semantics<parallel>, #tpu.dimension_semantics<parallel>, #tpu.dimension_semantics<arbitrary>], iteration_bounds = array<i64: 1, 1, 1>, scalar_prefetch = 0 : i64, scratch_operands = 1 : i64, tpu.core_type = #tpu.core_type<tc>, window_params = [{transform_indices = @transform_0, window_bounds = array<i64: 512, 256>}, {transform_indices = @transform_1, window_bounds = array<i64: 256, 128>}, {transform_indices = @transform_2, window_bounds = array<i64: 1, 128>}, {transform_indices = @transform_3, window_bounds = array<i64: 1, 128>}, {transform_indices = @transform_4, window_bounds = array<i64: 512, 128>}]} {
    %c0_i32 = arith.constant 0 : i32
    %0 = arith.cmpi eq, %arg2, %c0_i32 : i32
    %1 = arith.extui %0 : i1 to i32
    %c0_i32_0 = arith.constant 0 : i32
    %2 = arith.cmpi ne, %1, %c0_i32_0 : i32
    scf.if %2 {
      %cst_10 = arith.constant 0.000000e+00 : f32
      %12 = vector.broadcast %cst_10 : f32 to vector<512x128xf32>
      %c0_11 = arith.constant 0 : index
      %c0_12 = arith.constant 0 : index
      %13 = vector.load %arg8[%c0_11, %c0_12] : memref<512x128xf32, #tpu.memory_space<vmem>>, vector<512x128xf32>
      tpu.vector_store %arg8[%c0_11, %c0_12], %12 {strides = array<i32>} : memref<512x128xf32, #tpu.memory_space<vmem>>, vector<512x128xf32>,
    } else {
    }
    %c0 = arith.constant 0 : index
    %c0_1 = arith.constant 0 : index
    %3 = vector.load %arg8[%c0, %c0_1] : memref<512x128xf32, #tpu.memory_space<vmem>>, vector<512x128xf32>
    %c0_2 = arith.constant 0 : index
    %c0_3 = arith.constant 0 : index
    %4 = vector.load %arg3[%c0_2, %c0_3] : memref<512x256xbf16, #tpu.memory_space<vmem>>, vector<512x256xbf16>
    %c0_4 = arith.constant 0 : index
    %c0_5 = arith.constant 0 : index
    %5 = vector.load %arg4[%c0_4, %c0_5] : memref<256x128xbf16, #tpu.memory_space<vmem>>, vector<256x128xbf16>
    %cst = arith.constant dense<0.000000e+00> : vector<512x128xf32>
    %6 = tpu.matmul %4, %5, %cst {dimension_numbers = #tpu.dot_dimension_numbers<[1], [0], [0], [1], [0, 0, 1, 1], [], []>} : vector<512x256xbf16>, vector<256x128xbf16>, vector<512x128xf32> -> vector<512x128xf32>
    %7 = arith.addf %3, %6 : vector<512x128xf32>
    %c0_6 = arith.constant 0 : index
    %c0_7 = arith.constant 0 : index
    %8 = vector.load %arg8[%c0_6, %c0_7] : memref<512x128xf32, #tpu.memory_space<vmem>>, vector<512x128xf32>
    tpu.vector_store %arg8[%c0_6, %c0_7], %7 {strides = array<i32>} : memref<512x128xf32, #tpu.memory_space<vmem>>, vector<512x128xf32>,
    %c0_i32_8 = arith.constant 0 : i32
    %9 = arith.cmpi eq, %arg2, %c0_i32_8 : i32
    %10 = arith.extui %9 : i1 to i32
    %c0_i32_9 = arith.constant 0 : i32
    %11 = arith.cmpi ne, %10, %c0_i32_9 : i32
    scf.if %11 {
      %c0_10 = arith.constant 0 : index
      %c0_11 = arith.constant 0 : index
      %12 = vector.load %arg8[%c0_10, %c0_11] : memref<512x128xf32, #tpu.memory_space<vmem>>, vector<512x128xf32>
      %c0_12 = arith.constant 0 : index
      %c0_13 = arith.constant 0 : index
      %13 = vector.load %arg5[%c0_12, %c0_13] : memref<1x128xf32, #tpu.memory_space<vmem>>, vector<1x128xf32>
      %14 = vector.broadcast %13 : vector<1x128xf32> to vector<512x128xf32>
      %15 = arith.addf %12, %14 : vector<512x128xf32>
      %cst_14 = arith.constant 0.000000e+00 : f32
      %16 = vector.broadcast %cst_14 : f32 to vector<512x128xf32>
      %17 = arith.cmpf oge, %15, %16 : vector<512x128xf32>
      %c0_15 = arith.constant 0 : index
      %c0_16 = arith.constant 0 : index
      %18 = vector.load %arg6[%c0_15, %c0_16] : memref<1x128xf32, #tpu.memory_space<vmem>>, vector<1x128xf32>
      %19 = vector.broadcast %18 : vector<1x128xf32> to vector<512x128xf32>
      %20 = arith.mulf %19, %15 : vector<512x128xf32>
      %21 = arith.select %17, %15, %20 : vector<512x128xi1>, vector<512x128xf32>
      %22 = arith.truncf %21 : vector<512x128xf32> to vector<512x128xbf16>
      %c0_17 = arith.constant 0 : index
      %c0_18 = arith.constant 0 : index
      %23 = vector.load %arg7[%c0_17, %c0_18] : memref<512x128xbf16, #tpu.memory_space<vmem>>, vector<512x128xbf16>
      tpu.vector_store %arg7[%c0_17, %c0_18], %22 {strides = array<i32>} : memref<512x128xbf16, #tpu.memory_space<vmem>>, vector<512x128xbf16>,
    } else {
    }
    return
  }
  func.func @transform_0(%arg0: i32, %arg1: i32, %arg2: i32) -> (i32, i32) {
    %c0_i32 = arith.constant 0 : i32
    return %arg0, %arg2 : i32, i32
  }
  func.func @transform_1(%arg0: i32, %arg1: i32, %arg2: i32) -> (i32, i32) {
    %c0_i32 = arith.constant 0 : i32
    return %arg2, %arg1 : i32, i32
  }
  func.func @transform_2(%arg0: i32, %arg1: i32, %arg2: i32) -> (i32, i32) {
    %c0_i32 = arith.constant 0 : i32
    %c0_i32_0 = arith.constant 0 : i32
    return %c0_i32, %arg1 : i32, i32
  }
  func.func @transform_3(%arg0: i32, %arg1: i32, %arg2: i32) -> (i32, i32) {
    %c0_i32 = arith.constant 0 : i32
    %c0_i32_0 = arith.constant 0 : i32
    return %c0_i32, %arg1 : i32, i32
  }
  func.func @transform_4(%arg0: i32, %arg1: i32, %arg2: i32) -> (i32, i32) {
    %c0_i32 = arith.constant 0 : i32
    return %arg0, %arg1 : i32, i32
  }
}

module attributes {stable_mosaic.version = 11 : i64} {
  func.func @_gemm_bias_act_kernel(%arg0: i32, %arg1: i32, %arg2: i32, %arg3: memref<512x256xbf16, #tpu.memory_space<vmem>>, %arg4: memref<256x128xbf16, #tpu.memory_space<vmem>>, %arg5: memref<1x128xf32, #tpu.memory_space<vmem>>, %arg6: memref<1x128xf32, #tpu.memory_space<vmem>>, %arg7: memref<512x128xbf16, #tpu.memory_space<vmem>>, %arg8: memref<512x128xf32, #tpu.memory_space<vmem>>) attributes {dimension_semantics = [#tpu.dimension_semantics<parallel>, #tpu.dimension_semantics<parallel>, #tpu.dimension_semantics<arbitrary>], iteration_bounds = array<i64: 1, 1, 1>, scalar_prefetch = 0 : i64, scratch_operands = 1 : i64, tpu.core_type = #tpu.core_type<tc>, window_params = [{transform_indices = @transform_0, window_bounds = array<i64: 512, 256>}, {transform_indices = @transform_1, window_bounds = array<i64: 256, 128>}, {transform_indices = @transform_2, window_bounds = array<i64: 1, 128>}, {transform_indices = @transform_3, window_bounds = array<i64: 1, 128>}, {transform_indices = @transform_4, window_bounds = array<i64: 512, 128>}]} {
    %c0_i32 = arith.constant 0 : i32
    %0 = arith.cmpi eq, %arg2, %c0_i32 : i32
    %1 = arith.extui %0 : i1 to i32
    %c0_i32_0 = arith.constant 0 : i32
    %2 = arith.cmpi ne, %1, %c0_i32_0 : i32
    scf.if %2 {
      %cst_10 = arith.constant 0.000000e+00 : f32
      %12 = vector.broadcast %cst_10 : f32 to vector<512x128xf32>
      %c0_11 = arith.constant 0 : index
      %c0_12 = arith.constant 0 : index
      %13 = vector.load %arg8[%c0_11, %c0_12] : memref<512x128xf32, #tpu.memory_space<vmem>>, vector<512x128xf32>
      tpu.vector_store %arg8[%c0_11, %c0_12], %12 {strides = array<i32>} : memref<512x128xf32, #tpu.memory_space<vmem>>, vector<512x128xf32>,
    } else {
    }
    %c0 = arith.constant 0 : index
    %c0_1 = arith.constant 0 : index
    %3 = vector.load %arg8[%c0, %c0_1] : memref<512x128xf32, #tpu.memory_space<vmem>>, vector<512x128xf32>
    %c0_2 = arith.constant 0 : index
    %c0_3 = arith.constant 0 : index
    %4 = vector.load %arg3[%c0_2, %c0_3] : memref<512x256xbf16, #tpu.memory_space<vmem>>, vector<512x256xbf16>
    %c0_4 = arith.constant 0 : index
    %c0_5 = arith.constant 0 : index
    %5 = vector.load %arg4[%c0_4, %c0_5] : memref<256x128xbf16, #tpu.memory_space<vmem>>, vector<256x128xbf16>
    %cst = arith.constant dense<0.000000e+00> : vector<512x128xf32>
    %6 = tpu.matmul %4, %5, %cst {dimension_numbers = #tpu.dot_dimension_numbers<[1], [0], [0], [1], [0, 0, 1, 1], [], []>} : vector<512x256xbf16>, vector<256x128xbf16>, vector<512x128xf32> -> vector<512x128xf32>
    %7 = arith.addf %3, %6 : vector<512x128xf32>
    %c0_6 = arith.constant 0 : index
    %c0_7 = arith.constant 0 : index
    %8 = vector.load %arg8[%c0_6, %c0_7] : memref<512x128xf32, #tpu.memory_space<vmem>>, vector<512x128xf32>
    tpu.vector_store %arg8[%c0_6, %c0_7], %7 {strides = array<i32>} : memref<512x128xf32, #tpu.memory_space<vmem>>, vector<512x128xf32>,
    %c0_i32_8 = arith.constant 0 : i32
    %9 = arith.cmpi eq, %arg2, %c0_i32_8 : i32
    %10 = arith.extui %9 : i1 to i32
    %c0_i32_9 = arith.constant 0 : i32
    %11 = arith.cmpi ne, %10, %c0_i32_9 : i32
    scf.if %11 {
      %c0_10 = arith.constant 0 : index
      %c0_11 = arith.constant 0 : index
      %12 = vector.load %arg8[%c0_10, %c0_11] : memref<512x128xf32, #tpu.memory_space<vmem>>, vector<512x128xf32>
      %c0_12 = arith.constant 0 : index
      %c0_13 = arith.constant 0 : index
      %13 = vector.load %arg5[%c0_12, %c0_13] : memref<1x128xf32, #tpu.memory_space<vmem>>, vector<1x128xf32>
      %14 = vector.broadcast %13 : vector<1x128xf32> to vector<512x128xf32>
      %15 = arith.addf %12, %14 : vector<512x128xf32>
      %16 = arith.truncf %15 : vector<512x128xf32> to vector<512x128xbf16>
      %c0_14 = arith.constant 0 : index
      %c0_15 = arith.constant 0 : index
      %17 = vector.load %arg7[%c0_14, %c0_15] : memref<512x128xbf16, #tpu.memory_space<vmem>>, vector<512x128xbf16>
      tpu.vector_store %arg7[%c0_14, %c0_15], %16 {strides = array<i32>} : memref<512x128xbf16, #tpu.memory_space<vmem>>, vector<512x128xbf16>,
    } else {
    }
    return
  }
  func.func @transform_0(%arg0: i32, %arg1: i32, %arg2: i32) -> (i32, i32) {
    %c0_i32 = arith.constant 0 : i32
    return %arg0, %arg2 : i32, i32
  }
  func.func @transform_1(%arg0: i32, %arg1: i32, %arg2: i32) -> (i32, i32) {
    %c0_i32 = arith.constant 0 : i32
    return %arg2, %arg1 : i32, i32
  }
  func.func @transform_2(%arg0: i32, %arg1: i32, %arg2: i32) -> (i32, i32) {
    %c0_i32 = arith.constant 0 : i32
    %c0_i32_0 = arith.constant 0 : i32
    return %c0_i32, %arg1 : i32, i32
  }
  func.func @transform_3(%arg0: i32, %arg1: i32, %arg2: i32) -> (i32, i32) {
    %c0_i32 = arith.constant 0 : i32
    %c0_i32_0 = arith.constant 0 : i32
    return %c0_i32, %arg1 : i32, i32
  }
  func.func @transform_4(%arg0: i32, %arg1: i32, %arg2: i32) -> (i32, i32) {
    %c0_i32 = arith.constant 0 : i32
    return %arg0, %arg1 : i32, i32
  }
}

</mosaic_0001>

<bundles_post_ra>
// kernel: vxm_dense_forward.13
= control target key start
LH: loop header
LB: loop body
LE: loop exit
PB: predicated region body
PF: predicated region fallthrough
CT: control target
= control target key end

     0   :  { %s931_s1 = inlined_call_operand.vmem [shape: bf16[256,128], index: 1, kind: input, shape index: {}]   ;;  %s932_s3 = inlined_call_operand.vmem [shape: f32[1,128], index: 3, kind: input, shape index: {}]   ;;  %s933_s0 = inlined_call_operand.vmem [shape: bf16[128,256], index: 0, kind: input, shape index: {}]   ;;  %s934_s2 = inlined_call_operand.vmem [shape: f32[1,128], index: 2, kind: input, shape index: {}]   ;;  %s935_s4 = inlined_call_operand.vmem [shape: bf16[128,128], index: 4, kind: output, shape index: {}]  }
   0x1   :  { %v725_v0 = vld [vmem:[%s931_s1 + $0x40] sm:$0xff]   ;;  %v727_v2 = vld [vmem:[%s931_s1 + $0x48] sm:$0xff]   ;;  %v729_v4 = vld [vmem:[%s931_s1 + $0x50] sm:$0xff]  }
   0x2   :  { %v726_v1 = vld [vmem:[%s931_s1] sm:$0xff]   ;;  %645 = vmatprep.subr.bf16.mxu0 %v725_v0  ;;  %709 = vmatprep.subr.bf16.mxu1 %v725_v0  ;;  %v728_v3 = vld [vmem:[%s931_s1 + $0x8] sm:$0xff]   ;;  %v730_v5 = vld [vmem:[%s931_s1 + $0x10] sm:$0xff]  }
   0x3   :  { %646 = vmatpush3.bf16.msra.mxu0 %v726_v1  ;;  %717 = vmatpush3.bf16.msra.mxu1 %v726_v1  ;;  %v731_v6 = vld [vmem:[%s931_s1 + $0x58] sm:$0xff]   ;;  %v733_v8 = vld [vmem:[%s931_s1 + $0x60] sm:$0xff]   ;;  %v735_v10 = vld [vmem:[%s931_s1 + $0x68] sm:$0xff]  }
   0x4   :  { %647 = vmatprep.subr.bf16.mxu0 %v727_v2  ;;  %710 = vmatprep.subr.bf16.mxu1 %v727_v2  ;;  %v732_v7 = vld [vmem:[%s931_s1 + $0x18] sm:$0xff]   ;;  %v734_v9 = vld [vmem:[%s931_s1 + $0x20] sm:$0xff]   ;;  %v736_v13 = vld [vmem:[%s931_s1 + $0x28] sm:$0xff]  }
   0x5   :  { %v743_v11 = vld [vmem:[%s933_s0 + $0x4] ss:$8 sps:$4 sm:$0xff]   ;;  %v737_v14 = vld [vmem:[%s931_s1 + $0x70] sm:$0xff]   ;;  %v739_v16 = vld [vmem:[%s931_s1 + $0x78] sm:$0xff]  }
   0x6   :  { %v746_v12 = vld [vmem:[%s933_s0 + $0x44] ss:$8 sps:$4 sm:$0xff]   ;;  %310 = vmatprep.mubr.bf16.mxu0 %v743_v11  ;;  %v738_v15 = vld [vmem:[%s931_s1 + $0x30] sm:$0xff]   ;;  %v740_v17 = vld [vmem:[%s931_s1 + $0x38] sm:$0xff]  }
   0x7   :  { %648 = vmatpush3.bf16.msra.mxu0 %v728_v3  ;;  %718 = vmatpush3.bf16.msra.mxu1 %v728_v3  ;;  %v741_v18 = vld [vmem:[%s933_s0] ss:$8 sps:$4 sm:$0xff]   ;;  %v747_v20 = vld [vmem:[%s933_s0 + $0x14] ss:$8 sps:$4 sm:$0xff]   ;;  %v751_v22 = vld [vmem:[%s933_s0 + $0x10] ss:$8 sps:$4 sm:$0xff]  }
   0x8   :  { %649 = vmatprep.subr.bf16.mxu0 %v729_v4  ;;  %711 = vmatprep.subr.bf16.mxu1 %v729_v4  ;;  %v744_v19 = vld [vmem:[%s933_s0 + $0x40] ss:$8 sps:$4 sm:$0xff]   ;;  %v749_v21 = vld [vmem:[%s933_s0 + $0x54] ss:$8 sps:$4 sm:$0xff]   ;;  %v752_v23 = vld [vmem:[%s933_s0 + $0x50] ss:$8 sps:$4 sm:$0xff]  }
   0x9   :  { %342 = vmatprep.mubr.bf16.mxu1 %v746_v12  ;;  %v753_v24 = vld [vmem:[%s933_s0 + $0x24] ss:$8 sps:$4 sm:$0xff]   ;;  %v757_v26 = vld [vmem:[%s933_s0 + $0x20] ss:$8 sps:$4 sm:$0xff]   ;;  %v759_v28 = vld [vmem:[%s933_s0 + $0x34] ss:$8 sps:$4 sm:$0xff]  }
   0xa   :  { %v755_v25 = vld [vmem:[%s933_s0 + $0x64] ss:$8 sps:$4 sm:$0xff]   ;;  %v758_v27 = vld [vmem:[%s933_s0 + $0x60] ss:$8 sps:$4 sm:$0xff]   ;;  %v761_v29 = vld [vmem:[%s933_s0 + $0x74] ss:$8 sps:$4 sm:$0xff]  }
   0xb   :  { %650 = vmatpush3.bf16.msra.mxu0 %v730_v5  ;;  %719 = vmatpush3.bf16.msra.mxu1 %v730_v5  ;;  %v763_v30 = vld [vmem:[%s933_s0 + $0x30] ss:$8 sps:$4 sm:$0xff]   ;;  %v889_v40 = vld [vmem:[%s934_s2] ss:$0 sm:$0xff] }
   0xc   :  { %651 = vmatprep.subr.bf16.mxu0 %v731_v6  ;;  %712 = vmatprep.subr.bf16.mxu1 %v731_v6  ;;  %v764_v31 = vld [vmem:[%s933_s0 + $0x70] ss:$8 sps:$4 sm:$0xff]  }
   0xf   :  { %652 = vmatpush3.bf16.msra.mxu0 %v732_v7  ;;  %720 = vmatpush3.bf16.msra.mxu1 %v732_v7 }
  0x10   :  { %653 = vmatprep.subr.bf16.mxu0 %v733_v8  ;;  %713 = vmatprep.subr.bf16.mxu1 %v733_v8 }
  0x13   :  { %654 = vmatpush3.bf16.msra.mxu0 %v734_v9  ;;  %721 = vmatpush3.bf16.msra.mxu1 %v734_v9 }
  0x14   :  { %655 = vmatprep.subr.bf16.mxu0 %v735_v10  ;;  %714 = vmatprep.subr.bf16.mxu1 %v735_v10 }
  0x17   :  { %656 = vmatpush3.bf16.msra.mxu0 %v736_v13  ;;  %722 = vmatpush3.bf16.msra.mxu1 %v736_v13 }
  0x18   :  { %657 = vmatprep.subr.bf16.mxu0 %v737_v14  ;;  %715 = vmatprep.subr.bf16.mxu1 %v737_v14 }
  0x1b   :  { %658 = vmatpush3.bf16.msra.mxu0 %v738_v15  ;;  %723 = vmatpush3.bf16.msra.mxu1 %v738_v15 }
  0x1c   :  { %659 = vmatprep.subr.bf16.mxu0 %v739_v16  ;;  %716 = vmatprep.subr.bf16.mxu1 %v739_v16 }
  0x1f   :  { %660 = vmatpush3.bf16.msra.mxu0 %v740_v17  ;;  %724 = vmatpush3.bf16.msra.mxu1 %v740_v17 }
  0x22   :  { %311 = vmatmul.mubr.bf16.vlgmr.msra.gmra.mrb[0].mxu0 %v741_v18  ;;  %343 = vmatmul.mubr.bf16.vlgmr.msra.gmra.mrb[0].mxu1 %v744_v19 }
  0x23   :  { %318 = vmatprep.mubr.bf16.mxu0 %v747_v20  ;;  %350 = vmatprep.mubr.bf16.mxu1 %v749_v21 }
  0x2a   :  { %319 = vmatmul.mubr.bf16.gmra.mrb[4].mxu0 %v751_v22  ;;  %351 = vmatmul.mubr.bf16.gmra.mrb[4].mxu1 %v752_v23 }
  0x2b   :  { %326 = vmatprep.mubr.bf16.mxu0 %v753_v24  ;;  %358 = vmatprep.mubr.bf16.mxu1 %v755_v25 }
  0x32   :  { %327 = vmatmul.mubr.bf16.gmra.mrb[8].mxu0 %v757_v26  ;;  %359 = vmatmul.mubr.bf16.gmra.mrb[8].mxu1 %v758_v27 }
  0x33   :  { %334 = vmatprep.mubr.bf16.mxu0 %v759_v28  ;;  %366 = vmatprep.mubr.bf16.mxu1 %v761_v29 }
  0x3a   :  { %335 = vmatmul.mubr.bf16.gmra.mrb[12].mxu0 %v763_v30  ;;  %367 = vmatmul.mubr.bf16.gmra.mrb[12].mxu1 %v764_v31 }
  0xf5   :  { %v661_v32 = vpop.f32.mrb[0].mxu0  ;;  %v685_v33 = vpop.f32.mrb[0].mxu1 }
  0xf6   :  { %v662_v34 = vpop.f32.mrb[1].mxu0  ;;  %v686_v35 = vpop.f32.mrb[1].mxu1 }
  0xf7   :  { %v663_v36 = vadd.f32 %v662_v34, %v661_v32  ;;  %v687_v37 = vadd.f32 %v686_v35, %v685_v33  ;;  %v664_v38 = vpop.f32.mrb[2].mxu0  ;;  %v688_v39 = vpop.f32.mrb[2].mxu1 }
  0xf8   :  { %v665_v41 = vpop.f32.mrb[3].mxu0  ;;  %v689_v42 = vpop.f32.mrb[3].mxu1 }
  0xf9   :  { %v666_v43 = vadd.f32 %v665_v41, %v664_v38  ;;  %v690_v44 = vadd.f32 %v689_v42, %v688_v39  ;;  %v433_v45 = vadd.f32 %v663_v36, %v889_v40  ;;  %v441_v46 = vadd.f32 %v687_v37, %v889_v40 }
  0xfb   :  { %v434_v47 = vadd.f32 %v666_v43, %v889_v40  ;;  %v442_v48 = vadd.f32 %v690_v44, %v889_v40 }
  0xfd   :  { %v601_v49 = vpack.c.bf16 %v434_v47, %v433_v45  ;;  %v621_v50 = vpack.c.bf16 %v442_v48, %v441_v46  ;;  %v667_v51 = vpop.f32.mrb[4].mxu0  ;;  %v691_v52 = vpop.f32.mrb[4].mxu1 }
  0xfe   :  { %v668_v53 = vpop.f32.mrb[5].mxu0  ;;  %v692_v54 = vpop.f32.mrb[5].mxu1 }
  0xff   :  { %602 = vst [vmem:[%s935_s4] sm:$0xff] %v601_v49   ;;  %641 = vst [vmem:[%s935_s4 + $0x20] sm:$0xff] %v621_v50   ;;  %v669_v55 = vadd.f32 %v668_v53, %v667_v51  ;;  %v693_v56 = vadd.f32 %v692_v54, %v691_v52  ;;  %v670_v57 = vpop.f32.mrb[6].mxu0  ;;  %v694_v58 = vpop.f32.mrb[6].mxu1 }
 0x100   :  { %v671_v59 = vpop.f32.mrb[7].mxu0  ;;  %v695_v60 = vpop.f32.mrb[7].mxu1 }
 0x101   :  { %v672_v61 = vadd.f32 %v671_v59, %v670_v57  ;;  %v696_v62 = vadd.f32 %v695_v60, %v694_v58  ;;  %v435_v63 = vadd.f32 %v669_v55, %v889_v40  ;;  %v443_v0 = vadd.f32 %v693_v56, %v889_v40 }
 0x103   :  { %v436_v1 = vadd.f32 %v672_v61, %v889_v40  ;;  %v444_v2 = vadd.f32 %v696_v62, %v889_v40 }
 0x105   :  { %v606_v3 = vpack.c.bf16 %v436_v1, %v435_v63  ;;  %v626_v4 = vpack.c.bf16 %v444_v2, %v443_v0  ;;  %v673_v5 = vpop.f32.mrb[8].mxu0  ;;  %v697_v6 = vpop.f32.mrb[8].mxu1 }
 0x106   :  { %v674_v7 = vpop.f32.mrb[9].mxu0  ;;  %v698_v8 = vpop.f32.mrb[9].mxu1 }
 0x107   :  { %638 = vst [vmem:[%s935_s4 + $0x8] sm:$0xff] %v606_v3   ;;  %642 = vst [vmem:[%s935_s4 + $0x28] sm:$0xff] %v626_v4   ;;  %v675_v9 = vadd.f32 %v674_v7, %v673_v5  ;;  %v699_v10 = vadd.f32 %v698_v8, %v697_v6  ;;  %v676_v11 = vpop.f32.mrb[10].mxu0  ;;  %v700_v12 = vpop.f32.mrb[10].mxu1 }
 0x108   :  { %v677_v13 = vpop.f32.mrb[11].mxu0  ;;  %v701_v14 = vpop.f32.mrb[11].mxu1 }
 0x109   :  { %v678_v15 = vadd.f32 %v677_v13, %v676_v11  ;;  %v702_v16 = vadd.f32 %v701_v14, %v700_v12  ;;  %v437_v17 = vadd.f32 %v675_v9, %v889_v40  ;;  %v445_v18 = vadd.f32 %v699_v10, %v889_v40 }
 0x10b   :  { %v438_v19 = vadd.f32 %v678_v15, %v889_v40  ;;  %v446_v20 = vadd.f32 %v702_v16, %v889_v40 }
 0x10d   :  { %v611_v21 = vpack.c.bf16 %v438_v19, %v437_v17  ;;  %v631_v22 = vpack.c.bf16 %v446_v20, %v445_v18  ;;  %v679_v23 = vpop.f32.mrb[12].mxu0  ;;  %v703_v24 = vpop.f32.mrb[12].mxu1 }
 0x10e   :  { %v680_v25 = vpop.f32.mrb[13].mxu0  ;;  %v704_v26 = vpop.f32.mrb[13].mxu1 }
 0x10f   :  { %639 = vst [vmem:[%s935_s4 + $0x10] sm:$0xff] %v611_v21   ;;  %643 = vst [vmem:[%s935_s4 + $0x30] sm:$0xff] %v631_v22   ;;  %v681_v27 = vadd.f32 %v680_v25, %v679_v23  ;;  %v705_v28 = vadd.f32 %v704_v26, %v703_v24  ;;  %v682_v29 = vpop.f32.mrb[14].mxu0  ;;  %v706_v30 = vpop.f32.mrb[14].mxu1 }
 0x110   :  { %v683_v31 = vpop.f32.mrb[15].mxu0  ;;  %v707_v32 = vpop.f32.mrb[15].mxu1 }
 0x111   :  { %v684_v33 = vadd.f32 %v683_v31, %v682_v29  ;;  %v708_v34 = vadd.f32 %v707_v32, %v706_v30  ;;  %v439_v35 = vadd.f32 %v681_v27, %v889_v40  ;;  %v447_v36 = vadd.f32 %v705_v28, %v889_v40 }
 0x113   :  { %v440_v37 = vadd.f32 %v684_v33, %v889_v40  ;;  %v448_v38 = vadd.f32 %v708_v34, %v889_v40 }
 0x115   :  { %v616_v39 = vpack.c.bf16 %v440_v37, %v439_v35  ;;  %v636_v41 = vpack.c.bf16 %v448_v38, %v447_v36 }
 0x117   :  { %640 = vst [vmem:[%s935_s4 + $0x18] sm:$0xff] %v616_v39   ;;  %644 = vst [vmem:[%s935_s4 + $0x38] sm:$0xff] %v636_v41  }

// kernel: vxm_dense_forward.12
= control target key start
LH: loop header
LB: loop body
LE: loop exit
PB: predicated region body
PF: predicated region fallthrough
CT: control target
= control target key end

     0   :  { %s2467_s1 = inlined_call_operand.vmem [shape: bf16[128,128], index: 1, kind: input, shape index: {}]   ;;  %s2468_s0 = inlined_call_operand.vmem [shape: bf16[512,128], index: 0, kind: input, shape index: {}]   ;;  %s2469_s2 = inlined_call_operand.vmem [shape: f32[1,128], index: 2, kind: input, shape index: {}]   ;;  %s2470_s3 = inlined_call_operand.vmem [shape: f32[1,128], index: 3, kind: input, shape index: {}]   ;;  %s2471_s4 = inlined_call_operand.vmem [shape: bf16[512,128], index: 4, kind: output, shape index: {}]  }
   0x1   :  { %v2045_v0 = vld [vmem:[%s2467_s1] sm:$0xff]   ;;  %v2046_v1 = vld [vmem:[%s2467_s1 + $0x8] sm:$0xff]   ;;  %v2047_v2 = vld [vmem:[%s2467_s1 + $0x10] sm:$0xff]  }
   0x2   :  { %1949 = vmatprep.subr.bf16.mxu0 %v2045_v0  ;;  %2029 = vmatprep.subr.bf16.mxu1 %v2045_v0  ;;  %v2048_v3 = vld [vmem:[%s2467_s1 + $0x18] sm:$0xff]   ;;  %v2053_v4 = vld [vmem:[%s2468_s0] sm:$0xff]   ;;  %v2050_v7 = vld [vmem:[%s2467_s1 + $0x28] sm:$0xff]  }
   0x3   :  { %1950 = vmatpush3.bf16.msra.mxu0 %v2045_v0  ;;  %2037 = vmatpush3.bf16.msra.mxu1 %v2045_v0  ;;  %v2054_v5 = vld [vmem:[%s2468_s0 + $0x80] sm:$0xff]   ;;  %v2051_v8 = vld [vmem:[%s2467_s1 + $0x30] sm:$0xff]   ;;  %v2052_v9 = vld [vmem:[%s2467_s1 + $0x38] sm:$0xff]  }
   0x4   :  { %1951 = vmatprep.subr.bf16.mxu0 %v2046_v1  ;;  %2030 = vmatprep.subr.bf16.mxu1 %v2046_v1  ;;  %v2049_v6 = vld [vmem:[%s2467_s1 + $0x20] sm:$0xff]   ;;  %v2055_v10 = vld [vmem:[%s2468_s0 + $0x8] sm:$0xff]   ;;  %v2057_v12 = vld [vmem:[%s2468_s0 + $0x10] sm:$0xff]  }
   0x5   :  { %1965 = vmatprep.mubr.bf16.mxu0 %v2053_v4  ;;  %1997 = vmatprep.mubr.bf16.mxu1 %v2054_v5  ;;  %v2056_v11 = vld [vmem:[%s2468_s0 + $0x88] sm:$0xff]   ;;  %v2058_v13 = vld [vmem:[%s2468_s0 + $0x90] sm:$0xff]   ;;  %v2059_v14 = vld [vmem:[%s2468_s0 + $0x18] sm:$0xff]  }
   0x6   :  { %v2060_v15 = vld [vmem:[%s2468_s0 + $0x98] sm:$0xff]   ;;  %v2061_v16 = vld [vmem:[%s2468_s0 + $0x20] sm:$0xff]   ;;  %v2063_v18 = vld [vmem:[%s2468_s0 + $0x28] sm:$0xff]  }
   0x7   :  { %1952 = vmatpush3.bf16.msra.mxu0 %v2046_v1  ;;  %2038 = vmatpush3.bf16.msra.mxu1 %v2046_v1  ;;  %v2062_v17 = vld [vmem:[%s2468_s0 + $0xa0] sm:$0xff]   ;;  %v2064_v19 = vld [vmem:[%s2468_s0 + $0xa8] sm:$0xff]   ;;  %v2065_v20 = vld [vmem:[%s2468_s0 + $0x30] sm:$0xff]  }
   0x8   :  { %1953 = vmatprep.subr.bf16.mxu0 %v2047_v2  ;;  %2031 = vmatprep.subr.bf16.mxu1 %v2047_v2  ;;  %v2066_v21 = vld [vmem:[%s2468_s0 + $0xb0] sm:$0xff]   ;;  %v2067_v22 = vld [vmem:[%s2468_s0 + $0x38] sm:$0xff]   ;;  %v2069_v24 = vld [vmem:[%s2468_s0 + $0x40] sm:$0xff]  }
   0x9   :  { %v2068_v23 = vld [vmem:[%s2468_s0 + $0xb8] sm:$0xff]   ;;  %v2070_v25 = vld [vmem:[%s2468_s0 + $0xc0] sm:$0xff]   ;;  %v2071_v26 = vld [vmem:[%s2468_s0 + $0x48] sm:$0xff]  }
   0xa   :  { %v2072_v27 = vld [vmem:[%s2468_s0 + $0xc8] sm:$0xff]   ;;  %v2073_v28 = vld [vmem:[%s2468_s0 + $0x50] sm:$0xff]   ;;  %v2075_v30 = vld [vmem:[%s2468_s0 + $0x58] sm:$0xff]  }
   0xb   :  { %1954 = vmatpush3.bf16.msra.mxu0 %v2047_v2  ;;  %2039 = vmatpush3.bf16.msra.mxu1 %v2047_v2  ;;  %v2074_v29 = vld [vmem:[%s2468_s0 + $0xd0] sm:$0xff]   ;;  %v2076_v31 = vld [vmem:[%s2468_s0 + $0xd8] sm:$0xff]   ;;  %v2077_v32 = vld [vmem:[%s2468_s0 + $0x60] sm:$0xff]  }
   0xc   :  { %1955 = vmatprep.subr.bf16.mxu0 %v2048_v3  ;;  %2032 = vmatprep.subr.bf16.mxu1 %v2048_v3  ;;  %v2078_v33 = vld [vmem:[%s2468_s0 + $0xe0] sm:$0xff]   ;;  %v2079_v34 = vld [vmem:[%s2468_s0 + $0x68] sm:$0xff]   ;;  %v2081_v36 = vld [vmem:[%s2468_s0 + $0x70] sm:$0xff]  }
   0xd   :  { %v2080_v35 = vld [vmem:[%s2468_s0 + $0xe8] sm:$0xff]   ;;  %v2082_v37 = vld [vmem:[%s2468_s0 + $0xf0] sm:$0xff]   ;;  %v2083_v38 = vld [vmem:[%s2468_s0 + $0x78] sm:$0xff]  }
   0xe   :  { %v2084_v39 = vld [vmem:[%s2468_s0 + $0xf8] sm:$0xff]   ;;  %v2233_v40 = vld [vmem:[%s2469_s2] ss:$0 sm:$0xff] }
   0xf   :  { %1956 = vmatpush3.bf16.msra.mxu0 %v2048_v3  ;;  %2040 = vmatpush3.bf16.msra.mxu1 %v2048_v3  ;;  %v2238_v42 = vld [vmem:[%s2470_s3] ss:$0 sm:$0xff] }
  0x10   :  { %1957 = vmatprep.subr.bf16.mxu0 %v2049_v6  ;;  %2033 = vmatprep.subr.bf16.mxu1 %v2049_v6 }
  0x13   :  { %1958 = vmatpush3.bf16.msra.mxu0 %v2049_v6  ;;  %2041 = vmatpush3.bf16.msra.mxu1 %v2049_v6 }
  0x14   :  { %1959 = vmatprep.subr.bf16.mxu0 %v2050_v7  ;;  %2034 = vmatprep.subr.bf16.mxu1 %v2050_v7 }
  0x17   :  { %1960 = vmatpush3.bf16.msra.mxu0 %v2050_v7  ;;  %2042 = vmatpush3.bf16.msra.mxu1 %v2050_v7 }
  0x18   :  { %1961 = vmatprep.subr.bf16.mxu0 %v2051_v8  ;;  %2035 = vmatprep.subr.bf16.mxu1 %v2051_v8 }
  0x1b   :  { %1962 = vmatpush3.bf16.msra.mxu0 %v2051_v8  ;;  %2043 = vmatpush3.bf16.msra.mxu1 %v2051_v8 }
  0x1c   :  { %1963 = vmatprep.subr.bf16.mxu0 %v2052_v9  ;;  %2036 = vmatprep.subr.bf16.mxu1 %v2052_v9 }
  0x1f   :  { %1964 = vmatpush3.bf16.msra.mxu0 %v2052_v9  ;;  %2044 = vmatpush3.bf16.msra.mxu1 %v2052_v9 }
  0x22   :  { %1966 = vmatmul.mubr.bf16.vlgmr.msra.gmra.mrb[0].mxu0 %v2055_v10  ;;  %1998 = vmatmul.mubr.bf16.vlgmr.msra.gmra.mrb[0].mxu1 %v2056_v11 }
  0x23   :  { %1969 = vmatprep.mubr.bf16.mxu0 %v2057_v12  ;;  %2001 = vmatprep.mubr.bf16.mxu1 %v2058_v13 }
  0x2a   :  { %1970 = vmatmul.mubr.bf16.gmra.mrb[4].mxu0 %v2059_v14  ;;  %2002 = vmatmul.mubr.bf16.gmra.mrb[4].mxu1 %v2060_v15 }
  0x2b   :  { %1973 = vmatprep.mubr.bf16.mxu0 %v2061_v16  ;;  %2005 = vmatprep.mubr.bf16.mxu1 %v2062_v17 }
  0x32   :  { %1974 = vmatmul.mubr.bf16.gmra.mrb[8].mxu0 %v2063_v18  ;;  %2006 = vmatmul.mubr.bf16.gmra.mrb[8].mxu1 %v2064_v19 }
  0x33   :  { %1977 = vmatprep.mubr.bf16.mxu0 %v2065_v20  ;;  %2009 = vmatprep.mubr.bf16.mxu1 %v2066_v21 }
  0x3a   :  { %1978 = vmatmul.mubr.bf16.gmra.mrb[12].mxu0 %v2067_v22  ;;  %2010 = vmatmul.mubr.bf16.gmra.mrb[12].mxu1 %v2068_v23 }
  0x3b   :  { %1981 = vmatprep.mubr.bf16.mxu0 %v2069_v24  ;;  %2013 = vmatprep.mubr.bf16.mxu1 %v2070_v25 }
  0x42   :  { %1982 = vmatmul.mubr.bf16.gmra.mrb[16].mxu0 %v2071_v26  ;;  %2014 = vmatmul.mubr.bf16.gmra.mrb[16].mxu1 %v2072_v27 }
  0x43   :  { %1985 = vmatprep.mubr.bf16.mxu0 %v2073_v28  ;;  %2017 = vmatprep.mubr.bf16.mxu1 %v2074_v29 }
  0x4a   :  { %1986 = vmatmul.mubr.bf16.gmra.mrb[20].mxu0 %v2075_v30  ;;  %2018 = vmatmul.mubr.bf16.gmra.mrb[20].mxu1 %v2076_v31 }
  0x4b   :  { %1989 = vmatprep.mubr.bf16.mxu0 %v2077_v32  ;;  %2021 = vmatprep.mubr.bf16.mxu1 %v2078_v33 }
  0x52   :  { %1990 = vmatmul.mubr.bf16.gmra.mrb[24].mxu0 %v2079_v34  ;;  %2022 = vmatmul.mubr.bf16.gmra.mrb[24].mxu1 %v2080_v35 }
  0x53   :  { %1993 = vmatprep.mubr.bf16.mxu0 %v2081_v36  ;;  %2025 = vmatprep.mubr.bf16.mxu1 %v2082_v37 }
  0x5a   :  { %1994 = vmatmul.mubr.bf16.gmra.mrb[28].mxu0 %v2083_v38  ;;  %2026 = vmatmul.mubr.bf16.gmra.mrb[28].mxu1 %v2084_v39 }
  0xf5   :  { %v1967_v41 = vpop.f32.mrb[0].mxu0  ;;  %v1999_v43 = vpop.f32.mrb[0].mxu1 }
  0xf6   :  { %v963_v44 = vadd.f32 %v1967_v41, %v2233_v40  ;;  %v995_v45 = vadd.f32 %v1999_v43, %v2233_v40  ;;  %v504_v46 = vpop.f32.mrb[1].mxu0  ;;  %v632_v47 = vpop.f32.mrb[1].mxu1 }
  0xf7   :  { %v961_v48 = vadd.f32 %v2233_v40, %v504_v46  ;;  %v993_v49 = vadd.f32 %v2233_v40, %v632_v47  ;;  %v1968_v50 = vpop.f32.mrb[2].mxu0  ;;  %v2000_v51 = vpop.f32.mrb[2].mxu1 }
  0xf8   :  { %vm1027_vm0 = vcmp.ge.f32.partialorder %v963_v44, 0.0  ;;  %v1098_v52 = vmul.f32 %v2238_v42, %v963_v44  ;;  %vm1059_vm1 = vcmp.ge.f32.partialorder %v995_v45, 0.0  ;;  %v1130_v53 = vmul.f32 %v2238_v42, %v995_v45  ;;  %v507_v54 = vpop.f32.mrb[3].mxu0  ;;  %v635_v55 = vpop.f32.mrb[3].mxu1 }
  0xf9   :  { %vm1025_vm2 = vcmp.ge.f32.partialorder %v961_v48, 0.0  ;;  %v1096_v56 = vmul.f32 %v2238_v42, %v961_v48  ;;  %vm1057_vm3 = vcmp.ge.f32.partialorder %v993_v49, 0.0  ;;  %v1128_v57 = vmul.f32 %v2238_v42, %v993_v49 }
  0xfa   :  { %v1162_v58 = vsel %vm1027_vm0, %v963_v44, %v1098_v52  ;;  %v1194_v59 = vsel %vm1059_vm1, %v995_v45, %v1130_v53  ;;  %v964_v60 = vadd.f32 %v1968_v50, %v2233_v40  ;;  %v996_v61 = vadd.f32 %v2000_v51, %v2233_v40 }
  0xfb   :  { %v1160_v62 = vsel %vm1025_vm2, %v961_v48, %v1096_v56  ;;  %v1192_v63 = vsel %vm1057_vm3, %v993_v49, %v1128_v57  ;;  %v962_v0 = vadd.f32 %v2233_v40, %v507_v54  ;;  %v994_v1 = vadd.f32 %v2233_v40, %v635_v55 }
  0xfc   :  { %vm1028_vm4 = vcmp.ge.f32.partialorder %v964_v60, 0.0  ;;  %v1099_v2 = vmul.f32 %v2238_v42, %v964_v60  ;;  %vm1060_vm5 = vcmp.ge.f32.partialorder %v996_v61, 0.0  ;;  %v1131_v3 = vmul.f32 %v2238_v42, %v996_v61 }
  0xfd   :  { %vm1026_vm6 = vcmp.ge.f32.partialorder %v962_v0, 0.0  ;;  %v1097_v4 = vmul.f32 %v2238_v42, %v962_v0  ;;  %vm1058_vm7 = vcmp.ge.f32.partialorder %v994_v1, 0.0  ;;  %v1129_v5 = vmul.f32 %v2238_v42, %v994_v1  ;;  %v1971_v6 = vpop.f32.mrb[4].mxu0  ;;  %v2003_v7 = vpop.f32.mrb[4].mxu1 }
  0xfe   :  { %v1163_v8 = vsel %vm1028_vm4, %v964_v60, %v1099_v2  ;;  %v1195_v9 = vsel %vm1060_vm5, %v996_v61, %v1131_v3  ;;  %v967_v10 = vadd.f32 %v1971_v6, %v2233_v40  ;;  %v999_v11 = vadd.f32 %v2003_v7, %v2233_v40  ;;  %v520_v12 = vpop.f32.mrb[5].mxu0  ;;  %v648_v13 = vpop.f32.mrb[5].mxu1 }
  0xff   :  { %v1726_v14 = vpack.c.bf16 %v1163_v8, %v1162_v58  ;;  %v1806_v15 = vpack.c.bf16 %v1195_v9, %v1194_v59  ;;  %v1161_v16 = vsel %vm1026_vm6, %v962_v0, %v1097_v4  ;;  %v1193_v17 = vsel %vm1058_vm7, %v994_v1, %v1129_v5  ;;  %v1972_v18 = vpop.f32.mrb[6].mxu0  ;;  %v2004_v19 = vpop.f32.mrb[6].mxu1 }
 0x100   :  { %v1721_v20 = vpack.c.bf16 %v1161_v16, %v1160_v62  ;;  %v1801_v21 = vpack.c.bf16 %v1193_v17, %v1192_v63  ;;  %vm1031_vm8 = vcmp.ge.f32.partialorder %v967_v10, 0.0  ;;  %v1102_v22 = vmul.f32 %v2238_v42, %v967_v10  ;;  %v523_v23 = vpop.f32.mrb[7].mxu0  ;;  %v651_v24 = vpop.f32.mrb[7].mxu1 }
 0x101   :  { %1878 = vst [vmem:[%s2471_s4 + $0x8] sm:$0xff] %v1726_v14   ;;  %1894 = vst [vmem:[%s2471_s4 + $0x88] sm:$0xff] %v1806_v15   ;;  %vm1063_vm9 = vcmp.ge.f32.partialorder %v999_v11, 0.0  ;;  %v1134_v25 = vmul.f32 %v2238_v42, %v999_v11  ;;  %v965_v26 = vadd.f32 %v2233_v40, %v520_v12  ;;  %v997_v27 = vadd.f32 %v2233_v40, %v648_v13 }
 0x102   :  { %1722 = vst [vmem:[%s2471_s4] sm:$0xff] %v1721_v20   ;;  %1893 = vst [vmem:[%s2471_s4 + $0x80] sm:$0xff] %v1801_v21   ;;  %v1166_v28 = vsel %vm1031_vm8, %v967_v10, %v1102_v22  ;;  %v968_v29 = vadd.f32 %v1972_v18, %v2233_v40  ;;  %v1000_v30 = vadd.f32 %v2004_v19, %v2233_v40 }
 0x103   :  { %v966_v31 = vadd.f32 %v2233_v40, %v523_v23  ;;  %v1198_v32 = vsel %vm1063_vm9, %v999_v11, %v1134_v25  ;;  %vm1029_vm10 = vcmp.ge.f32.partialorder %v965_v26, 0.0  ;;  %v1100_v33 = vmul.f32 %v2238_v42, %v965_v26 }
 0x104   :  { %vm1061_vm11 = vcmp.ge.f32.partialorder %v997_v27, 0.0  ;;  %v1132_v34 = vmul.f32 %v2238_v42, %v997_v27  ;;  %vm1032_vm12 = vcmp.ge.f32.partialorder %v968_v29, 0.0  ;;  %v1103_v35 = vmul.f32 %v2238_v42, %v968_v29 }
 0x105   :  { %vm1064_vm13 = vcmp.ge.f32.partialorder %v1000_v30, 0.0  ;;  %v1164_v36 = vsel %vm1029_vm10, %v965_v26, %v1100_v33  ;;  %v1135_v37 = vmul.f32 %v2238_v42, %v1000_v30  ;;  %vm1030_vm14 = vcmp.ge.f32.partialorder %v966_v31, 0.0  ;;  %v1975_v39 = vpop.f32.mrb[8].mxu0  ;;  %v2007_v41 = vpop.f32.mrb[8].mxu1 }
 0x106   :  { %v1101_v38 = vmul.f32 %v2238_v42, %v966_v31  ;;  %v1196_v43 = vsel %vm1061_vm11, %v997_v27, %v1132_v34  ;;  %v1167_v44 = vsel %vm1032_vm12, %v968_v29, %v1103_v35  ;;  %v998_v45 = vadd.f32 %v2233_v40, %v651_v24  ;;  %v536_v47 = vpop.f32.mrb[9].mxu0  ;;  %v664_v48 = vpop.f32.mrb[9].mxu1 }
 0x107   :  { %v971_v46 = vadd.f32 %v1975_v39, %v2233_v40  ;;  %v1736_v49 = vpack.c.bf16 %v1167_v44, %v1166_v28  ;;  %v1199_v50 = vsel %vm1064_vm13, %v1000_v30, %v1135_v37  ;;  %v1003_v52 = vadd.f32 %v2007_v41, %v2233_v40  ;;  %v1976_v53 = vpop.f32.mrb[10].mxu0  ;;  %v2008_v54 = vpop.f32.mrb[10].mxu1 }
 0x108   :  { %v1165_v51 = vsel %vm1030_vm14, %v966_v31, %v1101_v38  ;;  %v1816_v55 = vpack.c.bf16 %v1199_v50, %v1198_v32  ;;  %vm1062_vm15 = vcmp.ge.f32.partialorder %v998_v45, 0.0  ;;  %v1133_v57 = vmul.f32 %v2238_v42, %v998_v45  ;;  %v539_v58 = vpop.f32.mrb[11].mxu0  ;;  %v667_v59 = vpop.f32.mrb[11].mxu1 }
 0x109   :  { %v1731_v56 = vpack.c.bf16 %v1165_v51, %v1164_v36  ;;  %1880 = vst [vmem:[%s2471_s4 + $0x18] sm:$0xff] %v1736_v49   ;;  %vm1035_vm0 = vcmp.ge.f32.partialorder %v971_v46, 0.0  ;;  %v1106_v60 = vmul.f32 %v2238_v42, %v971_v46  ;;  %vm1067_vm1 = vcmp.ge.f32.partialorder %v1003_v52, 0.0 }
 0x10a   :  { %v1138_v61 = vmul.f32 %v2238_v42, %v1003_v52  ;;  %1896 = vst [vmem:[%s2471_s4 + $0x98] sm:$0xff] %v1816_v55   ;;  %v1197_v62 = vsel %vm1062_vm15, %v998_v45, %v1133_v57  ;;  %v969_v63 = vadd.f32 %v2233_v40, %v536_v47  ;;  %v1001_v0 = vadd.f32 %v2233_v40, %v664_v48 }
 0x10b   :  { %1879 = vst [vmem:[%s2471_s4 + $0x10] sm:$0xff] %v1731_v56   ;;  %v972_v1 = vadd.f32 %v1976_v53, %v2233_v40  ;;  %v1811_v2 = vpack.c.bf16 %v1197_v62, %v1196_v43  ;;  %v1170_v3 = vsel %vm1035_vm0, %v971_v46, %v1106_v60  ;;  %v1004_v5 = vadd.f32 %v2008_v54, %v2233_v40 }
 0x10c   :  { %v1202_v4 = vsel %vm1067_vm1, %v1003_v52, %v1138_v61  ;;  %vm1033_vm2 = vcmp.ge.f32.partialorder %v969_v63, 0.0  ;;  %v1104_v6 = vmul.f32 %v2238_v42, %v969_v63  ;;  %vm1065_vm3 = vcmp.ge.f32.partialorder %v1001_v0, 0.0 }
 0x10d   :  { %v1136_v7 = vmul.f32 %v2238_v42, %v1001_v0  ;;  %1895 = vst [vmem:[%s2471_s4 + $0x90] sm:$0xff] %v1811_v2   ;;  %vm1036_vm4 = vcmp.ge.f32.partialorder %v972_v1, 0.0  ;;  %v1107_v8 = vmul.f32 %v2238_v42, %v972_v1  ;;  %vm1068_vm5 = vcmp.ge.f32.partialorder %v1004_v5, 0.0  ;;  %v1979_v10 = vpop.f32.mrb[12].mxu0  ;;  %v2011_v11 = vpop.f32.mrb[12].mxu1 }
 0x10e   :  { %v1139_v9 = vmul.f32 %v2238_v42, %v1004_v5  ;;  %v1168_v12 = vsel %vm1033_vm2, %v969_v63, %v1104_v6  ;;  %v970_v14 = vadd.f32 %v2233_v40, %v539_v58  ;;  %v1002_v15 = vadd.f32 %v2233_v40, %v667_v59  ;;  %v552_v16 = vpop.f32.mrb[13].mxu0  ;;  %v680_v17 = vpop.f32.mrb[13].mxu1 }
 0x10f   :  { %v1200_v13 = vsel %vm1065_vm3, %v1001_v0, %v1136_v7  ;;  %v1171_v18 = vsel %vm1036_vm4, %v972_v1, %v1107_v8  ;;  %v975_v20 = vadd.f32 %v1979_v10, %v2233_v40  ;;  %v1007_v21 = vadd.f32 %v2011_v11, %v2233_v40  ;;  %v1980_v22 = vpop.f32.mrb[14].mxu0  ;;  %v2012_v23 = vpop.f32.mrb[14].mxu1 }
 0x110   :  { %v1203_v19 = vsel %vm1068_vm5, %v1004_v5, %v1139_v9  ;;  %v1746_v24 = vpack.c.bf16 %v1171_v18, %v1170_v3  ;;  %vm1034_vm6 = vcmp.ge.f32.partialorder %v970_v14, 0.0  ;;  %v1105_v26 = vmul.f32 %v2238_v42, %v970_v14  ;;  %v555_v27 = vpop.f32.mrb[15].mxu0  ;;  %v683_v28 = vpop.f32.mrb[15].mxu1 }
 0x111   :  { %v1826_v25 = vpack.c.bf16 %v1203_v19, %v1202_v4  ;;  %vm1066_vm7 = vcmp.ge.f32.partialorder %v1002_v15, 0.0  ;;  %v1137_v29 = vmul.f32 %v2238_v42, %v1002_v15  ;;  %vm1039_vm8 = vcmp.ge.f32.partialorder %v975_v20, 0.0 }
 0x112   :  { %v1110_v30 = vmul.f32 %v2238_v42, %v975_v20  ;;  %1882 = vst [vmem:[%s2471_s4 + $0x28] sm:$0xff] %v1746_v24   ;;  %v1169_v31 = vsel %vm1034_vm6, %v970_v14, %v1105_v26  ;;  %vm1071_vm9 = vcmp.ge.f32.partialorder %v1007_v21, 0.0  ;;  %v1142_v32 = vmul.f32 %v2238_v42, %v1007_v21 }
 0x113   :  { %1898 = vst [vmem:[%s2471_s4 + $0xa8] sm:$0xff] %v1826_v25   ;;  %v973_v33 = vadd.f32 %v2233_v40, %v552_v16  ;;  %v1741_v34 = vpack.c.bf16 %v1169_v31, %v1168_v12  ;;  %v1201_v35 = vsel %vm1066_vm7, %v1002_v15, %v1137_v29  ;;  %v1005_v37 = vadd.f32 %v2233_v40, %v680_v17 }
 0x114   :  { %v1174_v36 = vsel %vm1039_vm8, %v975_v20, %v1110_v30  ;;  %v1821_v38 = vpack.c.bf16 %v1201_v35, %v1200_v13  ;;  %v1206_v39 = vsel %vm1071_vm9, %v1007_v21, %v1142_v32  ;;  %v976_v44 = vadd.f32 %v1980_v22, %v2233_v40 }
 0x115   :  { %vm1037_vm10 = vcmp.ge.f32.partialorder %v973_v33, 0.0  ;;  %v1108_v41 = vmul.f32 %v2238_v42, %v973_v33  ;;  %1881 = vst [vmem:[%s2471_s4 + $0x20] sm:$0xff] %v1741_v34   ;;  %vm1069_vm11 = vcmp.ge.f32.partialorder %v1005_v37, 0.0  ;;  %v1140_v43 = vmul.f32 %v2238_v42, %v1005_v37  ;;  %v1983_v46 = vpop.f32.mrb[16].mxu0  ;;  %v2015_v47 = vpop.f32.mrb[16].mxu1 }
 0x116   :  { %v1008_v45 = vadd.f32 %v2012_v23, %v2233_v40  ;;  %1897 = vst [vmem:[%s2471_s4 + $0xa0] sm:$0xff] %v1821_v38   ;;  %v974_v49 = vadd.f32 %v2233_v40, %v555_v27  ;;  %v1006_v50 = vadd.f32 %v2233_v40, %v683_v28  ;;  %v979_v51 = vadd.f32 %v1983_v46, %v2233_v40  ;;  %v568_v52 = vpop.f32.mrb[17].mxu0  ;;  %v696_v53 = vpop.f32.mrb[17].mxu1 }
 0x117   :  { %v1172_v48 = vsel %vm1037_vm10, %v973_v33, %v1108_v41  ;;  %v1204_v54 = vsel %vm1069_vm11, %v1005_v37, %v1140_v43  ;;  %vm1040_vm12 = vcmp.ge.f32.partialorder %v976_v44, 0.0  ;;  %v1111_v55 = vmul.f32 %v2238_v42, %v976_v44  ;;  %v1984_v56 = vpop.f32.mrb[18].mxu0  ;;  %v2016_v57 = vpop.f32.mrb[18].mxu1 }
 0x118   :  { %vm1072_vm13 = vcmp.ge.f32.partialorder %v1008_v45, 0.0  ;;  %v1143_v58 = vmul.f32 %v2238_v42, %v1008_v45  ;;  %vm1038_vm14 = vcmp.ge.f32.partialorder %v974_v49, 0.0  ;;  %v1109_v59 = vmul.f32 %v2238_v42, %v974_v49  ;;  %v571_v60 = vpop.f32.mrb[19].mxu0  ;;  %v699_v61 = vpop.f32.mrb[19].mxu1 }
 0x119   :  { %vm1070_vm15 = vcmp.ge.f32.partialorder %v1006_v50, 0.0  ;;  %v1175_v62 = vsel %vm1040_vm12, %v976_v44, %v1111_v55  ;;  %v1141_v63 = vmul.f32 %v2238_v42, %v1006_v50  ;;  %vm1043_vm0 = vcmp.ge.f32.partialorder %v979_v51, 0.0 }
 0x11a   :  { %v1114_v0 = vmul.f32 %v2238_v42, %v979_v51  ;;  %v1756_v1 = vpack.c.bf16 %v1175_v62, %v1174_v36  ;;  %v1207_v2 = vsel %vm1072_vm13, %v1008_v45, %v1143_v58  ;;  %v1173_v3 = vsel %vm1038_vm14, %v974_v49, %v1109_v59 }
 0x11b   :  { %v1011_v4 = vadd.f32 %v2015_v47, %v2233_v40  ;;  %v1836_v5 = vpack.c.bf16 %v1207_v2, %v1206_v39  ;;  %v1751_v6 = vpack.c.bf16 %v1173_v3, %v1172_v48  ;;  %v1205_v7 = vsel %vm1070_vm15, %v1006_v50, %v1141_v63 }
 0x11c   :  { %v1178_v8 = vsel %vm1043_vm0, %v979_v51, %v1114_v0  ;;  %1884 = vst [vmem:[%s2471_s4 + $0x38] sm:$0xff] %v1756_v1   ;;  %v1831_v9 = vpack.c.bf16 %v1205_v7, %v1204_v54  ;;  %v977_v11 = vadd.f32 %v2233_v40, %v568_v52  ;;  %v1009_v12 = vadd.f32 %v2233_v40, %v696_v53 }
 0x11d   :  { %vm1075_vm1 = vcmp.ge.f32.partialorder %v1011_v4, 0.0  ;;  %v1146_v10 = vmul.f32 %v2238_v42, %v1011_v4  ;;  %1900 = vst [vmem:[%s2471_s4 + $0xb8] sm:$0xff] %v1836_v5   ;;  %1883 = vst [vmem:[%s2471_s4 + $0x30] sm:$0xff] %v1751_v6   ;;  %v980_v13 = vadd.f32 %v1984_v56, %v2233_v40  ;;  %v1012_v14 = vadd.f32 %v2016_v57, %v2233_v40  ;;  %v1987_v16 = vpop.f32.mrb[20].mxu0  ;;  %v2019_v17 = vpop.f32.mrb[20].mxu1 }
 0x11e   :  { %v978_v15 = vadd.f32 %v2233_v40, %v571_v60  ;;  %1899 = vst [vmem:[%s2471_s4 + $0xb0] sm:$0xff] %v1831_v9   ;;  %vm1041_vm2 = vcmp.ge.f32.partialorder %v977_v11, 0.0  ;;  %v1112_v19 = vmul.f32 %v2238_v42, %v977_v11  ;;  %v1010_v20 = vadd.f32 %v2233_v40, %v699_v61  ;;  %v584_v21 = vpop.f32.mrb[21].mxu0  ;;  %v712_v22 = vpop.f32.mrb[21].mxu1 }
 0x11f   :  { %v1210_v18 = vsel %vm1075_vm1, %v1011_v4, %v1146_v10  ;;  %vm1073_vm3 = vcmp.ge.f32.partialorder %v1009_v12, 0.0  ;;  %v1144_v23 = vmul.f32 %v2238_v42, %v1009_v12  ;;  %vm1044_vm4 = vcmp.ge.f32.partialorder %v980_v13, 0.0  ;;  %v1988_v25 = vpop.f32.mrb[22].mxu0  ;;  %v2020_v26 = vpop.f32.mrb[22].mxu1 }
 0x120   :  { %v1115_v24 = vmul.f32 %v2238_v42, %v980_v13  ;;  %v1176_v27 = vsel %vm1041_vm2, %v977_v11, %v1112_v19  ;;  %vm1076_vm5 = vcmp.ge.f32.partialorder %v1012_v14, 0.0  ;;  %v1147_v28 = vmul.f32 %v2238_v42, %v1012_v14  ;;  %v587_v29 = vpop.f32.mrb[23].mxu0  ;;  %v715_v30 = vpop.f32.mrb[23].mxu1 }
 0x121   :  { %vm1042_vm6 = vcmp.ge.f32.partialorder %v978_v15, 0.0  ;;  %v1208_v31 = vsel %vm1073_vm3, %v1009_v12, %v1144_v23  ;;  %v1113_v33 = vmul.f32 %v2238_v42, %v978_v15  ;;  %vm1074_vm7 = vcmp.ge.f32.partialorder %v1010_v20, 0.0 }
 0x122   :  { %v1179_v32 = vsel %vm1044_vm4, %v980_v13, %v1115_v24  ;;  %v1211_v35 = vsel %vm1076_vm5, %v1012_v14, %v1147_v28  ;;  %v1145_v36 = vmul.f32 %v2238_v42, %v1010_v20  ;;  %v983_v37 = vadd.f32 %v1987_v16, %v2233_v40 }
 0x123   :  { %v1766_v34 = vpack.c.bf16 %v1179_v32, %v1178_v8  ;;  %v1846_v38 = vpack.c.bf16 %v1211_v35, %v1210_v18  ;;  %v1177_v39 = vsel %vm1042_vm6, %v978_v15, %v1113_v33  ;;  %v1015_v41 = vadd.f32 %v2019_v17, %v2233_v40 }
 0x124   :  { %v981_v43 = vadd.f32 %v2233_v40, %v584_v21  ;;  %v1761_v44 = vpack.c.bf16 %v1177_v39, %v1176_v27  ;;  %v1209_v45 = vsel %vm1074_vm7, %v1010_v20, %v1145_v36  ;;  %vm1047_vm8 = vcmp.ge.f32.partialorder %v983_v37, 0.0 }
 0x125   :  { %1886 = vst [vmem:[%s2471_s4 + $0x48] sm:$0xff] %v1766_v34   ;;  %v1118_v46 = vmul.f32 %v2238_v42, %v983_v37  ;;  %1902 = vst [vmem:[%s2471_s4 + $0xc8] sm:$0xff] %v1846_v38   ;;  %v1841_v47 = vpack.c.bf16 %v1209_v45, %v1208_v31  ;;  %vm1079_vm9 = vcmp.ge.f32.partialorder %v1015_v41, 0.0  ;;  %v1150_v48 = vmul.f32 %v2238_v42, %v1015_v41  ;;  %v1991_v49 = vpop.f32.mrb[24].mxu0  ;;  %v2023_v50 = vpop.f32.mrb[24].mxu1 }
 0x126   :  { %vm1045_vm10 = vcmp.ge.f32.partialorder %v981_v43, 0.0  ;;  %1885 = vst [vmem:[%s2471_s4 + $0x40] sm:$0xff] %v1761_v44   ;;  %v1116_v52 = vmul.f32 %v2238_v42, %v981_v43  ;;  %v1013_v53 = vadd.f32 %v2233_v40, %v712_v22  ;;  %v984_v54 = vadd.f32 %v1988_v25, %v2233_v40  ;;  %v600_v55 = vpop.f32.mrb[25].mxu0  ;;  %v728_v56 = vpop.f32.mrb[25].mxu1 }
 0x127   :  { %v1182_v51 = vsel %vm1047_vm8, %v983_v37, %v1118_v46  ;;  %1901 = vst [vmem:[%s2471_s4 + $0xc0] sm:$0xff] %v1841_v47   ;;  %v1214_v57 = vsel %vm1079_vm9, %v1015_v41, %v1150_v48  ;;  %v1016_v58 = vadd.f32 %v2020_v26, %v2233_v40  ;;  %v982_v59 = vadd.f32 %v2233_v40, %v587_v29  ;;  %v1992_v61 = vpop.f32.mrb[26].mxu0  ;;  %v2024_v62 = vpop.f32.mrb[26].mxu1 }
 0x128   :  { %v1014_v60 = vadd.f32 %v2233_v40, %v715_v30  ;;  %v1180_v63 = vsel %vm1045_vm10, %v981_v43, %v1116_v52  ;;  %vm1077_vm11 = vcmp.ge.f32.partialorder %v1013_v53, 0.0  ;;  %v1148_v0 = vmul.f32 %v2238_v42, %v1013_v53  ;;  %v603_v1 = vpop.f32.mrb[27].mxu0  ;;  %v731_v2 = vpop.f32.mrb[27].mxu1 }
 0x129   :  { %vm1048_vm12 = vcmp.ge.f32.partialorder %v984_v54, 0.0  ;;  %v1119_v3 = vmul.f32 %v2238_v42, %v984_v54  ;;  %vm1080_vm13 = vcmp.ge.f32.partialorder %v1016_v58, 0.0  ;;  %v1151_v4 = vmul.f32 %v2238_v42, %v1016_v58 }
 0x12a   :  { %vm1046_vm14 = vcmp.ge.f32.partialorder %v982_v59, 0.0  ;;  %v1212_v5 = vsel %vm1077_vm11, %v1013_v53, %v1148_v0  ;;  %v1117_v6 = vmul.f32 %v2238_v42, %v982_v59  ;;  %vm1078_vm15 = vcmp.ge.f32.partialorder %v1014_v60, 0.0 }
 0x12b   :  { %v1149_v7 = vmul.f32 %v2238_v42, %v1014_v60  ;;  %v1183_v8 = vsel %vm1048_vm12, %v984_v54, %v1119_v3  ;;  %v1215_v9 = vsel %vm1080_vm13, %v1016_v58, %v1151_v4  ;;  %v987_v10 = vadd.f32 %v1991_v49, %v2233_v40 }
 0x12c   :  { %v1019_v11 = vadd.f32 %v2023_v50, %v2233_v40  ;;  %v1776_v12 = vpack.c.bf16 %v1183_v8, %v1182_v51  ;;  %v1856_v13 = vpack.c.bf16 %v1215_v9, %v1214_v57  ;;  %v1181_v14 = vsel %vm1046_vm14, %v982_v59, %v1117_v6 }
 0x12d   :  { %v1213_v15 = vsel %vm1078_vm15, %v1014_v60, %v1149_v7  ;;  %v1771_v16 = vpack.c.bf16 %v1181_v14, %v1180_v63  ;;  %vm1051_vm0 = vcmp.ge.f32.partialorder %v987_v10, 0.0  ;;  %v1122_v18 = vmul.f32 %v2238_v42, %v987_v10  ;;  %v1995_v19 = vpop.f32.mrb[28].mxu0  ;;  %v2027_v20 = vpop.f32.mrb[28].mxu1 }
 0x12e   :  { %v1851_v17 = vpack.c.bf16 %v1213_v15, %v1212_v5  ;;  %1888 = vst [vmem:[%s2471_s4 + $0x58] sm:$0xff] %v1776_v12   ;;  %1904 = vst [vmem:[%s2471_s4 + $0xd8] sm:$0xff] %v1856_v13   ;;  %vm1083_vm1 = vcmp.ge.f32.partialorder %v1019_v11, 0.0  ;;  %v1154_v21 = vmul.f32 %v2238_v42, %v1019_v11  ;;  %v985_v22 = vadd.f32 %v2233_v40, %v600_v55  ;;  %v616_v24 = vpop.f32.mrb[29].mxu0  ;;  %v744_v25 = vpop.f32.mrb[29].mxu1 }
 0x12f   :  { %v1017_v23 = vadd.f32 %v2233_v40, %v728_v56  ;;  %1887 = vst [vmem:[%s2471_s4 + $0x50] sm:$0xff] %v1771_v16   ;;  %v988_v26 = vadd.f32 %v1992_v61, %v2233_v40  ;;  %v1020_v27 = vadd.f32 %v2024_v62, %v2233_v40  ;;  %v986_v28 = vadd.f32 %v2233_v40, %v603_v1  ;;  %v1996_v29 = vpop.f32.mrb[30].mxu0  ;;  %v2028_v30 = vpop.f32.mrb[30].mxu1 }
 0x130   :  { %1903 = vst [vmem:[%s2471_s4 + $0xd0] sm:$0xff] %v1851_v17   ;;  %v1186_v31 = vsel %vm1051_vm0, %v987_v10, %v1122_v18  ;;  %v1218_v32 = vsel %vm1083_vm1, %v1019_v11, %v1154_v21  ;;  %vm1049_vm2 = vcmp.ge.f32.partialorder %v985_v22, 0.0  ;;  %v1120_v33 = vmul.f32 %v2238_v42, %v985_v22  ;;  %v619_v34 = vpop.f32.mrb[31].mxu0  ;;  %v747_v35 = vpop.f32.mrb[31].mxu1 }
 0x131   :  { %vm1081_vm3 = vcmp.ge.f32.partialorder %v1017_v23, 0.0  ;;  %vm1052_vm4 = vcmp.ge.f32.partialorder %v988_v26, 0.0  ;;  %v1123_v36 = vmul.f32 %v2238_v42, %v988_v26  ;;  %vm1084_vm5 = vcmp.ge.f32.partialorder %v1020_v27, 0.0 }
 0x132   :  { %v1152_v37 = vmul.f32 %v2238_v42, %v1017_v23  ;;  %v1155_v38 = vmul.f32 %v2238_v42, %v1020_v27  ;;  %vm1050_vm6 = vcmp.ge.f32.partialorder %v986_v28, 0.0  ;;  %v1121_v39 = vmul.f32 %v2238_v42, %v986_v28 }
 0x133   :  { %v1184_v41 = vsel %vm1049_vm2, %v985_v22, %v1120_v33  ;;  %v1187_v43 = vsel %vm1052_vm4, %v988_v26, %v1123_v36  ;;  %v1018_v44 = vadd.f32 %v2233_v40, %v731_v2  ;;  %v991_v45 = vadd.f32 %v1995_v19, %v2233_v40 }
 0x134   :  { %v1786_v46 = vpack.c.bf16 %v1187_v43, %v1186_v31  ;;  %v1219_v47 = vsel %vm1084_vm5, %v1020_v27, %v1155_v38  ;;  %v1185_v48 = vsel %vm1050_vm6, %v986_v28, %v1121_v39  ;;  %v1023_v49 = vadd.f32 %v2027_v20, %v2233_v40 }
 0x135   :  { %v1866_v50 = vpack.c.bf16 %v1219_v47, %v1218_v32  ;;  %v1781_v51 = vpack.c.bf16 %v1185_v48, %v1184_v41  ;;  %vm1082_vm7 = vcmp.ge.f32.partialorder %v1018_v44, 0.0  ;;  %v1153_v52 = vmul.f32 %v2238_v42, %v1018_v44 }
 0x136   :  { %1890 = vst [vmem:[%s2471_s4 + $0x68] sm:$0xff] %v1786_v46   ;;  %vm1055_vm8 = vcmp.ge.f32.partialorder %v991_v45, 0.0  ;;  %v1126_v53 = vmul.f32 %v2238_v42, %v991_v45  ;;  %vm1087_vm9 = vcmp.ge.f32.partialorder %v1023_v49, 0.0  ;;  %v1158_v54 = vmul.f32 %v2238_v42, %v1023_v49 }
 0x137   :  { %v1216_v55 = vsel %vm1081_vm3, %v1017_v23, %v1152_v37  ;;  %1906 = vst [vmem:[%s2471_s4 + $0xe8] sm:$0xff] %v1866_v50   ;;  %1889 = vst [vmem:[%s2471_s4 + $0x60] sm:$0xff] %v1781_v51   ;;  %v1217_v56 = vsel %vm1082_vm7, %v1018_v44, %v1153_v52  ;;  %v989_v57 = vadd.f32 %v2233_v40, %v616_v24 }
 0x138   :  { %v992_v58 = vadd.f32 %v1996_v29, %v2233_v40  ;;  %v1861_v59 = vpack.c.bf16 %v1217_v56, %v1216_v55  ;;  %v1021_v60 = vadd.f32 %v2233_v40, %v744_v25  ;;  %v1024_v61 = vadd.f32 %v2028_v30, %v2233_v40 }
 0x139   :  { %v1190_v62 = vsel %vm1055_vm8, %v991_v45, %v1126_v53  ;;  %v1222_v63 = vsel %vm1087_vm9, %v1023_v49, %v1158_v54  ;;  %vm1053_vm12 = vcmp.ge.f32.partialorder %v989_v57, 0.0  ;;  %v1124_v2 = vmul.f32 %v2238_v42, %v989_v57 }
 0x13a   :  { %1905 = vst [vmem:[%s2471_s4 + $0xe0] sm:$0xff] %v1861_v59   ;;  %vm1056_vm10 = vcmp.ge.f32.partialorder %v992_v58, 0.0  ;;  %v1127_v0 = vmul.f32 %v2238_v42, %v992_v58  ;;  %vm1088_vm11 = vcmp.ge.f32.partialorder %v1024_v61, 0.0  ;;  %v1159_v1 = vmul.f32 %v2238_v42, %v1024_v61 }
 0x13b   :  { %v990_v3 = vadd.f32 %v2233_v40, %v619_v34  ;;  %v1022_v4 = vadd.f32 %v2233_v40, %v747_v35  ;;  %vm1085_vm13 = vcmp.ge.f32.partialorder %v1021_v60, 0.0  ;;  %v1156_v5 = vmul.f32 %v2238_v42, %v1021_v60 }
 0x13c   :  { %v1191_v6 = vsel %vm1056_vm10, %v992_v58, %v1127_v0  ;;  %v1223_v7 = vsel %vm1088_vm11, %v1024_v61, %v1159_v1  ;;  %v1188_v12 = vsel %vm1053_vm12, %v989_v57, %v1124_v2 }
 0x13d   :  { %v1796_v8 = vpack.c.bf16 %v1191_v6, %v1190_v62  ;;  %v1876_v9 = vpack.c.bf16 %v1223_v7, %v1222_v63  ;;  %vm1054_vm14 = vcmp.ge.f32.partialorder %v990_v3, 0.0  ;;  %v1125_v10 = vmul.f32 %v2238_v42, %v990_v3 }
 0x13e   :  { %vm1086_vm15 = vcmp.ge.f32.partialorder %v1022_v4, 0.0  ;;  %v1157_v11 = vmul.f32 %v2238_v42, %v1022_v4  ;;  %v1220_v13 = vsel %vm1085_vm13, %v1021_v60, %v1156_v5 }
 0x13f   :  { %1892 = vst [vmem:[%s2471_s4 + $0x78] sm:$0xff] %v1796_v8   ;;  %1908 = vst [vmem:[%s2471_s4 + $0xf8] sm:$0xff] %v1876_v9   ;;  %v1189_v40 = vsel %vm1054_vm14, %v990_v3, %v1125_v10 }
 0x140   :  { %v1791_v14 = vpack.c.bf16 %v1189_v40, %v1188_v12  ;;  %v1221_v15 = vsel %vm1086_vm15, %v1022_v4, %v1157_v11 }
 0x141   :  { %v1871_v16 = vpack.c.bf16 %v1221_v15, %v1220_v13 }
 0x142   :  { %1891 = vst [vmem:[%s2471_s4 + $0x70] sm:$0xff] %v1791_v14  }
 0x143   :  { %1907 = vst [vmem:[%s2471_s4 + $0xf0] sm:$0xff] %v1871_v16  }

// kernel: vxm_dense_forward.14
= control target key start
LH: loop header
LB: loop body
LE: loop exit
PB: predicated region body
PF: predicated region fallthrough
CT: control target
= control target key end

     0   :  { %s1008_s1 = inlined_call_operand.vmem [shape: bf16[256,128], index: 1, kind: input, shape index: {}]   ;;  %s1009_s0 = inlined_call_operand.vmem [shape: bf16[128,256], index: 0, kind: input, shape index: {}]   ;;  %s1010_s2 = inlined_call_operand.vmem [shape: f32[1,128], index: 2, kind: input, shape index: {}]   ;;  %s1011_s3 = inlined_call_operand.vmem [shape: f32[1,128], index: 3, kind: input, shape index: {}]   ;;  %s1012_s4 = inlined_call_operand.vmem [shape: bf16[128,128], index: 4, kind: output, shape index: {}]  }
   0x1   :  { %v781_v0 = vld [vmem:[%s1008_s1 + $0x40] sm:$0xff]   ;;  %v783_v2 = vld [vmem:[%s1008_s1 + $0x48] sm:$0xff]   ;;  %v785_v4 = vld [vmem:[%s1008_s1 + $0x50] sm:$0xff]  }
   0x2   :  { %v782_v1 = vld [vmem:[%s1008_s1] sm:$0xff]   ;;  %701 = vmatprep.subr.bf16.mxu0 %v781_v0  ;;  %765 = vmatprep.subr.bf16.mxu1 %v781_v0  ;;  %v784_v3 = vld [vmem:[%s1008_s1 + $0x8] sm:$0xff]   ;;  %v786_v5 = vld [vmem:[%s1008_s1 + $0x10] sm:$0xff]  }
   0x3   :  { %702 = vmatpush3.bf16.msra.mxu0 %v782_v1  ;;  %773 = vmatpush3.bf16.msra.mxu1 %v782_v1  ;;  %v787_v6 = vld [vmem:[%s1008_s1 + $0x58] sm:$0xff]   ;;  %v789_v8 = vld [vmem:[%s1008_s1 + $0x60] sm:$0xff]   ;;  %v791_v10 = vld [vmem:[%s1008_s1 + $0x68] sm:$0xff]  }
   0x4   :  { %703 = vmatprep.subr.bf16.mxu0 %v783_v2  ;;  %766 = vmatprep.subr.bf16.mxu1 %v783_v2  ;;  %v788_v7 = vld [vmem:[%s1008_s1 + $0x18] sm:$0xff]   ;;  %v790_v9 = vld [vmem:[%s1008_s1 + $0x20] sm:$0xff]   ;;  %v792_v13 = vld [vmem:[%s1008_s1 + $0x28] sm:$0xff]  }
   0x5   :  { %v799_v11 = vld [vmem:[%s1009_s0 + $0x4] ss:$8 sps:$4 sm:$0xff]   ;;  %v793_v14 = vld [vmem:[%s1008_s1 + $0x70] sm:$0xff]   ;;  %v795_v16 = vld [vmem:[%s1008_s1 + $0x78] sm:$0xff]  }
   0x6   :  { %v802_v12 = vld [vmem:[%s1009_s0 + $0x44] ss:$8 sps:$4 sm:$0xff]   ;;  %310 = vmatprep.mubr.bf16.mxu0 %v799_v11  ;;  %v794_v15 = vld [vmem:[%s1008_s1 + $0x30] sm:$0xff]   ;;  %v796_v17 = vld [vmem:[%s1008_s1 + $0x38] sm:$0xff]  }
   0x7   :  { %704 = vmatpush3.bf16.msra.mxu0 %v784_v3  ;;  %774 = vmatpush3.bf16.msra.mxu1 %v784_v3  ;;  %v797_v18 = vld [vmem:[%s1009_s0] ss:$8 sps:$4 sm:$0xff]   ;;  %v803_v20 = vld [vmem:[%s1009_s0 + $0x14] ss:$8 sps:$4 sm:$0xff]   ;;  %v807_v22 = vld [vmem:[%s1009_s0 + $0x10] ss:$8 sps:$4 sm:$0xff]  }
   0x8   :  { %705 = vmatprep.subr.bf16.mxu0 %v785_v4  ;;  %767 = vmatprep.subr.bf16.mxu1 %v785_v4  ;;  %v800_v19 = vld [vmem:[%s1009_s0 + $0x40] ss:$8 sps:$4 sm:$0xff]   ;;  %v805_v21 = vld [vmem:[%s1009_s0 + $0x54] ss:$8 sps:$4 sm:$0xff]   ;;  %v808_v23 = vld [vmem:[%s1009_s0 + $0x50] ss:$8 sps:$4 sm:$0xff]  }
   0x9   :  { %342 = vmatprep.mubr.bf16.mxu1 %v802_v12  ;;  %v809_v24 = vld [vmem:[%s1009_s0 + $0x24] ss:$8 sps:$4 sm:$0xff]   ;;  %v813_v26 = vld [vmem:[%s1009_s0 + $0x20] ss:$8 sps:$4 sm:$0xff]   ;;  %v815_v28 = vld [vmem:[%s1009_s0 + $0x34] ss:$8 sps:$4 sm:$0xff]  }
   0xa   :  { %v811_v25 = vld [vmem:[%s1009_s0 + $0x64] ss:$8 sps:$4 sm:$0xff]   ;;  %v814_v27 = vld [vmem:[%s1009_s0 + $0x60] ss:$8 sps:$4 sm:$0xff]   ;;  %v817_v29 = vld [vmem:[%s1009_s0 + $0x74] ss:$8 sps:$4 sm:$0xff]  }
   0xb   :  { %706 = vmatpush3.bf16.msra.mxu0 %v786_v5  ;;  %775 = vmatpush3.bf16.msra.mxu1 %v786_v5  ;;  %v819_v30 = vld [vmem:[%s1009_s0 + $0x30] ss:$8 sps:$4 sm:$0xff]   ;;  %v945_v35 = vld [vmem:[%s1010_s2] ss:$0 sm:$0xff] }
   0xc   :  { %707 = vmatprep.subr.bf16.mxu0 %v787_v6  ;;  %768 = vmatprep.subr.bf16.mxu1 %v787_v6  ;;  %v820_v31 = vld [vmem:[%s1009_s0 + $0x70] ss:$8 sps:$4 sm:$0xff]   ;;  %v951_v44 = vld [vmem:[%s1011_s3] ss:$0 sm:$0xff] }
   0xf   :  { %708 = vmatpush3.bf16.msra.mxu0 %v788_v7  ;;  %776 = vmatpush3.bf16.msra.mxu1 %v788_v7 }
  0x10   :  { %709 = vmatprep.subr.bf16.mxu0 %v789_v8  ;;  %769 = vmatprep.subr.bf16.mxu1 %v789_v8 }
  0x13   :  { %710 = vmatpush3.bf16.msra.mxu0 %v790_v9  ;;  %777 = vmatpush3.bf16.msra.mxu1 %v790_v9 }
  0x14   :  { %711 = vmatprep.subr.bf16.mxu0 %v791_v10  ;;  %770 = vmatprep.subr.bf16.mxu1 %v791_v10 }
  0x17   :  { %712 = vmatpush3.bf16.msra.mxu0 %v792_v13  ;;  %778 = vmatpush3.bf16.msra.mxu1 %v792_v13 }
  0x18   :  { %713 = vmatprep.subr.bf16.mxu0 %v793_v14  ;;  %771 = vmatprep.subr.bf16.mxu1 %v793_v14 }
  0x1b   :  { %714 = vmatpush3.bf16.msra.mxu0 %v794_v15  ;;  %779 = vmatpush3.bf16.msra.mxu1 %v794_v15 }
  0x1c   :  { %715 = vmatprep.subr.bf16.mxu0 %v795_v16  ;;  %772 = vmatprep.subr.bf16.mxu1 %v795_v16 }
  0x1f   :  { %716 = vmatpush3.bf16.msra.mxu0 %v796_v17  ;;  %780 = vmatpush3.bf16.msra.mxu1 %v796_v17 }
  0x22   :  { %311 = vmatmul.mubr.bf16.vlgmr.msra.gmra.mrb[0].mxu0 %v797_v18  ;;  %343 = vmatmul.mubr.bf16.vlgmr.msra.gmra.mrb[0].mxu1 %v800_v19 }
  0x23   :  { %318 = vmatprep.mubr.bf16.mxu0 %v803_v20  ;;  %350 = vmatprep.mubr.bf16.mxu1 %v805_v21 }
  0x2a   :  { %319 = vmatmul.mubr.bf16.gmra.mrb[4].mxu0 %v807_v22  ;;  %351 = vmatmul.mubr.bf16.gmra.mrb[4].mxu1 %v808_v23 }
  0x2b   :  { %326 = vmatprep.mubr.bf16.mxu0 %v809_v24  ;;  %358 = vmatprep.mubr.bf16.mxu1 %v811_v25 }
  0x32   :  { %327 = vmatmul.mubr.bf16.gmra.mrb[8].mxu0 %v813_v26  ;;  %359 = vmatmul.mubr.bf16.gmra.mrb[8].mxu1 %v814_v27 }
  0x33   :  { %334 = vmatprep.mubr.bf16.mxu0 %v815_v28  ;;  %366 = vmatprep.mubr.bf16.mxu1 %v817_v29 }
  0x3a   :  { %335 = vmatmul.mubr.bf16.gmra.mrb[12].mxu0 %v819_v30  ;;  %367 = vmatmul.mubr.bf16.gmra.mrb[12].mxu1 %v820_v31 }
  0xf5   :  { %v717_v32 = vpop.f32.mrb[0].mxu0  ;;  %v741_v33 = vpop.f32.mrb[0].mxu1 }
  0xf6   :  { %v718_v34 = vpop.f32.mrb[1].mxu0  ;;  %v742_v36 = vpop.f32.mrb[1].mxu1 }
  0xf7   :  { %v719_v37 = vadd.f32 %v718_v34, %v717_v32  ;;  %v743_v38 = vadd.f32 %v742_v36, %v741_v33  ;;  %v720_v39 = vpop.f32.mrb[2].mxu0  ;;  %v744_v40 = vpop.f32.mrb[2].mxu1 }
  0xf8   :  { %v721_v41 = vpop.f32.mrb[3].mxu0  ;;  %v745_v42 = vpop.f32.mrb[3].mxu1 }
  0xf9   :  { %v433_v43 = vadd.f32 %v719_v37, %v945_v35  ;;  %v441_v45 = vadd.f32 %v743_v38, %v945_v35  ;;  %v722_v46 = vadd.f32 %v721_v41, %v720_v39  ;;  %v746_v47 = vadd.f32 %v745_v42, %v744_v40 }
  0xfb   :  { %v472_v48 = vmul.f32 %v951_v44, %v433_v43  ;;  %v480_v49 = vmul.f32 %v951_v44, %v441_v45  ;;  %v434_v50 = vadd.f32 %v722_v46, %v945_v35  ;;  %v442_v51 = vadd.f32 %v746_v47, %v945_v35 }
  0xfc   :  { %vm449_vm0 = vcmp.ge.f32.partialorder %v433_v43, 0.0  ;;  %vm457_vm1 = vcmp.ge.f32.partialorder %v441_v45, 0.0 }
  0xfd   :  { %v723_v52 = vpop.f32.mrb[4].mxu0  ;;  %v747_v53 = vpop.f32.mrb[4].mxu1  ;;  %vm450_vm2 = vcmp.ge.f32.partialorder %v434_v50, 0.0  ;;  %v473_v54 = vmul.f32 %v951_v44, %v434_v50  ;;  %vm458_vm3 = vcmp.ge.f32.partialorder %v442_v51, 0.0  ;;  %v481_v55 = vmul.f32 %v951_v44, %v442_v51 }
  0xfe   :  { %v724_v56 = vpop.f32.mrb[5].mxu0  ;;  %v748_v57 = vpop.f32.mrb[5].mxu1  ;;  %v488_v62 = vsel %vm449_vm0, %v433_v43, %v472_v48  ;;  %v496_v63 = vsel %vm457_vm1, %v441_v45, %v480_v49 }
  0xff   :  { %v725_v58 = vadd.f32 %v724_v56, %v723_v52  ;;  %v749_v59 = vadd.f32 %v748_v57, %v747_v53  ;;  %v726_v60 = vpop.f32.mrb[6].mxu0  ;;  %v750_v61 = vpop.f32.mrb[6].mxu1  ;;  %v489_v0 = vsel %vm450_vm2, %v434_v50, %v473_v54  ;;  %v497_v1 = vsel %vm458_vm3, %v442_v51, %v481_v55 }
 0x100   :  { %v727_v2 = vpop.f32.mrb[7].mxu0  ;;  %v751_v3 = vpop.f32.mrb[7].mxu1  ;;  %v657_v4 = vpack.c.bf16 %v489_v0, %v488_v62  ;;  %v677_v5 = vpack.c.bf16 %v497_v1, %v496_v63 }
 0x101   :  { %v435_v6 = vadd.f32 %v725_v58, %v945_v35  ;;  %v443_v7 = vadd.f32 %v749_v59, %v945_v35  ;;  %v728_v8 = vadd.f32 %v727_v2, %v726_v60  ;;  %v752_v9 = vadd.f32 %v751_v3, %v750_v61 }
 0x102   :  { %658 = vst [vmem:[%s1012_s4] sm:$0xff] %v657_v4   ;;  %697 = vst [vmem:[%s1012_s4 + $0x20] sm:$0xff] %v677_v5  }
 0x103   :  { %v474_v10 = vmul.f32 %v951_v44, %v435_v6  ;;  %v482_v11 = vmul.f32 %v951_v44, %v443_v7  ;;  %v436_v12 = vadd.f32 %v728_v8, %v945_v35  ;;  %v444_v13 = vadd.f32 %v752_v9, %v945_v35 }
 0x104   :  { %vm451_vm4 = vcmp.ge.f32.partialorder %v435_v6, 0.0  ;;  %vm459_vm5 = vcmp.ge.f32.partialorder %v443_v7, 0.0 }
 0x105   :  { %v729_v14 = vpop.f32.mrb[8].mxu0  ;;  %v753_v15 = vpop.f32.mrb[8].mxu1  ;;  %vm452_vm6 = vcmp.ge.f32.partialorder %v436_v12, 0.0  ;;  %v475_v16 = vmul.f32 %v951_v44, %v436_v12  ;;  %vm460_vm7 = vcmp.ge.f32.partialorder %v444_v13, 0.0  ;;  %v483_v17 = vmul.f32 %v951_v44, %v444_v13 }
 0x106   :  { %v730_v18 = vpop.f32.mrb[9].mxu0  ;;  %v754_v19 = vpop.f32.mrb[9].mxu1  ;;  %v490_v24 = vsel %vm451_vm4, %v435_v6, %v474_v10  ;;  %v498_v25 = vsel %vm459_vm5, %v443_v7, %v482_v11 }
 0x107   :  { %v731_v20 = vadd.f32 %v730_v18, %v729_v14  ;;  %v755_v21 = vadd.f32 %v754_v19, %v753_v15  ;;  %v732_v22 = vpop.f32.mrb[10].mxu0  ;;  %v756_v23 = vpop.f32.mrb[10].mxu1  ;;  %v491_v26 = vsel %vm452_vm6, %v436_v12, %v475_v16  ;;  %v499_v27 = vsel %vm460_vm7, %v444_v13, %v483_v17 }
 0x108   :  { %v733_v28 = vpop.f32.mrb[11].mxu0  ;;  %v757_v29 = vpop.f32.mrb[11].mxu1  ;;  %v662_v30 = vpack.c.bf16 %v491_v26, %v490_v24  ;;  %v682_v31 = vpack.c.bf16 %v499_v27, %v498_v25 }
 0x109   :  { %v437_v32 = vadd.f32 %v731_v20, %v945_v35  ;;  %v445_v33 = vadd.f32 %v755_v21, %v945_v35  ;;  %v734_v34 = vadd.f32 %v733_v28, %v732_v22  ;;  %v758_v36 = vadd.f32 %v757_v29, %v756_v23 }
 0x10a   :  { %694 = vst [vmem:[%s1012_s4 + $0x8] sm:$0xff] %v662_v30   ;;  %698 = vst [vmem:[%s1012_s4 + $0x28] sm:$0xff] %v682_v31  }
 0x10b   :  { %v476_v37 = vmul.f32 %v951_v44, %v437_v32  ;;  %v484_v38 = vmul.f32 %v951_v44, %v445_v33  ;;  %v438_v39 = vadd.f32 %v734_v34, %v945_v35  ;;  %v446_v40 = vadd.f32 %v758_v36, %v945_v35 }
 0x10c   :  { %vm453_vm8 = vcmp.ge.f32.partialorder %v437_v32, 0.0  ;;  %vm461_vm9 = vcmp.ge.f32.partialorder %v445_v33, 0.0 }
 0x10d   :  { %v735_v41 = vpop.f32.mrb[12].mxu0  ;;  %v759_v42 = vpop.f32.mrb[12].mxu1  ;;  %vm454_vm10 = vcmp.ge.f32.partialorder %v438_v39, 0.0  ;;  %v477_v43 = vmul.f32 %v951_v44, %v438_v39  ;;  %vm462_vm11 = vcmp.ge.f32.partialorder %v446_v40, 0.0  ;;  %v485_v45 = vmul.f32 %v951_v44, %v446_v40 }
 0x10e   :  { %v736_v46 = vpop.f32.mrb[13].mxu0  ;;  %v760_v47 = vpop.f32.mrb[13].mxu1  ;;  %v492_v52 = vsel %vm453_vm8, %v437_v32, %v476_v37  ;;  %v500_v53 = vsel %vm461_vm9, %v445_v33, %v484_v38 }
 0x10f   :  { %v737_v48 = vadd.f32 %v736_v46, %v735_v41  ;;  %v761_v49 = vadd.f32 %v760_v47, %v759_v42  ;;  %v738_v50 = vpop.f32.mrb[14].mxu0  ;;  %v762_v51 = vpop.f32.mrb[14].mxu1  ;;  %v493_v54 = vsel %vm454_vm10, %v438_v39, %v477_v43  ;;  %v501_v55 = vsel %vm462_vm11, %v446_v40, %v485_v45 }
 0x110   :  { %v739_v56 = vpop.f32.mrb[15].mxu0  ;;  %v763_v57 = vpop.f32.mrb[15].mxu1  ;;  %v667_v58 = vpack.c.bf16 %v493_v54, %v492_v52  ;;  %v687_v59 = vpack.c.bf16 %v501_v55, %v500_v53 }
 0x111   :  { %v439_v60 = vadd.f32 %v737_v48, %v945_v35  ;;  %v447_v61 = vadd.f32 %v761_v49, %v945_v35  ;;  %v740_v62 = vadd.f32 %v739_v56, %v738_v50  ;;  %v764_v63 = vadd.f32 %v763_v57, %v762_v51 }
 0x112   :  { %695 = vst [vmem:[%s1012_s4 + $0x10] sm:$0xff] %v667_v58   ;;  %699 = vst [vmem:[%s1012_s4 + $0x30] sm:$0xff] %v687_v59  }
 0x113   :  { %v478_v0 = vmul.f32 %v951_v44, %v439_v60  ;;  %v486_v1 = vmul.f32 %v951_v44, %v447_v61  ;;  %v440_v2 = vadd.f32 %v740_v62, %v945_v35  ;;  %v448_v3 = vadd.f32 %v764_v63, %v945_v35 }
 0x114   :  { %vm455_vm12 = vcmp.ge.f32.partialorder %v439_v60, 0.0  ;;  %vm463_vm13 = vcmp.ge.f32.partialorder %v447_v61, 0.0 }
 0x115   :  { %vm456_vm14 = vcmp.ge.f32.partialorder %v440_v2, 0.0  ;;  %v479_v4 = vmul.f32 %v951_v44, %v440_v2  ;;  %vm464_vm15 = vcmp.ge.f32.partialorder %v448_v3, 0.0  ;;  %v487_v5 = vmul.f32 %v951_v44, %v448_v3 }
 0x116   :  { %v494_v6 = vsel %vm455_vm12, %v439_v60, %v478_v0  ;;  %v502_v7 = vsel %vm463_vm13, %v447_v61, %v486_v1 }
 0x117   :  { %v495_v8 = vsel %vm456_vm14, %v440_v2, %v479_v4  ;;  %v503_v9 = vsel %vm464_vm15, %v448_v3, %v487_v5 }
 0x118   :  { %v672_v10 = vpack.c.bf16 %v495_v8, %v494_v6  ;;  %v692_v11 = vpack.c.bf16 %v503_v9, %v502_v7 }
 0x11a   :  { %696 = vst [vmem:[%s1012_s4 + $0x18] sm:$0xff] %v672_v10   ;;  %700 = vst [vmem:[%s1012_s4 + $0x38] sm:$0xff] %v692_v11  }

// kernel: vxm_dense_forward.15
= control target key start
LH: loop header
LB: loop body
LE: loop exit
PB: predicated region body
PF: predicated region fallthrough
CT: control target
= control target key end

     0   :  { %s796_s1 = inlined_call_operand.vmem [shape: bf16[512,128], index: 1, kind: input, shape index: {}]   ;;  %s797_s3 = inlined_call_operand.vmem [shape: f32[1,128], index: 3, kind: input, shape index: {}]   ;;  %s798_s0 = inlined_call_operand.vmem [shape: bf16[32,512], index: 0, kind: input, shape index: {}]   ;;  %s799_s2 = inlined_call_operand.vmem [shape: f32[1,128], index: 2, kind: input, shape index: {}]   ;;  %s800_s4 = inlined_call_operand.vmem [shape: bf16[32,128], index: 4, kind: output, shape index: {}]  }
   0x1   :  { %v598_v0 = vld [vmem:[%s796_s1 + $0x40] sm:$0xff]   ;;  %v602_v4 = vld [vmem:[%s796_s1 + $0x48] sm:$0xff]   ;;  %v606_v8 = vld [vmem:[%s796_s1 + $0x50] sm:$0xff]  }
   0x2   :  { %v599_v1 = vld [vmem:[%s796_s1 + $0xc0] sm:$0xff]   ;;  %542 = vmatprep.subr.bf16.mxu0 %v598_v0  ;;  %v603_v5 = vld [vmem:[%s796_s1 + $0xc8] sm:$0xff]   ;;  %v607_v9 = vld [vmem:[%s796_s1 + $0xd0] sm:$0xff]  }
   0x3   :  { %v600_v2 = vld [vmem:[%s796_s1] sm:$0xff]   ;;  %570 = vmatprep.subr.bf16.mxu1 %v599_v1  ;;  %v604_v6 = vld [vmem:[%s796_s1 + $0x8] sm:$0xff]   ;;  %v608_v10 = vld [vmem:[%s796_s1 + $0x10] sm:$0xff]  }
   0x4   :  { %v601_v3 = vld [vmem:[%s796_s1 + $0x80] sm:$0xff]   ;;  %543 = vmatpush3.bf16.msra.mxu0 %v600_v2  ;;  %v605_v7 = vld [vmem:[%s796_s1 + $0x88] sm:$0xff]   ;;  %v609_v11 = vld [vmem:[%s796_s1 + $0x90] sm:$0xff]  }
   0x5   :  { %571 = vmatpush3.bf16.msra.mxu1 %v601_v3  ;;  %544 = vmatprep.subr.bf16.mxu0 %v602_v4  ;;  %v610_v12 = vld [vmem:[%s796_s1 + $0x58] sm:$0xff]   ;;  %v614_v16 = vld [vmem:[%s796_s1 + $0x60] sm:$0xff]   ;;  %v618_v20 = vld [vmem:[%s796_s1 + $0x68] sm:$0xff]  }
   0x6   :  { %572 = vmatprep.subr.bf16.mxu1 %v603_v5  ;;  %v611_v13 = vld [vmem:[%s796_s1 + $0xd8] sm:$0xff]   ;;  %v615_v17 = vld [vmem:[%s796_s1 + $0xe0] sm:$0xff]   ;;  %v619_v21 = vld [vmem:[%s796_s1 + $0xe8] sm:$0xff]  }
   0x7   :  { %v612_v14 = vld [vmem:[%s796_s1 + $0x18] sm:$0xff]   ;;  %v616_v18 = vld [vmem:[%s796_s1 + $0x20] sm:$0xff]   ;;  %v620_v22 = vld [vmem:[%s796_s1 + $0x28] sm:$0xff]  }
   0x8   :  { %545 = vmatpush3.bf16.msra.mxu0 %v604_v6  ;;  %v613_v15 = vld [vmem:[%s796_s1 + $0x98] sm:$0xff]   ;;  %v617_v19 = vld [vmem:[%s796_s1 + $0xa0] sm:$0xff]   ;;  %v621_v23 = vld [vmem:[%s796_s1 + $0xa8] sm:$0xff]  }
   0x9   :  { %573 = vmatpush3.bf16.msra.mxu1 %v605_v7  ;;  %546 = vmatprep.subr.bf16.mxu0 %v606_v8  ;;  %v622_v24 = vld [vmem:[%s796_s1 + $0x70] sm:$0xff]   ;;  %v626_v28 = vld [vmem:[%s796_s1 + $0x78] sm:$0xff]   ;;  %v522_v53 = vld [vmem:[%s799_s2] ss:$0 sm:$0xff] }
   0xa   :  { %574 = vmatprep.subr.bf16.mxu1 %v607_v9  ;;  %v623_v25 = vld [vmem:[%s796_s1 + $0xf0] sm:$0xff]   ;;  %v627_v29 = vld [vmem:[%s796_s1 + $0xf8] sm:$0xff]  }
   0xb   :  { %v624_v26 = vld [vmem:[%s796_s1 + $0x30] sm:$0xff]   ;;  %v628_v30 = vld [vmem:[%s796_s1 + $0x38] sm:$0xff]  }
   0xc   :  { %547 = vmatpush3.bf16.msra.mxu0 %v608_v10  ;;  %v625_v27 = vld [vmem:[%s796_s1 + $0xb0] sm:$0xff]   ;;  %v629_v31 = vld [vmem:[%s796_s1 + $0xb8] sm:$0xff]  }
   0xd   :  { %575 = vmatpush3.bf16.msra.mxu1 %v609_v11  ;;  %548 = vmatprep.subr.bf16.mxu0 %v610_v12  ;;  %v630_v32 = vld [vmem:[%s798_s0] ss:$16 sps:$4 sm:$0xff]   ;;  %v632_v33 = vld [vmem:[%s798_s0 + $0x4] ss:$16 sps:$4 sm:$0xff]   ;;  %v633_v34 = vld [vmem:[%s798_s0 + $0x8] ss:$16 sps:$4 sm:$0xff]  }
   0xe   :  { %576 = vmatprep.subr.bf16.mxu1 %v611_v13  ;;  %v635_v35 = vld [vmem:[%s798_s0 + $0xc] ss:$16 sps:$4 sm:$0xff]   ;;  %366 = vmatprep.mubr.bf16.mxu0 %v632_v33  ;;  %v636_v36 = vld [vmem:[%s798_s0 + $0x24] ss:$16 sps:$4 sm:$0xff]   ;;  %v640_v38 = vld [vmem:[%s798_s0 + $0x20] ss:$16 sps:$4 sm:$0xff]  }
   0xf   :  { %415 = vmatprep.mubr.bf16.mxu1 %v635_v35  ;;  %v638_v37 = vld [vmem:[%s798_s0 + $0x2c] ss:$16 sps:$4 sm:$0xff]   ;;  %v641_v39 = vld [vmem:[%s798_s0 + $0x28] ss:$16 sps:$4 sm:$0xff]  }
  0x10   :  { %549 = vmatpush3.bf16.msra.mxu0 %v612_v14 }
  0x11   :  { %577 = vmatpush3.bf16.msra.mxu1 %v613_v15  ;;  %550 = vmatprep.subr.bf16.mxu0 %v614_v16 }
  0x12   :  { %578 = vmatprep.subr.bf16.mxu1 %v615_v17 }
  0x14   :  { %551 = vmatpush3.bf16.msra.mxu0 %v616_v18 }
  0x15   :  { %579 = vmatpush3.bf16.msra.mxu1 %v617_v19  ;;  %552 = vmatprep.subr.bf16.mxu0 %v618_v20 }
  0x16   :  { %580 = vmatprep.subr.bf16.mxu1 %v619_v21 }
  0x18   :  { %553 = vmatpush3.bf16.msra.mxu0 %v620_v22 }
  0x19   :  { %581 = vmatpush3.bf16.msra.mxu1 %v621_v23  ;;  %554 = vmatprep.subr.bf16.mxu0 %v622_v24 }
  0x1a   :  { %582 = vmatprep.subr.bf16.mxu1 %v623_v25 }
  0x1c   :  { %555 = vmatpush3.bf16.msra.mxu0 %v624_v26 }
  0x1d   :  { %583 = vmatpush3.bf16.msra.mxu1 %v625_v27  ;;  %556 = vmatprep.subr.bf16.mxu0 %v626_v28 }
  0x1e   :  { %584 = vmatprep.subr.bf16.mxu1 %v627_v29 }
  0x20   :  { %557 = vmatpush3.bf16.msra.mxu0 %v628_v30 }
  0x21   :  { %585 = vmatpush3.bf16.msra.mxu1 %v629_v31 }
  0x23   :  { %367 = vmatmul.mubr.bf16.vlgmr.msra.gmra.mrb[0].mxu0 %v630_v32 }
  0x24   :  { %416 = vmatmul.mubr.bf16.vlgmr.msra.gmra.mrb[0].mxu1 %v633_v34  ;;  %374 = vmatprep.mubr.bf16.mxu0 %v636_v36 }
  0x25   :  { %423 = vmatprep.mubr.bf16.mxu1 %v638_v37 }
  0x2b   :  { %375 = vmatmul.mubr.bf16.gmra.mrb[4].mxu0 %v640_v38 }
  0x2c   :  { %424 = vmatmul.mubr.bf16.gmra.mrb[4].mxu1 %v641_v39 }
  0xf6   :  { %v558_v40 = vpop.f32.mrb[0].mxu0 }
  0xf7   :  { %v586_v41 = vpop.f32.mrb[0].mxu1  ;;  %v559_v42 = vpop.f32.mrb[1].mxu0 }
  0xf8   :  { %v560_v43 = vadd.f32 %v559_v42, %v558_v40  ;;  %v587_v44 = vpop.f32.mrb[1].mxu1  ;;  %v561_v45 = vpop.f32.mrb[2].mxu0 }
  0xf9   :  { %v588_v46 = vadd.f32 %v587_v44, %v586_v41  ;;  %v589_v47 = vpop.f32.mrb[2].mxu1  ;;  %v562_v48 = vpop.f32.mrb[3].mxu0 }
  0xfa   :  { %v563_v49 = vadd.f32 %v562_v48, %v561_v45  ;;  %v590_v50 = vpop.f32.mrb[3].mxu1 }
  0xfb   :  { %v418_v51 = vadd.f32 %v588_v46, %v560_v43  ;;  %v591_v52 = vadd.f32 %v590_v50, %v589_v47 }
  0xfd   :  { %v421_v54 = vadd.f32 %v591_v52, %v563_v49  ;;  %v454_v56 = vadd.f32 %v522_v53, %v418_v51 }
  0xfe   :  { %v564_v55 = vpop.f32.mrb[4].mxu0 }
  0xff   :  { %v455_v57 = vadd.f32 %v522_v53, %v421_v54  ;;  %v592_v58 = vpop.f32.mrb[4].mxu1  ;;  %v565_v59 = vpop.f32.mrb[5].mxu0 }
 0x100   :  { %v566_v60 = vadd.f32 %v565_v59, %v564_v55  ;;  %v593_v61 = vpop.f32.mrb[5].mxu1  ;;  %v567_v62 = vpop.f32.mrb[6].mxu0 }
 0x101   :  { %v534_v63 = vpack.c.bf16 %v455_v57, %v454_v56  ;;  %v594_v0 = vadd.f32 %v593_v61, %v592_v58  ;;  %v595_v1 = vpop.f32.mrb[6].mxu1  ;;  %v568_v2 = vpop.f32.mrb[7].mxu0 }
 0x102   :  { %v569_v3 = vadd.f32 %v568_v2, %v567_v62  ;;  %v596_v4 = vpop.f32.mrb[7].mxu1 }
 0x103   :  { %535 = vst [vmem:[%s800_s4] sm:$0xff] %v534_v63   ;;  %v426_v5 = vadd.f32 %v594_v0, %v566_v60  ;;  %v597_v6 = vadd.f32 %v596_v4, %v595_v1 }
 0x105   :  { %v429_v7 = vadd.f32 %v597_v6, %v569_v3  ;;  %v456_v8 = vadd.f32 %v522_v53, %v426_v5 }
 0x107   :  { %v457_v9 = vadd.f32 %v522_v53, %v429_v7 }
 0x109   :  { %v539_v10 = vpack.c.bf16 %v457_v9, %v456_v8 }
 0x10b   :  { %541 = vst [vmem:[%s800_s4 + $0x8] sm:$0xff] %v539_v10  }

// kernel: vxm_dense_forward.16
= control target key start
LH: loop header
LB: loop body
LE: loop exit
PB: predicated region body
PF: predicated region fallthrough
CT: control target
= control target key end

     0   :  { %s697_s1 = inlined_call_operand.vmem [shape: bf16[384,128], index: 1, kind: input, shape index: {}]   ;;  %s698_s0 = inlined_call_operand.vmem [shape: bf16[32,384], index: 0, kind: input, shape index: {}]   ;;  %s699_s2 = inlined_call_operand.vmem [shape: f32[1,128], index: 2, kind: input, shape index: {}]   ;;  %s700_s3 = inlined_call_operand.vmem [shape: f32[1,128], index: 3, kind: input, shape index: {}]   ;;  %s701_s4 = inlined_call_operand.vmem [shape: bf16[32,128], index: 4, kind: output, shape index: {}]  }
   0x1   :  { %v538_v0 = vld [vmem:[%s697_s1 + $0x40] sm:$0xff]   ;;  %v541_v3 = vld [vmem:[%s697_s1 + $0x48] sm:$0xff]   ;;  %v544_v6 = vld [vmem:[%s697_s1 + $0x50] sm:$0xff]  }
   0x2   :  { %v539_v1 = vld [vmem:[%s697_s1] sm:$0xff]   ;;  %480 = vmatprep.subr.bf16.mxu0 %v538_v0  ;;  %v542_v4 = vld [vmem:[%s697_s1 + $0x8] sm:$0xff]   ;;  %v545_v7 = vld [vmem:[%s697_s1 + $0x10] sm:$0xff]  }
   0x3   :  { %v540_v2 = vld [vmem:[%s697_s1 + $0x80] sm:$0xff]   ;;  %481 = vmatpush3.bf16.msra.mxu0 %v539_v1  ;;  %v543_v5 = vld [vmem:[%s697_s1 + $0x88] sm:$0xff]   ;;  %v546_v8 = vld [vmem:[%s697_s1 + $0x90] sm:$0xff]  }
   0x4   :  { %518 = vmatprep.subr.bf16.mxu1 %v540_v2  ;;  %482 = vmatprep.subr.bf16.mxu0 %v541_v3  ;;  %v547_v9 = vld [vmem:[%s697_s1 + $0x58] sm:$0xff]   ;;  %v550_v12 = vld [vmem:[%s697_s1 + $0x60] sm:$0xff]   ;;  %v553_v15 = vld [vmem:[%s697_s1 + $0x68] sm:$0xff]  }
   0x5   :  { %519 = vmatpush3.bf16.msra.mxu1 %v540_v2  ;;  %v548_v10 = vld [vmem:[%s697_s1 + $0x18] sm:$0xff]   ;;  %v552_v13 = vld [vmem:[%s697_s1 + $0xa0] sm:$0xff]   ;;  %v555_v16 = vld [vmem:[%s697_s1 + $0xa8] sm:$0xff]  }
   0x6   :  { %520 = vmatprep.subr.bf16.mxu1 %v543_v5  ;;  %v549_v11 = vld [vmem:[%s697_s1 + $0x98] sm:$0xff]   ;;  %v551_v14 = vld [vmem:[%s697_s1 + $0x20] sm:$0xff]   ;;  %v554_v17 = vld [vmem:[%s697_s1 + $0x28] sm:$0xff]  }
   0x7   :  { %483 = vmatpush3.bf16.msra.mxu0 %v542_v4  ;;  %v556_v18 = vld [vmem:[%s697_s1 + $0x70] sm:$0xff]   ;;  %v559_v21 = vld [vmem:[%s697_s1 + $0x78] sm:$0xff]   ;;  %v562_v26 = vld [vmem:[%s698_s0] ss:$12 sps:$4 sm:$0xff]  }
   0x8   :  { %484 = vmatprep.subr.bf16.mxu0 %v544_v6  ;;  %v557_v19 = vld [vmem:[%s697_s1 + $0x30] sm:$0xff]   ;;  %v561_v22 = vld [vmem:[%s697_s1 + $0xb8] sm:$0xff]   ;;  %v566_v28 = vld [vmem:[%s698_s0 + $0x20] ss:$12 sps:$4 sm:$0xff]  }
   0x9   :  { %521 = vmatpush3.bf16.msra.mxu1 %v543_v5  ;;  %v558_v20 = vld [vmem:[%s697_s1 + $0xb0] sm:$0xff]   ;;  %v560_v25 = vld [vmem:[%s697_s1 + $0x38] sm:$0xff]   ;;  %v459_v37 = vld [vmem:[%s699_s2] ss:$0 sm:$0xff] }
   0xa   :  { %522 = vmatprep.subr.bf16.mxu1 %v546_v8  ;;  %v564_v23 = vld [vmem:[%s698_s0 + $0x4] ss:$12 sps:$4 sm:$0xff]   ;;  %v565_v24 = vld [vmem:[%s698_s0 + $0x8] ss:$12 sps:$4 sm:$0xff]   ;;  %v460_v41 = vld [vmem:[%s700_s3] ss:$0 sm:$0xff] }
   0xb   :  { %485 = vmatpush3.bf16.msra.mxu0 %v545_v7  ;;  %294 = vmatprep.mubr.bf16.mxu0 %v564_v23  ;;  %v567_v27 = vld [vmem:[%s698_s0 + $0x1c] ss:$12 sps:$4 sm:$0xff]   ;;  %v569_v29 = vld [vmem:[%s698_s0 + $0x18] ss:$12 sps:$4 sm:$0xff]  }
   0xc   :  { %486 = vmatprep.subr.bf16.mxu0 %v547_v9  ;;  %534 = vmatprep.mubr.bf16.mxu1 %v565_v24 }
   0xd   :  { %523 = vmatpush3.bf16.msra.mxu1 %v546_v8 }
   0xe   :  { %524 = vmatprep.subr.bf16.mxu1 %v549_v11 }
   0xf   :  { %487 = vmatpush3.bf16.msra.mxu0 %v548_v10 }
  0x10   :  { %488 = vmatprep.subr.bf16.mxu0 %v550_v12 }
  0x11   :  { %525 = vmatpush3.bf16.msra.mxu1 %v549_v11 }
  0x12   :  { %526 = vmatprep.subr.bf16.mxu1 %v552_v13 }
  0x13   :  { %489 = vmatpush3.bf16.msra.mxu0 %v551_v14 }
  0x14   :  { %490 = vmatprep.subr.bf16.mxu0 %v553_v15 }
  0x15   :  { %527 = vmatpush3.bf16.msra.mxu1 %v552_v13 }
  0x16   :  { %528 = vmatprep.subr.bf16.mxu1 %v555_v16 }
  0x17   :  { %491 = vmatpush3.bf16.msra.mxu0 %v554_v17 }
  0x18   :  { %492 = vmatprep.subr.bf16.mxu0 %v556_v18 }
  0x19   :  { %529 = vmatpush3.bf16.msra.mxu1 %v555_v16 }
  0x1a   :  { %530 = vmatprep.subr.bf16.mxu1 %v558_v20 }
  0x1b   :  { %493 = vmatpush3.bf16.msra.mxu0 %v557_v19 }
  0x1c   :  { %494 = vmatprep.subr.bf16.mxu0 %v559_v21 }
  0x1d   :  { %531 = vmatpush3.bf16.msra.mxu1 %v558_v20 }
  0x1e   :  { %532 = vmatprep.subr.bf16.mxu1 %v561_v22 }
  0x1f   :  { %495 = vmatpush3.bf16.msra.mxu0 %v560_v25 }
  0x21   :  { %533 = vmatpush3.bf16.msra.mxu1 %v561_v22 }
  0x22   :  { %295 = vmatmul.mubr.bf16.vlgmr.msra.gmra.mrb[0].mxu0 %v562_v26 }
  0x23   :  { %302 = vmatprep.mubr.bf16.mxu0 %v567_v27 }
  0x24   :  { %535 = vmatmul.mubr.bf16.vlgmr.msra.gmra.mrb[0].mxu1 %v566_v28 }
  0x2a   :  { %303 = vmatmul.mubr.bf16.gmra.mrb[4].mxu0 %v569_v29 }
  0xf5   :  { %v496_v30 = vpop.f32.mrb[0].mxu0 }
  0xf6   :  { %v497_v31 = vpop.f32.mrb[1].mxu0 }
  0xf7   :  { %v498_v32 = vadd.f32 %v497_v31, %v496_v30  ;;  %v499_v33 = vpop.f32.mrb[2].mxu0  ;;  %v536_v34 = vpop.f32.mrb[0].mxu1 }
  0xf8   :  { %v500_v35 = vpop.f32.mrb[3].mxu0  ;;  %v345_v36 = vpop.f32.mrb[1].mxu1 }
  0xf9   :  { %v501_v38 = vadd.f32 %v500_v35, %v499_v33  ;;  %v346_v39 = vadd.f32 %v498_v32, %v345_v36  ;;  %v537_v40 = vpop.f32.mrb[2].mxu1 }
  0xfa   :  { %v348_v42 = vpop.f32.mrb[3].mxu1 }
  0xfb   :  { %v382_v43 = vadd.f32 %v459_v37, %v346_v39  ;;  %v349_v44 = vadd.f32 %v501_v38, %v348_v42 }
  0xfd   :  { %v397_v45 = vmul.f32 %v460_v41, %v382_v43  ;;  %v383_v46 = vadd.f32 %v459_v37, %v349_v44  ;;  %v502_v47 = vpop.f32.mrb[4].mxu0  ;;  %vm386_vm0 = vcmp.ge.f32.partialorder %v382_v43, 0.0 }
  0xfe   :  { %v503_v48 = vpop.f32.mrb[5].mxu0 }
  0xff   :  { %vm387_vm1 = vcmp.ge.f32.partialorder %v383_v46, 0.0  ;;  %v398_v49 = vmul.f32 %v460_v41, %v383_v46  ;;  %v504_v50 = vadd.f32 %v503_v48, %v502_v47  ;;  %v505_v51 = vpop.f32.mrb[6].mxu0  ;;  %v401_v53 = vsel %vm386_vm0, %v382_v43, %v397_v45 }
 0x100   :  { %v506_v52 = vpop.f32.mrb[7].mxu0 }
 0x101   :  { %v402_v54 = vsel %vm387_vm1, %v383_v46, %v398_v49  ;;  %v354_v55 = vadd.f32 %v536_v34, %v504_v50  ;;  %v507_v56 = vadd.f32 %v506_v52, %v505_v51 }
 0x102   :  { %v472_v57 = vpack.c.bf16 %v402_v54, %v401_v53 }
 0x103   :  { %v384_v58 = vadd.f32 %v459_v37, %v354_v55  ;;  %v357_v59 = vadd.f32 %v537_v40, %v507_v56 }
 0x104   :  { %473 = vst [vmem:[%s701_s4] sm:$0xff] %v472_v57  }
 0x105   :  { %v399_v60 = vmul.f32 %v460_v41, %v384_v58  ;;  %v385_v61 = vadd.f32 %v459_v37, %v357_v59  ;;  %vm388_vm2 = vcmp.ge.f32.partialorder %v384_v58, 0.0 }
 0x107   :  { %vm389_vm3 = vcmp.ge.f32.partialorder %v385_v61, 0.0  ;;  %v400_v62 = vmul.f32 %v460_v41, %v385_v61  ;;  %v403_v63 = vsel %vm388_vm2, %v384_v58, %v399_v60 }
 0x109   :  { %v404_v0 = vsel %vm389_vm3, %v385_v61, %v400_v62 }
 0x10a   :  { %v477_v1 = vpack.c.bf16 %v404_v0, %v403_v63 }
 0x10c   :  { %479 = vst [vmem:[%s701_s4 + $0x8] sm:$0xff] %v477_v1  }

// kernel: vxm_dense_forward.17
= control target key start
LH: loop header
LB: loop body
LE: loop exit
PB: predicated region body
PF: predicated region fallthrough
CT: control target
= control target key end

     0   :  { %s477_s1 = inlined_call_operand.vmem [shape: bf16[128,128], index: 1, kind: input, shape index: {}]   ;;  %s478_s3 = inlined_call_operand.vmem [shape: f32[1,128], index: 3, kind: input, shape index: {}]   ;;  %s479_s0 = inlined_call_operand.vmem [shape: bf16[64,128], index: 0, kind: input, shape index: {}]   ;;  %s480_s2 = inlined_call_operand.vmem [shape: f32[1,128], index: 2, kind: input, shape index: {}]   ;;  %s481_s4 = inlined_call_operand.vmem [shape: bf16[64,128], index: 4, kind: output, shape index: {}]  }
   0x1   :  { %v389_v0 = vld [vmem:[%s477_s1] sm:$0xff]   ;;  %v390_v1 = vld [vmem:[%s477_s1 + $0x8] sm:$0xff]   ;;  %v391_v2 = vld [vmem:[%s477_s1 + $0x10] sm:$0xff]  }
   0x2   :  { %349 = vmatprep.subr.bf16.mxu0 %v389_v0  ;;  %373 = vmatprep.subr.bf16.mxu1 %v389_v0  ;;  %v392_v3 = vld [vmem:[%s477_s1 + $0x18] sm:$0xff]   ;;  %v397_v4 = vld [vmem:[%s479_s0] sm:$0xff]   ;;  %v398_v5 = vld [vmem:[%s479_s0 + $0x10] sm:$0xff]  }
   0x3   :  { %350 = vmatpush3.bf16.msra.mxu0 %v389_v0  ;;  %381 = vmatpush3.bf16.msra.mxu1 %v389_v0  ;;  %v393_v6 = vld [vmem:[%s477_s1 + $0x20] sm:$0xff]   ;;  %v394_v7 = vld [vmem:[%s477_s1 + $0x28] sm:$0xff]   ;;  %v395_v8 = vld [vmem:[%s477_s1 + $0x30] sm:$0xff]  }
   0x4   :  { %351 = vmatprep.subr.bf16.mxu0 %v390_v1  ;;  %374 = vmatprep.subr.bf16.mxu1 %v390_v1  ;;  %v396_v9 = vld [vmem:[%s477_s1 + $0x38] sm:$0xff]   ;;  %v399_v10 = vld [vmem:[%s479_s0 + $0x8] sm:$0xff]   ;;  %v297_v13 = vld [vmem:[%s480_s2] ss:$0 sm:$0xff] }
   0x5   :  { %365 = vmatprep.mubr.bf16.mxu0 %v397_v4  ;;  %369 = vmatprep.mubr.bf16.mxu1 %v398_v5  ;;  %v400_v11 = vld [vmem:[%s479_s0 + $0x18] sm:$0xff]  }
   0x7   :  { %352 = vmatpush3.bf16.msra.mxu0 %v390_v1  ;;  %382 = vmatpush3.bf16.msra.mxu1 %v390_v1 }
   0x8   :  { %353 = vmatprep.subr.bf16.mxu0 %v391_v2  ;;  %375 = vmatprep.subr.bf16.mxu1 %v391_v2 }
   0xb   :  { %354 = vmatpush3.bf16.msra.mxu0 %v391_v2  ;;  %383 = vmatpush3.bf16.msra.mxu1 %v391_v2 }
   0xc   :  { %355 = vmatprep.subr.bf16.mxu0 %v392_v3  ;;  %376 = vmatprep.subr.bf16.mxu1 %v392_v3 }
   0xf   :  { %356 = vmatpush3.bf16.msra.mxu0 %v392_v3  ;;  %384 = vmatpush3.bf16.msra.mxu1 %v392_v3 }
  0x10   :  { %357 = vmatprep.subr.bf16.mxu0 %v393_v6  ;;  %377 = vmatprep.subr.bf16.mxu1 %v393_v6 }
  0x13   :  { %358 = vmatpush3.bf16.msra.mxu0 %v393_v6  ;;  %385 = vmatpush3.bf16.msra.mxu1 %v393_v6 }
  0x14   :  { %359 = vmatprep.subr.bf16.mxu0 %v394_v7  ;;  %378 = vmatprep.subr.bf16.mxu1 %v394_v7 }
  0x17   :  { %360 = vmatpush3.bf16.msra.mxu0 %v394_v7  ;;  %386 = vmatpush3.bf16.msra.mxu1 %v394_v7 }
  0x18   :  { %361 = vmatprep.subr.bf16.mxu0 %v395_v8  ;;  %379 = vmatprep.subr.bf16.mxu1 %v395_v8 }
  0x1b   :  { %362 = vmatpush3.bf16.msra.mxu0 %v395_v8  ;;  %387 = vmatpush3.bf16.msra.mxu1 %v395_v8 }
  0x1c   :  { %363 = vmatprep.subr.bf16.mxu0 %v396_v9  ;;  %380 = vmatprep.subr.bf16.mxu1 %v396_v9 }
  0x1f   :  { %364 = vmatpush3.bf16.msra.mxu0 %v396_v9  ;;  %388 = vmatpush3.bf16.msra.mxu1 %v396_v9 }
  0x22   :  { %366 = vmatmul.mubr.bf16.vlgmr.msra.gmra.mrb[0].mxu0 %v399_v10  ;;  %370 = vmatmul.mubr.bf16.vlgmr.msra.gmra.mrb[0].mxu1 %v400_v11 }
  0xf5   :  { %v367_v12 = vpop.f32.mrb[0].mxu0  ;;  %v371_v14 = vpop.f32.mrb[0].mxu1 }
  0xf6   :  { %v168_v15 = vpop.f32.mrb[1].mxu0  ;;  %v184_v16 = vpop.f32.mrb[1].mxu1  ;;  %v235_v19 = vadd.f32 %v367_v12, %v297_v13  ;;  %v239_v20 = vadd.f32 %v371_v14, %v297_v13 }
  0xf7   :  { %v368_v17 = vpop.f32.mrb[2].mxu0  ;;  %v372_v18 = vpop.f32.mrb[2].mxu1  ;;  %v233_v25 = vadd.f32 %v297_v13, %v168_v15  ;;  %v237_v26 = vadd.f32 %v297_v13, %v184_v16 }
  0xf8   :  { %v236_v21 = vadd.f32 %v368_v17, %v297_v13  ;;  %v240_v22 = vadd.f32 %v372_v18, %v297_v13  ;;  %v171_v23 = vpop.f32.mrb[3].mxu0  ;;  %v187_v24 = vpop.f32.mrb[3].mxu1 }
  0xf9   :  { %v234_v27 = vadd.f32 %v297_v13, %v171_v23  ;;  %v238_v28 = vadd.f32 %v297_v13, %v187_v24 }
  0xfa   :  { %v322_v29 = vpack.c.bf16 %v236_v21, %v235_v19  ;;  %v332_v30 = vpack.c.bf16 %v240_v22, %v239_v20 }
  0xfb   :  { %v317_v31 = vpack.c.bf16 %v234_v27, %v233_v25  ;;  %v327_v32 = vpack.c.bf16 %v238_v28, %v237_v26 }
  0xfc   :  { %334 = vst [vmem:[%s481_s4 + $0x8] sm:$0xff] %v322_v29   ;;  %336 = vst [vmem:[%s481_s4 + $0x18] sm:$0xff] %v332_v30  }
  0xfd   :  { %318 = vst [vmem:[%s481_s4] sm:$0xff] %v317_v31   ;;  %335 = vst [vmem:[%s481_s4 + $0x10] sm:$0xff] %v327_v32  }

// kernel: vxm_dense_forward.18
= control target key start
LH: loop header
LB: loop body
LE: loop exit
PB: predicated region body
PF: predicated region fallthrough
CT: control target
= control target key end

     0   :  { %s1758_s15 = smov 0   ;;  %s1760_s16 = smov 0   ;;  %s2011_s0 = inlined_call_operand.vmem [shape: bf16[128,768], index: 0, kind: input, shape index: {}]   ;;  %s2012_s1 = inlined_call_operand.vmem [shape: bf16[768,128], index: 1, kind: input, shape index: {}]   ;;  %s2013_s2 = inlined_call_operand.vmem [shape: f32[1,128], index: 2, kind: input, shape index: {}]   ;;  %s2014_s3 = inlined_call_operand.vmem [shape: f32[1,128], index: 3, kind: input, shape index: {}]   ;;  %s2015_s4 = inlined_call_operand.vmem [shape: bf16[128,128], index: 4, kind: output, shape index: {}]  }
   0x1   :  { %s1762_s17 = smov 0   ;;  %s1764_s18 = smov 0  }
   0x2   :  { %s1766_s19 = smov 0  }
   0x3 LB: > { %s26_s20 = sadd.s32 1, %s1726_s18  ;;  %p49_p1 = scmp.ne.s32.totalorder %s1718_s16, %s1714_s15  ;;  %s1730_s19 = sphi %s1766_s19, %s14_s19   ;;  %s1726_s18 = sphi %s1764_s18, %s2019_s18   ;;  %s1722_s17 = sphi %s1762_s17, %s2018_s17   ;;  %s1718_s16 = sphi %s1760_s16, %s2017_s16   ;;  %s1714_s15 = sphi %s1758_s15, %s2016_s15  }
   0x4   : > { %p27_p0 = scmp.ge.s32.totalorder %s26_s20, 2  ;;  %p50_p2 = scmp.eq.s32.totalorder %s1730_s19, 0 }
   0x5   : > { %s42_s22 = sadd.s32 1, %s1718_s16  ;;  %p1309_p5 = scmp.ge.s32.totalorder %s1730_s19, 2 }
   0x6   : > { %s2021_s20 = smov (%p27_p0, %s26_s20), 0  ;;  %p51_p3 = por %p50_p2, %p49_p1 }
   0x7   : > { %s38_s21 = ssub.s32 %s1726_s18, %s2021_s20  ;;  %195 = sbr.rel (%p1309_p5) target bundleno = 37 (0x25), region = 24 }
   0x8   : > { %p40_p4 = scmp.eq.s32.totalorder %s38_s21, 0 }
   0xa   : > { %s1793_s23 = scalar_select %p40_p4, %s1718_s16, %s42_s22  }
   0xe   : > { %198 = sbr.rel (!%p51_p3) target bundleno = 37 (0x25), region = 28  ;;  %s200_s24 = sand.u32 (%p51_p3), 1, %s1718_s16  }
   0xf   : > { %s1417_s25 = smul.u32 (%p51_p3), 12, %s1726_s18 }
  0x10   : > { %s1593_s26 = smul.u32 (%p51_p3), 192, %s200_s24 }
  0x11   : > { %s1801_s29 = scalar_lea.vmem (%p51_p3), %s2011_s0, %s1417_s25 }
  0x12   : > { %v223_v0 = vld [vmem:[%s1801_s29] sm:$0xff] (%p51_p3)  ;;  %v225_v1 = vld [vmem:[%s1801_s29 + $0x18] sm:$0xff] (%p51_p3)  ;;  %v227_v2 = vld [vmem:[%s1801_s29 + $0x30] sm:$0xff] (%p51_p3)  ;;  %s1806_s30 = scalar_lea.vmem (%p51_p3), [#allocation3], %s1593_s26 }
  0x13   : > { %224 = vst [vmem:[%s1806_s30] sm:$0xff] (%p51_p3), %v223_v0  ;;  %226 = vst [vmem:[%s1806_s30 + $0xc] sm:$0xff] (%p51_p3), %v225_v1  ;;  %v229_v3 = vld [vmem:[%s1801_s29 + $0x48] sm:$0xff] (%p51_p3)  ;;  %v231_v4 = vld [vmem:[%s1801_s29 + $0x60] sm:$0xff] (%p51_p3) }
  0x14   : > { %228 = vst [vmem:[%s1806_s30 + $0x18] sm:$0xff] (%p51_p3), %v227_v2  ;;  %v233_v5 = vld [vmem:[%s1801_s29 + $0x78] sm:$0xff] (%p51_p3)  ;;  %230 = vst [vmem:[%s1806_s30 + $0x24] sm:$0xff] (%p51_p3), %v229_v3  ;;  %v235_v6 = vld [vmem:[%s1801_s29 + $0x90] sm:$0xff] (%p51_p3) }
  0x15   : > { %232 = vst [vmem:[%s1806_s30 + $0x30] sm:$0xff] %v231_v4  ;;  %234 = vst [vmem:[%s1806_s30 + $0x3c] sm:$0xff] %v233_v5  ;;  %v237_v7 = vld [vmem:[%s1801_s29 + $0xa8] sm:$0xff]  ;;  %v239_v8 = vld [vmem:[%s1801_s29 + $0xc0] sm:$0xff] }
  0x16   : > { %236 = vst [vmem:[%s1806_s30 + $0x48] sm:$0xff] %v235_v6  ;;  %238 = vst [vmem:[%s1806_s30 + $0x54] sm:$0xff] %v237_v7  ;;  %v241_v9 = vld [vmem:[%s1801_s29 + $0xd8] sm:$0xff]  ;;  %v243_v10 = vld [vmem:[%s1801_s29 + $0xf0] sm:$0xff] }
  0x17   : > { %240 = vst [vmem:[%s1806_s30 + $0x60] sm:$0xff] %v239_v8  ;;  %v245_v11 = vld [vmem:[%s1801_s29 + $0x108] sm:$0xff]  ;;  %242 = vst [vmem:[%s1806_s30 + $0x6c] sm:$0xff] %v241_v9  ;;  %v247_v12 = vld [vmem:[%s1801_s29 + $0x120] sm:$0xff] }
  0x18   : > { %244 = vst [vmem:[%s1806_s30 + $0x78] sm:$0xff] %v243_v10  ;;  %246 = vst [vmem:[%s1806_s30 + $0x84] sm:$0xff] %v245_v11  ;;  %v249_v13 = vld [vmem:[%s1801_s29 + $0x138] sm:$0xff]  ;;  %v251_v14 = vld [vmem:[%s1801_s29 + $0x150] sm:$0xff] }
  0x19   : > { %248 = vst [vmem:[%s1806_s30 + $0x90] sm:$0xff] %v247_v12  ;;  %250 = vst [vmem:[%s1806_s30 + $0x9c] sm:$0xff] %v249_v13  ;;  %v253_v15 = vld [vmem:[%s1801_s29 + $0x168] sm:$0xff]  ;;  %v1313_v17 = vld [vmem:[%s1801_s29 + $0x20] sm:$0xf] }
  0x1a   : > { %252 = vst [vmem:[%s1806_s30 + $0xa8] sm:$0xff] %v251_v14  ;;  %v1311_v16 = vld [vmem:[%s1801_s29 + $0x8] sm:$0xf]  ;;  %254 = vst [vmem:[%s1806_s30 + $0xb4] sm:$0xff] %v253_v15  ;;  %v1315_v18 = vld [vmem:[%s1801_s29 + $0x38] sm:$0xf] }
  0x1b   : > { %1312 = vst [vmem:[%s1806_s30 + $0x8] sm:$0xf] %v1311_v16  ;;  %1314 = vst [vmem:[%s1806_s30 + $0x14] sm:$0xf] %v1313_v17  ;;  %v1317_v19 = vld [vmem:[%s1801_s29 + $0x50] sm:$0xf] }
  0x1c   : > { %v1319_v20 = vld [vmem:[%s1801_s29 + $0x68] sm:$0xf]  ;;  %1316 = vst [vmem:[%s1806_s30 + $0x20] sm:$0xf] %v1315_v18  ;;  %1318 = vst [vmem:[%s1806_s30 + $0x2c] sm:$0xf] %v1317_v19 }
  0x1d   : > { %1320 = vst [vmem:[%s1806_s30 + $0x38] sm:$0xf] %v1319_v20  ;;  %v1321_v21 = vld [vmem:[%s1801_s29 + $0x80] sm:$0xf]  ;;  %v1323_v22 = vld [vmem:[%s1801_s29 + $0x98] sm:$0xf] }
  0x1e   : > { %v1325_v23 = vld [vmem:[%s1801_s29 + $0xb0] sm:$0xf]  ;;  %1322 = vst [vmem:[%s1806_s30 + $0x44] sm:$0xf] %v1321_v21  ;;  %1324 = vst [vmem:[%s1806_s30 + $0x50] sm:$0xf] %v1323_v22 }
  0x1f   : > { %1326 = vst [vmem:[%s1806_s30 + $0x5c] sm:$0xf] %v1325_v23  ;;  %v1327_v24 = vld [vmem:[%s1801_s29 + $0xc8] sm:$0xf]  ;;  %v1329_v25 = vld [vmem:[%s1801_s29 + $0xe0] sm:$0xf] }
  0x20   : > { %v1331_v26 = vld [vmem:[%s1801_s29 + $0xf8] sm:$0xf]  ;;  %1328 = vst [vmem:[%s1806_s30 + $0x68] sm:$0xf] %v1327_v24  ;;  %1330 = vst [vmem:[%s1806_s30 + $0x74] sm:$0xf] %v1329_v25 }
  0x21   : > { %1332 = vst [vmem:[%s1806_s30 + $0x80] sm:$0xf] %v1331_v26  ;;  %v1333_v27 = vld [vmem:[%s1801_s29 + $0x110] sm:$0xf]  ;;  %v1335_v28 = vld [vmem:[%s1801_s29 + $0x128] sm:$0xf] }
  0x22   : > { %v1337_v29 = vld [vmem:[%s1801_s29 + $0x140] sm:$0xf]  ;;  %1334 = vst [vmem:[%s1806_s30 + $0x8c] sm:$0xf] %v1333_v27  ;;  %1336 = vst [vmem:[%s1806_s30 + $0x98] sm:$0xf] %v1335_v28 }
  0x23   : > { %1338 = vst [vmem:[%s1806_s30 + $0xa4] sm:$0xf] %v1337_v29  ;;  %v1339_v30 = vld [vmem:[%s1801_s29 + $0x158] sm:$0xf]  ;;  %v1341_v31 = vld [vmem:[%s1801_s29 + $0x170] sm:$0xf] }
  0x24   : > { %1340 = vst [vmem:[%s1806_s30 + $0xb0] sm:$0xf] %v1339_v30  ;;  %1342 = vst [vmem:[%s1806_s30 + $0xbc] sm:$0xf] %v1341_v31 }
  0x25 PF: > { %p1343_p6 = scmp.ge.s32.totalorder %s1730_s19, 1  ;;  %p310_p7 = scmp.lt.s32.totalorder %s1730_s19, 3 }
  0x27   : > { %p311_p8 = pnand %p1343_p6, %p310_p7 }
  0x28   : > { %s317_s5 = sand.u32 (!%p311_p8), 1, %s1714_s15   ;;  %s361_s6 = smul.u32 (!%p311_p8), 48, %s1722_s17 }
  0x29   : > { %314 = sbr.rel (%p311_p8) target bundleno = 384 (0x180), region = 58  ;;  %p1345_p10 = scmp.ne.s32.totalorder (!%p311_p8), %s1722_s17, 0 }
  0x2a   : > { %s1594_s7 = smul.u32 (!%p311_p8), 192, %s317_s5  ;;  %p362_p9 = scmp.lt.s32.totalorder (!%p311_p8), %s361_s6, 95 }
  0x2c   : > { %s1878_s12 = scalar_lea.vmem (!%p311_p8), [#allocation3], %s1594_s7 }
  0x30   : > { %s2023_s6 = smov (!%p362_p9, %s361_s6), 95  ;;  %389 = sbr.rel (%p1345_p10) target bundleno = 58 (0x3a), region = 66 }
  0x31   : > { %s1344_s8 = sshll.u32 %s2023_s6, 2  ;;  %v1732_v32 = vmov (!%p1345_p10), 0.0  }
  0x32   : > { %s1876_s11 = scalar_lea.vmem %s2012_s1, %s1344_s8  ;;  %390 = vst [vmem:[#allocation2] sm:$0xff] (!%p1345_p10), %v1732_v32  ;;  %391 = vst [vmem:[#allocation2 + $0x8] sm:$0xff] (!%p1345_p10), %v1732_v32 }
  0x33   : > { %392 = vst [vmem:[#allocation2 + $0x10] sm:$0xff] (!%p1345_p10), %v1732_v32  ;;  %393 = vst [vmem:[#allocation2 + $0x18] sm:$0xff] (!%p1345_p10), %v1732_v32 }
  0x34   : > { %394 = vst [vmem:[#allocation2 + $0x20] sm:$0xff] (!%p1345_p10), %v1732_v32  ;;  %395 = vst [vmem:[#allocation2 + $0x28] sm:$0xff] (!%p1345_p10), %v1732_v32 }
  0x35   : > { %396 = vst [vmem:[#allocation2 + $0x30] sm:$0xff] (!%p1345_p10), %v1732_v32  ;;  %397 = vst [vmem:[#allocation2 + $0x38] sm:$0xff] (!%p1345_p10), %v1732_v32 }
  0x36   : > { %398 = vst [vmem:[#allocation2 + $0x40] sm:$0xff] (!%p1345_p10), %v1732_v32  ;;  %399 = vst [vmem:[#allocation2 + $0x48] sm:$0xff] (!%p1345_p10), %v1732_v32 }
  0x37   : > { %400 = vst [vmem:[#allocation2 + $0x50] sm:$0xff] %v1732_v32  ;;  %401 = vst [vmem:[#allocation2 + $0x58] sm:$0xff] %v1732_v32 }
  0x38   : > { %402 = vst [vmem:[#allocation2 + $0x60] sm:$0xff] %v1732_v32  ;;  %403 = vst [vmem:[#allocation2 + $0x68] sm:$0xff] %v1732_v32 }
  0x39   : > { %404 = vst [vmem:[#allocation2 + $0x70] sm:$0xff] %v1732_v32  ;;  %405 = vst [vmem:[#allocation2 + $0x78] sm:$0xff] %v1732_v32 }
  0x3a PF: > { %v1636_v33 = vld [vmem:[%s1876_s11 + $0x40] sm:$0xff]   ;;  %v1639_v36 = vld [vmem:[%s1876_s11 + $0x48] sm:$0xff]   ;;  %v1642_v39 = vld [vmem:[%s1876_s11 + $0x50] sm:$0xff]   ;;  %p1394_p11 = scmp.ne.s32.totalorder %s1722_s17, 1 }
  0x3b   : > { %v1637_v34 = vld [vmem:[%s1876_s11] sm:$0xff]   ;;  %1481 = vmatprep.subr.bf16.mxu0 %v1636_v33  ;;  %v1640_v37 = vld [vmem:[%s1876_s11 + $0x8] sm:$0xff]   ;;  %v1643_v40 = vld [vmem:[%s1876_s11 + $0x10] sm:$0xff]  }
  0x3c   : > { %v1638_v35 = vld [vmem:[%s1876_s11 + $0x80] sm:$0xff]   ;;  %1482 = vmatpush3.bf16.msra.mxu0 %v1637_v34  ;;  %v1641_v38 = vld [vmem:[%s1876_s11 + $0x88] sm:$0xff]   ;;  %v1644_v41 = vld [vmem:[%s1876_s11 + $0x90] sm:$0xff]  }
  0x3d   : > { %1561 = vmatprep.subr.bf16.mxu1 %v1638_v35  ;;  %1483 = vmatprep.subr.bf16.mxu0 %v1639_v36  ;;  %v1645_v42 = vld [vmem:[%s1876_s11 + $0x58] sm:$0xff]   ;;  %v1648_v45 = vld [vmem:[%s1876_s11 + $0x60] sm:$0xff]   ;;  %v1651_v48 = vld [vmem:[%s1876_s11 + $0x68] sm:$0xff]  }
  0x3e   : > { %1562 = vmatpush3.bf16.msra.mxu1 %v1638_v35  ;;  %v1646_v43 = vld [vmem:[%s1876_s11 + $0x18] sm:$0xff]   ;;  %v1650_v46 = vld [vmem:[%s1876_s11 + $0xa0] sm:$0xff]   ;;  %v1653_v49 = vld [vmem:[%s1876_s11 + $0xa8] sm:$0xff]  }
  0x3f   : > { %1563 = vmatprep.subr.bf16.mxu1 %v1641_v38  ;;  %v1647_v44 = vld [vmem:[%s1876_s11 + $0x98] sm:$0xff]   ;;  %v1649_v47 = vld [vmem:[%s1876_s11 + $0x20] sm:$0xff]   ;;  %v1652_v50 = vld [vmem:[%s1876_s11 + $0x28] sm:$0xff]  }
  0x40   : > { %1484 = vmatpush3.bf16.msra.mxu0 %v1640_v37  ;;  %v1654_v51 = vld [vmem:[%s1876_s11 + $0x70] sm:$0xff]   ;;  %v1657_v54 = vld [vmem:[%s1876_s11 + $0x78] sm:$0xff]   ;;  %v1660_v59 = vld [vmem:[%s1878_s12] ss:$12 sps:$4 sm:$0xff]  }
  0x41   : > { %1485 = vmatprep.subr.bf16.mxu0 %v1642_v39  ;;  %v1655_v52 = vld [vmem:[%s1876_s11 + $0x30] sm:$0xff]   ;;  %v1659_v55 = vld [vmem:[%s1876_s11 + $0xb8] sm:$0xff]   ;;  %v1664_v61 = vld [vmem:[%s1878_s12 + $0x20] ss:$12 sps:$4 sm:$0xff]  }
  0x42   : > { %1564 = vmatpush3.bf16.msra.mxu1 %v1641_v38  ;;  %v1656_v53 = vld [vmem:[%s1876_s11 + $0xb0] sm:$0xff]   ;;  %v1658_v58 = vld [vmem:[%s1876_s11 + $0x38] sm:$0xff]   ;;  %v1680_v5 = vld [vmem:[%s1878_s12 + $0x80] ss:$12 sps:$4 sm:$0xff]  }
  0x43   : > { %1565 = vmatprep.subr.bf16.mxu1 %v1644_v41  ;;  %v1662_v56 = vld [vmem:[%s1878_s12 + $0x4] ss:$12 sps:$4 sm:$0xff]   ;;  %v1663_v57 = vld [vmem:[%s1878_s12 + $0x8] ss:$12 sps:$4 sm:$0xff]   ;;  %v1673_v4 = vld [vmem:[%s1878_s12 + $0x4c] ss:$12 sps:$4 sm:$0xff]  }
  0x44   : > { %1486 = vmatpush3.bf16.msra.mxu0 %v1643_v40  ;;  %806 = vmatprep.mubr.bf16.mxu0 %v1662_v56  ;;  %v1665_v60 = vld [vmem:[%s1878_s12 + $0x1c] ss:$12 sps:$4 sm:$0xff]   ;;  %v1671_v62 = vld [vmem:[%s1878_s12 + $0x38] ss:$12 sps:$4 sm:$0xff]   ;;  %v1668_v0 = vld [vmem:[%s1878_s12 + $0x34] ss:$12 sps:$4 sm:$0xff]  }
  0x45   : > { %1487 = vmatprep.subr.bf16.mxu0 %v1645_v42  ;;  %1577 = vmatprep.mubr.bf16.mxu1 %v1663_v57  ;;  %v1667_v63 = vld [vmem:[%s1878_s12 + $0x18] ss:$12 sps:$4 sm:$0xff]   ;;  %v1672_v1 = vld [vmem:[%s1878_s12 + $0x50] ss:$12 sps:$4 sm:$0xff]   ;;  %v1679_v2 = vld [vmem:[%s1878_s12 + $0x68] ss:$12 sps:$4 sm:$0xff]  }
  0x46   : > { %1566 = vmatpush3.bf16.msra.mxu1 %v1644_v41  ;;  %v1670_v3 = vld [vmem:[%s1878_s12 + $0x30] ss:$12 sps:$4 sm:$0xff]   ;;  %v1687_v6 = vld [vmem:[%s1878_s12 + $0x98] ss:$12 sps:$4 sm:$0xff]   ;;  %v1675_v7 = vld [vmem:[%s1878_s12 + $0x48] ss:$12 sps:$4 sm:$0xff]  }
  0x47   : > { %1567 = vmatprep.subr.bf16.mxu1 %v1647_v44  ;;  %v1676_v8 = vld [vmem:[%s1878_s12 + $0x64] ss:$12 sps:$4 sm:$0xff]   ;;  %v1678_v10 = vld [vmem:[%s1878_s12 + $0x60] ss:$12 sps:$4 sm:$0xff]   ;;  %v1681_v11 = vld [vmem:[%s1878_s12 + $0x7c] ss:$12 sps:$4 sm:$0xff]  }
  0x48   : > { %1488 = vmatpush3.bf16.msra.mxu0 %v1646_v43  ;;  %v1688_v9 = vld [vmem:[%s1878_s12 + $0xb0] ss:$12 sps:$4 sm:$0xff]   ;;  %v1683_v12 = vld [vmem:[%s1878_s12 + $0x78] ss:$12 sps:$4 sm:$0xff]   ;;  %v1684_v13 = vld [vmem:[%s1878_s12 + $0x94] ss:$12 sps:$4 sm:$0xff]  }
  0x49   : > { %1489 = vmatprep.subr.bf16.mxu0 %v1648_v45  ;;  %v1686_v14 = vld [vmem:[%s1878_s12 + $0x90] ss:$12 sps:$4 sm:$0xff]   ;;  %v1689_v15 = vld [vmem:[%s1878_s12 + $0xac] ss:$12 sps:$4 sm:$0xff]   ;;  %v1691_v16 = vld [vmem:[%s1878_s12 + $0xa8] ss:$12 sps:$4 sm:$0xff]  }
  0x4a   : > { %1568 = vmatpush3.bf16.msra.mxu1 %v1647_v44  ;;  %v406_v23 = vld [vmem:[#allocation2] sm:$0xff]  ;;  %v407_v28 = vld [vmem:[#allocation2 + $0x8] sm:$0xff]  ;;  %v408_v38 = vld [vmem:[#allocation2 + $0x10] sm:$0xff] }
  0x4b   : > { %1569 = vmatprep.subr.bf16.mxu1 %v1650_v46  ;;  %v409_v44 = vld [vmem:[#allocation2 + $0x18] sm:$0xff] }
  0x4c   : > { %1490 = vmatpush3.bf16.msra.mxu0 %v1649_v47 }
  0x4d   : > { %1491 = vmatprep.subr.bf16.mxu0 %v1651_v48 }
  0x4e   : > { %1570 = vmatpush3.bf16.msra.mxu1 %v1650_v46 }
  0x4f   : > { %1571 = vmatprep.subr.bf16.mxu1 %v1653_v49 }
  0x50   : > { %1492 = vmatpush3.bf16.msra.mxu0 %v1652_v50 }
  0x51   : > { %1493 = vmatprep.subr.bf16.mxu0 %v1654_v51 }
  0x52   : > { %1572 = vmatpush3.bf16.msra.mxu1 %v1653_v49 }
  0x53   : > { %1573 = vmatprep.subr.bf16.mxu1 %v1656_v53 }
  0x54   : > { %1494 = vmatpush3.bf16.msra.mxu0 %v1655_v52 }
  0x55   : > { %1495 = vmatprep.subr.bf16.mxu0 %v1657_v54 }
  0x56   : > { %1574 = vmatpush3.bf16.msra.mxu1 %v1656_v53 }
  0x57   : > { %1575 = vmatprep.subr.bf16.mxu1 %v1659_v55 }
  0x58   : > { %1496 = vmatpush3.bf16.msra.mxu0 %v1658_v58 }
  0x5a   : > { %1576 = vmatpush3.bf16.msra.mxu1 %v1659_v55  ;;  %v410_v55 = vld [vmem:[#allocation2 + $0x20] sm:$0xff] }
  0x5b   : > { %807 = vmatmul.mubr.bf16.vlgmr.msra.gmra.mrb[0].mxu0 %v1660_v59 }
  0x5c   : > { %814 = vmatprep.mubr.bf16.mxu0 %v1665_v60  ;;  %v411_v60 = vld [vmem:[#allocation2 + $0x28] sm:$0xff] }
  0x5d   : > { %1578 = vmatmul.mubr.bf16.vlgmr.msra.gmra.mrb[0].mxu1 %v1664_v61 }
  0x5e   : > { %1581 = vmatprep.mubr.bf16.mxu1 %v1671_v62 }
  0x63   : > { %815 = vmatmul.mubr.bf16.gmra.mrb[4].mxu0 %v1667_v63 }
  0x64   : > { %822 = vmatprep.mubr.bf16.mxu0 %v1668_v0 }
  0x65   : > { %1582 = vmatmul.mubr.bf16.gmra.mrb[4].mxu1 %v1672_v1 }
  0x66   : > { %1585 = vmatprep.mubr.bf16.mxu1 %v1679_v2 }
  0x6b   : > { %823 = vmatmul.mubr.bf16.gmra.mrb[8].mxu0 %v1670_v3 }
  0x6c   : > { %830 = vmatprep.mubr.bf16.mxu0 %v1673_v4 }
  0x6d   : > { %1586 = vmatmul.mubr.bf16.gmra.mrb[8].mxu1 %v1680_v5 }
  0x6e   : > { %1589 = vmatprep.mubr.bf16.mxu1 %v1687_v6  ;;  %v412_v6 = vld [vmem:[#allocation2 + $0x30] sm:$0xff] }
  0x73   : > { %831 = vmatmul.mubr.bf16.gmra.mrb[12].mxu0 %v1675_v7 }
  0x74   : > { %838 = vmatprep.mubr.bf16.mxu0 %v1676_v8 }
  0x75   : > { %1590 = vmatmul.mubr.bf16.gmra.mrb[12].mxu1 %v1688_v9 }
  0x7b   : > { %839 = vmatmul.mubr.bf16.gmra.mrb[16].mxu0 %v1678_v10 }
  0x7c   : > { %846 = vmatprep.mubr.bf16.mxu0 %v1681_v11 }
  0x83   : > { %847 = vmatmul.mubr.bf16.gmra.mrb[20].mxu0 %v1683_v12  ;;  %v413_v12 = vld [vmem:[#allocation2 + $0x38] sm:$0xff] }
  0x84   : > { %854 = vmatprep.mubr.bf16.mxu0 %v1684_v13 }
  0x8b   : > { %855 = vmatmul.mubr.bf16.gmra.mrb[24].mxu0 %v1686_v14 }
  0x8c   : > { %862 = vmatprep.mubr.bf16.mxu0 %v1689_v15 }
  0x93   : > { %863 = vmatmul.mubr.bf16.gmra.mrb[28].mxu0 %v1691_v16 }
 0x12e   : > { %v1497_v17 = vpop.f32.mrb[0].mxu0 }
 0x12f   : > { %v1498_v18 = vpop.f32.mrb[1].mxu0 }
 0x130   : > { %v1499_v19 = vadd.f32 %v1498_v18, %v1497_v17  ;;  %v1500_v20 = vpop.f32.mrb[2].mxu0  ;;  %v1579_v21 = vpop.f32.mrb[0].mxu1 }
 0x131   : > { %v1501_v22 = vpop.f32.mrb[3].mxu0  ;;  %v905_v24 = vpop.f32.mrb[1].mxu1 }
 0x132   : > { %v1502_v25 = vadd.f32 %v1501_v22, %v1500_v20  ;;  %v906_v26 = vadd.f32 %v1499_v19, %v905_v24  ;;  %v1580_v27 = vpop.f32.mrb[2].mxu1  ;;  %v414_v22 = vld [vmem:[#allocation2 + $0x40] sm:$0xff] }
 0x133   : > { %v908_v29 = vpop.f32.mrb[3].mxu1 }
 0x134   : > { %v968_v30 = vadd.f32 %v906_v26, %v406_v23  ;;  %v909_v31 = vadd.f32 %v1502_v25, %v908_v29  ;;  %v415_v25 = vld [vmem:[#allocation2 + $0x48] sm:$0xff] }
 0x136   : > { %984 = vst [vmem:[#allocation2] sm:$0xff] %v968_v30  ;;  %v969_v32 = vadd.f32 %v909_v31, %v407_v28  ;;  %v1503_v33 = vpop.f32.mrb[4].mxu0 }
 0x137   : > { %v1504_v34 = vpop.f32.mrb[5].mxu0 }
 0x138   : > { %985 = vst [vmem:[#allocation2 + $0x8] sm:$0xff] %v969_v32  ;;  %v1505_v35 = vadd.f32 %v1504_v34, %v1503_v33  ;;  %v1506_v36 = vpop.f32.mrb[6].mxu0  ;;  %v1583_v37 = vpop.f32.mrb[4].mxu1  ;;  %v416_v33 = vld [vmem:[#allocation2 + $0x50] sm:$0xff] }
 0x139   : > { %v1507_v39 = vpop.f32.mrb[7].mxu0  ;;  %v921_v40 = vpop.f32.mrb[5].mxu1 }
 0x13a   : > { %v914_v41 = vadd.f32 %v1579_v21, %v1505_v35  ;;  %v1508_v42 = vadd.f32 %v1507_v39, %v1506_v36  ;;  %v1584_v43 = vpop.f32.mrb[6].mxu1 }
 0x13b   : > { %v924_v45 = vpop.f32.mrb[7].mxu1 }
 0x13c   : > { %v970_v46 = vadd.f32 %v914_v41, %v408_v38  ;;  %v917_v47 = vadd.f32 %v1580_v27, %v1508_v42 }
 0x13e   : > { %986 = vst [vmem:[#allocation2 + $0x10] sm:$0xff] %v970_v46  ;;  %v971_v48 = vadd.f32 %v917_v47, %v409_v44  ;;  %v1509_v49 = vpop.f32.mrb[8].mxu0  ;;  %v418_v46 = vld [vmem:[#allocation2 + $0x60] sm:$0xff] }
 0x13f   : > { %v1510_v50 = vpop.f32.mrb[9].mxu0 }
 0x140   : > { %987 = vst [vmem:[#allocation2 + $0x18] sm:$0xff] %v971_v48  ;;  %v1511_v51 = vadd.f32 %v1510_v50, %v1509_v49  ;;  %v1512_v52 = vpop.f32.mrb[10].mxu0  ;;  %v1587_v53 = vpop.f32.mrb[8].mxu1  ;;  %v419_v49 = vld [vmem:[#allocation2 + $0x68] sm:$0xff] }
 0x141   : > { %v1513_v54 = vpop.f32.mrb[11].mxu0  ;;  %v937_v56 = vpop.f32.mrb[9].mxu1 }
 0x142   : > { %v1514_v57 = vadd.f32 %v1513_v54, %v1512_v52  ;;  %v922_v58 = vadd.f32 %v1511_v51, %v921_v40  ;;  %v1588_v59 = vpop.f32.mrb[10].mxu1 }
 0x143   : > { %v940_v61 = vpop.f32.mrb[11].mxu1 }
 0x144   : > { %v972_v62 = vadd.f32 %v922_v58, %v410_v55  ;;  %v925_v63 = vadd.f32 %v1514_v57, %v924_v45  ;;  %v420_v57 = vld [vmem:[#allocation2 + $0x70] sm:$0xff] }
 0x146   : > { %988 = vst [vmem:[#allocation2 + $0x20] sm:$0xff] %v972_v62  ;;  %v973_v0 = vadd.f32 %v925_v63, %v411_v60  ;;  %v1515_v1 = vpop.f32.mrb[12].mxu0 }
 0x147   : > { %v1516_v2 = vpop.f32.mrb[13].mxu0 }
 0x148   : > { %989 = vst [vmem:[#allocation2 + $0x28] sm:$0xff] %v973_v0  ;;  %v1517_v3 = vadd.f32 %v1516_v2, %v1515_v1  ;;  %v1518_v4 = vpop.f32.mrb[14].mxu0  ;;  %v1591_v5 = vpop.f32.mrb[12].mxu1  ;;  %v1004_v1 = vld [vmem:[#allocation2] sm:$0xff] (!%p1394_p11)  ;;  %v1005_v2 = vld [vmem:[#allocation2 + $0x8] sm:$0xff] (!%p1394_p11) }
 0x149   : > { %v1519_v7 = vpop.f32.mrb[15].mxu0  ;;  %v953_v8 = vpop.f32.mrb[13].mxu1 }
 0x14a   : > { %v930_v9 = vadd.f32 %v1583_v37, %v1517_v3  ;;  %v1520_v10 = vadd.f32 %v1519_v7, %v1518_v4  ;;  %v1592_v11 = vpop.f32.mrb[14].mxu1  ;;  %v417_v37 = vld [vmem:[#allocation2 + $0x58] sm:$0xff]  ;;  %v1933_v3 = vld [vmem:[%s2013_s2] ss:$0 sm:$0xff] (!%p1394_p11)  ;;  %v1006_v7 = vld [vmem:[#allocation2 + $0x10] sm:$0xff] (!%p1394_p11) }
 0x14b   : > { %v956_v13 = vpop.f32.mrb[15].mxu1  ;;  %v1027_v4 = vadd.f32 (!%p1394_p11), %v1933_v3, %v1004_v1 }
 0x14c   : > { %v974_v14 = vadd.f32 %v930_v9, %v412_v6  ;;  %v933_v15 = vadd.f32 %v1584_v43, %v1520_v10  ;;  %v1940_v6 = vld [vmem:[%s2014_s3] ss:$0 sm:$0xff] (!%p1394_p11)  ;;  %v1029_v9 = vadd.f32 (!%p1394_p11), %v1933_v3, %v1006_v7 }
 0x14d   : > { %vm1043_vm0 = vcmp.ge.f32.partialorder (!%p1394_p11), %v1027_v4, 0.0 }
 0x14e   : > { %990 = vst [vmem:[#allocation2 + $0x30] sm:$0xff] %v974_v14  ;;  %v975_v16 = vadd.f32 %v933_v15, %v413_v12  ;;  %v1521_v17 = vpop.f32.mrb[16].mxu0  ;;  %vm1045_vm2 = vcmp.ge.f32.partialorder (!%p1394_p11), %v1029_v9, 0.0 }
 0x14f   : > { %v1522_v18 = vpop.f32.mrb[17].mxu0  ;;  %v1009_v12 = vld [vmem:[#allocation2 + $0x28] sm:$0xff] (!%p1394_p11) }
 0x150   : > { %991 = vst [vmem:[#allocation2 + $0x38] sm:$0xff] %v975_v16  ;;  %v1523_v19 = vadd.f32 %v1522_v18, %v1521_v17  ;;  %v1524_v20 = vpop.f32.mrb[18].mxu0  ;;  %v1068_v16 = vmul.f32 (!%p1394_p11), %v1940_v6, %v1029_v9 }
 0x151   : > { %v1525_v21 = vpop.f32.mrb[19].mxu0 }
 0x152   : > { %v1526_v23 = vadd.f32 %v1525_v21, %v1524_v20  ;;  %v938_v24 = vadd.f32 %v1523_v19, %v937_v56  ;;  %v1032_v21 = vadd.f32 (!%p1394_p11), %v1933_v3, %v1009_v12 }
 0x154   : > { %v976_v26 = vadd.f32 %v938_v24, %v414_v22  ;;  %v941_v27 = vadd.f32 %v1526_v23, %v940_v61  ;;  %v421_v61 = vld [vmem:[#allocation2 + $0x78] sm:$0xff]  ;;  %v1084_v24 = vsel (!%p1394_p11), %vm1045_vm2, %v1029_v9, %v1068_v16  ;;  %vm1048_vm5 = vcmp.ge.f32.partialorder (!%p1394_p11), %v1032_v21, 0.0 }
 0x155   : > { %v1010_v15 = vld [vmem:[#allocation2 + $0x30] sm:$0xff] (!%p1394_p11) }
 0x156   : > { %992 = vst [vmem:[#allocation2 + $0x40] sm:$0xff] %v976_v26  ;;  %v977_v28 = vadd.f32 %v941_v27, %v415_v25  ;;  %v1527_v29 = vpop.f32.mrb[20].mxu0  ;;  %v1033_v26 = vadd.f32 (!%p1394_p11), %v1933_v3, %v1010_v15 }
 0x157   : > { %v1528_v30 = vpop.f32.mrb[21].mxu0  ;;  %v1011_v22 = vld [vmem:[#allocation2 + $0x38] sm:$0xff] (!%p1394_p11) }
 0x158   : > { %993 = vst [vmem:[#allocation2 + $0x48] sm:$0xff] %v977_v28  ;;  %v1529_v31 = vadd.f32 %v1528_v30, %v1527_v29  ;;  %v1530_v32 = vpop.f32.mrb[22].mxu0  ;;  %vm1049_vm6 = vcmp.ge.f32.partialorder (!%p1394_p11), %v1033_v26, 0.0 }
 0x159   : > { %v1531_v34 = vpop.f32.mrb[23].mxu0 }
 0x15a   : > { %v946_v35 = vadd.f32 %v1587_v53, %v1529_v31  ;;  %v1532_v36 = vadd.f32 %v1531_v34, %v1530_v32  ;;  %v1071_v32 = vmul.f32 (!%p1394_p11), %v1940_v6, %v1032_v21  ;;  %v1072_v34 = vmul.f32 (!%p1394_p11), %v1940_v6, %v1033_v26 }
 0x15c   : > { %v978_v38 = vadd.f32 %v946_v35, %v416_v33  ;;  %v949_v39 = vadd.f32 %v1588_v59, %v1532_v36  ;;  %v1034_v33 = vadd.f32 (!%p1394_p11), %v1933_v3, %v1011_v22 }
 0x15d   : > { %v1012_v27 = vld [vmem:[#allocation2 + $0x40] sm:$0xff] (!%p1394_p11) }
 0x15e   : > { %994 = vst [vmem:[#allocation2 + $0x50] sm:$0xff] %v978_v38  ;;  %v979_v40 = vadd.f32 %v949_v39, %v417_v37  ;;  %v1533_v41 = vpop.f32.mrb[24].mxu0  ;;  %v1035_v36 = vadd.f32 (!%p1394_p11), %v1933_v3, %v1012_v27  ;;  %vm1050_vm7 = vcmp.ge.f32.partialorder (!%p1394_p11), %v1034_v33, 0.0 }
 0x15f   : > { %v1534_v42 = vpop.f32.mrb[25].mxu0  ;;  %v1013_v28 = vld [vmem:[#allocation2 + $0x48] sm:$0xff] (!%p1394_p11) }
 0x160   : > { %995 = vst [vmem:[#allocation2 + $0x58] sm:$0xff] %v979_v40  ;;  %v1535_v43 = vadd.f32 %v1534_v42, %v1533_v41  ;;  %v1536_v44 = vpop.f32.mrb[26].mxu0  ;;  %v1036_v37 = vadd.f32 (!%p1394_p11), %v1933_v3, %v1013_v28  ;;  %v1087_v40 = vsel (!%p1394_p11), %vm1048_vm5, %v1032_v21, %v1071_v32  ;;  %v1073_v41 = vmul.f32 (!%p1394_p11), %v1940_v6, %v1034_v33 }
 0x161   : > { %v1537_v45 = vpop.f32.mrb[27].mxu0  ;;  %v1088_v42 = vsel (!%p1394_p11), %vm1049_vm6, %v1033_v26, %v1072_v34  ;;  %vm1051_vm8 = vcmp.ge.f32.partialorder (!%p1394_p11), %v1035_v36, 0.0 }
 0x162   : > { %v1538_v47 = vadd.f32 %v1537_v45, %v1536_v44  ;;  %v954_v48 = vadd.f32 %v1535_v43, %v953_v8  ;;  %v1007_v8 = vld [vmem:[#allocation2 + $0x18] sm:$0xff] (!%p1394_p11)  ;;  %vm1052_vm9 = vcmp.ge.f32.partialorder (!%p1394_p11), %v1036_v37, 0.0  ;;  %v1074_v45 = vmul.f32 (!%p1394_p11), %v1940_v6, %v1035_v36 }
 0x163   : > { %v1030_v10 = vadd.f32 (!%p1394_p11), %v1933_v3, %v1007_v8 }
 0x164   : > { %v980_v50 = vadd.f32 %v954_v48, %v418_v46  ;;  %v957_v51 = vadd.f32 %v1538_v47, %v956_v13  ;;  %v1066_v13 = vmul.f32 (!%p1394_p11), %v1940_v6, %v1027_v4  ;;  %v1089_v47 = vsel (!%p1394_p11), %vm1050_vm7, %v1034_v33, %v1073_v41 }
 0x165   : > { %vm1046_vm3 = vcmp.ge.f32.partialorder (!%p1394_p11), %v1030_v10, 0.0  ;;  %v1069_v17 = vmul.f32 (!%p1394_p11), %v1940_v6, %v1030_v10  ;;  %v1014_v29 = vld [vmem:[#allocation2 + $0x50] sm:$0xff] (!%p1394_p11)  ;;  %v1075_v48 = vmul.f32 (!%p1394_p11), %v1940_v6, %v1036_v37 }
 0x166   : > { %996 = vst [vmem:[#allocation2 + $0x60] sm:$0xff] %v980_v50  ;;  %v981_v52 = vadd.f32 %v957_v51, %v419_v49  ;;  %v1539_v53 = vpop.f32.mrb[28].mxu0  ;;  %v1082_v18 = vsel (!%p1394_p11), %vm1043_vm0, %v1027_v4, %v1066_v13  ;;  %v1037_v39 = vadd.f32 (!%p1394_p11), %v1933_v3, %v1014_v29  ;;  %v1452_v50 = vpack.c.bf16 (!%p1394_p11), %v1089_v47, %v1088_v42 }
 0x167   : > { %v1540_v54 = vpop.f32.mrb[29].mxu0  ;;  %v1085_v25 = vsel (!%p1394_p11), %vm1046_vm3, %v1030_v10, %v1069_v17  ;;  %v1015_v38 = vld [vmem:[#allocation2 + $0x58] sm:$0xff] (!%p1394_p11)  ;;  %v1090_v51 = vsel (!%p1394_p11), %vm1051_vm8, %v1035_v36, %v1074_v45 }
 0x168   : > { %997 = vst [vmem:[#allocation2 + $0x68] sm:$0xff] %v981_v52  ;;  %v1541_v55 = vadd.f32 %v1540_v54, %v1539_v53  ;;  %v1542_v56 = vpop.f32.mrb[30].mxu0  ;;  %v1442_v30 = vpack.c.bf16 (!%p1394_p11), %v1085_v25, %v1084_v24  ;;  %v1038_v49 = vadd.f32 (!%p1394_p11), %v1933_v3, %v1015_v38  ;;  %vm1053_vm10 = vcmp.ge.f32.partialorder (!%p1394_p11), %v1037_v39, 0.0  ;;  %1476 = vst [vmem:[%s2015_s4 + $0x18] sm:$0xff] (!%p1394_p11), %v1452_v50  }
 0x169   : > { %v1543_v58 = vpop.f32.mrb[31].mxu0  ;;  %v1076_v52 = vmul.f32 (!%p1394_p11), %v1940_v6, %v1037_v39 }
 0x16a   : > { %v962_v59 = vadd.f32 %v1591_v5, %v1541_v55  ;;  %v1544_v60 = vadd.f32 %v1543_v58, %v1542_v56  ;;  %1003 = sbr.rel (%p1394_p11) target bundleno = 384 (0x180), region = 70  ;;  %v1028_v5 = vadd.f32 (!%p1394_p11), %v1933_v3, %v1005_v2  ;;  %1474 = vst [vmem:[%s2015_s4 + $0x8] sm:$0xff] (!%p1394_p11), %v1442_v30   ;;  %v1091_v55 = vsel (!%p1394_p11), %vm1052_vm9, %v1036_v37, %v1075_v48 }
 0x16b   : > { %vm1054_vm11 = vcmp.ge.f32.partialorder (!%p1394_p11), %v1038_v49, 0.0  ;;  %v1077_v56 = vmul.f32 (!%p1394_p11), %v1940_v6, %v1038_v49 }
 0x16c   : > { %v982_v62 = vadd.f32 %v962_v59, %v420_v57  ;;  %v965_v63 = vadd.f32 %v1592_v11, %v1544_v60  ;;  %v1008_v11 = vld [vmem:[#allocation2 + $0x20] sm:$0xff] (!%p1394_p11)  ;;  %vm1044_vm1 = vcmp.ge.f32.partialorder (!%p1394_p11), %v1028_v5, 0.0  ;;  %v1067_v14 = vmul.f32 (!%p1394_p11), %v1940_v6, %v1028_v5 }
 0x16d   : > { %v1031_v20 = vadd.f32 (!%p1394_p11), %v1933_v3, %v1008_v11  ;;  %v1016_v43 = vld [vmem:[#allocation2 + $0x60] sm:$0xff] (!%p1394_p11)  ;;  %v1457_v59 = vpack.c.bf16 (!%p1394_p11), %v1091_v55, %v1090_v51  ;;  %v1092_v60 = vsel (!%p1394_p11), %vm1053_vm10, %v1037_v39, %v1076_v52 }
 0x16e   : > { %998 = vst [vmem:[#allocation2 + $0x70] sm:$0xff] %v982_v62  ;;  %v983_v0 = vadd.f32 %v965_v63, %v421_v61  ;;  %v1083_v19 = vsel (!%p1394_p11), %vm1044_vm1, %v1028_v5, %v1067_v14  ;;  %v1039_v53 = vadd.f32 (!%p1394_p11), %v1933_v3, %v1016_v43  ;;  %v1093_v62 = vsel (!%p1394_p11), %vm1054_vm11, %v1038_v49, %v1077_v56 }
 0x16f   : > { %v1437_v23 = vpack.c.bf16 (!%p1394_p11), %v1083_v19, %v1082_v18  ;;  %vm1047_vm4 = vcmp.ge.f32.partialorder (!%p1394_p11), %v1031_v20, 0.0  ;;  %v1070_v31 = vmul.f32 (!%p1394_p11), %v1940_v6, %v1031_v20  ;;  %v1017_v46 = vld [vmem:[#allocation2 + $0x68] sm:$0xff] (!%p1394_p11)  ;;  %1477 = vst [vmem:[%s2015_s4 + $0x20] sm:$0xff] (!%p1394_p11), %v1457_v59   ;;  %v1462_v1 = vpack.c.bf16 (!%p1394_p11), %v1093_v62, %v1092_v60 }
 0x170   : > { %999 = vst [vmem:[#allocation2 + $0x78] sm:$0xff] %v983_v0  ;;  %v1040_v57 = vadd.f32 (!%p1394_p11), %v1933_v3, %v1017_v46  ;;  %vm1055_vm12 = vcmp.ge.f32.partialorder (!%p1394_p11), %v1039_v53, 0.0  ;;  %v1078_v61 = vmul.f32 (!%p1394_p11), %v1940_v6, %v1039_v53 }
 0x171   : > { %1438 = vst [vmem:[%s2015_s4] sm:$0xff] %v1437_v23   ;;  %v1086_v35 = vsel %vm1047_vm4, %v1031_v20, %v1070_v31  ;;  %1478 = vst [vmem:[%s2015_s4 + $0x28] sm:$0xff] %v1462_v1  }
 0x172   : > { %v1447_v44 = vpack.c.bf16 %v1087_v40, %v1086_v35  ;;  %vm1056_vm13 = vcmp.ge.f32.partialorder %v1040_v57, 0.0  ;;  %v1079_v63 = vmul.f32 %v1940_v6, %v1040_v57  ;;  %v1094_v2 = vsel %vm1055_vm12, %v1039_v53, %v1078_v61 }
 0x174   : > { %1475 = vst [vmem:[%s2015_s4 + $0x10] sm:$0xff] %v1447_v44   ;;  %v1095_v5 = vsel %vm1056_vm13, %v1040_v57, %v1079_v63 }
 0x175   : > { %v1018_v54 = vld [vmem:[#allocation2 + $0x70] sm:$0xff]  ;;  %v1467_v8 = vpack.c.bf16 %v1095_v5, %v1094_v2 }
 0x176   : > { %v1041_v0 = vadd.f32 %v1933_v3, %v1018_v54 }
 0x177   : > { %v1019_v58 = vld [vmem:[#allocation2 + $0x78] sm:$0xff]  ;;  %1479 = vst [vmem:[%s2015_s4 + $0x30] sm:$0xff] %v1467_v8  }
 0x178   : > { %v1042_v4 = vadd.f32 %v1933_v3, %v1019_v58  ;;  %vm1057_vm14 = vcmp.ge.f32.partialorder %v1041_v0, 0.0  ;;  %v1080_v7 = vmul.f32 %v1940_v6, %v1041_v0 }
 0x17a   : > { %vm1058_vm15 = vcmp.ge.f32.partialorder %v1042_v4, 0.0  ;;  %v1081_v9 = vmul.f32 %v1940_v6, %v1042_v4  ;;  %v1096_v10 = vsel %vm1057_vm14, %v1041_v0, %v1080_v7 }
 0x17c   : > { %v1097_v11 = vsel %vm1058_vm15, %v1042_v4, %v1081_v9 }
 0x17d   : > { %v1472_v12 = vpack.c.bf16 %v1097_v11, %v1096_v10 }
 0x17f   : > { %1480 = vst [vmem:[%s2015_s4 + $0x38] sm:$0xff] %v1472_v12  }
 0x180 PF: > { %s14_s19 = sadd.s32 1, %s1730_s19   ;;  %s2016_s15 = smov %s1718_s16 }
 0x181   : > { %p11_p12 = scmp.ge.s32.totalorder %s14_s19, 4   ;;  %s2017_s16 = smov %s1793_s23 }
 0x182   : > { %s2018_s17 = smov %s1726_s18  ;;  %s2019_s18 = smov %s2021_s20 }
 0x183   :  { %13 = sbr.rel (!%p11_p12) target bundleno = 3 (0x3), region = 120 }

// kernel: vxm_dense_forward.19
= control target key start
LH: loop header
LB: loop body
LE: loop exit
PB: predicated region body
PF: predicated region fallthrough
CT: control target
= control target key end

     0   :  { %v796_v0 = vmov 0.0   ;;  %vm797_vm0 = vmmov 0   ;;  %s978_s3 = inlined_call_operand.vmem [shape: f32[1,128], index: 3, kind: input, shape index: {}]   ;;  %s979_s1 = inlined_call_operand.vmem [shape: bf16[128,128], index: 1, kind: input, shape index: {}]   ;;  %s980_s0 = inlined_call_operand.vmem [shape: bf16[176,128], index: 0, kind: input, shape index: {}]   ;;  %s981_s2 = inlined_call_operand.vmem [shape: f32[1,128], index: 2, kind: input, shape index: {}]   ;;  %s982_s4 = inlined_call_operand.vmem [shape: bf16[176,128], index: 4, kind: output, shape index: {}]  }
   0x1   :  { %699 = vmatprep.subr.bf16.mxu0 %v796_v0  ;;  %v777_v1 = vld [vmem:[%s979_s1] sm:$0xff]   ;;  %759 = vmatprep.subr.bf16.mxu1 %v796_v0  ;;  %v778_v2 = vld [vmem:[%s979_s1 + $0x8] sm:$0xff]   ;;  %v779_v3 = vld [vmem:[%s979_s1 + $0x10] sm:$0xff]  }
   0x2   :  { %715 = vmatprep.mubr.msk.bf16.mxu0 %vm797_vm0, %v796_v0  ;;  %739 = vmatprep.mubr.msk.bf16.mxu1 %vm797_vm0, %v796_v0  ;;  %v780_v4 = vld [vmem:[%s979_s1 + $0x18] sm:$0xff]   ;;  %v781_v5 = vld [vmem:[%s979_s1 + $0x20] sm:$0xff]   ;;  %v782_v6 = vld [vmem:[%s979_s1 + $0x28] sm:$0xff]  }
   0x3   :  { %700 = vmatpush3.bf16.msra.mxu0 %v777_v1  ;;  %767 = vmatpush3.bf16.msra.mxu1 %v777_v1  ;;  %v783_v7 = vld [vmem:[%s979_s1 + $0x30] sm:$0xff]   ;;  %v784_v8 = vld [vmem:[%s979_s1 + $0x38] sm:$0xff]   ;;  %v785_v9 = vld [vmem:[%s980_s0] sm:$0xff]  }
   0x4   :  { %701 = vmatprep.subr.bf16.mxu0 %v796_v0  ;;  %760 = vmatprep.subr.bf16.mxu1 %v796_v0  ;;  %v786_v10 = vld [vmem:[%s980_s0 + $0x30] sm:$0xff]   ;;  %v787_v11 = vld [vmem:[%s980_s0 + $0x8] sm:$0xff]   ;;  %v788_v12 = vld [vmem:[%s980_s0 + $0x38] sm:$0xff]  }
   0x5   :  { %v789_v13 = vld [vmem:[%s980_s0 + $0x10] sm:$0xff]   ;;  %v790_v14 = vld [vmem:[%s980_s0 + $0x40] sm:$0xff]   ;;  %v791_v15 = vld [vmem:[%s980_s0 + $0x18] sm:$0xff]  }
   0x6   :  { %v792_v16 = vld [vmem:[%s980_s0 + $0x48] sm:$0xff]   ;;  %v793_v17 = vld [vmem:[%s980_s0 + $0x20] sm:$0xff]   ;;  %v794_v18 = vld [vmem:[%s980_s0 + $0x50] sm:$0xff]  }
   0x7   :  { %702 = vmatpush3.bf16.msra.mxu0 %v778_v2  ;;  %768 = vmatpush3.bf16.msra.mxu1 %v778_v2  ;;  %v795_v19 = vld [vmem:[%s980_s0 + $0x28] sm:$0xff]   ;;  %v921_v21 = vld [vmem:[%s981_s2] ss:$0 sm:$0xff] }
   0x8   :  { %703 = vmatprep.subr.bf16.mxu0 %v796_v0  ;;  %761 = vmatprep.subr.bf16.mxu1 %v796_v0 }
   0xb   :  { %704 = vmatpush3.bf16.msra.mxu0 %v779_v3  ;;  %769 = vmatpush3.bf16.msra.mxu1 %v779_v3 }
   0xc   :  { %705 = vmatprep.subr.bf16.mxu0 %v796_v0  ;;  %762 = vmatprep.subr.bf16.mxu1 %v796_v0 }
   0xf   :  { %706 = vmatpush3.bf16.msra.mxu0 %v780_v4  ;;  %770 = vmatpush3.bf16.msra.mxu1 %v780_v4 }
  0x10   :  { %707 = vmatprep.subr.bf16.mxu0 %v796_v0  ;;  %763 = vmatprep.subr.bf16.mxu1 %v796_v0 }
  0x13   :  { %708 = vmatpush3.bf16.msra.mxu0 %v781_v5  ;;  %771 = vmatpush3.bf16.msra.mxu1 %v781_v5 }
  0x14   :  { %709 = vmatprep.subr.bf16.mxu0 %v796_v0  ;;  %764 = vmatprep.subr.bf16.mxu1 %v796_v0 }
  0x17   :  { %710 = vmatpush3.bf16.msra.mxu0 %v782_v6  ;;  %772 = vmatpush3.bf16.msra.mxu1 %v782_v6 }
  0x18   :  { %711 = vmatprep.subr.bf16.mxu0 %v796_v0  ;;  %765 = vmatprep.subr.bf16.mxu1 %v796_v0 }
  0x1b   :  { %712 = vmatpush3.bf16.msra.mxu0 %v783_v7  ;;  %773 = vmatpush3.bf16.msra.mxu1 %v783_v7 }
  0x1c   :  { %713 = vmatprep.subr.bf16.mxu0 %v796_v0  ;;  %766 = vmatprep.subr.bf16.mxu1 %v796_v0 }
  0x1f   :  { %714 = vmatpush3.bf16.msra.mxu0 %v784_v8  ;;  %774 = vmatpush3.bf16.msra.mxu1 %v784_v8 }
  0x22   :  { %716 = vmatmul.mubr.bf16.vlgmr.msra.gmra.mrb[0].mxu0 %v785_v9  ;;  %740 = vmatmul.mubr.bf16.vlgmr.msra.gmra.mrb[0].mxu1 %v786_v10 }
  0x23   :  { %719 = vmatprep.mubr.msk.bf16.mxu0 %vm797_vm0, %v796_v0  ;;  %743 = vmatprep.mubr.msk.bf16.mxu1 %vm797_vm0, %v796_v0 }
  0x2a   :  { %720 = vmatmul.mubr.bf16.gmra.mrb[4].mxu0 %v787_v11  ;;  %744 = vmatmul.mubr.bf16.gmra.mrb[4].mxu1 %v788_v12 }
  0x2b   :  { %723 = vmatprep.mubr.msk.bf16.mxu0 %vm797_vm0, %v796_v0  ;;  %747 = vmatprep.mubr.msk.bf16.mxu1 %vm797_vm0, %v796_v0 }
  0x32   :  { %724 = vmatmul.mubr.bf16.gmra.mrb[8].mxu0 %v789_v13  ;;  %748 = vmatmul.mubr.bf16.gmra.mrb[8].mxu1 %v790_v14 }
  0x33   :  { %727 = vmatprep.mubr.msk.bf16.mxu0 %vm797_vm0, %v796_v0  ;;  %751 = vmatprep.mubr.msk.bf16.mxu1 %vm797_vm0, %v796_v0 }
  0x3a   :  { %728 = vmatmul.mubr.bf16.gmra.mrb[12].mxu0 %v791_v15  ;;  %752 = vmatmul.mubr.bf16.gmra.mrb[12].mxu1 %v792_v16 }
  0x3b   :  { %731 = vmatprep.mubr.msk.bf16.mxu0 %vm797_vm0, %v796_v0  ;;  %755 = vmatprep.mubr.msk.bf16.mxu1 %vm797_vm0, %v796_v0 }
  0x42   :  { %732 = vmatmul.mubr.bf16.gmra.mrb[16].mxu0 %v793_v17  ;;  %756 = vmatmul.mubr.bf16.gmra.mrb[16].mxu1 %v794_v18 }
  0x43   :  { %735 = vmatprep.mubr.msk.bf16.mxu0 %vm797_vm0, %v796_v0 }
  0x4a   :  { %736 = vmatmul.mubr.bf16.gmra.mrb[20].mxu0 %v795_v19 }
  0xf5   :  { %v252_v20 = vpop.f32.mrb[0].mxu0  ;;  %v300_v22 = vpop.f32.mrb[0].mxu1 }
  0xf6   :  { %v717_v23 = vpop.f32.mrb[1].mxu0  ;;  %v427_v24 = vadd.f32 %v921_v21, %v300_v22  ;;  %v741_v25 = vpop.f32.mrb[1].mxu1  ;;  %v415_v28 = vadd.f32 %v921_v21, %v252_v20 }
  0xf7   :  { %v255_v26 = vpop.f32.mrb[2].mxu0  ;;  %v303_v27 = vpop.f32.mrb[2].mxu1 }
  0xf8   :  { %v416_v29 = vadd.f32 %v921_v21, %v255_v26  ;;  %v718_v30 = vpop.f32.mrb[3].mxu0  ;;  %v428_v31 = vadd.f32 %v921_v21, %v303_v27  ;;  %v742_v32 = vpop.f32.mrb[3].mxu1 }
  0xfa   :  { %v618_v33 = vpack.c.bf16 %v416_v29, %v415_v28  ;;  %v648_v34 = vpack.c.bf16 %v428_v31, %v427_v24 }
  0xfc   :  { %619 = vst [vmem:[%s982_s4] sm:$0xff] %v618_v33   ;;  %675 = vst [vmem:[%s982_s4 + $0x30] sm:$0xff] %v648_v34  }
  0xfd   :  { %v260_v35 = vpop.f32.mrb[4].mxu0  ;;  %v308_v36 = vpop.f32.mrb[4].mxu1 }
  0xfe   :  { %v721_v37 = vpop.f32.mrb[5].mxu0  ;;  %v429_v38 = vadd.f32 %v921_v21, %v308_v36  ;;  %v745_v39 = vpop.f32.mrb[5].mxu1  ;;  %v417_v42 = vadd.f32 %v921_v21, %v260_v35 }
  0xff   :  { %v263_v40 = vpop.f32.mrb[6].mxu0  ;;  %v311_v41 = vpop.f32.mrb[6].mxu1 }
 0x100   :  { %v418_v43 = vadd.f32 %v921_v21, %v263_v40  ;;  %v722_v44 = vpop.f32.mrb[7].mxu0  ;;  %v430_v45 = vadd.f32 %v921_v21, %v311_v41  ;;  %v746_v46 = vpop.f32.mrb[7].mxu1 }
 0x102   :  { %v623_v47 = vpack.c.bf16 %v418_v43, %v417_v42  ;;  %v653_v48 = vpack.c.bf16 %v430_v45, %v429_v38 }
 0x104   :  { %670 = vst [vmem:[%s982_s4 + $0x8] sm:$0xff] %v623_v47   ;;  %676 = vst [vmem:[%s982_s4 + $0x38] sm:$0xff] %v653_v48  }
 0x105   :  { %v268_v49 = vpop.f32.mrb[8].mxu0  ;;  %v316_v50 = vpop.f32.mrb[8].mxu1 }
 0x106   :  { %v725_v51 = vpop.f32.mrb[9].mxu0  ;;  %v431_v52 = vadd.f32 %v921_v21, %v316_v50  ;;  %v749_v53 = vpop.f32.mrb[9].mxu1  ;;  %v419_v56 = vadd.f32 %v921_v21, %v268_v49 }
 0x107   :  { %v271_v54 = vpop.f32.mrb[10].mxu0  ;;  %v319_v55 = vpop.f32.mrb[10].mxu1 }
 0x108   :  { %v420_v57 = vadd.f32 %v921_v21, %v271_v54  ;;  %v726_v58 = vpop.f32.mrb[11].mxu0  ;;  %v432_v59 = vadd.f32 %v921_v21, %v319_v55  ;;  %v750_v60 = vpop.f32.mrb[11].mxu1 }
 0x10a   :  { %v628_v61 = vpack.c.bf16 %v420_v57, %v419_v56  ;;  %v658_v62 = vpack.c.bf16 %v432_v59, %v431_v52 }
 0x10c   :  { %671 = vst [vmem:[%s982_s4 + $0x10] sm:$0xff] %v628_v61   ;;  %677 = vst [vmem:[%s982_s4 + $0x40] sm:$0xff] %v658_v62  }
 0x10d   :  { %v276_v63 = vpop.f32.mrb[12].mxu0  ;;  %v324_v0 = vpop.f32.mrb[12].mxu1 }
 0x10e   :  { %v729_v1 = vpop.f32.mrb[13].mxu0  ;;  %v433_v2 = vadd.f32 %v921_v21, %v324_v0  ;;  %v753_v3 = vpop.f32.mrb[13].mxu1  ;;  %v421_v6 = vadd.f32 %v921_v21, %v276_v63 }
 0x10f   :  { %v279_v4 = vpop.f32.mrb[14].mxu0  ;;  %v327_v5 = vpop.f32.mrb[14].mxu1 }
 0x110   :  { %v422_v7 = vadd.f32 %v921_v21, %v279_v4  ;;  %v730_v8 = vpop.f32.mrb[15].mxu0  ;;  %v434_v9 = vadd.f32 %v921_v21, %v327_v5  ;;  %v754_v10 = vpop.f32.mrb[15].mxu1 }
 0x112   :  { %v633_v11 = vpack.c.bf16 %v422_v7, %v421_v6  ;;  %v663_v12 = vpack.c.bf16 %v434_v9, %v433_v2 }
 0x114   :  { %672 = vst [vmem:[%s982_s4 + $0x18] sm:$0xff] %v633_v11   ;;  %678 = vst [vmem:[%s982_s4 + $0x48] sm:$0xff] %v663_v12  }
 0x115   :  { %v284_v13 = vpop.f32.mrb[16].mxu0  ;;  %v332_v14 = vpop.f32.mrb[16].mxu1 }
 0x116   :  { %v733_v15 = vpop.f32.mrb[17].mxu0  ;;  %v435_v16 = vadd.f32 %v921_v21, %v332_v14  ;;  %v757_v17 = vpop.f32.mrb[17].mxu1  ;;  %v423_v20 = vadd.f32 %v921_v21, %v284_v13 }
 0x117   :  { %v287_v18 = vpop.f32.mrb[18].mxu0  ;;  %v335_v19 = vpop.f32.mrb[18].mxu1 }
 0x118   :  { %v424_v22 = vadd.f32 %v921_v21, %v287_v18  ;;  %v734_v23 = vpop.f32.mrb[19].mxu0  ;;  %v436_v24 = vadd.f32 %v921_v21, %v335_v19  ;;  %v758_v25 = vpop.f32.mrb[19].mxu1 }
 0x11a   :  { %v638_v26 = vpack.c.bf16 %v424_v22, %v423_v20  ;;  %v668_v27 = vpack.c.bf16 %v436_v24, %v435_v16 }
 0x11c   :  { %673 = vst [vmem:[%s982_s4 + $0x20] sm:$0xff] %v638_v26   ;;  %679 = vst [vmem:[%s982_s4 + $0x50] sm:$0xff] %v668_v27  }
 0x11d   :  { %v292_v28 = vpop.f32.mrb[20].mxu0 }
 0x11e   :  { %v737_v29 = vpop.f32.mrb[21].mxu0  ;;  %v425_v31 = vadd.f32 %v921_v21, %v292_v28 }
 0x11f   :  { %v295_v30 = vpop.f32.mrb[22].mxu0 }
 0x120   :  { %v426_v32 = vadd.f32 %v921_v21, %v295_v30  ;;  %v738_v33 = vpop.f32.mrb[23].mxu0 }
 0x122   :  { %v643_v34 = vpack.c.bf16 %v426_v32, %v425_v31 }
 0x124   :  { %674 = vst [vmem:[%s982_s4 + $0x28] sm:$0xff] %v643_v34  }

// kernel: vxm_dense_forward.20
= control target key start
LH: loop header
LB: loop body
LE: loop exit
PB: predicated region body
PF: predicated region fallthrough
CT: control target
= control target key end

     0   :  { %v3249_v0 = vmov 0   ;;  %s4031_s1 = inlined_call_operand.vmem [shape: bf16[512,128], index: 1, kind: input, shape index: {}]   ;;  %s4032_s0 = inlined_call_operand.vmem [shape: bf16[512,512], index: 0, kind: input, shape index: {}]   ;;  %s4033_s2 = inlined_call_operand.vmem [shape: f32[1,128], index: 2, kind: input, shape index: {}]   ;;  %s4034_s3 = inlined_call_operand.vmem [shape: f32[1,128], index: 3, kind: input, shape index: {}]   ;;  %s4035_s4 = inlined_call_operand.vmem [shape: bf16[512,128], index: 4, kind: output, shape index: {}]  }
   0x1   :  { %1174 = vmatprep.subr.bf16.mxu0 %v3249_v0  ;;  %1463 = vmatprep.subr.bf16.mxu1 %v3249_v0  ;;  %v3023_v1 = vld [vmem:[%s4031_s1] sm:$0xff]   ;;  %v3025_v3 = vld [vmem:[%s4031_s1 + $0x8] sm:$0xff]   ;;  %v3027_v5 = vld [vmem:[%s4031_s1 + $0x10] sm:$0xff]  }
   0x2   :  { %v3024_v2 = vld [vmem:[%s4031_s1 + $0x80] sm:$0xff]   ;;  %1175 = vmatpush1.bf16.msra.mxu0 %v3023_v1  ;;  %v3026_v4 = vld [vmem:[%s4031_s1 + $0x88] sm:$0xff]   ;;  %v3028_v6 = vld [vmem:[%s4031_s1 + $0x90] sm:$0xff]  }
   0x3   :  { %1464 = vmatpush1.bf16.msra.mxu1 %v3024_v2  ;;  %1176 = vmatprep.subr.bf16.mxu0 %v3249_v0  ;;  %v3029_v7 = vld [vmem:[%s4031_s1 + $0x18] sm:$0xff]   ;;  %v3031_v9 = vld [vmem:[%s4031_s1 + $0x20] sm:$0xff]   ;;  %v3033_v11 = vld [vmem:[%s4031_s1 + $0x28] sm:$0xff]  }
   0x4   :  { %1465 = vmatprep.subr.bf16.mxu1 %v3249_v0  ;;  %v3030_v8 = vld [vmem:[%s4031_s1 + $0x98] sm:$0xff]   ;;  %v3032_v10 = vld [vmem:[%s4031_s1 + $0xa0] sm:$0xff]   ;;  %v3034_v12 = vld [vmem:[%s4031_s1 + $0xa8] sm:$0xff]  }
   0x5   :  { %v3035_v13 = vld [vmem:[%s4031_s1 + $0x30] sm:$0xff]   ;;  %v3037_v15 = vld [vmem:[%s4031_s1 + $0x38] sm:$0xff]   ;;  %v3039_v17 = vld [vmem:[%s4031_s1 + $0x40] sm:$0xff]  }
   0x6   :  { %1177 = vmatpush1.bf16.msra.mxu0 %v3025_v3  ;;  %v3036_v14 = vld [vmem:[%s4031_s1 + $0xb0] sm:$0xff]   ;;  %v3038_v16 = vld [vmem:[%s4031_s1 + $0xb8] sm:$0xff]   ;;  %v3040_v18 = vld [vmem:[%s4031_s1 + $0xc0] sm:$0xff]  }
   0x7   :  { %1466 = vmatpush1.bf16.msra.mxu1 %v3026_v4  ;;  %1178 = vmatprep.subr.bf16.mxu0 %v3249_v0  ;;  %v3057_v19 = vld [vmem:[%s4032_s0 + $0x4] ss:$16 sps:$4 sm:$0xff]   ;;  %v3041_v20 = vld [vmem:[%s4031_s1 + $0x48] sm:$0xff]   ;;  %v3045_v25 = vld [vmem:[%s4031_s1 + $0x58] sm:$0xff]  }
   0x8   :  { %1467 = vmatprep.subr.bf16.mxu1 %v3249_v0  ;;  %v3060_v21 = vld [vmem:[%s4032_s0 + $0xc] ss:$16 sps:$4 sm:$0xff]   ;;  %1206 = vmatprep.mubr.bf16.mxu0 %v3057_v19  ;;  %v3043_v23 = vld [vmem:[%s4031_s1 + $0x50] sm:$0xff]   ;;  %v3047_v27 = vld [vmem:[%s4031_s1 + $0x60] sm:$0xff]  }
   0x9   :  { %v3042_v22 = vld [vmem:[%s4031_s1 + $0xc8] sm:$0xff]   ;;  %1495 = vmatprep.mubr.bf16.mxu1 %v3060_v21  ;;  %v3044_v24 = vld [vmem:[%s4031_s1 + $0xd0] sm:$0xff]   ;;  %v3046_v26 = vld [vmem:[%s4031_s1 + $0xd8] sm:$0xff]  }
   0xa   :  { %1179 = vmatpush1.bf16.msra.mxu0 %v3027_v5  ;;  %v3048_v28 = vld [vmem:[%s4031_s1 + $0xe0] sm:$0xff]   ;;  %v3049_v29 = vld [vmem:[%s4031_s1 + $0x68] sm:$0xff]   ;;  %v3051_v31 = vld [vmem:[%s4031_s1 + $0x70] sm:$0xff]  }
   0xb   :  { %1468 = vmatpush1.bf16.msra.mxu1 %v3028_v6  ;;  %1180 = vmatprep.subr.bf16.mxu0 %v3249_v0  ;;  %v3050_v30 = vld [vmem:[%s4031_s1 + $0xe8] sm:$0xff]   ;;  %v3052_v32 = vld [vmem:[%s4031_s1 + $0xf0] sm:$0xff]   ;;  %v3053_v33 = vld [vmem:[%s4031_s1 + $0x78] sm:$0xff]  }
   0xc   :  { %1469 = vmatprep.subr.bf16.mxu1 %v3249_v0  ;;  %v3054_v34 = vld [vmem:[%s4031_s1 + $0xf8] sm:$0xff]   ;;  %v3055_v35 = vld [vmem:[%s4032_s0] ss:$16 sps:$4 sm:$0xff]   ;;  %v3061_v37 = vld [vmem:[%s4032_s0 + $0x24] ss:$16 sps:$4 sm:$0xff]  }
   0xd   :  { %v3058_v36 = vld [vmem:[%s4032_s0 + $0x8] ss:$16 sps:$4 sm:$0xff]   ;;  %v3063_v38 = vld [vmem:[%s4032_s0 + $0x2c] ss:$16 sps:$4 sm:$0xff]   ;;  %v3065_v39 = vld [vmem:[%s4032_s0 + $0x20] ss:$16 sps:$4 sm:$0xff]  }
   0xe   :  { %1181 = vmatpush1.bf16.msra.mxu0 %v3029_v7  ;;  %v3066_v40 = vld [vmem:[%s4032_s0 + $0x28] ss:$16 sps:$4 sm:$0xff]   ;;  %v3067_v41 = vld [vmem:[%s4032_s0 + $0x44] ss:$16 sps:$4 sm:$0xff]   ;;  %v3069_v42 = vld [vmem:[%s4032_s0 + $0x4c] ss:$16 sps:$4 sm:$0xff]  }
   0xf   :  { %1470 = vmatpush1.bf16.msra.mxu1 %v3030_v8  ;;  %1182 = vmatprep.subr.bf16.mxu0 %v3249_v0  ;;  %v3071_v43 = vld [vmem:[%s4032_s0 + $0x40] ss:$16 sps:$4 sm:$0xff]   ;;  %v3072_v44 = vld [vmem:[%s4032_s0 + $0x48] ss:$16 sps:$4 sm:$0xff]   ;;  %v3073_v45 = vld [vmem:[%s4032_s0 + $0x64] ss:$16 sps:$4 sm:$0xff]  }
  0x10   :  { %1471 = vmatprep.subr.bf16.mxu1 %v3249_v0  ;;  %v3075_v46 = vld [vmem:[%s4032_s0 + $0x6c] ss:$16 sps:$4 sm:$0xff]   ;;  %v3077_v47 = vld [vmem:[%s4032_s0 + $0x60] ss:$16 sps:$4 sm:$0xff]   ;;  %v3078_v48 = vld [vmem:[%s4032_s0 + $0x68] ss:$16 sps:$4 sm:$0xff]  }
  0x11   :  { %v3079_v49 = vld [vmem:[%s4032_s0 + $0x84] ss:$16 sps:$4 sm:$0xff]   ;;  %v3081_v50 = vld [vmem:[%s4032_s0 + $0x8c] ss:$16 sps:$4 sm:$0xff]   ;;  %v3083_v51 = vld [vmem:[%s4032_s0 + $0x80] ss:$16 sps:$4 sm:$0xff]  }
  0x12   :  { %1183 = vmatpush1.bf16.msra.mxu0 %v3031_v9  ;;  %v3084_v52 = vld [vmem:[%s4032_s0 + $0x88] ss:$16 sps:$4 sm:$0xff]   ;;  %v3085_v53 = vld [vmem:[%s4032_s0 + $0xa4] ss:$16 sps:$4 sm:$0xff]   ;;  %v3087_v54 = vld [vmem:[%s4032_s0 + $0xac] ss:$16 sps:$4 sm:$0xff]  }
  0x13   :  { %1472 = vmatpush1.bf16.msra.mxu1 %v3032_v10  ;;  %1184 = vmatprep.subr.bf16.mxu0 %v3249_v0  ;;  %v3089_v55 = vld [vmem:[%s4032_s0 + $0xa0] ss:$16 sps:$4 sm:$0xff]   ;;  %v3090_v56 = vld [vmem:[%s4032_s0 + $0xa8] ss:$16 sps:$4 sm:$0xff]   ;;  %v3091_v57 = vld [vmem:[%s4032_s0 + $0xc4] ss:$16 sps:$4 sm:$0xff]  }
  0x14   :  { %1473 = vmatprep.subr.bf16.mxu1 %v3249_v0  ;;  %v3093_v58 = vld [vmem:[%s4032_s0 + $0xcc] ss:$16 sps:$4 sm:$0xff]   ;;  %v3095_v59 = vld [vmem:[%s4032_s0 + $0xc0] ss:$16 sps:$4 sm:$0xff]   ;;  %v3096_v60 = vld [vmem:[%s4032_s0 + $0xc8] ss:$16 sps:$4 sm:$0xff]  }
  0x15   :  { %v3097_v61 = vld [vmem:[%s4032_s0 + $0xe4] ss:$16 sps:$4 sm:$0xff]   ;;  %v3099_v62 = vld [vmem:[%s4032_s0 + $0xec] ss:$16 sps:$4 sm:$0xff]   ;;  %v3101_v63 = vld [vmem:[%s4032_s0 + $0xe0] ss:$16 sps:$4 sm:$0xff]  }
  0x16   :  { %1185 = vmatpush1.bf16.msra.mxu0 %v3033_v11  ;;  %v3103_v1 = vld [vmem:[%s4032_s0 + $0x104] ss:$16 sps:$4 sm:$0xff]   ;;  %v3105_v2 = vld [vmem:[%s4032_s0 + $0x10c] ss:$16 sps:$4 sm:$0xff]   ;;  %v3107_v3 = vld [vmem:[%s4032_s0 + $0x100] ss:$16 sps:$4 sm:$0xff]  }
  0x17   :  { %1474 = vmatpush1.bf16.msra.mxu1 %v3034_v12  ;;  %1186 = vmatprep.subr.bf16.mxu0 %v3249_v0  ;;  %v3108_v4 = vld [vmem:[%s4032_s0 + $0x108] ss:$16 sps:$4 sm:$0xff]   ;;  %v3109_v5 = vld [vmem:[%s4032_s0 + $0x124] ss:$16 sps:$4 sm:$0xff]   ;;  %v3111_v6 = vld [vmem:[%s4032_s0 + $0x12c] ss:$16 sps:$4 sm:$0xff]  }
  0x18   :  { %1475 = vmatprep.subr.bf16.mxu1 %v3249_v0  ;;  %v3113_v7 = vld [vmem:[%s4032_s0 + $0x120] ss:$16 sps:$4 sm:$0xff]   ;;  %v3114_v8 = vld [vmem:[%s4032_s0 + $0x128] ss:$16 sps:$4 sm:$0xff]   ;;  %v3115_v9 = vld [vmem:[%s4032_s0 + $0x144] ss:$16 sps:$4 sm:$0xff]  }
  0x19   :  { %v3117_v10 = vld [vmem:[%s4032_s0 + $0x14c] ss:$16 sps:$4 sm:$0xff]   ;;  %v3119_v11 = vld [vmem:[%s4032_s0 + $0x140] ss:$16 sps:$4 sm:$0xff]   ;;  %v3120_v12 = vld [vmem:[%s4032_s0 + $0x148] ss:$16 sps:$4 sm:$0xff]  }
  0x1a   :  { %1187 = vmatpush1.bf16.msra.mxu0 %v3035_v13  ;;  %v3121_v13 = vld [vmem:[%s4032_s0 + $0x164] ss:$16 sps:$4 sm:$0xff]   ;;  %v3131_v19 = vld [vmem:[%s4032_s0 + $0x180] ss:$16 sps:$4 sm:$0xff]  }
  0x1b   :  { %1476 = vmatpush1.bf16.msra.mxu1 %v3036_v14  ;;  %1188 = vmatprep.subr.bf16.mxu0 %v3249_v0  ;;  %v3123_v14 = vld [vmem:[%s4032_s0 + $0x16c] ss:$16 sps:$4 sm:$0xff]   ;;  %v3133_v21 = vld [vmem:[%s4032_s0 + $0x1a4] ss:$16 sps:$4 sm:$0xff]  }
  0x1c   :  { %1477 = vmatprep.subr.bf16.mxu1 %v3249_v0 }
  0x1e   :  { %1189 = vmatpush1.bf16.msra.mxu0 %v3037_v15  ;;  %v3125_v15 = vld [vmem:[%s4032_s0 + $0x160] ss:$16 sps:$4 sm:$0xff]  }
  0x1f   :  { %1478 = vmatpush1.bf16.msra.mxu1 %v3038_v16  ;;  %1190 = vmatprep.subr.bf16.mxu0 %v3249_v0  ;;  %v3126_v16 = vld [vmem:[%s4032_s0 + $0x168] ss:$16 sps:$4 sm:$0xff]  }
  0x20   :  { %1479 = vmatprep.subr.bf16.mxu1 %v3249_v0 }
  0x22   :  { %1191 = vmatpush1.bf16.msra.mxu0 %v3039_v17  ;;  %v3127_v17 = vld [vmem:[%s4032_s0 + $0x184] ss:$16 sps:$4 sm:$0xff]  }
  0x23   :  { %1480 = vmatpush1.bf16.msra.mxu1 %v3040_v18  ;;  %1192 = vmatprep.subr.bf16.mxu0 %v3249_v0  ;;  %v3129_v18 = vld [vmem:[%s4032_s0 + $0x18c] ss:$16 sps:$4 sm:$0xff]  }
  0x24   :  { %1481 = vmatprep.subr.bf16.mxu1 %v3249_v0 }
  0x26   :  { %1193 = vmatpush1.bf16.msra.mxu0 %v3041_v20  ;;  %v3132_v20 = vld [vmem:[%s4032_s0 + $0x188] ss:$16 sps:$4 sm:$0xff]  }
  0x27   :  { %1482 = vmatpush1.bf16.msra.mxu1 %v3042_v22  ;;  %1194 = vmatprep.subr.bf16.mxu0 %v3249_v0  ;;  %v3135_v22 = vld [vmem:[%s4032_s0 + $0x1ac] ss:$16 sps:$4 sm:$0xff]  }
  0x28   :  { %1483 = vmatprep.subr.bf16.mxu1 %v3249_v0 }
  0x2a   :  { %1195 = vmatpush1.bf16.msra.mxu0 %v3043_v23  ;;  %v3137_v23 = vld [vmem:[%s4032_s0 + $0x1a0] ss:$16 sps:$4 sm:$0xff]  }
  0x2b   :  { %1484 = vmatpush1.bf16.msra.mxu1 %v3044_v24  ;;  %1196 = vmatprep.subr.bf16.mxu0 %v3249_v0  ;;  %v3138_v24 = vld [vmem:[%s4032_s0 + $0x1a8] ss:$16 sps:$4 sm:$0xff]  }
  0x2c   :  { %1485 = vmatprep.subr.bf16.mxu1 %v3249_v0 }
  0x2e   :  { %1197 = vmatpush1.bf16.msra.mxu0 %v3045_v25  ;;  %v3139_v25 = vld [vmem:[%s4032_s0 + $0x1c4] ss:$16 sps:$4 sm:$0xff]  }
  0x2f   :  { %1486 = vmatpush1.bf16.msra.mxu1 %v3046_v26  ;;  %1198 = vmatprep.subr.bf16.mxu0 %v3249_v0  ;;  %v3141_v26 = vld [vmem:[%s4032_s0 + $0x1cc] ss:$16 sps:$4 sm:$0xff]  }
  0x30   :  { %1487 = vmatprep.subr.bf16.mxu1 %v3249_v0 }
  0x32   :  { %1199 = vmatpush1.bf16.msra.mxu0 %v3047_v27  ;;  %v3143_v27 = vld [vmem:[%s4032_s0 + $0x1c0] ss:$16 sps:$4 sm:$0xff]  }
  0x33   :  { %1488 = vmatpush1.bf16.msra.mxu1 %v3048_v28  ;;  %1200 = vmatprep.subr.bf16.mxu0 %v3249_v0  ;;  %v3144_v28 = vld [vmem:[%s4032_s0 + $0x1c8] ss:$16 sps:$4 sm:$0xff]  }
  0x34   :  { %1489 = vmatprep.subr.bf16.mxu1 %v3249_v0 }
  0x36   :  { %1201 = vmatpush1.bf16.msra.mxu0 %v3049_v29  ;;  %v3145_v29 = vld [vmem:[%s4032_s0 + $0x1e4] ss:$16 sps:$4 sm:$0xff]  }
  0x37   :  { %1490 = vmatpush1.bf16.msra.mxu1 %v3050_v30  ;;  %1202 = vmatprep.subr.bf16.mxu0 %v3249_v0  ;;  %v3147_v30 = vld [vmem:[%s4032_s0 + $0x1ec] ss:$16 sps:$4 sm:$0xff]  }
  0x38   :  { %1491 = vmatprep.subr.bf16.mxu1 %v3249_v0 }
  0x3a   :  { %1203 = vmatpush1.bf16.msra.mxu0 %v3051_v31  ;;  %v3149_v31 = vld [vmem:[%s4032_s0 + $0x1e0] ss:$16 sps:$4 sm:$0xff]  }
  0x3b   :  { %1492 = vmatpush1.bf16.msra.mxu1 %v3052_v32  ;;  %1204 = vmatprep.subr.bf16.mxu0 %v3249_v0  ;;  %v3150_v32 = vld [vmem:[%s4032_s0 + $0x1e8] ss:$16 sps:$4 sm:$0xff]  }
  0x3c   :  { %1493 = vmatprep.subr.bf16.mxu1 %v3249_v0  ;;  %v3102_v0 = vld [vmem:[%s4032_s0 + $0xe8] ss:$16 sps:$4 sm:$0xff]  }
  0x3e   :  { %1205 = vmatpush1.bf16.msra.mxu0 %v3053_v33  ;;  %v3151_v33 = vld [vmem:[%s4032_s0 + $0x204] ss:$16 sps:$4 sm:$0xff]  }
  0x3f   :  { %1494 = vmatpush1.bf16.msra.mxu1 %v3054_v34  ;;  %v3153_v34 = vld [vmem:[%s4032_s0 + $0x20c] ss:$16 sps:$4 sm:$0xff]  }
  0x41   :  { %1207 = vmatmul.mubr.bf16.vlgmr.msra.gmra.mrb[0].mxu0 %v3055_v35  ;;  %v3155_v35 = vld [vmem:[%s4032_s0 + $0x200] ss:$16 sps:$4 sm:$0xff]  }
  0x42   :  { %1496 = vmatmul.mubr.bf16.vlgmr.msra.gmra.mrb[0].mxu1 %v3058_v36  ;;  %1214 = vmatprep.mubr.bf16.mxu0 %v3061_v37  ;;  %v3156_v36 = vld [vmem:[%s4032_s0 + $0x208] ss:$16 sps:$4 sm:$0xff]   ;;  %v3157_v37 = vld [vmem:[%s4032_s0 + $0x224] ss:$16 sps:$4 sm:$0xff]  }
  0x43   :  { %1503 = vmatprep.mubr.bf16.mxu1 %v3063_v38  ;;  %v3159_v38 = vld [vmem:[%s4032_s0 + $0x22c] ss:$16 sps:$4 sm:$0xff]  }
  0x49   :  { %1215 = vmatmul.mubr.bf16.gmra.mrb[4].mxu0 %v3065_v39  ;;  %v3161_v39 = vld [vmem:[%s4032_s0 + $0x220] ss:$16 sps:$4 sm:$0xff]  }
  0x4a   :  { %1504 = vmatmul.mubr.bf16.gmra.mrb[4].mxu1 %v3066_v40  ;;  %1222 = vmatprep.mubr.bf16.mxu0 %v3067_v41  ;;  %v3162_v40 = vld [vmem:[%s4032_s0 + $0x228] ss:$16 sps:$4 sm:$0xff]   ;;  %v3163_v41 = vld [vmem:[%s4032_s0 + $0x244] ss:$16 sps:$4 sm:$0xff]  }
  0x4b   :  { %1511 = vmatprep.mubr.bf16.mxu1 %v3069_v42  ;;  %v3165_v42 = vld [vmem:[%s4032_s0 + $0x24c] ss:$16 sps:$4 sm:$0xff]  }
  0x51   :  { %1223 = vmatmul.mubr.bf16.gmra.mrb[8].mxu0 %v3071_v43  ;;  %v3167_v43 = vld [vmem:[%s4032_s0 + $0x240] ss:$16 sps:$4 sm:$0xff]  }
  0x52   :  { %1512 = vmatmul.mubr.bf16.gmra.mrb[8].mxu1 %v3072_v44  ;;  %1230 = vmatprep.mubr.bf16.mxu0 %v3073_v45  ;;  %v3168_v44 = vld [vmem:[%s4032_s0 + $0x248] ss:$16 sps:$4 sm:$0xff]   ;;  %v3169_v45 = vld [vmem:[%s4032_s0 + $0x264] ss:$16 sps:$4 sm:$0xff]  }
  0x53   :  { %1519 = vmatprep.mubr.bf16.mxu1 %v3075_v46  ;;  %v3171_v46 = vld [vmem:[%s4032_s0 + $0x26c] ss:$16 sps:$4 sm:$0xff]  }
  0x59   :  { %1231 = vmatmul.mubr.bf16.gmra.mrb[12].mxu0 %v3077_v47  ;;  %v3173_v47 = vld [vmem:[%s4032_s0 + $0x260] ss:$16 sps:$4 sm:$0xff]  }
  0x5a   :  { %1520 = vmatmul.mubr.bf16.gmra.mrb[12].mxu1 %v3078_v48  ;;  %1238 = vmatprep.mubr.bf16.mxu0 %v3079_v49  ;;  %v3174_v48 = vld [vmem:[%s4032_s0 + $0x268] ss:$16 sps:$4 sm:$0xff]   ;;  %v3175_v49 = vld [vmem:[%s4032_s0 + $0x284] ss:$16 sps:$4 sm:$0xff]  }
  0x5b   :  { %1527 = vmatprep.mubr.bf16.mxu1 %v3081_v50  ;;  %v3177_v50 = vld [vmem:[%s4032_s0 + $0x28c] ss:$16 sps:$4 sm:$0xff]  }
  0x61   :  { %1239 = vmatmul.mubr.bf16.gmra.mrb[16].mxu0 %v3083_v51  ;;  %v3179_v51 = vld [vmem:[%s4032_s0 + $0x280] ss:$16 sps:$4 sm:$0xff]  }
  0x62   :  { %1528 = vmatmul.mubr.bf16.gmra.mrb[16].mxu1 %v3084_v52  ;;  %1246 = vmatprep.mubr.bf16.mxu0 %v3085_v53  ;;  %v3180_v52 = vld [vmem:[%s4032_s0 + $0x288] ss:$16 sps:$4 sm:$0xff]   ;;  %v3181_v53 = vld [vmem:[%s4032_s0 + $0x2a4] ss:$16 sps:$4 sm:$0xff]  }
  0x63   :  { %1535 = vmatprep.mubr.bf16.mxu1 %v3087_v54  ;;  %v3183_v54 = vld [vmem:[%s4032_s0 + $0x2ac] ss:$16 sps:$4 sm:$0xff]  }
  0x69   :  { %1247 = vmatmul.mubr.bf16.gmra.mrb[20].mxu0 %v3089_v55  ;;  %v3185_v55 = vld [vmem:[%s4032_s0 + $0x2a0] ss:$16 sps:$4 sm:$0xff]  }
  0x6a   :  { %1536 = vmatmul.mubr.bf16.gmra.mrb[20].mxu1 %v3090_v56  ;;  %1254 = vmatprep.mubr.bf16.mxu0 %v3091_v57  ;;  %v3186_v56 = vld [vmem:[%s4032_s0 + $0x2a8] ss:$16 sps:$4 sm:$0xff]   ;;  %v3187_v57 = vld [vmem:[%s4032_s0 + $0x2c4] ss:$16 sps:$4 sm:$0xff]  }
  0x6b   :  { %1543 = vmatprep.mubr.bf16.mxu1 %v3093_v58  ;;  %v3189_v58 = vld [vmem:[%s4032_s0 + $0x2cc] ss:$16 sps:$4 sm:$0xff]  }
  0x71   :  { %1255 = vmatmul.mubr.bf16.gmra.mrb[24].mxu0 %v3095_v59  ;;  %v3191_v59 = vld [vmem:[%s4032_s0 + $0x2c0] ss:$16 sps:$4 sm:$0xff]  }
  0x72   :  { %1544 = vmatmul.mubr.bf16.gmra.mrb[24].mxu1 %v3096_v60  ;;  %1262 = vmatprep.mubr.bf16.mxu0 %v3097_v61  ;;  %v3192_v60 = vld [vmem:[%s4032_s0 + $0x2c8] ss:$16 sps:$4 sm:$0xff]   ;;  %v3193_v61 = vld [vmem:[%s4032_s0 + $0x2e4] ss:$16 sps:$4 sm:$0xff]  }
  0x73   :  { %1551 = vmatprep.mubr.bf16.mxu1 %v3099_v62  ;;  %v3195_v62 = vld [vmem:[%s4032_s0 + $0x2ec] ss:$16 sps:$4 sm:$0xff]  }
  0x79   :  { %1263 = vmatmul.mubr.bf16.gmra.mrb[28].mxu0 %v3101_v63  ;;  %v3197_v63 = vld [vmem:[%s4032_s0 + $0x2e0] ss:$16 sps:$4 sm:$0xff]  }
  0x7a   :  { %1552 = vmatmul.mubr.bf16.gmra.mrb[28].mxu1 %v3102_v0  ;;  %1270 = vmatprep.mubr.bf16.mxu0 %v3103_v1  ;;  %v3198_v0 = vld [vmem:[%s4032_s0 + $0x2e8] ss:$16 sps:$4 sm:$0xff]   ;;  %v3199_v1 = vld [vmem:[%s4032_s0 + $0x304] ss:$16 sps:$4 sm:$0xff]  }
  0x7b   :  { %1559 = vmatprep.mubr.bf16.mxu1 %v3105_v2  ;;  %v3201_v2 = vld [vmem:[%s4032_s0 + $0x30c] ss:$16 sps:$4 sm:$0xff]  }
  0x81   :  { %1271 = vmatmul.mubr.bf16.gmra.mrb[32].mxu0 %v3107_v3  ;;  %v3203_v3 = vld [vmem:[%s4032_s0 + $0x300] ss:$16 sps:$4 sm:$0xff]  }
  0x82   :  { %1560 = vmatmul.mubr.bf16.gmra.mrb[32].mxu1 %v3108_v4  ;;  %1278 = vmatprep.mubr.bf16.mxu0 %v3109_v5  ;;  %v3204_v4 = vld [vmem:[%s4032_s0 + $0x308] ss:$16 sps:$4 sm:$0xff]   ;;  %v3205_v5 = vld [vmem:[%s4032_s0 + $0x324] ss:$16 sps:$4 sm:$0xff]  }
  0x83   :  { %1567 = vmatprep.mubr.bf16.mxu1 %v3111_v6  ;;  %v3207_v6 = vld [vmem:[%s4032_s0 + $0x32c] ss:$16 sps:$4 sm:$0xff]  }
  0x89   :  { %1279 = vmatmul.mubr.bf16.gmra.mrb[36].mxu0 %v3113_v7  ;;  %v3209_v7 = vld [vmem:[%s4032_s0 + $0x320] ss:$16 sps:$4 sm:$0xff]  }
  0x8a   :  { %1568 = vmatmul.mubr.bf16.gmra.mrb[36].mxu1 %v3114_v8  ;;  %1286 = vmatprep.mubr.bf16.mxu0 %v3115_v9  ;;  %v3210_v8 = vld [vmem:[%s4032_s0 + $0x328] ss:$16 sps:$4 sm:$0xff]   ;;  %v3211_v9 = vld [vmem:[%s4032_s0 + $0x344] ss:$16 sps:$4 sm:$0xff]  }
  0x8b   :  { %1575 = vmatprep.mubr.bf16.mxu1 %v3117_v10  ;;  %v3213_v10 = vld [vmem:[%s4032_s0 + $0x34c] ss:$16 sps:$4 sm:$0xff]  }
  0x91   :  { %1287 = vmatmul.mubr.bf16.gmra.mrb[40].mxu0 %v3119_v11  ;;  %v3215_v11 = vld [vmem:[%s4032_s0 + $0x340] ss:$16 sps:$4 sm:$0xff]  }
  0x92   :  { %1576 = vmatmul.mubr.bf16.gmra.mrb[40].mxu1 %v3120_v12  ;;  %1294 = vmatprep.mubr.bf16.mxu0 %v3121_v13  ;;  %v3216_v12 = vld [vmem:[%s4032_s0 + $0x348] ss:$16 sps:$4 sm:$0xff]   ;;  %v3217_v13 = vld [vmem:[%s4032_s0 + $0x364] ss:$16 sps:$4 sm:$0xff]  }
  0x93   :  { %1583 = vmatprep.mubr.bf16.mxu1 %v3123_v14  ;;  %v3219_v14 = vld [vmem:[%s4032_s0 + $0x36c] ss:$16 sps:$4 sm:$0xff]  }
  0x99   :  { %1295 = vmatmul.mubr.bf16.gmra.mrb[44].mxu0 %v3125_v15 }
  0x9a   :  { %1584 = vmatmul.mubr.bf16.gmra.mrb[44].mxu1 %v3126_v16  ;;  %1302 = vmatprep.mubr.bf16.mxu0 %v3127_v17  ;;  %v3736_v17 = vld [vmem:[%s4033_s2] ss:$0 sm:$0xff] }
  0x9b   :  { %1591 = vmatprep.mubr.bf16.mxu1 %v3129_v18 }
  0xa1   :  { %1303 = vmatmul.mubr.bf16.gmra.mrb[48].mxu0 %v3131_v19  ;;  %v3221_v19 = vld [vmem:[%s4032_s0 + $0x360] ss:$16 sps:$4 sm:$0xff]  }
  0xa2   :  { %1592 = vmatmul.mubr.bf16.gmra.mrb[48].mxu1 %v3132_v20  ;;  %1310 = vmatprep.mubr.bf16.mxu0 %v3133_v21 }
  0xa3   :  { %1599 = vmatprep.mubr.bf16.mxu1 %v3135_v22 }
  0xa9   :  { %1311 = vmatmul.mubr.bf16.gmra.mrb[52].mxu0 %v3137_v23  ;;  %v3222_v23 = vld [vmem:[%s4032_s0 + $0x368] ss:$16 sps:$4 sm:$0xff]  }
  0xaa   :  { %1600 = vmatmul.mubr.bf16.gmra.mrb[52].mxu1 %v3138_v24  ;;  %1318 = vmatprep.mubr.bf16.mxu0 %v3139_v25  ;;  %v3223_v24 = vld [vmem:[%s4032_s0 + $0x384] ss:$16 sps:$4 sm:$0xff]   ;;  %v3750_v25 = vld [vmem:[%s4034_s3] ss:$0 sm:$0xff] }
  0xab   :  { %1607 = vmatprep.mubr.bf16.mxu1 %v3141_v26 }
  0xb1   :  { %1319 = vmatmul.mubr.bf16.gmra.mrb[56].mxu0 %v3143_v27 }
  0xb2   :  { %1608 = vmatmul.mubr.bf16.gmra.mrb[56].mxu1 %v3144_v28  ;;  %1326 = vmatprep.mubr.bf16.mxu0 %v3145_v29  ;;  %v3225_v28 = vld [vmem:[%s4032_s0 + $0x38c] ss:$16 sps:$4 sm:$0xff]  }
  0xb3   :  { %1615 = vmatprep.mubr.bf16.mxu1 %v3147_v30 }
  0xb9   :  { %1327 = vmatmul.mubr.bf16.gmra.mrb[60].mxu0 %v3149_v31 }
  0xba   :  { %1616 = vmatmul.mubr.bf16.gmra.mrb[60].mxu1 %v3150_v32  ;;  %1334 = vmatprep.mubr.bf16.mxu0 %v3151_v33 }
  0xbb   :  { %1623 = vmatprep.mubr.bf16.mxu1 %v3153_v34 }
  0xc1   :  { %1335 = vmatmul.mubr.bf16.gmra.mrb[64].mxu0 %v3155_v35 }
  0xc2   :  { %1624 = vmatmul.mubr.bf16.gmra.mrb[64].mxu1 %v3156_v36  ;;  %1342 = vmatprep.mubr.bf16.mxu0 %v3157_v37 }
  0xc3   :  { %1631 = vmatprep.mubr.bf16.mxu1 %v3159_v38  ;;  %v3227_v38 = vld [vmem:[%s4032_s0 + $0x380] ss:$16 sps:$4 sm:$0xff]  }
  0xc9   :  { %1343 = vmatmul.mubr.bf16.gmra.mrb[68].mxu0 %v3161_v39 }
  0xca   :  { %1632 = vmatmul.mubr.bf16.gmra.mrb[68].mxu1 %v3162_v40  ;;  %1350 = vmatprep.mubr.bf16.mxu0 %v3163_v41 }
  0xcb   :  { %1639 = vmatprep.mubr.bf16.mxu1 %v3165_v42 }
  0xd1   :  { %1351 = vmatmul.mubr.bf16.gmra.mrb[72].mxu0 %v3167_v43 }
  0xd2   :  { %1640 = vmatmul.mubr.bf16.gmra.mrb[72].mxu1 %v3168_v44  ;;  %1358 = vmatprep.mubr.bf16.mxu0 %v3169_v45  ;;  %v3228_v44 = vld [vmem:[%s4032_s0 + $0x388] ss:$16 sps:$4 sm:$0xff]   ;;  %v3229_v45 = vld [vmem:[%s4032_s0 + $0x3a4] ss:$16 sps:$4 sm:$0xff]  }
  0xd3   :  { %1647 = vmatprep.mubr.bf16.mxu1 %v3171_v46 }
  0xd9   :  { %1359 = vmatmul.mubr.bf16.gmra.mrb[76].mxu0 %v3173_v47 }
  0xda   :  { %1648 = vmatmul.mubr.bf16.gmra.mrb[76].mxu1 %v3174_v48  ;;  %1366 = vmatprep.mubr.bf16.mxu0 %v3175_v49  ;;  %v3231_v49 = vld [vmem:[%s4032_s0 + $0x3ac] ss:$16 sps:$4 sm:$0xff]  }
  0xdb   :  { %1655 = vmatprep.mubr.bf16.mxu1 %v3177_v50 }
  0xe1   :  { %1367 = vmatmul.mubr.bf16.gmra.mrb[80].mxu0 %v3179_v51 }
  0xe2   :  { %1656 = vmatmul.mubr.bf16.gmra.mrb[80].mxu1 %v3180_v52  ;;  %1374 = vmatprep.mubr.bf16.mxu0 %v3181_v53 }
  0xe3   :  { %1663 = vmatprep.mubr.bf16.mxu1 %v3183_v54 }
  0xe9   :  { %1375 = vmatmul.mubr.bf16.gmra.mrb[84].mxu0 %v3185_v55 }
  0xea   :  { %1664 = vmatmul.mubr.bf16.gmra.mrb[84].mxu1 %v3186_v56  ;;  %1382 = vmatprep.mubr.bf16.mxu0 %v3187_v57 }
  0xeb   :  { %1671 = vmatprep.mubr.bf16.mxu1 %v3189_v58 }
  0xf1   :  { %1383 = vmatmul.mubr.bf16.gmra.mrb[88].mxu0 %v3191_v59  ;;  %v3233_v59 = vld [vmem:[%s4032_s0 + $0x3a0] ss:$16 sps:$4 sm:$0xff]  }
  0xf2   :  { %1672 = vmatmul.mubr.bf16.gmra.mrb[88].mxu1 %v3192_v60  ;;  %1390 = vmatprep.mubr.bf16.mxu0 %v3193_v61 }
  0xf3   :  { %1679 = vmatprep.mubr.bf16.mxu1 %v3195_v62 }
  0xf9   :  { %1391 = vmatmul.mubr.bf16.gmra.mrb[92].mxu0 %v3197_v63 }
  0xfa   :  { %1680 = vmatmul.mubr.bf16.gmra.mrb[92].mxu1 %v3198_v0  ;;  %1398 = vmatprep.mubr.bf16.mxu0 %v3199_v1  ;;  %v3234_v1 = vld [vmem:[%s4032_s0 + $0x3a8] ss:$16 sps:$4 sm:$0xff]  }
  0xfb   :  { %1687 = vmatprep.mubr.bf16.mxu1 %v3201_v2  ;;  %v3235_v2 = vld [vmem:[%s4032_s0 + $0x3c4] ss:$16 sps:$4 sm:$0xff]  }
 0x101   :  { %1399 = vmatmul.mubr.bf16.gmra.mrb[96].mxu0 %v3203_v3 }
 0x102   :  { %1688 = vmatmul.mubr.bf16.gmra.mrb[96].mxu1 %v3204_v4  ;;  %1406 = vmatprep.mubr.bf16.mxu0 %v3205_v5 }
 0x103   :  { %1695 = vmatprep.mubr.bf16.mxu1 %v3207_v6  ;;  %v3237_v6 = vld [vmem:[%s4032_s0 + $0x3cc] ss:$16 sps:$4 sm:$0xff]  }
 0x109   :  { %1407 = vmatmul.mubr.bf16.gmra.mrb[100].mxu0 %v3209_v7 }
 0x10a   :  { %1696 = vmatmul.mubr.bf16.gmra.mrb[100].mxu1 %v3210_v8  ;;  %1414 = vmatprep.mubr.bf16.mxu0 %v3211_v9 }
 0x10b   :  { %1703 = vmatprep.mubr.bf16.mxu1 %v3213_v10 }
 0x111   :  { %1415 = vmatmul.mubr.bf16.gmra.mrb[104].mxu0 %v3215_v11 }
 0x112   :  { %1704 = vmatmul.mubr.bf16.gmra.mrb[104].mxu1 %v3216_v12  ;;  %1422 = vmatprep.mubr.bf16.mxu0 %v3217_v13 }
 0x113   :  { %1711 = vmatprep.mubr.bf16.mxu1 %v3219_v14 }
 0x114   :  { %v1208_v15 = vpop.f32.mrb[0].mxu0 }
 0x115   :  { %v1497_v16 = vpop.f32.mrb[0].mxu1  ;;  %v1210_v18 = vpop.f32.mrb[1].mxu0 }
 0x116   :  { %v1498_v20 = vadd.f32 %v1497_v16, %v1208_v15  ;;  %v1499_v21 = vpop.f32.mrb[1].mxu1  ;;  %v1211_v22 = vpop.f32.mrb[2].mxu0  ;;  %v3239_v16 = vld [vmem:[%s4032_s0 + $0x3c0] ss:$16 sps:$4 sm:$0xff]  }
 0x117   :  { %v1500_v26 = vpop.f32.mrb[2].mxu1  ;;  %v1213_v27 = vpop.f32.mrb[3].mxu0 }
 0x118   :  { %v1954_v29 = vadd.f32 %v3736_v17, %v1498_v20  ;;  %v1501_v30 = vadd.f32 %v1500_v26, %v1211_v22  ;;  %v1502_v31 = vpop.f32.mrb[3].mxu1 }
 0x119   :  { %1423 = vmatmul.mubr.bf16.gmra.mrb[108].mxu0 %v3221_v19 }
 0x11a   :  { %v2089_v32 = vmul.f32 %v3750_v25, %v1954_v29  ;;  %v1955_v33 = vadd.f32 %v3736_v17, %v1501_v30  ;;  %1712 = vmatmul.mubr.bf16.gmra.mrb[108].mxu1 %v3222_v23  ;;  %1430 = vmatprep.mubr.bf16.mxu0 %v3223_v24  ;;  %vm2018_vm0 = vcmp.ge.f32.partialorder %v1954_v29, 0.0  ;;  %v3240_v23 = vld [vmem:[%s4032_s0 + $0x3c8] ss:$16 sps:$4 sm:$0xff]   ;;  %v3241_v24 = vld [vmem:[%s4032_s0 + $0x3e4] ss:$16 sps:$4 sm:$0xff]  }
 0x11b   :  { %1719 = vmatprep.mubr.bf16.mxu1 %v3225_v28 }
 0x11c   :  { %vm2019_vm1 = vcmp.ge.f32.partialorder %v1955_v33, 0.0  ;;  %v2090_v34 = vmul.f32 %v3750_v25, %v1955_v33  ;;  %v1216_v35 = vpop.f32.mrb[4].mxu0  ;;  %v2153_v39 = vsel %vm2018_vm0, %v1954_v29, %v2089_v32  ;;  %v3243_v29 = vld [vmem:[%s4032_s0 + $0x3ec] ss:$16 sps:$4 sm:$0xff]  }
 0x11d   :  { %v1505_v36 = vpop.f32.mrb[4].mxu1  ;;  %v1218_v37 = vpop.f32.mrb[5].mxu0 }
 0x11e   :  { %v2154_v40 = vsel %vm2019_vm1, %v1955_v33, %v2090_v34  ;;  %v1506_v41 = vadd.f32 %v1505_v36, %v1216_v35  ;;  %v1507_v42 = vpop.f32.mrb[5].mxu1  ;;  %v1219_v43 = vpop.f32.mrb[6].mxu0 }
 0x11f   :  { %v2834_v46 = vpack.c.bf16 %v2154_v40, %v2153_v39  ;;  %v1508_v47 = vpop.f32.mrb[6].mxu1  ;;  %v1221_v48 = vpop.f32.mrb[7].mxu0  ;;  %v3245_v39 = vld [vmem:[%s4032_s0 + $0x3e0] ss:$16 sps:$4 sm:$0xff]  }
 0x120   :  { %v1956_v50 = vadd.f32 %v3736_v17, %v1506_v41  ;;  %v1509_v51 = vadd.f32 %v1508_v47, %v1219_v43  ;;  %v1510_v52 = vpop.f32.mrb[7].mxu1 }
 0x121   :  { %2835 = vst [vmem:[%s4035_s4] sm:$0xff] %v2834_v46   ;;  %1431 = vmatmul.mubr.bf16.gmra.mrb[112].mxu0 %v3227_v38 }
 0x122   :  { %v2091_v53 = vmul.f32 %v3750_v25, %v1956_v50  ;;  %v1957_v54 = vadd.f32 %v3736_v17, %v1509_v51  ;;  %1720 = vmatmul.mubr.bf16.gmra.mrb[112].mxu1 %v3228_v44  ;;  %1438 = vmatprep.mubr.bf16.mxu0 %v3229_v45  ;;  %vm2020_vm2 = vcmp.ge.f32.partialorder %v1956_v50, 0.0  ;;  %v3246_v45 = vld [vmem:[%s4032_s0 + $0x3e8] ss:$16 sps:$4 sm:$0xff]  }
 0x123   :  { %1727 = vmatprep.mubr.bf16.mxu1 %v3231_v49 }
 0x124   :  { %vm2021_vm3 = vcmp.ge.f32.partialorder %v1957_v54, 0.0  ;;  %v2092_v55 = vmul.f32 %v3750_v25, %v1957_v54  ;;  %v1224_v56 = vpop.f32.mrb[8].mxu0  ;;  %v2155_v60 = vsel %vm2020_vm2, %v1956_v50, %v2091_v53 }
 0x125   :  { %v1513_v57 = vpop.f32.mrb[8].mxu1  ;;  %v1226_v58 = vpop.f32.mrb[9].mxu0 }
 0x126   :  { %v2156_v61 = vsel %vm2021_vm3, %v1957_v54, %v2092_v55  ;;  %v1514_v62 = vadd.f32 %v1513_v57, %v1224_v56  ;;  %v1515_v63 = vpop.f32.mrb[9].mxu1  ;;  %v1227_v0 = vpop.f32.mrb[10].mxu0 }
 0x127   :  { %v2839_v3 = vpack.c.bf16 %v2156_v61, %v2155_v60  ;;  %v1516_v4 = vpop.f32.mrb[10].mxu1  ;;  %v1229_v5 = vpop.f32.mrb[11].mxu0 }
 0x128   :  { %v1958_v7 = vadd.f32 %v3736_v17, %v1514_v62  ;;  %v1517_v8 = vadd.f32 %v1516_v4, %v1227_v0  ;;  %v1518_v9 = vpop.f32.mrb[11].mxu1 }
 0x129   :  { %2991 = vst [vmem:[%s4035_s4 + $0x8] sm:$0xff] %v2839_v3   ;;  %1439 = vmatmul.mubr.bf16.gmra.mrb[116].mxu0 %v3233_v59 }
 0x12a   :  { %v2093_v10 = vmul.f32 %v3750_v25, %v1958_v7  ;;  %v1959_v11 = vadd.f32 %v3736_v17, %v1517_v8  ;;  %1728 = vmatmul.mubr.bf16.gmra.mrb[116].mxu1 %v3234_v1  ;;  %1446 = vmatprep.mubr.bf16.mxu0 %v3235_v2  ;;  %vm2022_vm4 = vcmp.ge.f32.partialorder %v1958_v7, 0.0 }
 0x12b   :  { %1735 = vmatprep.mubr.bf16.mxu1 %v3237_v6 }
 0x12c   :  { %vm2023_vm5 = vcmp.ge.f32.partialorder %v1959_v11, 0.0  ;;  %v2094_v12 = vmul.f32 %v3750_v25, %v1959_v11  ;;  %v1232_v13 = vpop.f32.mrb[12].mxu0  ;;  %v2157_v18 = vsel %vm2022_vm4, %v1958_v7, %v2093_v10 }
 0x12d   :  { %v1521_v14 = vpop.f32.mrb[12].mxu1  ;;  %v1234_v15 = vpop.f32.mrb[13].mxu0 }
 0x12e   :  { %v2158_v19 = vsel %vm2023_vm5, %v1959_v11, %v2094_v12  ;;  %v1522_v20 = vadd.f32 %v1521_v14, %v1232_v13  ;;  %v1523_v21 = vpop.f32.mrb[13].mxu1  ;;  %v1235_v22 = vpop.f32.mrb[14].mxu0 }
 0x12f   :  { %v2844_v26 = vpack.c.bf16 %v2158_v19, %v2157_v18  ;;  %v1524_v27 = vpop.f32.mrb[14].mxu1  ;;  %v1237_v28 = vpop.f32.mrb[15].mxu0 }
 0x130   :  { %v1960_v30 = vadd.f32 %v3736_v17, %v1522_v20  ;;  %v1525_v31 = vadd.f32 %v1524_v27, %v1235_v22  ;;  %v1526_v32 = vpop.f32.mrb[15].mxu1 }
 0x131   :  { %2992 = vst [vmem:[%s4035_s4 + $0x10] sm:$0xff] %v2844_v26   ;;  %1447 = vmatmul.mubr.bf16.gmra.mrb[120].mxu0 %v3239_v16 }
 0x132   :  { %v2095_v33 = vmul.f32 %v3750_v25, %v1960_v30  ;;  %v1961_v34 = vadd.f32 %v3736_v17, %v1525_v31  ;;  %1736 = vmatmul.mubr.bf16.gmra.mrb[120].mxu1 %v3240_v23  ;;  %1454 = vmatprep.mubr.bf16.mxu0 %v3241_v24  ;;  %vm2024_vm6 = vcmp.ge.f32.partialorder %v1960_v30, 0.0 }
 0x133   :  { %1743 = vmatprep.mubr.bf16.mxu1 %v3243_v29 }
 0x134   :  { %vm2025_vm7 = vcmp.ge.f32.partialorder %v1961_v34, 0.0  ;;  %v2096_v35 = vmul.f32 %v3750_v25, %v1961_v34  ;;  %v1240_v36 = vpop.f32.mrb[16].mxu0  ;;  %v2159_v40 = vsel %vm2024_vm6, %v1960_v30, %v2095_v33 }
 0x135   :  { %v1529_v37 = vpop.f32.mrb[16].mxu1  ;;  %v1242_v38 = vpop.f32.mrb[17].mxu0 }
 0x136   :  { %v2160_v41 = vsel %vm2025_vm7, %v1961_v34, %v2096_v35  ;;  %v1530_v42 = vadd.f32 %v1529_v37, %v1240_v36  ;;  %v1531_v43 = vpop.f32.mrb[17].mxu1  ;;  %v1243_v44 = vpop.f32.mrb[18].mxu0 }
 0x137   :  { %v2849_v46 = vpack.c.bf16 %v2160_v41, %v2159_v40  ;;  %v1532_v47 = vpop.f32.mrb[18].mxu1  ;;  %v1245_v48 = vpop.f32.mrb[19].mxu0 }
 0x138   :  { %v1962_v49 = vadd.f32 %v3736_v17, %v1530_v42  ;;  %v1533_v50 = vadd.f32 %v1532_v47, %v1243_v44  ;;  %v1534_v51 = vpop.f32.mrb[19].mxu1 }
 0x139   :  { %2993 = vst [vmem:[%s4035_s4 + $0x18] sm:$0xff] %v2849_v46   ;;  %1455 = vmatmul.mubr.bf16.gmra.mrb[124].mxu0 %v3245_v39 }
 0x13a   :  { %v2097_v52 = vmul.f32 %v3750_v25, %v1962_v49  ;;  %v1963_v53 = vadd.f32 %v3736_v17, %v1533_v50  ;;  %1744 = vmatmul.mubr.bf16.gmra.mrb[124].mxu1 %v3246_v45  ;;  %vm2026_vm8 = vcmp.ge.f32.partialorder %v1962_v49, 0.0 }
 0x13c   :  { %vm2027_vm9 = vcmp.ge.f32.partialorder %v1963_v53, 0.0  ;;  %v2098_v54 = vmul.f32 %v3750_v25, %v1963_v53  ;;  %v1248_v55 = vpop.f32.mrb[20].mxu0  ;;  %v2161_v58 = vsel %vm2026_vm8, %v1962_v49, %v2097_v52 }
 0x13d   :  { %v1537_v56 = vpop.f32.mrb[20].mxu1  ;;  %v1250_v57 = vpop.f32.mrb[21].mxu0 }
 0x13e   :  { %v2162_v59 = vsel %vm2027_vm9, %v1963_v53, %v2098_v54  ;;  %v1538_v60 = vadd.f32 %v1537_v56, %v1248_v55  ;;  %v1539_v61 = vpop.f32.mrb[21].mxu1  ;;  %v1251_v62 = vpop.f32.mrb[22].mxu0 }
 0x13f   :  { %v2854_v63 = vpack.c.bf16 %v2162_v59, %v2161_v58  ;;  %v1540_v0 = vpop.f32.mrb[22].mxu1  ;;  %v1253_v1 = vpop.f32.mrb[23].mxu0 }
 0x140   :  { %v1964_v2 = vadd.f32 %v3736_v17, %v1538_v60  ;;  %v1541_v3 = vadd.f32 %v1540_v0, %v1251_v62  ;;  %v1542_v4 = vpop.f32.mrb[23].mxu1 }
 0x141   :  { %2994 = vst [vmem:[%s4035_s4 + $0x20] sm:$0xff] %v2854_v63  }
 0x142   :  { %v2099_v5 = vmul.f32 %v3750_v25, %v1964_v2  ;;  %v1965_v6 = vadd.f32 %v3736_v17, %v1541_v3  ;;  %vm2028_vm10 = vcmp.ge.f32.partialorder %v1964_v2, 0.0 }
 0x144   :  { %vm2029_vm11 = vcmp.ge.f32.partialorder %v1965_v6, 0.0  ;;  %v2100_v7 = vmul.f32 %v3750_v25, %v1965_v6  ;;  %v1256_v8 = vpop.f32.mrb[24].mxu0  ;;  %v2163_v11 = vsel %vm2028_vm10, %v1964_v2, %v2099_v5 }
 0x145   :  { %v1545_v9 = vpop.f32.mrb[24].mxu1  ;;  %v1258_v10 = vpop.f32.mrb[25].mxu0 }
 0x146   :  { %v2164_v12 = vsel %vm2029_vm11, %v1965_v6, %v2100_v7  ;;  %v1546_v13 = vadd.f32 %v1545_v9, %v1256_v8  ;;  %v1547_v14 = vpop.f32.mrb[25].mxu1  ;;  %v1259_v15 = vpop.f32.mrb[26].mxu0 }
 0x147   :  { %v2859_v16 = vpack.c.bf16 %v2164_v12, %v2163_v11  ;;  %v1548_v18 = vpop.f32.mrb[26].mxu1  ;;  %v1261_v19 = vpop.f32.mrb[27].mxu0 }
 0x148   :  { %v1966_v20 = vadd.f32 %v3736_v17, %v1546_v13  ;;  %v1549_v21 = vadd.f32 %v1548_v18, %v1259_v15  ;;  %v1550_v22 = vpop.f32.mrb[27].mxu1 }
 0x149   :  { %2995 = vst [vmem:[%s4035_s4 + $0x28] sm:$0xff] %v2859_v16  }
 0x14a   :  { %v2101_v23 = vmul.f32 %v3750_v25, %v1966_v20  ;;  %v1967_v24 = vadd.f32 %v3736_v17, %v1549_v21  ;;  %vm2030_vm12 = vcmp.ge.f32.partialorder %v1966_v20, 0.0 }
 0x14c   :  { %vm2031_vm13 = vcmp.ge.f32.partialorder %v1967_v24, 0.0  ;;  %v2102_v26 = vmul.f32 %v3750_v25, %v1967_v24  ;;  %v1264_v27 = vpop.f32.mrb[28].mxu0  ;;  %v2165_v30 = vsel %vm2030_vm12, %v1966_v20, %v2101_v23 }
 0x14d   :  { %v1553_v28 = vpop.f32.mrb[28].mxu1  ;;  %v1266_v29 = vpop.f32.mrb[29].mxu0 }
 0x14e   :  { %v2166_v31 = vsel %vm2031_vm13, %v1967_v24, %v2102_v26  ;;  %v1554_v32 = vadd.f32 %v1553_v28, %v1264_v27  ;;  %v1555_v33 = vpop.f32.mrb[29].mxu1  ;;  %v1267_v34 = vpop.f32.mrb[30].mxu0 }
 0x14f   :  { %v2864_v35 = vpack.c.bf16 %v2166_v31, %v2165_v30  ;;  %v1556_v36 = vpop.f32.mrb[30].mxu1  ;;  %v1269_v37 = vpop.f32.mrb[31].mxu0 }
 0x150   :  { %v1968_v38 = vadd.f32 %v3736_v17, %v1554_v32  ;;  %v1557_v39 = vadd.f32 %v1556_v36, %v1267_v34  ;;  %v1558_v40 = vpop.f32.mrb[31].mxu1 }
 0x151   :  { %2996 = vst [vmem:[%s4035_s4 + $0x30] sm:$0xff] %v2864_v35  }
 0x152   :  { %v2103_v41 = vmul.f32 %v3750_v25, %v1968_v38  ;;  %v1969_v42 = vadd.f32 %v3736_v17, %v1557_v39  ;;  %vm2032_vm14 = vcmp.ge.f32.partialorder %v1968_v38, 0.0 }
 0x154   :  { %vm2033_vm15 = vcmp.ge.f32.partialorder %v1969_v42, 0.0  ;;  %v2104_v43 = vmul.f32 %v3750_v25, %v1969_v42  ;;  %v1272_v44 = vpop.f32.mrb[32].mxu0  ;;  %v2167_v47 = vsel %vm2032_vm14, %v1968_v38, %v2103_v41 }
 0x155   :  { %v1561_v45 = vpop.f32.mrb[32].mxu1  ;;  %v1274_v46 = vpop.f32.mrb[33].mxu0 }
 0x156   :  { %v2168_v48 = vsel %vm2033_vm15, %v1969_v42, %v2104_v43  ;;  %v1562_v49 = vadd.f32 %v1561_v45, %v1272_v44  ;;  %v1563_v50 = vpop.f32.mrb[33].mxu1  ;;  %v1275_v51 = vpop.f32.mrb[34].mxu0 }
 0x157   :  { %v2869_v52 = vpack.c.bf16 %v2168_v48, %v2167_v47  ;;  %v1564_v53 = vpop.f32.mrb[34].mxu1  ;;  %v1277_v54 = vpop.f32.mrb[35].mxu0 }
 0x158   :  { %v1970_v55 = vadd.f32 %v3736_v17, %v1562_v49  ;;  %v1565_v56 = vadd.f32 %v1564_v53, %v1275_v51  ;;  %v1566_v57 = vpop.f32.mrb[35].mxu1 }
 0x159   :  { %2997 = vst [vmem:[%s4035_s4 + $0x38] sm:$0xff] %v2869_v52  }
 0x15a   :  { %v2105_v58 = vmul.f32 %v3750_v25, %v1970_v55  ;;  %v1971_v59 = vadd.f32 %v3736_v17, %v1565_v56  ;;  %vm2034_vm0 = vcmp.ge.f32.partialorder %v1970_v55, 0.0 }
 0x15c   :  { %vm2035_vm1 = vcmp.ge.f32.partialorder %v1971_v59, 0.0  ;;  %v2106_v60 = vmul.f32 %v3750_v25, %v1971_v59  ;;  %v1280_v61 = vpop.f32.mrb[36].mxu0  ;;  %v2169_v0 = vsel %vm2034_vm0, %v1970_v55, %v2105_v58 }
 0x15d   :  { %v1569_v62 = vpop.f32.mrb[36].mxu1  ;;  %v1282_v63 = vpop.f32.mrb[37].mxu0 }
 0x15e   :  { %v2170_v1 = vsel %vm2035_vm1, %v1971_v59, %v2106_v60  ;;  %v1570_v2 = vadd.f32 %v1569_v62, %v1280_v61  ;;  %v1571_v3 = vpop.f32.mrb[37].mxu1  ;;  %v1283_v4 = vpop.f32.mrb[38].mxu0 }
 0x15f   :  { %v2874_v5 = vpack.c.bf16 %v2170_v1, %v2169_v0  ;;  %v1572_v6 = vpop.f32.mrb[38].mxu1  ;;  %v1285_v7 = vpop.f32.mrb[39].mxu0 }
 0x160   :  { %v1972_v8 = vadd.f32 %v3736_v17, %v1570_v2  ;;  %v1573_v9 = vadd.f32 %v1572_v6, %v1283_v4  ;;  %v1574_v10 = vpop.f32.mrb[39].mxu1 }
 0x161   :  { %2998 = vst [vmem:[%s4035_s4 + $0x40] sm:$0xff] %v2874_v5  }
 0x162   :  { %v2107_v11 = vmul.f32 %v3750_v25, %v1972_v8  ;;  %v1973_v12 = vadd.f32 %v3736_v17, %v1573_v9  ;;  %vm2036_vm2 = vcmp.ge.f32.partialorder %v1972_v8, 0.0 }
 0x164   :  { %vm2037_vm3 = vcmp.ge.f32.partialorder %v1973_v12, 0.0  ;;  %v2108_v13 = vmul.f32 %v3750_v25, %v1973_v12  ;;  %v1288_v14 = vpop.f32.mrb[40].mxu0  ;;  %v2171_v18 = vsel %vm2036_vm2, %v1972_v8, %v2107_v11 }
 0x165   :  { %v1577_v15 = vpop.f32.mrb[40].mxu1  ;;  %v1290_v16 = vpop.f32.mrb[41].mxu0 }
 0x166   :  { %v2172_v19 = vsel %vm2037_vm3, %v1973_v12, %v2108_v13  ;;  %v1578_v20 = vadd.f32 %v1577_v15, %v1288_v14  ;;  %v1579_v21 = vpop.f32.mrb[41].mxu1  ;;  %v1291_v22 = vpop.f32.mrb[42].mxu0 }
 0x167   :  { %v2879_v23 = vpack.c.bf16 %v2172_v19, %v2171_v18  ;;  %v1580_v24 = vpop.f32.mrb[42].mxu1  ;;  %v1293_v26 = vpop.f32.mrb[43].mxu0 }
 0x168   :  { %v1974_v27 = vadd.f32 %v3736_v17, %v1578_v20  ;;  %v1581_v28 = vadd.f32 %v1580_v24, %v1291_v22  ;;  %v1582_v29 = vpop.f32.mrb[43].mxu1 }
 0x169   :  { %2999 = vst [vmem:[%s4035_s4 + $0x48] sm:$0xff] %v2879_v23  }
 0x16a   :  { %v2109_v30 = vmul.f32 %v3750_v25, %v1974_v27  ;;  %v1975_v31 = vadd.f32 %v3736_v17, %v1581_v28  ;;  %vm2038_vm4 = vcmp.ge.f32.partialorder %v1974_v27, 0.0 }
 0x16c   :  { %vm2039_vm5 = vcmp.ge.f32.partialorder %v1975_v31, 0.0  ;;  %v2110_v32 = vmul.f32 %v3750_v25, %v1975_v31  ;;  %v1296_v33 = vpop.f32.mrb[44].mxu0  ;;  %v2173_v36 = vsel %vm2038_vm4, %v1974_v27, %v2109_v30 }
 0x16d   :  { %v1585_v34 = vpop.f32.mrb[44].mxu1  ;;  %v1298_v35 = vpop.f32.mrb[45].mxu0 }
 0x16e   :  { %v2174_v37 = vsel %vm2039_vm5, %v1975_v31, %v2110_v32  ;;  %v1586_v38 = vadd.f32 %v1585_v34, %v1296_v33  ;;  %v1587_v39 = vpop.f32.mrb[45].mxu1  ;;  %v1299_v40 = vpop.f32.mrb[46].mxu0 }
 0x16f   :  { %v2884_v41 = vpack.c.bf16 %v2174_v37, %v2173_v36  ;;  %v1588_v42 = vpop.f32.mrb[46].mxu1  ;;  %v1301_v43 = vpop.f32.mrb[47].mxu0 }
 0x170   :  { %v1976_v44 = vadd.f32 %v3736_v17, %v1586_v38  ;;  %v1589_v45 = vadd.f32 %v1588_v42, %v1299_v40  ;;  %v1590_v46 = vpop.f32.mrb[47].mxu1 }
 0x171   :  { %3000 = vst [vmem:[%s4035_s4 + $0x50] sm:$0xff] %v2884_v41  }
 0x172   :  { %v2111_v47 = vmul.f32 %v3750_v25, %v1976_v44  ;;  %v1977_v48 = vadd.f32 %v3736_v17, %v1589_v45  ;;  %vm2040_vm6 = vcmp.ge.f32.partialorder %v1976_v44, 0.0 }
 0x174   :  { %vm2041_vm7 = vcmp.ge.f32.partialorder %v1977_v48, 0.0  ;;  %v2112_v49 = vmul.f32 %v3750_v25, %v1977_v48  ;;  %v1304_v50 = vpop.f32.mrb[48].mxu0  ;;  %v2175_v53 = vsel %vm2040_vm6, %v1976_v44, %v2111_v47 }
 0x175   :  { %v1593_v51 = vpop.f32.mrb[48].mxu1  ;;  %v1306_v52 = vpop.f32.mrb[49].mxu0 }
 0x176   :  { %v2176_v54 = vsel %vm2041_vm7, %v1977_v48, %v2112_v49  ;;  %v1594_v55 = vadd.f32 %v1593_v51, %v1304_v50  ;;  %v1595_v56 = vpop.f32.mrb[49].mxu1  ;;  %v1307_v57 = vpop.f32.mrb[50].mxu0 }
 0x177   :  { %v2889_v58 = vpack.c.bf16 %v2176_v54, %v2175_v53  ;;  %v1596_v59 = vpop.f32.mrb[50].mxu1  ;;  %v1309_v60 = vpop.f32.mrb[51].mxu0 }
 0x178   :  { %v1978_v61 = vadd.f32 %v3736_v17, %v1594_v55  ;;  %v1597_v62 = vadd.f32 %v1596_v59, %v1307_v57  ;;  %v1598_v63 = vpop.f32.mrb[51].mxu1 }
 0x179   :  { %3001 = vst [vmem:[%s4035_s4 + $0x58] sm:$0xff] %v2889_v58  }
 0x17a   :  { %v2113_v0 = vmul.f32 %v3750_v25, %v1978_v61  ;;  %v1979_v1 = vadd.f32 %v3736_v17, %v1597_v62  ;;  %vm2042_vm8 = vcmp.ge.f32.partialorder %v1978_v61, 0.0 }
 0x17c   :  { %vm2043_vm9 = vcmp.ge.f32.partialorder %v1979_v1, 0.0  ;;  %v2114_v2 = vmul.f32 %v3750_v25, %v1979_v1  ;;  %v1312_v3 = vpop.f32.mrb[52].mxu0  ;;  %v2177_v6 = vsel %vm2042_vm8, %v1978_v61, %v2113_v0 }
 0x17d   :  { %v1601_v4 = vpop.f32.mrb[52].mxu1  ;;  %v1314_v5 = vpop.f32.mrb[53].mxu0 }
 0x17e   :  { %v2178_v7 = vsel %vm2043_vm9, %v1979_v1, %v2114_v2  ;;  %v1602_v8 = vadd.f32 %v1601_v4, %v1312_v3  ;;  %v1603_v9 = vpop.f32.mrb[53].mxu1  ;;  %v1315_v10 = vpop.f32.mrb[54].mxu0 }
 0x17f   :  { %v2894_v11 = vpack.c.bf16 %v2178_v7, %v2177_v6  ;;  %v1604_v12 = vpop.f32.mrb[54].mxu1  ;;  %v1317_v13 = vpop.f32.mrb[55].mxu0 }
 0x180   :  { %v1980_v14 = vadd.f32 %v3736_v17, %v1602_v8  ;;  %v1605_v15 = vadd.f32 %v1604_v12, %v1315_v10  ;;  %v1606_v16 = vpop.f32.mrb[55].mxu1 }
 0x181   :  { %3002 = vst [vmem:[%s4035_s4 + $0x60] sm:$0xff] %v2894_v11  }
 0x182   :  { %v2115_v18 = vmul.f32 %v3750_v25, %v1980_v14  ;;  %v1981_v19 = vadd.f32 %v3736_v17, %v1605_v15  ;;  %vm2044_vm10 = vcmp.ge.f32.partialorder %v1980_v14, 0.0 }
 0x184   :  { %vm2045_vm11 = vcmp.ge.f32.partialorder %v1981_v19, 0.0  ;;  %v2116_v20 = vmul.f32 %v3750_v25, %v1981_v19  ;;  %v1320_v21 = vpop.f32.mrb[56].mxu0  ;;  %v2179_v24 = vsel %vm2044_vm10, %v1980_v14, %v2115_v18 }
 0x185   :  { %v1609_v22 = vpop.f32.mrb[56].mxu1  ;;  %v1322_v23 = vpop.f32.mrb[57].mxu0 }
 0x186   :  { %v2180_v26 = vsel %vm2045_vm11, %v1981_v19, %v2116_v20  ;;  %v1610_v27 = vadd.f32 %v1609_v22, %v1320_v21  ;;  %v1611_v28 = vpop.f32.mrb[57].mxu1  ;;  %v1323_v29 = vpop.f32.mrb[58].mxu0 }
 0x187   :  { %v2899_v30 = vpack.c.bf16 %v2180_v26, %v2179_v24  ;;  %v1612_v31 = vpop.f32.mrb[58].mxu1  ;;  %v1325_v32 = vpop.f32.mrb[59].mxu0 }
 0x188   :  { %v1982_v33 = vadd.f32 %v3736_v17, %v1610_v27  ;;  %v1613_v34 = vadd.f32 %v1612_v31, %v1323_v29  ;;  %v1614_v35 = vpop.f32.mrb[59].mxu1 }
 0x189   :  { %3003 = vst [vmem:[%s4035_s4 + $0x68] sm:$0xff] %v2899_v30  }
 0x18a   :  { %v2117_v36 = vmul.f32 %v3750_v25, %v1982_v33  ;;  %v1983_v37 = vadd.f32 %v3736_v17, %v1613_v34  ;;  %vm2046_vm12 = vcmp.ge.f32.partialorder %v1982_v33, 0.0 }
 0x18c   :  { %vm2047_vm13 = vcmp.ge.f32.partialorder %v1983_v37, 0.0  ;;  %v2118_v38 = vmul.f32 %v3750_v25, %v1983_v37  ;;  %v1328_v39 = vpop.f32.mrb[60].mxu0  ;;  %v2181_v42 = vsel %vm2046_vm12, %v1982_v33, %v2117_v36 }
 0x18d   :  { %v1617_v40 = vpop.f32.mrb[60].mxu1  ;;  %v1330_v41 = vpop.f32.mrb[61].mxu0 }
 0x18e   :  { %v2182_v43 = vsel %vm2047_vm13, %v1983_v37, %v2118_v38  ;;  %v1618_v44 = vadd.f32 %v1617_v40, %v1328_v39  ;;  %v1619_v45 = vpop.f32.mrb[61].mxu1  ;;  %v1331_v46 = vpop.f32.mrb[62].mxu0 }
 0x18f   :  { %v2904_v47 = vpack.c.bf16 %v2182_v43, %v2181_v42  ;;  %v1620_v48 = vpop.f32.mrb[62].mxu1  ;;  %v1333_v49 = vpop.f32.mrb[63].mxu0 }
 0x190   :  { %v1984_v50 = vadd.f32 %v3736_v17, %v1618_v44  ;;  %v1621_v51 = vadd.f32 %v1620_v48, %v1331_v46  ;;  %v1622_v52 = vpop.f32.mrb[63].mxu1 }
 0x191   :  { %3004 = vst [vmem:[%s4035_s4 + $0x70] sm:$0xff] %v2904_v47  }
 0x192   :  { %v2119_v53 = vmul.f32 %v3750_v25, %v1984_v50  ;;  %v1985_v54 = vadd.f32 %v3736_v17, %v1621_v51  ;;  %vm2048_vm14 = vcmp.ge.f32.partialorder %v1984_v50, 0.0 }
 0x194   :  { %vm2049_vm15 = vcmp.ge.f32.partialorder %v1985_v54, 0.0  ;;  %v2120_v55 = vmul.f32 %v3750_v25, %v1985_v54  ;;  %v1336_v56 = vpop.f32.mrb[64].mxu0  ;;  %v2183_v59 = vsel %vm2048_vm14, %v1984_v50, %v2119_v53 }
 0x195   :  { %v1625_v57 = vpop.f32.mrb[64].mxu1  ;;  %v1338_v58 = vpop.f32.mrb[65].mxu0 }
 0x196   :  { %v2184_v60 = vsel %vm2049_vm15, %v1985_v54, %v2120_v55  ;;  %v1626_v61 = vadd.f32 %v1625_v57, %v1336_v56  ;;  %v1627_v62 = vpop.f32.mrb[65].mxu1  ;;  %v1339_v63 = vpop.f32.mrb[66].mxu0 }
 0x197   :  { %v2909_v0 = vpack.c.bf16 %v2184_v60, %v2183_v59  ;;  %v1628_v1 = vpop.f32.mrb[66].mxu1  ;;  %v1341_v2 = vpop.f32.mrb[67].mxu0 }
 0x198   :  { %v1986_v3 = vadd.f32 %v3736_v17, %v1626_v61  ;;  %v1629_v4 = vadd.f32 %v1628_v1, %v1339_v63  ;;  %v1630_v5 = vpop.f32.mrb[67].mxu1 }
 0x199   :  { %3005 = vst [vmem:[%s4035_s4 + $0x78] sm:$0xff] %v2909_v0  }
 0x19a   :  { %v2121_v6 = vmul.f32 %v3750_v25, %v1986_v3  ;;  %v1987_v7 = vadd.f32 %v3736_v17, %v1629_v4  ;;  %vm2050_vm0 = vcmp.ge.f32.partialorder %v1986_v3, 0.0 }
 0x19c   :  { %vm2051_vm1 = vcmp.ge.f32.partialorder %v1987_v7, 0.0  ;;  %v2122_v8 = vmul.f32 %v3750_v25, %v1987_v7  ;;  %v1344_v9 = vpop.f32.mrb[68].mxu0  ;;  %v2185_v12 = vsel %vm2050_vm0, %v1986_v3, %v2121_v6 }
 0x19d   :  { %v1633_v10 = vpop.f32.mrb[68].mxu1  ;;  %v1346_v11 = vpop.f32.mrb[69].mxu0 }
 0x19e   :  { %v2186_v13 = vsel %vm2051_vm1, %v1987_v7, %v2122_v8  ;;  %v1634_v14 = vadd.f32 %v1633_v10, %v1344_v9  ;;  %v1635_v15 = vpop.f32.mrb[69].mxu1  ;;  %v1347_v16 = vpop.f32.mrb[70].mxu0 }
 0x19f   :  { %v2914_v18 = vpack.c.bf16 %v2186_v13, %v2185_v12  ;;  %v1636_v19 = vpop.f32.mrb[70].mxu1  ;;  %v1349_v20 = vpop.f32.mrb[71].mxu0 }
 0x1a0   :  { %v1988_v21 = vadd.f32 %v3736_v17, %v1634_v14  ;;  %v1637_v22 = vadd.f32 %v1636_v19, %v1347_v16  ;;  %v1638_v23 = vpop.f32.mrb[71].mxu1 }
 0x1a1   :  { %3006 = vst [vmem:[%s4035_s4 + $0x80] sm:$0xff] %v2914_v18  }
 0x1a2   :  { %v2123_v24 = vmul.f32 %v3750_v25, %v1988_v21  ;;  %v1989_v26 = vadd.f32 %v3736_v17, %v1637_v22  ;;  %vm2052_vm2 = vcmp.ge.f32.partialorder %v1988_v21, 0.0 }
 0x1a4   :  { %vm2053_vm3 = vcmp.ge.f32.partialorder %v1989_v26, 0.0  ;;  %v2124_v27 = vmul.f32 %v3750_v25, %v1989_v26  ;;  %v1352_v28 = vpop.f32.mrb[72].mxu0  ;;  %v2187_v31 = vsel %vm2052_vm2, %v1988_v21, %v2123_v24 }
 0x1a5   :  { %v1641_v29 = vpop.f32.mrb[72].mxu1  ;;  %v1354_v30 = vpop.f32.mrb[73].mxu0 }
 0x1a6   :  { %v2188_v32 = vsel %vm2053_vm3, %v1989_v26, %v2124_v27  ;;  %v1642_v33 = vadd.f32 %v1641_v29, %v1352_v28  ;;  %v1643_v34 = vpop.f32.mrb[73].mxu1  ;;  %v1355_v35 = vpop.f32.mrb[74].mxu0 }
 0x1a7   :  { %v2919_v36 = vpack.c.bf16 %v2188_v32, %v2187_v31  ;;  %v1644_v37 = vpop.f32.mrb[74].mxu1  ;;  %v1357_v38 = vpop.f32.mrb[75].mxu0 }
 0x1a8   :  { %v1990_v39 = vadd.f32 %v3736_v17, %v1642_v33  ;;  %v1645_v40 = vadd.f32 %v1644_v37, %v1355_v35  ;;  %v1646_v41 = vpop.f32.mrb[75].mxu1 }
 0x1a9   :  { %3007 = vst [vmem:[%s4035_s4 + $0x88] sm:$0xff] %v2919_v36  }
 0x1aa   :  { %v2125_v42 = vmul.f32 %v3750_v25, %v1990_v39  ;;  %v1991_v43 = vadd.f32 %v3736_v17, %v1645_v40  ;;  %vm2054_vm4 = vcmp.ge.f32.partialorder %v1990_v39, 0.0 }
 0x1ac   :  { %vm2055_vm5 = vcmp.ge.f32.partialorder %v1991_v43, 0.0  ;;  %v2126_v44 = vmul.f32 %v3750_v25, %v1991_v43  ;;  %v1360_v45 = vpop.f32.mrb[76].mxu0  ;;  %v2189_v48 = vsel %vm2054_vm4, %v1990_v39, %v2125_v42 }
 0x1ad   :  { %v1649_v46 = vpop.f32.mrb[76].mxu1  ;;  %v1362_v47 = vpop.f32.mrb[77].mxu0 }
 0x1ae   :  { %v2190_v49 = vsel %vm2055_vm5, %v1991_v43, %v2126_v44  ;;  %v1650_v50 = vadd.f32 %v1649_v46, %v1360_v45  ;;  %v1651_v51 = vpop.f32.mrb[77].mxu1  ;;  %v1363_v52 = vpop.f32.mrb[78].mxu0 }
 0x1af   :  { %v2924_v53 = vpack.c.bf16 %v2190_v49, %v2189_v48  ;;  %v1652_v54 = vpop.f32.mrb[78].mxu1  ;;  %v1365_v55 = vpop.f32.mrb[79].mxu0 }
 0x1b0   :  { %v1992_v56 = vadd.f32 %v3736_v17, %v1650_v50  ;;  %v1653_v57 = vadd.f32 %v1652_v54, %v1363_v52  ;;  %v1654_v58 = vpop.f32.mrb[79].mxu1 }
 0x1b1   :  { %3008 = vst [vmem:[%s4035_s4 + $0x90] sm:$0xff] %v2924_v53  }
 0x1b2   :  { %v2127_v59 = vmul.f32 %v3750_v25, %v1992_v56  ;;  %v1993_v60 = vadd.f32 %v3736_v17, %v1653_v57  ;;  %vm2056_vm6 = vcmp.ge.f32.partialorder %v1992_v56, 0.0 }
 0x1b4   :  { %vm2057_vm7 = vcmp.ge.f32.partialorder %v1993_v60, 0.0  ;;  %v2128_v61 = vmul.f32 %v3750_v25, %v1993_v60  ;;  %v1368_v62 = vpop.f32.mrb[80].mxu0  ;;  %v2191_v1 = vsel %vm2056_vm6, %v1992_v56, %v2127_v59 }
 0x1b5   :  { %v1657_v63 = vpop.f32.mrb[80].mxu1  ;;  %v1370_v0 = vpop.f32.mrb[81].mxu0 }
 0x1b6   :  { %v2192_v2 = vsel %vm2057_vm7, %v1993_v60, %v2128_v61  ;;  %v1658_v3 = vadd.f32 %v1657_v63, %v1368_v62  ;;  %v1659_v4 = vpop.f32.mrb[81].mxu1  ;;  %v1371_v5 = vpop.f32.mrb[82].mxu0 }
 0x1b7   :  { %v2929_v6 = vpack.c.bf16 %v2192_v2, %v2191_v1  ;;  %v1660_v7 = vpop.f32.mrb[82].mxu1  ;;  %v1373_v8 = vpop.f32.mrb[83].mxu0 }
 0x1b8   :  { %v1994_v9 = vadd.f32 %v3736_v17, %v1658_v3  ;;  %v1661_v10 = vadd.f32 %v1660_v7, %v1371_v5  ;;  %v1662_v11 = vpop.f32.mrb[83].mxu1 }
 0x1b9   :  { %3009 = vst [vmem:[%s4035_s4 + $0x98] sm:$0xff] %v2929_v6  }
 0x1ba   :  { %v2129_v12 = vmul.f32 %v3750_v25, %v1994_v9  ;;  %v1995_v13 = vadd.f32 %v3736_v17, %v1661_v10  ;;  %vm2058_vm8 = vcmp.ge.f32.partialorder %v1994_v9, 0.0 }
 0x1bc   :  { %vm2059_vm9 = vcmp.ge.f32.partialorder %v1995_v13, 0.0  ;;  %v2130_v14 = vmul.f32 %v3750_v25, %v1995_v13  ;;  %v1376_v15 = vpop.f32.mrb[84].mxu0  ;;  %v2193_v19 = vsel %vm2058_vm8, %v1994_v9, %v2129_v12 }
 0x1bd   :  { %v1665_v16 = vpop.f32.mrb[84].mxu1  ;;  %v1378_v18 = vpop.f32.mrb[85].mxu0 }
 0x1be   :  { %v2194_v20 = vsel %vm2059_vm9, %v1995_v13, %v2130_v14  ;;  %v1666_v21 = vadd.f32 %v1665_v16, %v1376_v15  ;;  %v1667_v22 = vpop.f32.mrb[85].mxu1  ;;  %v1379_v23 = vpop.f32.mrb[86].mxu0  ;;  %v3965_v15 = vld [vmem:[%s4033_s2] ss:$0 sm:$0xff] }
 0x1bf   :  { %v2934_v24 = vpack.c.bf16 %v2194_v20, %v2193_v19  ;;  %v1668_v26 = vpop.f32.mrb[86].mxu1  ;;  %v1381_v27 = vpop.f32.mrb[87].mxu0  ;;  %v3974_v18 = vld [vmem:[%s4034_s3] ss:$0 sm:$0xff] }
 0x1c0   :  { %v1996_v28 = vadd.f32 %v3736_v17, %v1666_v21  ;;  %v1669_v29 = vadd.f32 %v1668_v26, %v1379_v23  ;;  %v1670_v30 = vpop.f32.mrb[87].mxu1 }
 0x1c1   :  { %3010 = vst [vmem:[%s4035_s4 + $0xa0] sm:$0xff] %v2934_v24  }
 0x1c2   :  { %v2131_v31 = vmul.f32 %v3750_v25, %v1996_v28  ;;  %v1997_v32 = vadd.f32 %v3736_v17, %v1669_v29  ;;  %vm2060_vm10 = vcmp.ge.f32.partialorder %v1996_v28, 0.0 }
 0x1c4   :  { %vm2061_vm11 = vcmp.ge.f32.partialorder %v1997_v32, 0.0  ;;  %v2132_v33 = vmul.f32 %v3750_v25, %v1997_v32  ;;  %v1384_v34 = vpop.f32.mrb[88].mxu0  ;;  %v2195_v37 = vsel %vm2060_vm10, %v1996_v28, %v2131_v31 }
 0x1c5   :  { %v1673_v35 = vpop.f32.mrb[88].mxu1  ;;  %v1386_v36 = vpop.f32.mrb[89].mxu0 }
 0x1c6   :  { %v2196_v38 = vsel %vm2061_vm11, %v1997_v32, %v2132_v33  ;;  %v1674_v39 = vadd.f32 %v1673_v35, %v1384_v34  ;;  %v1675_v40 = vpop.f32.mrb[89].mxu1  ;;  %v1387_v41 = vpop.f32.mrb[90].mxu0 }
 0x1c7   :  { %v2939_v42 = vpack.c.bf16 %v2196_v38, %v2195_v37  ;;  %v1676_v43 = vpop.f32.mrb[90].mxu1  ;;  %v1389_v44 = vpop.f32.mrb[91].mxu0 }
 0x1c8   :  { %v1998_v45 = vadd.f32 %v3736_v17, %v1674_v39  ;;  %v1677_v46 = vadd.f32 %v1676_v43, %v1387_v41  ;;  %v1678_v47 = vpop.f32.mrb[91].mxu1 }
 0x1c9   :  { %3011 = vst [vmem:[%s4035_s4 + $0xa8] sm:$0xff] %v2939_v42  }
 0x1ca   :  { %v2133_v48 = vmul.f32 %v3750_v25, %v1998_v45  ;;  %v1999_v49 = vadd.f32 %v3736_v17, %v1677_v46  ;;  %vm2062_vm12 = vcmp.ge.f32.partialorder %v1998_v45, 0.0 }
 0x1cc   :  { %vm2063_vm13 = vcmp.ge.f32.partialorder %v1999_v49, 0.0  ;;  %v2134_v50 = vmul.f32 %v3750_v25, %v1999_v49  ;;  %v1392_v51 = vpop.f32.mrb[92].mxu0  ;;  %v2197_v54 = vsel %vm2062_vm12, %v1998_v45, %v2133_v48 }
 0x1cd   :  { %v1681_v52 = vpop.f32.mrb[92].mxu1  ;;  %v1394_v53 = vpop.f32.mrb[93].mxu0 }
 0x1ce   :  { %v2198_v55 = vsel %vm2063_vm13, %v1999_v49, %v2134_v50  ;;  %v1682_v56 = vadd.f32 %v1681_v52, %v1392_v51  ;;  %v1683_v57 = vpop.f32.mrb[93].mxu1  ;;  %v1395_v58 = vpop.f32.mrb[94].mxu0 }
 0x1cf   :  { %v2944_v59 = vpack.c.bf16 %v2198_v55, %v2197_v54  ;;  %v1684_v60 = vpop.f32.mrb[94].mxu1  ;;  %v1397_v61 = vpop.f32.mrb[95].mxu0 }
 0x1d0   :  { %v2000_v62 = vadd.f32 %v3736_v17, %v1682_v56  ;;  %v1685_v63 = vadd.f32 %v1684_v60, %v1395_v58  ;;  %v1686_v0 = vpop.f32.mrb[95].mxu1 }
 0x1d1   :  { %3012 = vst [vmem:[%s4035_s4 + $0xb0] sm:$0xff] %v2944_v59  }
 0x1d2   :  { %v2135_v1 = vmul.f32 %v3750_v25, %v2000_v62  ;;  %v2001_v2 = vadd.f32 %v3736_v17, %v1685_v63  ;;  %vm2064_vm14 = vcmp.ge.f32.partialorder %v2000_v62, 0.0 }
 0x1d4   :  { %vm2065_vm15 = vcmp.ge.f32.partialorder %v2001_v2, 0.0  ;;  %v2136_v3 = vmul.f32 %v3750_v25, %v2001_v2  ;;  %v1400_v4 = vpop.f32.mrb[96].mxu0  ;;  %v2199_v7 = vsel %vm2064_vm14, %v2000_v62, %v2135_v1 }
 0x1d5   :  { %v1689_v5 = vpop.f32.mrb[96].mxu1  ;;  %v1402_v6 = vpop.f32.mrb[97].mxu0 }
 0x1d6   :  { %v2200_v8 = vsel %vm2065_vm15, %v2001_v2, %v2136_v3  ;;  %v1690_v9 = vadd.f32 %v1689_v5, %v1400_v4  ;;  %v1691_v10 = vpop.f32.mrb[97].mxu1  ;;  %v1403_v11 = vpop.f32.mrb[98].mxu0 }
 0x1d7   :  { %v2949_v12 = vpack.c.bf16 %v2200_v8, %v2199_v7  ;;  %v1692_v13 = vpop.f32.mrb[98].mxu1  ;;  %v1405_v14 = vpop.f32.mrb[99].mxu0 }
 0x1d8   :  { %v2002_v17 = vadd.f32 %v3965_v15, %v1690_v9  ;;  %v1693_v16 = vadd.f32 %v1692_v13, %v1403_v11  ;;  %v1694_v25 = vpop.f32.mrb[99].mxu1 }
 0x1d9   :  { %3013 = vst [vmem:[%s4035_s4 + $0xb8] sm:$0xff] %v2949_v12  }
 0x1da   :  { %v2137_v19 = vmul.f32 %v3974_v18, %v2002_v17  ;;  %v2003_v20 = vadd.f32 %v3965_v15, %v1693_v16  ;;  %vm2066_vm0 = vcmp.ge.f32.partialorder %v2002_v17, 0.0 }
 0x1dc   :  { %vm2067_vm1 = vcmp.ge.f32.partialorder %v2003_v20, 0.0  ;;  %v2138_v21 = vmul.f32 %v3974_v18, %v2003_v20  ;;  %v1408_v22 = vpop.f32.mrb[100].mxu0  ;;  %v2201_v26 = vsel %vm2066_vm0, %v2002_v17, %v2137_v19 }
 0x1dd   :  { %v1697_v23 = vpop.f32.mrb[100].mxu1  ;;  %v1410_v24 = vpop.f32.mrb[101].mxu0 }
 0x1de   :  { %v2202_v27 = vsel %vm2067_vm1, %v2003_v20, %v2138_v21  ;;  %v1698_v28 = vadd.f32 %v1697_v23, %v1408_v22  ;;  %v1699_v29 = vpop.f32.mrb[101].mxu1  ;;  %v1411_v30 = vpop.f32.mrb[102].mxu0 }
 0x1df   :  { %v2954_v31 = vpack.c.bf16 %v2202_v27, %v2201_v26  ;;  %v1700_v32 = vpop.f32.mrb[102].mxu1  ;;  %v1413_v33 = vpop.f32.mrb[103].mxu0 }
 0x1e0   :  { %v2004_v34 = vadd.f32 %v3965_v15, %v1698_v28  ;;  %v1701_v35 = vadd.f32 %v1700_v32, %v1411_v30  ;;  %v1702_v36 = vpop.f32.mrb[103].mxu1 }
 0x1e1   :  { %3014 = vst [vmem:[%s4035_s4 + $0xc0] sm:$0xff] %v2954_v31  }
 0x1e2   :  { %v2139_v37 = vmul.f32 %v3974_v18, %v2004_v34  ;;  %v2005_v38 = vadd.f32 %v3965_v15, %v1701_v35  ;;  %vm2068_vm2 = vcmp.ge.f32.partialorder %v2004_v34, 0.0 }
 0x1e4   :  { %vm2069_vm3 = vcmp.ge.f32.partialorder %v2005_v38, 0.0  ;;  %v2140_v39 = vmul.f32 %v3974_v18, %v2005_v38  ;;  %v1416_v40 = vpop.f32.mrb[104].mxu0  ;;  %v2203_v43 = vsel %vm2068_vm2, %v2004_v34, %v2139_v37 }
 0x1e5   :  { %v1705_v41 = vpop.f32.mrb[104].mxu1  ;;  %v1418_v42 = vpop.f32.mrb[105].mxu0 }
 0x1e6   :  { %v2204_v44 = vsel %vm2069_vm3, %v2005_v38, %v2140_v39  ;;  %v1706_v45 = vadd.f32 %v1705_v41, %v1416_v40  ;;  %v1707_v46 = vpop.f32.mrb[105].mxu1  ;;  %v1419_v47 = vpop.f32.mrb[106].mxu0 }
 0x1e7   :  { %v2959_v48 = vpack.c.bf16 %v2204_v44, %v2203_v43  ;;  %v1708_v49 = vpop.f32.mrb[106].mxu1  ;;  %v1421_v50 = vpop.f32.mrb[107].mxu0 }
 0x1e8   :  { %v2006_v51 = vadd.f32 %v3965_v15, %v1706_v45  ;;  %v1709_v52 = vadd.f32 %v1708_v49, %v1419_v47  ;;  %v1710_v53 = vpop.f32.mrb[107].mxu1 }
 0x1e9   :  { %3015 = vst [vmem:[%s4035_s4 + $0xc8] sm:$0xff] %v2959_v48  }
 0x1ea   :  { %v2141_v54 = vmul.f32 %v3974_v18, %v2006_v51  ;;  %v2007_v55 = vadd.f32 %v3965_v15, %v1709_v52  ;;  %vm2070_vm4 = vcmp.ge.f32.partialorder %v2006_v51, 0.0 }
 0x1ec   :  { %vm2071_vm5 = vcmp.ge.f32.partialorder %v2007_v55, 0.0  ;;  %v2142_v56 = vmul.f32 %v3974_v18, %v2007_v55  ;;  %v1424_v57 = vpop.f32.mrb[108].mxu0  ;;  %v2205_v60 = vsel %vm2070_vm4, %v2006_v51, %v2141_v54 }
 0x1ed   :  { %v1713_v58 = vpop.f32.mrb[108].mxu1  ;;  %v1426_v59 = vpop.f32.mrb[109].mxu0 }
 0x1ee   :  { %v2206_v61 = vsel %vm2071_vm5, %v2007_v55, %v2142_v56  ;;  %v1714_v62 = vadd.f32 %v1713_v58, %v1424_v57  ;;  %v1715_v63 = vpop.f32.mrb[109].mxu1  ;;  %v1427_v0 = vpop.f32.mrb[110].mxu0 }
 0x1ef   :  { %v2964_v1 = vpack.c.bf16 %v2206_v61, %v2205_v60  ;;  %v1716_v2 = vpop.f32.mrb[110].mxu1  ;;  %v1429_v3 = vpop.f32.mrb[111].mxu0 }
 0x1f0   :  { %v2008_v4 = vadd.f32 %v3965_v15, %v1714_v62  ;;  %v1717_v5 = vadd.f32 %v1716_v2, %v1427_v0  ;;  %v1718_v6 = vpop.f32.mrb[111].mxu1 }
 0x1f1   :  { %3016 = vst [vmem:[%s4035_s4 + $0xd0] sm:$0xff] %v2964_v1  }
 0x1f2   :  { %v2143_v7 = vmul.f32 %v3974_v18, %v2008_v4  ;;  %v2009_v8 = vadd.f32 %v3965_v15, %v1717_v5  ;;  %vm2072_vm6 = vcmp.ge.f32.partialorder %v2008_v4, 0.0 }
 0x1f4   :  { %vm2073_vm7 = vcmp.ge.f32.partialorder %v2009_v8, 0.0  ;;  %v2144_v9 = vmul.f32 %v3974_v18, %v2009_v8  ;;  %v1432_v10 = vpop.f32.mrb[112].mxu0  ;;  %v2207_v13 = vsel %vm2072_vm6, %v2008_v4, %v2143_v7 }
 0x1f5   :  { %v1721_v11 = vpop.f32.mrb[112].mxu1  ;;  %v1434_v12 = vpop.f32.mrb[113].mxu0 }
 0x1f6   :  { %v2208_v14 = vsel %vm2073_vm7, %v2009_v8, %v2144_v9  ;;  %v1722_v17 = vadd.f32 %v1721_v11, %v1432_v10  ;;  %v1723_v16 = vpop.f32.mrb[113].mxu1  ;;  %v1435_v25 = vpop.f32.mrb[114].mxu0 }
 0x1f7   :  { %v2969_v19 = vpack.c.bf16 %v2208_v14, %v2207_v13  ;;  %v1724_v20 = vpop.f32.mrb[114].mxu1  ;;  %v1437_v21 = vpop.f32.mrb[115].mxu0 }
 0x1f8   :  { %v2010_v22 = vadd.f32 %v3965_v15, %v1722_v17  ;;  %v1725_v23 = vadd.f32 %v1724_v20, %v1435_v25  ;;  %v1726_v24 = vpop.f32.mrb[115].mxu1 }
 0x1f9   :  { %3017 = vst [vmem:[%s4035_s4 + $0xd8] sm:$0xff] %v2969_v19  }
 0x1fa   :  { %v2145_v26 = vmul.f32 %v3974_v18, %v2010_v22  ;;  %v2011_v27 = vadd.f32 %v3965_v15, %v1725_v23  ;;  %vm2074_vm8 = vcmp.ge.f32.partialorder %v2010_v22, 0.0 }
 0x1fc   :  { %vm2075_vm9 = vcmp.ge.f32.partialorder %v2011_v27, 0.0  ;;  %v2146_v28 = vmul.f32 %v3974_v18, %v2011_v27  ;;  %v1440_v29 = vpop.f32.mrb[116].mxu0  ;;  %v2209_v32 = vsel %vm2074_vm8, %v2010_v22, %v2145_v26 }
 0x1fd   :  { %v1729_v30 = vpop.f32.mrb[116].mxu1  ;;  %v1442_v31 = vpop.f32.mrb[117].mxu0 }
 0x1fe   :  { %v2210_v33 = vsel %vm2075_vm9, %v2011_v27, %v2146_v28  ;;  %v1730_v34 = vadd.f32 %v1729_v30, %v1440_v29  ;;  %v1731_v35 = vpop.f32.mrb[117].mxu1  ;;  %v1443_v36 = vpop.f32.mrb[118].mxu0 }
 0x1ff   :  { %v2974_v37 = vpack.c.bf16 %v2210_v33, %v2209_v32  ;;  %v1732_v38 = vpop.f32.mrb[118].mxu1  ;;  %v1445_v39 = vpop.f32.mrb[119].mxu0 }
 0x200   :  { %v2012_v40 = vadd.f32 %v3965_v15, %v1730_v34  ;;  %v1733_v41 = vadd.f32 %v1732_v38, %v1443_v36  ;;  %v1734_v42 = vpop.f32.mrb[119].mxu1 }
 0x201   :  { %3018 = vst [vmem:[%s4035_s4 + $0xe0] sm:$0xff] %v2974_v37  }
 0x202   :  { %v2147_v43 = vmul.f32 %v3974_v18, %v2012_v40  ;;  %v2013_v44 = vadd.f32 %v3965_v15, %v1733_v41  ;;  %vm2076_vm10 = vcmp.ge.f32.partialorder %v2012_v40, 0.0 }
 0x204   :  { %vm2077_vm11 = vcmp.ge.f32.partialorder %v2013_v44, 0.0  ;;  %v2148_v45 = vmul.f32 %v3974_v18, %v2013_v44  ;;  %v1448_v46 = vpop.f32.mrb[120].mxu0  ;;  %v2211_v49 = vsel %vm2076_vm10, %v2012_v40, %v2147_v43 }
 0x205   :  { %v1737_v47 = vpop.f32.mrb[120].mxu1  ;;  %v1450_v48 = vpop.f32.mrb[121].mxu0 }
 0x206   :  { %v2212_v50 = vsel %vm2077_vm11, %v2013_v44, %v2148_v45  ;;  %v1738_v51 = vadd.f32 %v1737_v47, %v1448_v46  ;;  %v1739_v52 = vpop.f32.mrb[121].mxu1  ;;  %v1451_v53 = vpop.f32.mrb[122].mxu0 }
 0x207   :  { %v2979_v54 = vpack.c.bf16 %v2212_v50, %v2211_v49  ;;  %v1740_v55 = vpop.f32.mrb[122].mxu1  ;;  %v1453_v56 = vpop.f32.mrb[123].mxu0 }
 0x208   :  { %v2014_v57 = vadd.f32 %v3965_v15, %v1738_v51  ;;  %v1741_v58 = vadd.f32 %v1740_v55, %v1451_v53  ;;  %v1742_v59 = vpop.f32.mrb[123].mxu1 }
 0x209   :  { %3019 = vst [vmem:[%s4035_s4 + $0xe8] sm:$0xff] %v2979_v54  }
 0x20a   :  { %v2149_v60 = vmul.f32 %v3974_v18, %v2014_v57  ;;  %v2015_v61 = vadd.f32 %v3965_v15, %v1741_v58  ;;  %vm2078_vm12 = vcmp.ge.f32.partialorder %v2014_v57, 0.0 }
 0x20c   :  { %vm2079_vm13 = vcmp.ge.f32.partialorder %v2015_v61, 0.0  ;;  %v2150_v62 = vmul.f32 %v3974_v18, %v2015_v61  ;;  %v1456_v63 = vpop.f32.mrb[124].mxu0  ;;  %v2213_v2 = vsel %vm2078_vm12, %v2014_v57, %v2149_v60 }
 0x20d   :  { %v1745_v0 = vpop.f32.mrb[124].mxu1  ;;  %v1458_v1 = vpop.f32.mrb[125].mxu0 }
 0x20e   :  { %v2214_v3 = vsel %vm2079_vm13, %v2015_v61, %v2150_v62  ;;  %v1746_v4 = vadd.f32 %v1745_v0, %v1456_v63  ;;  %v1747_v5 = vpop.f32.mrb[125].mxu1  ;;  %v1459_v6 = vpop.f32.mrb[126].mxu0 }
 0x20f   :  { %v2984_v7 = vpack.c.bf16 %v2214_v3, %v2213_v2  ;;  %v1748_v8 = vpop.f32.mrb[126].mxu1  ;;  %v1461_v9 = vpop.f32.mrb[127].mxu0 }
 0x210   :  { %v2016_v10 = vadd.f32 %v3965_v15, %v1746_v4  ;;  %v1749_v11 = vadd.f32 %v1748_v8, %v1459_v6  ;;  %v1750_v12 = vpop.f32.mrb[127].mxu1 }
 0x211   :  { %3020 = vst [vmem:[%s4035_s4 + $0xf0] sm:$0xff] %v2984_v7  }
 0x212   :  { %v2151_v13 = vmul.f32 %v3974_v18, %v2016_v10  ;;  %v2017_v14 = vadd.f32 %v3965_v15, %v1749_v11  ;;  %vm2080_vm14 = vcmp.ge.f32.partialorder %v2016_v10, 0.0 }
 0x214   :  { %vm2081_vm15 = vcmp.ge.f32.partialorder %v2017_v14, 0.0  ;;  %v2152_v17 = vmul.f32 %v3974_v18, %v2017_v14  ;;  %v2215_v16 = vsel %vm2080_vm14, %v2016_v10, %v2151_v13 }
 0x216   :  { %v2216_v25 = vsel %vm2081_vm15, %v2017_v14, %v2152_v17 }
 0x217   :  { %v2989_v19 = vpack.c.bf16 %v2216_v25, %v2215_v16 }
 0x219   :  { %3021 = vst [vmem:[%s4035_s4 + $0xf8] sm:$0xff] %v2989_v19  }

// kernel: vxm_dense_forward.21
= control target key start
LH: loop header
LB: loop body
LE: loop exit
PB: predicated region body
PF: predicated region fallthrough
CT: control target
= control target key end

     0   :  { %v3095_v0 = vmov 0   ;;  %s3893_s1 = inlined_call_operand.vmem [shape: bf16[384,128], index: 1, kind: input, shape index: {}]   ;;  %s3894_s0 = inlined_call_operand.vmem [shape: bf16[512,384], index: 0, kind: input, shape index: {}]   ;;  %s3895_s2 = inlined_call_operand.vmem [shape: f32[1,128], index: 2, kind: input, shape index: {}]   ;;  %s3896_s3 = inlined_call_operand.vmem [shape: f32[1,128], index: 3, kind: input, shape index: {}]   ;;  %s3897_s4 = inlined_call_operand.vmem [shape: bf16[512,128], index: 4, kind: output, shape index: {}]  }
   0x1   :  { %982 = vmatprep.subr.bf16.mxu0 %v3095_v0  ;;  %2910 = vmatprep.subr.bf16.mxu1 %v3095_v0  ;;  %v2943_v1 = vld [vmem:[%s3893_s1] sm:$0xff]   ;;  %v2944_v2 = vld [vmem:[%s3893_s1 + $0x8] sm:$0xff]   ;;  %v2945_v3 = vld [vmem:[%s3893_s1 + $0x10] sm:$0xff]  }
   0x2   :  { %983 = vmatpush1.bf16.msra.mxu0 %v2943_v1  ;;  %2926 = vmatpush1.bf16.msra.mxu1 %v2943_v1  ;;  %v2946_v4 = vld [vmem:[%s3893_s1 + $0x18] sm:$0xff]   ;;  %v2947_v5 = vld [vmem:[%s3893_s1 + $0x20] sm:$0xff]   ;;  %v2948_v7 = vld [vmem:[%s3893_s1 + $0x28] sm:$0xff]  }
   0x3   :  { %984 = vmatprep.subr.bf16.mxu0 %v3095_v0  ;;  %2911 = vmatprep.subr.bf16.mxu1 %v3095_v0  ;;  %v2961_v6 = vld [vmem:[%s3894_s0 + $0x4] ss:$12 sps:$4 sm:$0xff]   ;;  %v2950_v10 = vld [vmem:[%s3893_s1 + $0x38] sm:$0xff]   ;;  %v2952_v12 = vld [vmem:[%s3893_s1 + $0x48] sm:$0xff]  }
   0x4   :  { %v2964_v8 = vld [vmem:[%s3894_s0 + $0x244] ss:$12 sps:$4 sm:$0xff]   ;;  %1014 = vmatprep.mubr.bf16.mxu0 %v2961_v6  ;;  %v2954_v14 = vld [vmem:[%s3893_s1 + $0x58] sm:$0xff]   ;;  %v2956_v16 = vld [vmem:[%s3893_s1 + $0x68] sm:$0xff]  }
   0x5   :  { %1206 = vmatprep.mubr.bf16.mxu1 %v2964_v8  ;;  %v2949_v9 = vld [vmem:[%s3893_s1 + $0x30] sm:$0xff]   ;;  %v2951_v11 = vld [vmem:[%s3893_s1 + $0x40] sm:$0xff]   ;;  %v2958_v18 = vld [vmem:[%s3893_s1 + $0x78] sm:$0xff]  }
   0x6   :  { %985 = vmatpush1.bf16.msra.mxu0 %v2944_v2  ;;  %2927 = vmatpush1.bf16.msra.mxu1 %v2944_v2  ;;  %v2953_v13 = vld [vmem:[%s3893_s1 + $0x50] sm:$0xff]   ;;  %v2955_v15 = vld [vmem:[%s3893_s1 + $0x60] sm:$0xff]   ;;  %v2966_v22 = vld [vmem:[%s3894_s0 + $0x1c] ss:$12 sps:$4 sm:$0xff]  }
   0x7   :  { %986 = vmatprep.subr.bf16.mxu0 %v3095_v0  ;;  %2912 = vmatprep.subr.bf16.mxu1 %v3095_v0  ;;  %v2957_v17 = vld [vmem:[%s3893_s1 + $0x70] sm:$0xff]   ;;  %v2965_v19 = vld [vmem:[%s3893_s1 + $0x80] sm:$0xff]   ;;  %v2968_v23 = vld [vmem:[%s3894_s0 + $0x25c] ss:$12 sps:$4 sm:$0xff]  }
   0x8   :  { %v2959_v20 = vld [vmem:[%s3894_s0] ss:$12 sps:$4 sm:$0xff]   ;;  %v2979_v25 = vld [vmem:[%s3893_s1 + $0x90] sm:$0xff]   ;;  %v2970_v26 = vld [vmem:[%s3894_s0 + $0x18] ss:$12 sps:$4 sm:$0xff]  }
   0x9   :  { %v2962_v21 = vld [vmem:[%s3894_s0 + $0x240] ss:$12 sps:$4 sm:$0xff]   ;;  %v2971_v27 = vld [vmem:[%s3894_s0 + $0x258] ss:$12 sps:$4 sm:$0xff]   ;;  %v2977_v31 = vld [vmem:[%s3894_s0 + $0x30] ss:$12 sps:$4 sm:$0xff]  }
   0xa   :  { %987 = vmatpush1.bf16.msra.mxu0 %v2945_v3  ;;  %2928 = vmatpush1.bf16.msra.mxu1 %v2945_v3  ;;  %v2972_v24 = vld [vmem:[%s3893_s1 + $0x88] sm:$0xff]   ;;  %v2973_v28 = vld [vmem:[%s3894_s0 + $0x34] ss:$12 sps:$4 sm:$0xff]   ;;  %v2986_v30 = vld [vmem:[%s3893_s1 + $0x98] sm:$0xff]  }
   0xb   :  { %988 = vmatprep.subr.bf16.mxu0 %v3095_v0  ;;  %2913 = vmatprep.subr.bf16.mxu1 %v3095_v0  ;;  %v2975_v29 = vld [vmem:[%s3894_s0 + $0x274] ss:$12 sps:$4 sm:$0xff]   ;;  %v2978_v33 = vld [vmem:[%s3894_s0 + $0x270] ss:$12 sps:$4 sm:$0xff]   ;;  %v2980_v34 = vld [vmem:[%s3894_s0 + $0x4c] ss:$12 sps:$4 sm:$0xff]  }
   0xc   :  { %v2993_v32 = vld [vmem:[%s3893_s1 + $0xa0] sm:$0xff]   ;;  %v2982_v35 = vld [vmem:[%s3894_s0 + $0x28c] ss:$12 sps:$4 sm:$0xff]   ;;  %v2984_v37 = vld [vmem:[%s3894_s0 + $0x48] ss:$12 sps:$4 sm:$0xff]  }
   0xd   :  { %v3000_v36 = vld [vmem:[%s3893_s1 + $0xa8] sm:$0xff]   ;;  %v2987_v39 = vld [vmem:[%s3894_s0 + $0x64] ss:$12 sps:$4 sm:$0xff]   ;;  %v3014_v42 = vld [vmem:[%s3893_s1 + $0xb8] sm:$0xff]  }
   0xe   :  { %989 = vmatpush1.bf16.msra.mxu0 %v2946_v4  ;;  %2929 = vmatpush1.bf16.msra.mxu1 %v2946_v4  ;;  %v2985_v38 = vld [vmem:[%s3894_s0 + $0x288] ss:$12 sps:$4 sm:$0xff]   ;;  %v2989_v40 = vld [vmem:[%s3894_s0 + $0x2a4] ss:$12 sps:$4 sm:$0xff]   ;;  %v2991_v43 = vld [vmem:[%s3894_s0 + $0x60] ss:$12 sps:$4 sm:$0xff]  }
   0xf   :  { %990 = vmatprep.subr.bf16.mxu0 %v3095_v0  ;;  %2914 = vmatprep.subr.bf16.mxu1 %v3095_v0  ;;  %v3007_v41 = vld [vmem:[%s3893_s1 + $0xb0] sm:$0xff]   ;;  %v2992_v44 = vld [vmem:[%s3894_s0 + $0x2a0] ss:$12 sps:$4 sm:$0xff]   ;;  %v2994_v45 = vld [vmem:[%s3894_s0 + $0x7c] ss:$12 sps:$4 sm:$0xff]  }
  0x10   :  { %v2996_v46 = vld [vmem:[%s3894_s0 + $0x2bc] ss:$12 sps:$4 sm:$0xff]   ;;  %v2998_v47 = vld [vmem:[%s3894_s0 + $0x78] ss:$12 sps:$4 sm:$0xff]   ;;  %v3001_v49 = vld [vmem:[%s3894_s0 + $0x94] ss:$12 sps:$4 sm:$0xff]  }
  0x11   :  { %v2999_v48 = vld [vmem:[%s3894_s0 + $0x2b8] ss:$12 sps:$4 sm:$0xff]   ;;  %v3003_v50 = vld [vmem:[%s3894_s0 + $0x2d4] ss:$12 sps:$4 sm:$0xff]   ;;  %v3005_v51 = vld [vmem:[%s3894_s0 + $0x90] ss:$12 sps:$4 sm:$0xff]  }
  0x12   :  { %991 = vmatpush1.bf16.msra.mxu0 %v2947_v5  ;;  %2930 = vmatpush1.bf16.msra.mxu1 %v2947_v5  ;;  %v3006_v52 = vld [vmem:[%s3894_s0 + $0x2d0] ss:$12 sps:$4 sm:$0xff]   ;;  %v3008_v53 = vld [vmem:[%s3894_s0 + $0xac] ss:$12 sps:$4 sm:$0xff]   ;;  %v3012_v55 = vld [vmem:[%s3894_s0 + $0xa8] ss:$12 sps:$4 sm:$0xff]  }
  0x13   :  { %992 = vmatprep.subr.bf16.mxu0 %v3095_v0  ;;  %2915 = vmatprep.subr.bf16.mxu1 %v3095_v0  ;;  %v3010_v54 = vld [vmem:[%s3894_s0 + $0x2ec] ss:$12 sps:$4 sm:$0xff]   ;;  %v3013_v56 = vld [vmem:[%s3894_s0 + $0x2e8] ss:$12 sps:$4 sm:$0xff]   ;;  %v3015_v57 = vld [vmem:[%s3894_s0 + $0xc4] ss:$12 sps:$4 sm:$0xff]  }
  0x14   :  { %v3017_v58 = vld [vmem:[%s3894_s0 + $0x8] ss:$12 sps:$4 sm:$0xff]   ;;  %v3018_v59 = vld [vmem:[%s3894_s0 + $0xc0] ss:$12 sps:$4 sm:$0xff]   ;;  %v3022_v62 = vld [vmem:[%s3894_s0 + $0x38] ss:$12 sps:$4 sm:$0xff]  }
  0x15   :  { %v3019_v60 = vld [vmem:[%s3894_s0 + $0x20] ss:$12 sps:$4 sm:$0xff]   ;;  %v3020_v61 = vld [vmem:[%s3894_s0 + $0xdc] ss:$12 sps:$4 sm:$0xff]   ;;  %v3023_v63 = vld [vmem:[%s3894_s0 + $0xd8] ss:$12 sps:$4 sm:$0xff]  }
  0x16   :  { %993 = vmatpush1.bf16.msra.mxu0 %v2948_v7  ;;  %2931 = vmatpush1.bf16.msra.mxu1 %v2948_v7  ;;  %v3025_v1 = vld [vmem:[%s3894_s0 + $0xf4] ss:$12 sps:$4 sm:$0xff]   ;;  %v3028_v3 = vld [vmem:[%s3894_s0 + $0xf0] ss:$12 sps:$4 sm:$0xff]   ;;  %v3030_v5 = vld [vmem:[%s3894_s0 + $0x10c] ss:$12 sps:$4 sm:$0xff]  }
  0x17   :  { %994 = vmatprep.subr.bf16.mxu0 %v3095_v0  ;;  %2916 = vmatprep.subr.bf16.mxu1 %v3095_v0  ;;  %v3027_v2 = vld [vmem:[%s3894_s0 + $0x68] ss:$12 sps:$4 sm:$0xff]   ;;  %v3029_v4 = vld [vmem:[%s3894_s0 + $0x80] ss:$12 sps:$4 sm:$0xff]   ;;  %v3032_v6 = vld [vmem:[%s3894_s0 + $0x98] ss:$12 sps:$4 sm:$0xff]  }
  0x18   :  { %v3033_v7 = vld [vmem:[%s3894_s0 + $0x108] ss:$12 sps:$4 sm:$0xff]   ;;  %v3034_v8 = vld [vmem:[%s3894_s0 + $0xb0] ss:$12 sps:$4 sm:$0xff]  }
  0x1a   :  { %995 = vmatpush1.bf16.msra.mxu0 %v2949_v9  ;;  %2932 = vmatpush1.bf16.msra.mxu1 %v2949_v9  ;;  %v3035_v9 = vld [vmem:[%s3894_s0 + $0x124] ss:$12 sps:$4 sm:$0xff]  }
  0x1b   :  { %996 = vmatprep.subr.bf16.mxu0 %v3095_v0  ;;  %2917 = vmatprep.subr.bf16.mxu1 %v3095_v0 }
  0x1e   :  { %997 = vmatpush1.bf16.msra.mxu0 %v2950_v10  ;;  %2933 = vmatpush1.bf16.msra.mxu1 %v2950_v10  ;;  %v3037_v10 = vld [vmem:[%s3894_s0 + $0xc8] ss:$12 sps:$4 sm:$0xff]  }
  0x1f   :  { %998 = vmatprep.subr.bf16.mxu0 %v3095_v0  ;;  %2918 = vmatprep.subr.bf16.mxu1 %v3095_v0 }
  0x22   :  { %999 = vmatpush1.bf16.msra.mxu0 %v2951_v11  ;;  %2934 = vmatpush1.bf16.msra.mxu1 %v2951_v11  ;;  %v3038_v11 = vld [vmem:[%s3894_s0 + $0x120] ss:$12 sps:$4 sm:$0xff]  }
  0x23   :  { %1000 = vmatprep.subr.bf16.mxu0 %v3095_v0  ;;  %2919 = vmatprep.subr.bf16.mxu1 %v3095_v0 }
  0x26   :  { %1001 = vmatpush1.bf16.msra.mxu0 %v2952_v12  ;;  %2935 = vmatpush1.bf16.msra.mxu1 %v2952_v12  ;;  %v3039_v12 = vld [vmem:[%s3894_s0 + $0xe0] ss:$12 sps:$4 sm:$0xff]  }
  0x27   :  { %1002 = vmatprep.subr.bf16.mxu0 %v3095_v0  ;;  %2920 = vmatprep.subr.bf16.mxu1 %v3095_v0 }
  0x2a   :  { %1003 = vmatpush1.bf16.msra.mxu0 %v2953_v13  ;;  %2936 = vmatpush1.bf16.msra.mxu1 %v2953_v13  ;;  %v3040_v13 = vld [vmem:[%s3894_s0 + $0x13c] ss:$12 sps:$4 sm:$0xff]  }
  0x2b   :  { %1004 = vmatprep.subr.bf16.mxu0 %v3095_v0  ;;  %2921 = vmatprep.subr.bf16.mxu1 %v3095_v0 }
  0x2e   :  { %1005 = vmatpush1.bf16.msra.mxu0 %v2954_v14  ;;  %2937 = vmatpush1.bf16.msra.mxu1 %v2954_v14  ;;  %v3042_v14 = vld [vmem:[%s3894_s0 + $0xf8] ss:$12 sps:$4 sm:$0xff]  }
  0x2f   :  { %1006 = vmatprep.subr.bf16.mxu0 %v3095_v0  ;;  %2922 = vmatprep.subr.bf16.mxu1 %v3095_v0 }
  0x32   :  { %1007 = vmatpush1.bf16.msra.mxu0 %v2955_v15  ;;  %2938 = vmatpush1.bf16.msra.mxu1 %v2955_v15  ;;  %v3043_v15 = vld [vmem:[%s3894_s0 + $0x138] ss:$12 sps:$4 sm:$0xff]  }
  0x33   :  { %1008 = vmatprep.subr.bf16.mxu0 %v3095_v0  ;;  %2923 = vmatprep.subr.bf16.mxu1 %v3095_v0 }
  0x36   :  { %1009 = vmatpush1.bf16.msra.mxu0 %v2956_v16  ;;  %2939 = vmatpush1.bf16.msra.mxu1 %v2956_v16  ;;  %v3044_v16 = vld [vmem:[%s3894_s0 + $0x110] ss:$12 sps:$4 sm:$0xff]  }
  0x37   :  { %1010 = vmatprep.subr.bf16.mxu0 %v3095_v0  ;;  %2924 = vmatprep.subr.bf16.mxu1 %v3095_v0 }
  0x3a   :  { %1011 = vmatpush1.bf16.msra.mxu0 %v2957_v17  ;;  %2940 = vmatpush1.bf16.msra.mxu1 %v2957_v17  ;;  %v3045_v17 = vld [vmem:[%s3894_s0 + $0x154] ss:$12 sps:$4 sm:$0xff]  }
  0x3b   :  { %1012 = vmatprep.subr.bf16.mxu0 %v3095_v0  ;;  %2925 = vmatprep.subr.bf16.mxu1 %v3095_v0  ;;  %v3024_v0 = vld [vmem:[%s3894_s0 + $0x50] ss:$12 sps:$4 sm:$0xff]  }
  0x3e   :  { %1013 = vmatpush1.bf16.msra.mxu0 %v2958_v18  ;;  %2941 = vmatpush1.bf16.msra.mxu1 %v2958_v18  ;;  %v3047_v18 = vld [vmem:[%s3894_s0 + $0x128] ss:$12 sps:$4 sm:$0xff]  }
  0x3f   :  { %2830 = vmatprep.subr.bf16.mxu1 %v2965_v19 }
  0x41   :  { %1015 = vmatmul.mubr.bf16.vlgmr.msra.gmra.mrb[0].mxu0 %v2959_v20  ;;  %1207 = vmatmul.mubr.bf16.vlgmr.msra.gmra.mrb[0].mxu1 %v2962_v21  ;;  %v3049_v20 = vld [vmem:[%s3894_s0 + $0x140] ss:$12 sps:$4 sm:$0xff]  }
  0x42   :  { %2831 = vmatpush3.bf16.msra.mxu1 %v2965_v19  ;;  %1022 = vmatprep.mubr.bf16.mxu0 %v2966_v22  ;;  %v3048_v19 = vld [vmem:[%s3894_s0 + $0x150] ss:$12 sps:$4 sm:$0xff]   ;;  %v3050_v21 = vld [vmem:[%s3894_s0 + $0x16c] ss:$12 sps:$4 sm:$0xff]  }
  0x43   :  { %1214 = vmatprep.mubr.bf16.mxu1 %v2968_v23  ;;  %2832 = vmatprep.subr.bf16.mxu1 %v2972_v24  ;;  %v3052_v22 = vld [vmem:[%s3894_s0 + $0x158] ss:$12 sps:$4 sm:$0xff]   ;;  %v3053_v23 = vld [vmem:[%s3894_s0 + $0x168] ss:$12 sps:$4 sm:$0xff]  }
  0x46   :  { %2833 = vmatpush3.bf16.msra.mxu1 %v2972_v24  ;;  %v3054_v24 = vld [vmem:[%s3894_s0 + $0x170] ss:$12 sps:$4 sm:$0xff]  }
  0x47   :  { %2834 = vmatprep.subr.bf16.mxu1 %v2979_v25 }
  0x49   :  { %1023 = vmatmul.mubr.bf16.gmra.mrb[4].mxu0 %v2970_v26  ;;  %1215 = vmatmul.mubr.bf16.gmra.mrb[4].mxu1 %v2971_v27  ;;  %v3057_v26 = vld [vmem:[%s3894_s0 + $0x188] ss:$12 sps:$4 sm:$0xff]   ;;  %v3058_v27 = vld [vmem:[%s3894_s0 + $0x180] ss:$12 sps:$4 sm:$0xff]  }
  0x4a   :  { %1030 = vmatprep.mubr.bf16.mxu0 %v2973_v28  ;;  %1222 = vmatprep.mubr.bf16.mxu1 %v2975_v29  ;;  %v3059_v28 = vld [vmem:[%s3894_s0 + $0x1a0] ss:$12 sps:$4 sm:$0xff]   ;;  %v3060_v29 = vld [vmem:[%s3894_s0 + $0x19c] ss:$12 sps:$4 sm:$0xff]  }
  0x4b   :  { %2835 = vmatpush3.bf16.msra.mxu1 %v2979_v25  ;;  %v3055_v25 = vld [vmem:[%s3894_s0 + $0x184] ss:$12 sps:$4 sm:$0xff]  }
  0x4c   :  { %2836 = vmatprep.subr.bf16.mxu1 %v2986_v30 }
  0x4f   :  { %2837 = vmatpush3.bf16.msra.mxu1 %v2986_v30  ;;  %v3062_v30 = vld [vmem:[%s3894_s0 + $0x1b8] ss:$12 sps:$4 sm:$0xff]  }
  0x50   :  { %2838 = vmatprep.subr.bf16.mxu1 %v2993_v32 }
  0x51   :  { %1031 = vmatmul.mubr.bf16.gmra.mrb[8].mxu0 %v2977_v31  ;;  %1223 = vmatmul.mubr.bf16.gmra.mrb[8].mxu1 %v2978_v33  ;;  %v3063_v31 = vld [vmem:[%s3894_s0 + $0x198] ss:$12 sps:$4 sm:$0xff]   ;;  %v3065_v33 = vld [vmem:[%s3894_s0 + $0x1b4] ss:$12 sps:$4 sm:$0xff]  }
  0x52   :  { %1038 = vmatprep.mubr.bf16.mxu0 %v2980_v34  ;;  %1230 = vmatprep.mubr.bf16.mxu1 %v2982_v35  ;;  %v3067_v34 = vld [vmem:[%s3894_s0 + $0x1e8] ss:$12 sps:$4 sm:$0xff]   ;;  %v3068_v35 = vld [vmem:[%s3894_s0 + $0x1b0] ss:$12 sps:$4 sm:$0xff]  }
  0x53   :  { %2839 = vmatpush3.bf16.msra.mxu1 %v2993_v32  ;;  %v3064_v32 = vld [vmem:[%s3894_s0 + $0x1d0] ss:$12 sps:$4 sm:$0xff]  }
  0x54   :  { %2840 = vmatprep.subr.bf16.mxu1 %v3000_v36 }
  0x57   :  { %2841 = vmatpush3.bf16.msra.mxu1 %v3000_v36  ;;  %v3069_v36 = vld [vmem:[%s3894_s0 + $0x200] ss:$12 sps:$4 sm:$0xff]  }
  0x58   :  { %2842 = vmatprep.subr.bf16.mxu1 %v3007_v41 }
  0x59   :  { %1039 = vmatmul.mubr.bf16.gmra.mrb[12].mxu0 %v2984_v37  ;;  %1231 = vmatmul.mubr.bf16.gmra.mrb[12].mxu1 %v2985_v38  ;;  %v3070_v37 = vld [vmem:[%s3894_s0 + $0x1cc] ss:$12 sps:$4 sm:$0xff]  }
  0x5a   :  { %1046 = vmatprep.mubr.bf16.mxu0 %v2987_v39  ;;  %1238 = vmatprep.mubr.bf16.mxu1 %v2989_v40  ;;  %v3072_v38 = vld [vmem:[%s3894_s0 + $0x218] ss:$12 sps:$4 sm:$0xff]   ;;  %v3073_v39 = vld [vmem:[%s3894_s0 + $0x1c8] ss:$12 sps:$4 sm:$0xff]   ;;  %v3074_v40 = vld [vmem:[%s3894_s0 + $0x230] ss:$12 sps:$4 sm:$0xff]  }
  0x5b   :  { %2843 = vmatpush3.bf16.msra.mxu1 %v3007_v41  ;;  %v3075_v41 = vld [vmem:[%s3894_s0 + $0x1e4] ss:$12 sps:$4 sm:$0xff]  }
  0x5c   :  { %2844 = vmatprep.subr.bf16.mxu1 %v3014_v42 }
  0x5f   :  { %2845 = vmatpush3.bf16.msra.mxu1 %v3014_v42  ;;  %v3077_v42 = vld [vmem:[%s3894_s0 + $0x248] ss:$12 sps:$4 sm:$0xff]  }
  0x61   :  { %1047 = vmatmul.mubr.bf16.gmra.mrb[16].mxu0 %v2991_v43  ;;  %1239 = vmatmul.mubr.bf16.gmra.mrb[16].mxu1 %v2992_v44  ;;  %v3078_v43 = vld [vmem:[%s3894_s0 + $0x1e0] ss:$12 sps:$4 sm:$0xff]  }
  0x62   :  { %1054 = vmatprep.mubr.bf16.mxu0 %v2994_v45  ;;  %1246 = vmatprep.mubr.bf16.mxu1 %v2996_v46  ;;  %v3079_v44 = vld [vmem:[%s3894_s0 + $0x260] ss:$12 sps:$4 sm:$0xff]   ;;  %v3080_v45 = vld [vmem:[%s3894_s0 + $0x1fc] ss:$12 sps:$4 sm:$0xff]   ;;  %v3082_v46 = vld [vmem:[%s3894_s0 + $0x278] ss:$12 sps:$4 sm:$0xff]  }
  0x69   :  { %1055 = vmatmul.mubr.bf16.gmra.mrb[20].mxu0 %v2998_v47  ;;  %1247 = vmatmul.mubr.bf16.gmra.mrb[20].mxu1 %v2999_v48  ;;  %v3083_v47 = vld [vmem:[%s3894_s0 + $0x1f8] ss:$12 sps:$4 sm:$0xff]   ;;  %v3084_v48 = vld [vmem:[%s3894_s0 + $0x290] ss:$12 sps:$4 sm:$0xff]  }
  0x6a   :  { %1062 = vmatprep.mubr.bf16.mxu0 %v3001_v49  ;;  %1254 = vmatprep.mubr.bf16.mxu1 %v3003_v50  ;;  %v3085_v49 = vld [vmem:[%s3894_s0 + $0x214] ss:$12 sps:$4 sm:$0xff]  }
  0x6b   :  { %v3087_v50 = vld [vmem:[%s3894_s0 + $0x2a8] ss:$12 sps:$4 sm:$0xff]  }
  0x71   :  { %1063 = vmatmul.mubr.bf16.gmra.mrb[24].mxu0 %v3005_v51  ;;  %1255 = vmatmul.mubr.bf16.gmra.mrb[24].mxu1 %v3006_v52  ;;  %v3088_v51 = vld [vmem:[%s3894_s0 + $0x210] ss:$12 sps:$4 sm:$0xff]   ;;  %v3089_v52 = vld [vmem:[%s3894_s0 + $0x2c0] ss:$12 sps:$4 sm:$0xff]  }
  0x72   :  { %1070 = vmatprep.mubr.bf16.mxu0 %v3008_v53  ;;  %1262 = vmatprep.mubr.bf16.mxu1 %v3010_v54  ;;  %v3090_v53 = vld [vmem:[%s3894_s0 + $0x22c] ss:$12 sps:$4 sm:$0xff]  }
  0x73   :  { %v3092_v54 = vld [vmem:[%s3894_s0 + $0x2d8] ss:$12 sps:$4 sm:$0xff]  }
  0x79   :  { %1071 = vmatmul.mubr.bf16.gmra.mrb[28].mxu0 %v3012_v55  ;;  %1263 = vmatmul.mubr.bf16.gmra.mrb[28].mxu1 %v3013_v56  ;;  %v3093_v55 = vld [vmem:[%s3894_s0 + $0x228] ss:$12 sps:$4 sm:$0xff]   ;;  %v3094_v56 = vld [vmem:[%s3894_s0 + $0x2f0] ss:$12 sps:$4 sm:$0xff]  }
  0x7a   :  { %1078 = vmatprep.mubr.bf16.mxu0 %v3015_v57  ;;  %2846 = vmatprep.mubr.bf16.mxu1 %v3017_v58 }
  0x81   :  { %1079 = vmatmul.mubr.bf16.gmra.mrb[32].mxu0 %v3018_v59  ;;  %2847 = vmatmul.mubr.bf16.vlgmr.msra.gmra.mrb[32].mxu1 %v3019_v60 }
  0x82   :  { %1086 = vmatprep.mubr.bf16.mxu0 %v3020_v61  ;;  %2850 = vmatprep.mubr.bf16.mxu1 %v3022_v62 }
  0x89   :  { %1087 = vmatmul.mubr.bf16.gmra.mrb[36].mxu0 %v3023_v63  ;;  %2851 = vmatmul.mubr.bf16.gmra.mrb[36].mxu1 %v3024_v0 }
  0x8a   :  { %1094 = vmatprep.mubr.bf16.mxu0 %v3025_v1  ;;  %2854 = vmatprep.mubr.bf16.mxu1 %v3027_v2 }
  0x91   :  { %1095 = vmatmul.mubr.bf16.gmra.mrb[40].mxu0 %v3028_v3  ;;  %2855 = vmatmul.mubr.bf16.gmra.mrb[40].mxu1 %v3029_v4 }
  0x92   :  { %1102 = vmatprep.mubr.bf16.mxu0 %v3030_v5  ;;  %2858 = vmatprep.mubr.bf16.mxu1 %v3032_v6 }
  0x99   :  { %1103 = vmatmul.mubr.bf16.gmra.mrb[44].mxu0 %v3033_v7  ;;  %2859 = vmatmul.mubr.bf16.gmra.mrb[44].mxu1 %v3034_v8 }
  0x9a   :  { %1110 = vmatprep.mubr.bf16.mxu0 %v3035_v9  ;;  %2862 = vmatprep.mubr.bf16.mxu1 %v3037_v10 }
  0xa1   :  { %1111 = vmatmul.mubr.bf16.gmra.mrb[48].mxu0 %v3038_v11  ;;  %2863 = vmatmul.mubr.bf16.gmra.mrb[48].mxu1 %v3039_v12 }
  0xa2   :  { %1118 = vmatprep.mubr.bf16.mxu0 %v3040_v13  ;;  %2866 = vmatprep.mubr.bf16.mxu1 %v3042_v14 }
  0xa9   :  { %1119 = vmatmul.mubr.bf16.gmra.mrb[52].mxu0 %v3043_v15  ;;  %2867 = vmatmul.mubr.bf16.gmra.mrb[52].mxu1 %v3044_v16 }
  0xaa   :  { %1126 = vmatprep.mubr.bf16.mxu0 %v3045_v17  ;;  %2870 = vmatprep.mubr.bf16.mxu1 %v3047_v18 }
  0xb1   :  { %1127 = vmatmul.mubr.bf16.gmra.mrb[56].mxu0 %v3048_v19  ;;  %2871 = vmatmul.mubr.bf16.gmra.mrb[56].mxu1 %v3049_v20 }
  0xb2   :  { %1134 = vmatprep.mubr.bf16.mxu0 %v3050_v21  ;;  %2874 = vmatprep.mubr.bf16.mxu1 %v3052_v22 }
  0xb9   :  { %1135 = vmatmul.mubr.bf16.gmra.mrb[60].mxu0 %v3053_v23  ;;  %2875 = vmatmul.mubr.bf16.gmra.mrb[60].mxu1 %v3054_v24 }
  0xba   :  { %1142 = vmatprep.mubr.bf16.mxu0 %v3055_v25  ;;  %2878 = vmatprep.mubr.bf16.mxu1 %v3057_v26 }
  0xc1   :  { %1143 = vmatmul.mubr.bf16.gmra.mrb[64].mxu0 %v3058_v27  ;;  %2879 = vmatmul.mubr.bf16.gmra.mrb[64].mxu1 %v3059_v28 }
  0xc2   :  { %1150 = vmatprep.mubr.bf16.mxu0 %v3060_v29  ;;  %2882 = vmatprep.mubr.bf16.mxu1 %v3062_v30 }
  0xc9   :  { %1151 = vmatmul.mubr.bf16.gmra.mrb[68].mxu0 %v3063_v31  ;;  %2883 = vmatmul.mubr.bf16.gmra.mrb[68].mxu1 %v3064_v32 }
  0xca   :  { %1158 = vmatprep.mubr.bf16.mxu0 %v3065_v33  ;;  %2886 = vmatprep.mubr.bf16.mxu1 %v3067_v34 }
  0xd1   :  { %1159 = vmatmul.mubr.bf16.gmra.mrb[72].mxu0 %v3068_v35  ;;  %2887 = vmatmul.mubr.bf16.gmra.mrb[72].mxu1 %v3069_v36 }
  0xd2   :  { %1166 = vmatprep.mubr.bf16.mxu0 %v3070_v37  ;;  %2890 = vmatprep.mubr.bf16.mxu1 %v3072_v38 }
  0xd9   :  { %1167 = vmatmul.mubr.bf16.gmra.mrb[76].mxu0 %v3073_v39  ;;  %2891 = vmatmul.mubr.bf16.gmra.mrb[76].mxu1 %v3074_v40 }
  0xda   :  { %1174 = vmatprep.mubr.bf16.mxu0 %v3075_v41  ;;  %2894 = vmatprep.mubr.bf16.mxu1 %v3077_v42 }
  0xe1   :  { %1175 = vmatmul.mubr.bf16.gmra.mrb[80].mxu0 %v3078_v43  ;;  %2895 = vmatmul.mubr.bf16.gmra.mrb[80].mxu1 %v3079_v44 }
  0xe2   :  { %1182 = vmatprep.mubr.bf16.mxu0 %v3080_v45  ;;  %2898 = vmatprep.mubr.bf16.mxu1 %v3082_v46 }
  0xe9   :  { %1183 = vmatmul.mubr.bf16.gmra.mrb[84].mxu0 %v3083_v47  ;;  %2899 = vmatmul.mubr.bf16.gmra.mrb[84].mxu1 %v3084_v48 }
  0xea   :  { %1190 = vmatprep.mubr.bf16.mxu0 %v3085_v49  ;;  %2902 = vmatprep.mubr.bf16.mxu1 %v3087_v50 }
  0xf1   :  { %1191 = vmatmul.mubr.bf16.gmra.mrb[88].mxu0 %v3088_v51  ;;  %2903 = vmatmul.mubr.bf16.gmra.mrb[88].mxu1 %v3089_v52 }
  0xf2   :  { %1198 = vmatprep.mubr.bf16.mxu0 %v3090_v53  ;;  %2906 = vmatprep.mubr.bf16.mxu1 %v3092_v54 }
  0xf9   :  { %1199 = vmatmul.mubr.bf16.gmra.mrb[92].mxu0 %v3093_v55  ;;  %2907 = vmatmul.mubr.bf16.gmra.mrb[92].mxu1 %v3094_v56 }
 0x114   :  { %v3513_v57 = vpop.f32.mrb[0].mxu0  ;;  %v3515_v58 = vpop.f32.mrb[0].mxu1 }
 0x115   :  { %v1018_v59 = vpop.f32.mrb[1].mxu0  ;;  %v1210_v60 = vpop.f32.mrb[1].mxu1 }
 0x116   :  { %v3517_v61 = vpop.f32.mrb[2].mxu0  ;;  %v3519_v62 = vpop.f32.mrb[2].mxu1 }
 0x117   :  { %v1021_v63 = vpop.f32.mrb[3].mxu0  ;;  %v1213_v0 = vpop.f32.mrb[3].mxu1 }
 0x118   :  { %v3580_v63 = vld [vmem:[%s3895_s2] ss:$0 sm:$0xff] }
 0x11c   :  { %v1024_v1 = vpop.f32.mrb[4].mxu0  ;;  %v3521_v2 = vpop.f32.mrb[4].mxu1 }
 0x11d   :  { %v1026_v3 = vpop.f32.mrb[5].mxu0  ;;  %v1218_v4 = vpop.f32.mrb[5].mxu1 }
 0x11e   :  { %v3523_v5 = vpop.f32.mrb[6].mxu0  ;;  %v3525_v6 = vpop.f32.mrb[6].mxu1 }
 0x11f   :  { %v1029_v7 = vpop.f32.mrb[7].mxu0  ;;  %v1221_v8 = vpop.f32.mrb[7].mxu1 }
 0x120   :  { %v3585_v7 = vld [vmem:[%s3896_s3] ss:$0 sm:$0xff] }
 0x124   :  { %v3527_v9 = vpop.f32.mrb[8].mxu0  ;;  %v3529_v10 = vpop.f32.mrb[8].mxu1 }
 0x125   :  { %v1034_v11 = vpop.f32.mrb[9].mxu0  ;;  %v1226_v12 = vpop.f32.mrb[9].mxu1 }
 0x126   :  { %v3531_v13 = vpop.f32.mrb[10].mxu0  ;;  %v3533_v14 = vpop.f32.mrb[10].mxu1 }
 0x127   :  { %v1037_v15 = vpop.f32.mrb[11].mxu0  ;;  %v1229_v16 = vpop.f32.mrb[11].mxu1 }
 0x12c   :  { %v3535_v17 = vpop.f32.mrb[12].mxu0  ;;  %v3537_v18 = vpop.f32.mrb[12].mxu1 }
 0x12d   :  { %v1042_v19 = vpop.f32.mrb[13].mxu0  ;;  %v1234_v20 = vpop.f32.mrb[13].mxu1 }
 0x12e   :  { %v3539_v21 = vpop.f32.mrb[14].mxu0  ;;  %v3541_v22 = vpop.f32.mrb[14].mxu1 }
 0x12f   :  { %v1045_v23 = vpop.f32.mrb[15].mxu0  ;;  %v1237_v24 = vpop.f32.mrb[15].mxu1 }
 0x134   :  { %v3543_v25 = vpop.f32.mrb[16].mxu0  ;;  %v3545_v26 = vpop.f32.mrb[16].mxu1 }
 0x135   :  { %v1050_v27 = vpop.f32.mrb[17].mxu0  ;;  %v1242_v28 = vpop.f32.mrb[17].mxu1 }
 0x136   :  { %v3547_v29 = vpop.f32.mrb[18].mxu0  ;;  %v3549_v30 = vpop.f32.mrb[18].mxu1 }
 0x137   :  { %v1053_v31 = vpop.f32.mrb[19].mxu0  ;;  %v1245_v32 = vpop.f32.mrb[19].mxu1 }
 0x13c   :  { %v3551_v33 = vpop.f32.mrb[20].mxu0  ;;  %v3553_v34 = vpop.f32.mrb[20].mxu1 }
 0x13d   :  { %v1058_v35 = vpop.f32.mrb[21].mxu0  ;;  %v1250_v36 = vpop.f32.mrb[21].mxu1 }
 0x13e   :  { %v3555_v37 = vpop.f32.mrb[22].mxu0  ;;  %v3557_v38 = vpop.f32.mrb[22].mxu1 }
 0x13f   :  { %v1061_v39 = vpop.f32.mrb[23].mxu0  ;;  %v1253_v40 = vpop.f32.mrb[23].mxu1 }
 0x144   :  { %v3559_v41 = vpop.f32.mrb[24].mxu0  ;;  %v3561_v42 = vpop.f32.mrb[24].mxu1 }
 0x145   :  { %v1066_v43 = vpop.f32.mrb[25].mxu0  ;;  %v1258_v44 = vpop.f32.mrb[25].mxu1 }
 0x146   :  { %v3563_v45 = vpop.f32.mrb[26].mxu0  ;;  %v3565_v46 = vpop.f32.mrb[26].mxu1 }
 0x147   :  { %v1069_v47 = vpop.f32.mrb[27].mxu0  ;;  %v1261_v48 = vpop.f32.mrb[27].mxu1 }
 0x14c   :  { %v3567_v49 = vpop.f32.mrb[28].mxu0  ;;  %v3569_v50 = vpop.f32.mrb[28].mxu1 }
 0x14d   :  { %v1074_v51 = vpop.f32.mrb[29].mxu0  ;;  %v1266_v52 = vpop.f32.mrb[29].mxu1 }
 0x14e   :  { %v3571_v53 = vpop.f32.mrb[30].mxu0  ;;  %v3573_v54 = vpop.f32.mrb[30].mxu1 }
 0x14f   :  { %v1077_v55 = vpop.f32.mrb[31].mxu0  ;;  %v1269_v56 = vpop.f32.mrb[31].mxu1 }
 0x154   :  { %v3575_v59 = vpop.f32.mrb[32].mxu0  ;;  %v2848_v60 = vpop.f32.mrb[32].mxu1 }
 0x155   :  { %v1314_v0 = vadd.f32 %v2848_v60, %v1024_v1  ;;  %v1082_v3 = vpop.f32.mrb[33].mxu0  ;;  %v1305_v4 = vpop.f32.mrb[33].mxu1 }
 0x156   :  { %v1306_v8 = vadd.f32 %v1305_v4, %v3513_v57  ;;  %v3588_v11 = vpop.f32.mrb[34].mxu0  ;;  %v2849_v12 = vpop.f32.mrb[34].mxu1 }
 0x157   :  { %v1764_v15 = vadd.f32 %v3580_v63, %v1314_v0  ;;  %v1317_v16 = vadd.f32 %v2849_v12, %v3523_v5  ;;  %v1085_v19 = vpop.f32.mrb[35].mxu0  ;;  %v1308_v20 = vpop.f32.mrb[35].mxu1 }
 0x158   :  { %v1762_v1 = vadd.f32 %v3580_v63, %v1306_v8  ;;  %v1309_v23 = vadd.f32 %v1308_v20, %v3517_v61 }
 0x159   :  { %v1899_v24 = vmul.f32 %v3585_v7, %v1764_v15  ;;  %v1765_v27 = vadd.f32 %v3580_v63, %v1317_v16  ;;  %vm1828_vm0 = vcmp.ge.f32.partialorder %v1764_v15, 0.0 }
 0x15a   :  { %v1897_v57 = vmul.f32 %v3585_v7, %v1762_v1  ;;  %v1763_v28 = vadd.f32 %v3580_v63, %v1309_v23  ;;  %vm1826_vm1 = vcmp.ge.f32.partialorder %v1762_v1, 0.0 }
 0x15b   :  { %vm1829_vm2 = vcmp.ge.f32.partialorder %v1765_v27, 0.0  ;;  %v1900_v31 = vmul.f32 %v3585_v7, %v1765_v27  ;;  %v1963_v61 = vsel %vm1828_vm0, %v1764_v15, %v1899_v24 }
 0x15c   :  { %vm1827_vm3 = vcmp.ge.f32.partialorder %v1763_v28, 0.0  ;;  %v1898_v5 = vmul.f32 %v3585_v7, %v1763_v28  ;;  %v3600_v32 = vpop.f32.mrb[36].mxu0  ;;  %v2852_v35 = vpop.f32.mrb[36].mxu1  ;;  %v1961_v44 = vsel %vm1826_vm1, %v1762_v1, %v1897_v57 }
 0x15d   :  { %v1964_v36 = vsel %vm1829_vm2, %v1765_v27, %v1900_v31  ;;  %v1330_v39 = vadd.f32 %v2852_v35, %v3535_v17  ;;  %v1090_v40 = vpop.f32.mrb[37].mxu0  ;;  %v1321_v43 = vpop.f32.mrb[37].mxu1 }
 0x15e   :  { %v2607_v47 = vpack.c.bf16 %v1964_v36, %v1963_v61  ;;  %v1962_v48 = vsel %vm1827_vm3, %v1763_v28, %v1898_v5  ;;  %v1322_v51 = vadd.f32 %v1321_v43, %v3527_v9  ;;  %v3604_v52 = vpop.f32.mrb[38].mxu0  ;;  %v2853_v55 = vpop.f32.mrb[38].mxu1 }
 0x15f   :  { %v2602_v56 = vpack.c.bf16 %v1962_v48, %v1961_v44  ;;  %v1768_v60 = vadd.f32 %v3580_v63, %v1330_v39  ;;  %v1333_v0 = vadd.f32 %v2853_v55, %v3539_v21  ;;  %v1093_v3 = vpop.f32.mrb[39].mxu0  ;;  %v1324_v4 = vpop.f32.mrb[39].mxu1 }
 0x160   :  { %2759 = vst [vmem:[%s3897_s4 + $0x8] sm:$0xff] %v2607_v47   ;;  %v1766_v17 = vadd.f32 %v3580_v63, %v1322_v51  ;;  %v1325_v8 = vadd.f32 %v1324_v4, %v3531_v13 }
 0x161   :  { %2603 = vst [vmem:[%s3897_s4] sm:$0xff] %v2602_v56   ;;  %v1903_v9 = vmul.f32 %v3585_v7, %v1768_v60  ;;  %v1769_v12 = vadd.f32 %v3580_v63, %v1333_v0  ;;  %vm1832_vm4 = vcmp.ge.f32.partialorder %v1768_v60, 0.0 }
 0x162   :  { %v1901_v21 = vmul.f32 %v3585_v7, %v1766_v17  ;;  %v1767_v15 = vadd.f32 %v3580_v63, %v1325_v8  ;;  %vm1830_vm5 = vcmp.ge.f32.partialorder %v1766_v17, 0.0 }
 0x163   :  { %vm1833_vm6 = vcmp.ge.f32.partialorder %v1769_v12, 0.0  ;;  %v1904_v16 = vmul.f32 %v3585_v7, %v1769_v12  ;;  %v1967_v1 = vsel %vm1832_vm4, %v1768_v60, %v1903_v9 }
 0x164   :  { %vm1831_vm7 = vcmp.ge.f32.partialorder %v1767_v15, 0.0  ;;  %v1902_v13 = vmul.f32 %v3585_v7, %v1767_v15  ;;  %v3622_v19 = vpop.f32.mrb[40].mxu0  ;;  %v2856_v20 = vpop.f32.mrb[40].mxu1  ;;  %v1965_v28 = vsel %vm1830_vm5, %v1766_v17, %v1901_v21 }
 0x165   :  { %v1968_v23 = vsel %vm1833_vm6, %v1769_v12, %v1904_v16  ;;  %v1346_v24 = vadd.f32 %v2856_v20, %v3551_v33  ;;  %v1098_v27 = vpop.f32.mrb[41].mxu0  ;;  %v1337_v57 = vpop.f32.mrb[41].mxu1 }
 0x166   :  { %v2617_v31 = vpack.c.bf16 %v1968_v23, %v1967_v1  ;;  %v1966_v5 = vsel %vm1831_vm7, %v1767_v15, %v1902_v13  ;;  %v1338_v35 = vadd.f32 %v1337_v57, %v3543_v25  ;;  %v3626_v61 = vpop.f32.mrb[42].mxu0  ;;  %v2857_v36 = vpop.f32.mrb[42].mxu1 }
 0x167   :  { %v2612_v39 = vpack.c.bf16 %v1966_v5, %v1965_v28  ;;  %v1772_v40 = vadd.f32 %v3580_v63, %v1346_v24  ;;  %v1349_v43 = vadd.f32 %v2857_v36, %v3555_v37  ;;  %v1101_v44 = vpop.f32.mrb[43].mxu0  ;;  %v1340_v47 = vpop.f32.mrb[43].mxu1 }
 0x168   :  { %2761 = vst [vmem:[%s3897_s4 + $0x18] sm:$0xff] %v2617_v31   ;;  %v1770_v33 = vadd.f32 %v3580_v63, %v1338_v35  ;;  %v1341_v48 = vadd.f32 %v1340_v47, %v3547_v29 }
 0x169   :  { %2760 = vst [vmem:[%s3897_s4 + $0x10] sm:$0xff] %v2612_v39   ;;  %v1907_v25 = vmul.f32 %v3585_v7, %v1772_v40  ;;  %v1773_v51 = vadd.f32 %v3580_v63, %v1349_v43  ;;  %vm1836_vm8 = vcmp.ge.f32.partialorder %v1772_v40, 0.0 }
 0x16a   :  { %v1905_v37 = vmul.f32 %v3585_v7, %v1770_v33  ;;  %v1771_v55 = vadd.f32 %v3580_v63, %v1341_v48  ;;  %vm1834_vm9 = vcmp.ge.f32.partialorder %v1770_v33, 0.0 }
 0x16b   :  { %vm1837_vm10 = vcmp.ge.f32.partialorder %v1773_v51, 0.0  ;;  %v1908_v56 = vmul.f32 %v3585_v7, %v1773_v51  ;;  %v1971_v3 = vsel %vm1836_vm8, %v1772_v40, %v1907_v25 }
 0x16c   :  { %vm1835_vm11 = vcmp.ge.f32.partialorder %v1771_v55, 0.0  ;;  %v1906_v29 = vmul.f32 %v3585_v7, %v1771_v55  ;;  %v3644_v60 = vpop.f32.mrb[44].mxu0  ;;  %v2860_v0 = vpop.f32.mrb[44].mxu1  ;;  %v1969_v12 = vsel %vm1834_vm9, %v1770_v33, %v1905_v37 }
 0x16d   :  { %v1972_v4 = vsel %vm1837_vm10, %v1773_v51, %v1908_v56  ;;  %v1362_v17 = vadd.f32 %v2860_v0, %v3567_v49  ;;  %v1106_v8 = vpop.f32.mrb[45].mxu0  ;;  %v1353_v9 = vpop.f32.mrb[45].mxu1 }
 0x16e   :  { %v2627_v21 = vpack.c.bf16 %v1972_v4, %v1971_v3  ;;  %v1970_v15 = vsel %vm1835_vm11, %v1771_v55, %v1906_v29  ;;  %v1354_v16 = vadd.f32 %v1353_v9, %v3559_v41  ;;  %v3648_v13 = vpop.f32.mrb[46].mxu0  ;;  %v2861_v20 = vpop.f32.mrb[46].mxu1 }
 0x16f   :  { %v2622_v1 = vpack.c.bf16 %v1970_v15, %v1969_v12  ;;  %v1776_v23 = vadd.f32 %v3580_v63, %v1362_v17  ;;  %v1365_v24 = vadd.f32 %v2861_v20, %v3571_v53  ;;  %v1109_v27 = vpop.f32.mrb[47].mxu0  ;;  %v1356_v57 = vpop.f32.mrb[47].mxu1 }
 0x170   :  { %2763 = vst [vmem:[%s3897_s4 + $0x28] sm:$0xff] %v2627_v21   ;;  %v1774_v49 = vadd.f32 %v3580_v63, %v1354_v16  ;;  %v1357_v28 = vadd.f32 %v1356_v57, %v3563_v45 }
 0x171   :  { %2762 = vst [vmem:[%s3897_s4 + $0x20] sm:$0xff] %v2622_v1   ;;  %v1911_v41 = vmul.f32 %v3585_v7, %v1776_v23  ;;  %v1777_v31 = vadd.f32 %v3580_v63, %v1365_v24  ;;  %vm1840_vm12 = vcmp.ge.f32.partialorder %v1776_v23, 0.0 }
 0x172   :  { %v1909_v53 = vmul.f32 %v3585_v7, %v1774_v49  ;;  %v1775_v5 = vadd.f32 %v3580_v63, %v1357_v28  ;;  %vm1838_vm13 = vcmp.ge.f32.partialorder %v1774_v49, 0.0 }
 0x173   :  { %vm1841_vm14 = vcmp.ge.f32.partialorder %v1777_v31, 0.0  ;;  %v1912_v35 = vmul.f32 %v3585_v7, %v1777_v31  ;;  %v1975_v40 = vsel %vm1840_vm12, %v1776_v23, %v1911_v41 }
 0x174   :  { %vm1839_vm15 = vcmp.ge.f32.partialorder %v1775_v5, 0.0  ;;  %v1910_v45 = vmul.f32 %v3585_v7, %v1775_v5  ;;  %v3666_v36 = vpop.f32.mrb[48].mxu0  ;;  %v2864_v39 = vpop.f32.mrb[48].mxu1  ;;  %v1973_v48 = vsel %vm1838_vm13, %v1774_v49, %v1909_v53 }
 0x175   :  { %v1976_v43 = vsel %vm1841_vm14, %v1777_v31, %v1912_v35  ;;  %v1378_v44 = vadd.f32 %v2864_v39, %v3600_v32  ;;  %v1114_v47 = vpop.f32.mrb[49].mxu0  ;;  %v1369_v33 = vpop.f32.mrb[49].mxu1 }
 0x176   :  { %v2637_v25 = vpack.c.bf16 %v1976_v43, %v1975_v40  ;;  %v1974_v51 = vsel %vm1839_vm15, %v1775_v5, %v1910_v45  ;;  %v1370_v37 = vadd.f32 %v1369_v33, %v3575_v59  ;;  %v3670_v55 = vpop.f32.mrb[50].mxu0  ;;  %v2865_v56 = vpop.f32.mrb[50].mxu1 }
 0x177   :  { %v2632_v29 = vpack.c.bf16 %v1974_v51, %v1973_v48  ;;  %v1780_v0 = vadd.f32 %v3580_v63, %v1378_v44  ;;  %v1381_v3 = vadd.f32 %v2865_v56, %v3604_v52  ;;  %v1117_v4 = vpop.f32.mrb[51].mxu0  ;;  %v1372_v17 = vpop.f32.mrb[51].mxu1 }
 0x178   :  { %2765 = vst [vmem:[%s3897_s4 + $0x38] sm:$0xff] %v2637_v25   ;;  %v1778_v32 = vadd.f32 %v3580_v63, %v1370_v37  ;;  %v1373_v8 = vadd.f32 %v1372_v17, %v3588_v11 }
 0x179   :  { %2764 = vst [vmem:[%s3897_s4 + $0x30] sm:$0xff] %v2632_v29   ;;  %v1915_v59 = vmul.f32 %v3585_v7, %v1780_v0  ;;  %v1781_v9 = vadd.f32 %v3580_v63, %v1381_v3  ;;  %vm1844_vm0 = vcmp.ge.f32.partialorder %v1780_v0, 0.0 }
 0x17a   :  { %v1913_v52 = vmul.f32 %v3585_v7, %v1778_v32  ;;  %v1779_v12 = vadd.f32 %v3580_v63, %v1373_v8  ;;  %vm1842_vm1 = vcmp.ge.f32.partialorder %v1778_v32, 0.0 }
 0x17b   :  { %vm1845_vm2 = vcmp.ge.f32.partialorder %v1781_v9, 0.0  ;;  %v1916_v21 = vmul.f32 %v3585_v7, %v1781_v9  ;;  %v1979_v20 = vsel %vm1844_vm0, %v1780_v0, %v1915_v59 }
 0x17c   :  { %vm1843_vm3 = vcmp.ge.f32.partialorder %v1779_v12, 0.0  ;;  %v1914_v11 = vmul.f32 %v3585_v7, %v1779_v12  ;;  %v1120_v15 = vpop.f32.mrb[52].mxu0  ;;  %v2868_v16 = vpop.f32.mrb[52].mxu1  ;;  %v1977_v57 = vsel %vm1842_vm1, %v1778_v32, %v1913_v52 }
 0x17d   :  { %v1980_v1 = vsel %vm1845_vm2, %v1781_v9, %v1916_v21  ;;  %v1394_v23 = vadd.f32 %v2868_v16, %v3644_v60  ;;  %v1122_v24 = vpop.f32.mrb[53].mxu0  ;;  %v1385_v27 = vpop.f32.mrb[53].mxu1 }
 0x17e   :  { %v2647_v49 = vpack.c.bf16 %v1980_v1, %v1979_v20  ;;  %v1978_v28 = vsel %vm1843_vm3, %v1779_v12, %v1914_v11  ;;  %v1386_v41 = vadd.f32 %v1385_v27, %v3622_v19  ;;  %v1123_v31 = vpop.f32.mrb[54].mxu0  ;;  %v2869_v53 = vpop.f32.mrb[54].mxu1 }
 0x17f   :  { %v2642_v5 = vpack.c.bf16 %v1978_v28, %v1977_v57  ;;  %v1784_v35 = vadd.f32 %v3580_v63, %v1394_v23  ;;  %v1397_v45 = vadd.f32 %v2869_v53, %v3648_v13  ;;  %v1125_v39 = vpop.f32.mrb[55].mxu0  ;;  %v1388_v40 = vpop.f32.mrb[55].mxu1 }
 0x180   :  { %2767 = vst [vmem:[%s3897_s4 + $0x48] sm:$0xff] %v2647_v49   ;;  %v1782_v60 = vadd.f32 %v3580_v63, %v1386_v41  ;;  %v1389_v43 = vadd.f32 %v1388_v40, %v3626_v61 }
 0x181   :  { %2766 = vst [vmem:[%s3897_s4 + $0x40] sm:$0xff] %v2642_v5   ;;  %v1919_v19 = vmul.f32 %v3585_v7, %v1784_v35  ;;  %v1785_v44 = vadd.f32 %v3580_v63, %v1397_v45  ;;  %vm1848_vm4 = vcmp.ge.f32.partialorder %v1784_v35, 0.0 }
 0x182   :  { %v1917_v13 = vmul.f32 %v3585_v7, %v1782_v60  ;;  %v1783_v47 = vadd.f32 %v3580_v63, %v1389_v43  ;;  %vm1846_vm5 = vcmp.ge.f32.partialorder %v1782_v60, 0.0 }
 0x183   :  { %vm1849_vm6 = vcmp.ge.f32.partialorder %v1785_v44, 0.0  ;;  %v1920_v33 = vmul.f32 %v3585_v7, %v1785_v44  ;;  %v1983_v51 = vsel %vm1848_vm4, %v1784_v35, %v1919_v19 }
 0x184   :  { %vm1847_vm7 = vcmp.ge.f32.partialorder %v1783_v47, 0.0  ;;  %v1918_v61 = vmul.f32 %v3585_v7, %v1783_v47  ;;  %v1128_v48 = vpop.f32.mrb[56].mxu0  ;;  %v2872_v25 = vpop.f32.mrb[56].mxu1  ;;  %v1981_v3 = vsel %vm1846_vm5, %v1782_v60, %v1917_v13 }
 0x185   :  { %v1984_v37 = vsel %vm1849_vm6, %v1785_v44, %v1920_v33  ;;  %v1410_v56 = vadd.f32 %v2872_v25, %v1120_v15  ;;  %v1130_v29 = vpop.f32.mrb[57].mxu0  ;;  %v1401_v0 = vpop.f32.mrb[57].mxu1 }
 0x186   :  { %v2657_v4 = vpack.c.bf16 %v1984_v37, %v1983_v51  ;;  %v1982_v17 = vsel %vm1847_vm7, %v1783_v47, %v1918_v61  ;;  %v1402_v32 = vadd.f32 %v1401_v0, %v3666_v36  ;;  %v1131_v8 = vpop.f32.mrb[58].mxu0  ;;  %v2873_v59 = vpop.f32.mrb[58].mxu1 }
 0x187   :  { %v2652_v9 = vpack.c.bf16 %v1982_v17, %v1981_v3  ;;  %v1788_v52 = vadd.f32 %v3580_v63, %v1410_v56  ;;  %v1413_v12 = vadd.f32 %v2873_v59, %v1123_v31  ;;  %v1133_v21 = vpop.f32.mrb[59].mxu0  ;;  %v1404_v11 = vpop.f32.mrb[59].mxu1 }
 0x188   :  { %2769 = vst [vmem:[%s3897_s4 + $0x58] sm:$0xff] %v2657_v4   ;;  %v1786_v15 = vadd.f32 %v3580_v63, %v1402_v32  ;;  %v1405_v16 = vadd.f32 %v1404_v11, %v3670_v55 }
 0x189   :  { %2768 = vst [vmem:[%s3897_s4 + $0x50] sm:$0xff] %v2652_v9   ;;  %v1923_v36 = vmul.f32 %v3585_v7, %v1788_v52  ;;  %v1789_v20 = vadd.f32 %v3580_v63, %v1413_v12  ;;  %vm1852_vm8 = vcmp.ge.f32.partialorder %v1788_v52, 0.0 }
 0x18a   :  { %v1921_v1 = vmul.f32 %v3585_v7, %v1786_v15  ;;  %v1787_v23 = vadd.f32 %v3580_v63, %v1405_v16  ;;  %vm1850_vm9 = vcmp.ge.f32.partialorder %v1786_v15, 0.0 }
 0x18b   :  { %vm1853_vm10 = vcmp.ge.f32.partialorder %v1789_v20, 0.0  ;;  %v1924_v24 = vmul.f32 %v3585_v7, %v1789_v20  ;;  %v1987_v49 = vsel %vm1852_vm8, %v1788_v52, %v1923_v36 }
 0x18c   :  { %vm1851_vm11 = vcmp.ge.f32.partialorder %v1787_v23, 0.0  ;;  %v1922_v55 = vmul.f32 %v3585_v7, %v1787_v23  ;;  %v1136_v27 = vpop.f32.mrb[60].mxu0  ;;  %v2876_v57 = vpop.f32.mrb[60].mxu1  ;;  %v1985_v5 = vsel %vm1850_vm9, %v1786_v15, %v1921_v1 }
 0x18d   :  { %v1988_v28 = vsel %vm1853_vm10, %v1789_v20, %v1924_v24  ;;  %v1426_v41 = vadd.f32 %v2876_v57, %v1136_v27  ;;  %v1138_v31 = vpop.f32.mrb[61].mxu0  ;;  %v1417_v53 = vpop.f32.mrb[61].mxu1 }
 0x18e   :  { %v2667_v35 = vpack.c.bf16 %v1988_v28, %v1987_v49  ;;  %v1986_v45 = vsel %vm1851_vm11, %v1787_v23, %v1922_v55  ;;  %v1418_v39 = vadd.f32 %v1417_v53, %v1128_v48  ;;  %v1139_v40 = vpop.f32.mrb[62].mxu0  ;;  %v2877_v60 = vpop.f32.mrb[62].mxu1 }
 0x18f   :  { %v2662_v43 = vpack.c.bf16 %v1986_v45, %v1985_v5  ;;  %v1792_v19 = vadd.f32 %v3580_v63, %v1426_v41  ;;  %v1429_v44 = vadd.f32 %v2877_v60, %v1139_v40  ;;  %v1141_v13 = vpop.f32.mrb[63].mxu0  ;;  %v1420_v47 = vpop.f32.mrb[63].mxu1 }
 0x190   :  { %2771 = vst [vmem:[%s3897_s4 + $0x68] sm:$0xff] %v2667_v35   ;;  %v1790_v33 = vadd.f32 %v3580_v63, %v1418_v39  ;;  %v1421_v61 = vadd.f32 %v1420_v47, %v1131_v8 }
 0x191   :  { %2770 = vst [vmem:[%s3897_s4 + $0x60] sm:$0xff] %v2662_v43   ;;  %v1927_v48 = vmul.f32 %v3585_v7, %v1792_v19  ;;  %v1793_v25 = vadd.f32 %v3580_v63, %v1429_v44  ;;  %vm1856_vm12 = vcmp.ge.f32.partialorder %v1792_v19, 0.0 }
 0x192   :  { %v1925_v51 = vmul.f32 %v3585_v7, %v1790_v33  ;;  %v1791_v37 = vadd.f32 %v3580_v63, %v1421_v61  ;;  %vm1854_vm13 = vcmp.ge.f32.partialorder %v1790_v33, 0.0 }
 0x193   :  { %vm1857_vm14 = vcmp.ge.f32.partialorder %v1793_v25, 0.0  ;;  %v1928_v56 = vmul.f32 %v3585_v7, %v1793_v25  ;;  %v1991_v4 = vsel %vm1856_vm12, %v1792_v19, %v1927_v48 }
 0x194   :  { %vm1855_vm15 = vcmp.ge.f32.partialorder %v1791_v37, 0.0  ;;  %v1926_v29 = vmul.f32 %v3585_v7, %v1791_v37  ;;  %v1144_v0 = vpop.f32.mrb[64].mxu0  ;;  %v2880_v3 = vpop.f32.mrb[64].mxu1  ;;  %v1989_v59 = vsel %vm1854_vm13, %v1790_v33, %v1925_v51 }
 0x195   :  { %v1992_v17 = vsel %vm1857_vm14, %v1793_v25, %v1928_v56  ;;  %v1146_v32 = vpop.f32.mrb[65].mxu0  ;;  %v1433_v8 = vpop.f32.mrb[65].mxu1 }
 0x196   :  { %v2677_v9 = vpack.c.bf16 %v1992_v17, %v1991_v4  ;;  %v1990_v52 = vsel %vm1855_vm15, %v1791_v37, %v1926_v29  ;;  %v1434_v12 = vadd.f32 %v1433_v8, %v1144_v0  ;;  %v1147_v21 = vpop.f32.mrb[66].mxu0  ;;  %v2881_v11 = vpop.f32.mrb[66].mxu1 }
 0x197   :  { %v2672_v15 = vpack.c.bf16 %v1990_v52, %v1989_v59  ;;  %v1149_v16 = vpop.f32.mrb[67].mxu0  ;;  %v1436_v36 = vpop.f32.mrb[67].mxu1 }
 0x198   :  { %2773 = vst [vmem:[%s3897_s4 + $0x78] sm:$0xff] %v2677_v9   ;;  %v1794_v20 = vadd.f32 %v3580_v63, %v1434_v12  ;;  %v1437_v1 = vadd.f32 %v1436_v36, %v1147_v21 }
 0x199   :  { %2772 = vst [vmem:[%s3897_s4 + $0x70] sm:$0xff] %v2672_v15  }
 0x19a   :  { %v1929_v23 = vmul.f32 %v3585_v7, %v1794_v20  ;;  %v1795_v24 = vadd.f32 %v3580_v63, %v1437_v1  ;;  %vm1858_vm0 = vcmp.ge.f32.partialorder %v1794_v20, 0.0 }
 0x19c   :  { %vm1859_vm1 = vcmp.ge.f32.partialorder %v1795_v24, 0.0  ;;  %v1930_v55 = vmul.f32 %v3585_v7, %v1795_v24  ;;  %v1152_v27 = vpop.f32.mrb[68].mxu0  ;;  %v2884_v57 = vpop.f32.mrb[68].mxu1  ;;  %v1993_v31 = vsel %vm1858_vm0, %v1794_v20, %v1929_v23 }
 0x19d   :  { %v1442_v49 = vadd.f32 %v2880_v3, %v1152_v27  ;;  %v1154_v28 = vpop.f32.mrb[69].mxu0  ;;  %v1449_v41 = vpop.f32.mrb[69].mxu1 }
 0x19e   :  { %v1994_v53 = vsel %vm1859_vm1, %v1795_v24, %v1930_v55  ;;  %v1155_v5 = vpop.f32.mrb[70].mxu0  ;;  %v2885_v35 = vpop.f32.mrb[70].mxu1 }
 0x19f   :  { %v2682_v45 = vpack.c.bf16 %v1994_v53, %v1993_v31  ;;  %v1796_v39 = vadd.f32 %v3580_v63, %v1442_v49  ;;  %v1445_v40 = vadd.f32 %v2881_v11, %v1155_v5  ;;  %v1157_v60 = vpop.f32.mrb[71].mxu0  ;;  %v1452_v43 = vpop.f32.mrb[71].mxu1 }
 0x1a1   :  { %2774 = vst [vmem:[%s3897_s4 + $0x80] sm:$0xff] %v2682_v45   ;;  %v1931_v19 = vmul.f32 %v3585_v7, %v1796_v39  ;;  %v1797_v44 = vadd.f32 %v3580_v63, %v1445_v40  ;;  %vm1860_vm2 = vcmp.ge.f32.partialorder %v1796_v39, 0.0 }
 0x1a3   :  { %vm1861_vm3 = vcmp.ge.f32.partialorder %v1797_v44, 0.0  ;;  %v1932_v13 = vmul.f32 %v3585_v7, %v1797_v44  ;;  %v1995_v61 = vsel %vm1860_vm2, %v1796_v39, %v1931_v19 }
 0x1a4   :  { %v1160_v47 = vpop.f32.mrb[72].mxu0  ;;  %v3753_v33 = vpop.f32.mrb[72].mxu1 }
 0x1a5   :  { %v1996_v48 = vsel %vm1861_vm3, %v1797_v44, %v1932_v13  ;;  %v1450_v25 = vadd.f32 %v1449_v41, %v1160_v47  ;;  %v1162_v51 = vpop.f32.mrb[73].mxu0  ;;  %v1465_v37 = vpop.f32.mrb[73].mxu1 }
 0x1a6   :  { %v2687_v56 = vpack.c.bf16 %v1996_v48, %v1995_v61  ;;  %v1163_v29 = vpop.f32.mrb[74].mxu0  ;;  %v3755_v0 = vpop.f32.mrb[74].mxu1 }
 0x1a7   :  { %v1798_v3 = vadd.f32 %v3580_v63, %v1450_v25  ;;  %v1453_v4 = vadd.f32 %v1452_v43, %v1163_v29  ;;  %v1165_v17 = vpop.f32.mrb[75].mxu0  ;;  %v1468_v32 = vpop.f32.mrb[75].mxu1 }
 0x1a8   :  { %2775 = vst [vmem:[%s3897_s4 + $0x88] sm:$0xff] %v2687_v56  }
 0x1a9   :  { %v1933_v8 = vmul.f32 %v3585_v7, %v1798_v3  ;;  %v1799_v59 = vadd.f32 %v3580_v63, %v1453_v4  ;;  %vm1862_vm4 = vcmp.ge.f32.partialorder %v1798_v3, 0.0 }
 0x1ab   :  { %vm1863_vm5 = vcmp.ge.f32.partialorder %v1799_v59, 0.0  ;;  %v1934_v9 = vmul.f32 %v3585_v7, %v1799_v59  ;;  %v1997_v21 = vsel %vm1862_vm4, %v1798_v3, %v1933_v8 }
 0x1ac   :  { %v1168_v52 = vpop.f32.mrb[76].mxu0  ;;  %v3764_v12 = vpop.f32.mrb[76].mxu1 }
 0x1ad   :  { %v1998_v11 = vsel %vm1863_vm5, %v1799_v59, %v1934_v9  ;;  %v1458_v15 = vadd.f32 %v2884_v57, %v1168_v52  ;;  %v1170_v16 = vpop.f32.mrb[77].mxu0  ;;  %v3766_v36 = vpop.f32.mrb[77].mxu1 }
 0x1ae   :  { %v2692_v20 = vpack.c.bf16 %v1998_v11, %v1997_v21  ;;  %v1171_v1 = vpop.f32.mrb[78].mxu0  ;;  %v3768_v23 = vpop.f32.mrb[78].mxu1 }
 0x1af   :  { %v1800_v24 = vadd.f32 %v3580_v63, %v1458_v15  ;;  %v1461_v55 = vadd.f32 %v2885_v35, %v1171_v1  ;;  %v1173_v27 = vpop.f32.mrb[79].mxu0  ;;  %v3771_v49 = vpop.f32.mrb[79].mxu1 }
 0x1b0   :  { %2776 = vst [vmem:[%s3897_s4 + $0x90] sm:$0xff] %v2692_v20  }
 0x1b1   :  { %v1935_v28 = vmul.f32 %v3585_v7, %v1800_v24  ;;  %v1801_v57 = vadd.f32 %v3580_v63, %v1461_v55  ;;  %vm1864_vm6 = vcmp.ge.f32.partialorder %v1800_v24, 0.0 }
 0x1b3   :  { %vm1865_vm7 = vcmp.ge.f32.partialorder %v1801_v57, 0.0  ;;  %v1936_v41 = vmul.f32 %v3585_v7, %v1801_v57  ;;  %v1999_v5 = vsel %vm1864_vm6, %v1800_v24, %v1935_v28 }
 0x1b4   :  { %v1176_v31 = vpop.f32.mrb[80].mxu0  ;;  %v2896_v53 = vpop.f32.mrb[80].mxu1 }
 0x1b5   :  { %v2000_v45 = vsel %vm1865_vm7, %v1801_v57, %v1936_v41  ;;  %v1466_v35 = vadd.f32 %v1465_v37, %v1176_v31  ;;  %v1506_v39 = vadd.f32 %v2896_v53, %v3521_v2  ;;  %v1178_v40 = vpop.f32.mrb[81].mxu0  ;;  %v1497_v60 = vpop.f32.mrb[81].mxu1 }
 0x1b6   :  { %v2697_v43 = vpack.c.bf16 %v2000_v45, %v1999_v5  ;;  %v1498_v19 = vadd.f32 %v1497_v60, %v3515_v58  ;;  %v1179_v44 = vpop.f32.mrb[82].mxu0  ;;  %v2897_v13 = vpop.f32.mrb[82].mxu1 }
 0x1b7   :  { %v1802_v47 = vadd.f32 %v3580_v63, %v1466_v35  ;;  %v1812_v61 = vadd.f32 %v3580_v63, %v1506_v39  ;;  %v1469_v48 = vadd.f32 %v1468_v32, %v1179_v44  ;;  %v1509_v25 = vadd.f32 %v2897_v13, %v3525_v6  ;;  %v1181_v51 = vpop.f32.mrb[83].mxu0  ;;  %v1500_v56 = vpop.f32.mrb[83].mxu1 }
 0x1b8   :  { %2777 = vst [vmem:[%s3897_s4 + $0x98] sm:$0xff] %v2697_v43   ;;  %v1810_v2 = vadd.f32 %v3580_v63, %v1498_v19  ;;  %v1501_v37 = vadd.f32 %v1500_v56, %v3519_v62 }
 0x1b9   :  { %vm1866_vm8 = vcmp.ge.f32.partialorder %v1802_v47, 0.0  ;;  %v1937_v58 = vmul.f32 %v3585_v7, %v1802_v47  ;;  %vm1876_vm9 = vcmp.ge.f32.partialorder %v1812_v61, 0.0  ;;  %v1947_v29 = vmul.f32 %v3585_v7, %v1812_v61 }
 0x1ba   :  { %v1945_v3 = vmul.f32 %v3585_v7, %v1810_v2  ;;  %v1803_v6 = vadd.f32 %v3580_v63, %v1469_v48  ;;  %v1813_v4 = vadd.f32 %v3580_v63, %v1509_v25  ;;  %vm1874_vm10 = vcmp.ge.f32.partialorder %v1810_v2, 0.0 }
 0x1bb   :  { %v2001_v17 = vsel %vm1866_vm8, %v1802_v47, %v1937_v58  ;;  %v1811_v32 = vadd.f32 %v3580_v63, %v1501_v37  ;;  %v2011_v8 = vsel %vm1876_vm9, %v1812_v61, %v1947_v29 }
 0x1bc   :  { %vm1867_vm11 = vcmp.ge.f32.partialorder %v1803_v6, 0.0  ;;  %v1938_v62 = vmul.f32 %v3585_v7, %v1803_v6  ;;  %vm1877_vm12 = vcmp.ge.f32.partialorder %v1813_v4, 0.0  ;;  %v1184_v59 = vpop.f32.mrb[84].mxu0  ;;  %v2900_v9 = vpop.f32.mrb[84].mxu1  ;;  %v1948_v52 = vmul.f32 %v3585_v7, %v1813_v4 }
 0x1bd   :  { %vm1875_vm13 = vcmp.ge.f32.partialorder %v1811_v32, 0.0  ;;  %v1946_v21 = vmul.f32 %v3585_v7, %v1811_v32  ;;  %v1474_v11 = vadd.f32 %v3753_v33, %v1184_v59  ;;  %v1186_v15 = vpop.f32.mrb[85].mxu0  ;;  %v1513_v16 = vpop.f32.mrb[85].mxu1  ;;  %v2009_v20 = vsel %vm1874_vm10, %v1810_v2, %v1945_v3 }
 0x1be   :  { %v2002_v1 = vsel %vm1867_vm11, %v1803_v6, %v1938_v62  ;;  %v1522_v24 = vadd.f32 %v2900_v9, %v3537_v18  ;;  %v1514_v55 = vadd.f32 %v1513_v16, %v3529_v10  ;;  %v1187_v27 = vpop.f32.mrb[86].mxu0  ;;  %v2901_v28 = vpop.f32.mrb[86].mxu1  ;;  %v2012_v41 = vsel %vm1877_vm12, %v1813_v4, %v1948_v52 }
 0x1bf   :  { %v2702_v57 = vpack.c.bf16 %v2002_v1, %v2001_v17  ;;  %v2010_v31 = vsel %vm1875_vm13, %v1811_v32, %v1946_v21  ;;  %v1804_v53 = vadd.f32 %v3580_v63, %v1474_v11  ;;  %v1189_v5 = vpop.f32.mrb[87].mxu0  ;;  %v1516_v45 = vpop.f32.mrb[87].mxu1  ;;  %v2727_v35 = vpack.c.bf16 %v2012_v41, %v2011_v8 }
 0x1c0   :  { %v2722_v33 = vpack.c.bf16 %v2010_v31, %v2009_v20  ;;  %v1816_v39 = vadd.f32 %v3580_v63, %v1522_v24  ;;  %v1814_v40 = vadd.f32 %v3580_v63, %v1514_v55  ;;  %v1477_v18 = vadd.f32 %v3755_v0, %v1187_v27 }
 0x1c1   :  { %2778 = vst [vmem:[%s3897_s4 + $0xa0] sm:$0xff] %v2702_v57   ;;  %vm1868_vm14 = vcmp.ge.f32.partialorder %v1804_v53, 0.0  ;;  %v1939_v10 = vmul.f32 %v3585_v7, %v1804_v53  ;;  %v1525_v60 = vadd.f32 %v2901_v28, %v3541_v22  ;;  %2783 = vst [vmem:[%s3897_s4 + $0xc8] sm:$0xff] %v2727_v35   ;;  %v1517_v13 = vadd.f32 %v1516_v45, %v3533_v14 }
 0x1c2   :  { %2782 = vst [vmem:[%s3897_s4 + $0xc0] sm:$0xff] %v2722_v33   ;;  %vm1880_vm15 = vcmp.ge.f32.partialorder %v1816_v39, 0.0  ;;  %v1951_v43 = vmul.f32 %v3585_v7, %v1816_v39  ;;  %v1805_v19 = vadd.f32 %v3580_v63, %v1477_v18  ;;  %vm1878_vm0 = vcmp.ge.f32.partialorder %v1814_v40, 0.0 }
 0x1c3   :  { %v1817_v44 = vadd.f32 %v3580_v63, %v1525_v60  ;;  %v2003_v0 = vsel %vm1868_vm14, %v1804_v53, %v1939_v10  ;;  %v1949_v22 = vmul.f32 %v3585_v7, %v1814_v40  ;;  %v1815_v37 = vadd.f32 %v3580_v63, %v1517_v13 }
 0x1c4   :  { %v2015_v47 = vsel %vm1880_vm15, %v1816_v39, %v1951_v43  ;;  %v1192_v61 = vpop.f32.mrb[88].mxu0  ;;  %v2904_v48 = vpop.f32.mrb[88].mxu1  ;;  %vm1869_vm1 = vcmp.ge.f32.partialorder %v1805_v19, 0.0  ;;  %v1940_v25 = vmul.f32 %v3585_v7, %v1805_v19 }
 0x1c5   :  { %vm1881_vm2 = vcmp.ge.f32.partialorder %v1817_v44, 0.0  ;;  %v1952_v51 = vmul.f32 %v3585_v7, %v1817_v44  ;;  %v1194_v56 = vpop.f32.mrb[89].mxu0  ;;  %v1529_v2 = vpop.f32.mrb[89].mxu1  ;;  %v1482_v58 = vadd.f32 %v3766_v36, %v1192_v61  ;;  %v1538_v14 = vadd.f32 %v2904_v48, %v3553_v34 }
 0x1c6   :  { %v1530_v29 = vadd.f32 %v1529_v2, %v3545_v26  ;;  %v1195_v3 = vpop.f32.mrb[90].mxu0  ;;  %v2905_v6 = vpop.f32.mrb[90].mxu1  ;;  %v2004_v4 = vsel %vm1869_vm1, %v1805_v19, %v1940_v25  ;;  %vm1879_vm3 = vcmp.ge.f32.partialorder %v1815_v37, 0.0  ;;  %v1950_v21 = vmul.f32 %v3585_v7, %v1815_v37 }
 0x1c7   :  { %v2016_v17 = vsel %vm1881_vm2, %v1817_v44, %v1952_v51  ;;  %v1485_v32 = vadd.f32 %v3771_v49, %v1195_v3  ;;  %v1541_v8 = vadd.f32 %v2905_v6, %v3557_v38  ;;  %v1197_v62 = vpop.f32.mrb[91].mxu0  ;;  %v1532_v59 = vpop.f32.mrb[91].mxu1  ;;  %v2707_v9 = vpack.c.bf16 %v2004_v4, %v2003_v0 }
 0x1c8   :  { %v2737_v52 = vpack.c.bf16 %v2016_v17, %v2015_v47  ;;  %v1806_v36 = vadd.f32 %v3580_v63, %v1482_v58  ;;  %v1820_v34 = vadd.f32 %v3580_v63, %v1538_v14  ;;  %v1818_v26 = vadd.f32 %v3580_v63, %v1530_v29 }
 0x1c9   :  { %v1807_v11 = vadd.f32 %v3580_v63, %v1485_v32  ;;  %v2013_v15 = vsel %vm1878_vm0, %v1814_v40, %v1949_v22  ;;  %2779 = vst [vmem:[%s3897_s4 + $0xa8] sm:$0xff] %v2707_v9   ;;  %v2014_v38 = vsel %vm1879_vm3, %v1815_v37, %v1950_v21  ;;  %v1821_v49 = vadd.f32 %v3580_v63, %v1541_v8 }
 0x1ca   :  { %2785 = vst [vmem:[%s3897_s4 + $0xd8] sm:$0xff] %v2737_v52   ;;  %v1533_v16 = vadd.f32 %v1532_v59, %v3549_v30  ;;  %v2732_v20 = vpack.c.bf16 %v2014_v38, %v2013_v15  ;;  %vm1870_vm4 = vcmp.ge.f32.partialorder %v1806_v36, 0.0  ;;  %v1941_v1 = vmul.f32 %v3585_v7, %v1806_v36 }
 0x1cb   :  { %vm1884_vm5 = vcmp.ge.f32.partialorder %v1820_v34, 0.0  ;;  %v1955_v24 = vmul.f32 %v3585_v7, %v1820_v34  ;;  %vm1882_vm6 = vcmp.ge.f32.partialorder %v1818_v26, 0.0  ;;  %vm1871_vm7 = vcmp.ge.f32.partialorder %v1807_v11, 0.0 }
 0x1cc   :  { %v1200_v55 = vpop.f32.mrb[92].mxu0  ;;  %v2908_v27 = vpop.f32.mrb[92].mxu1  ;;  %2784 = vst [vmem:[%s3897_s4 + $0xd0] sm:$0xff] %v2732_v20   ;;  %v1953_v28 = vmul.f32 %v3585_v7, %v1818_v26  ;;  %v1942_v57 = vmul.f32 %v3585_v7, %v1807_v11  ;;  %vm1885_vm8 = vcmp.ge.f32.partialorder %v1821_v49, 0.0  ;;  %v1956_v30 = vmul.f32 %v3585_v7, %v1821_v49 }
 0x1cd   :  { %v1202_v41 = vpop.f32.mrb[93].mxu0  ;;  %v1545_v31 = vpop.f32.mrb[93].mxu1  ;;  %v2005_v53 = vsel %vm1870_vm4, %v1806_v36, %v1941_v1  ;;  %v2019_v5 = vsel %vm1884_vm5, %v1820_v34, %v1955_v24  ;;  %v1819_v45 = vadd.f32 %v3580_v63, %v1533_v16  ;;  %v1490_v35 = vadd.f32 %v3764_v12, %v1200_v55 }
 0x1ce   :  { %v1203_v33 = vpop.f32.mrb[94].mxu0  ;;  %v2909_v39 = vpop.f32.mrb[94].mxu1  ;;  %v2006_v40 = vsel %vm1871_vm7, %v1807_v11, %v1942_v57  ;;  %v2020_v10 = vsel %vm1885_vm8, %v1821_v49, %v1956_v30  ;;  %v1554_v18 = vadd.f32 %v2908_v27, %v3569_v50  ;;  %v1546_v60 = vadd.f32 %v1545_v31, %v3561_v42 }
 0x1cf   :  { %v1205_v43 = vpop.f32.mrb[95].mxu0  ;;  %v1548_v19 = vpop.f32.mrb[95].mxu1  ;;  %v2712_v44 = vpack.c.bf16 %v2006_v40, %v2005_v53  ;;  %v2747_v13 = vpack.c.bf16 %v2020_v10, %v2019_v5  ;;  %vm1883_vm9 = vcmp.ge.f32.partialorder %v1819_v45, 0.0  ;;  %v1954_v0 = vmul.f32 %v3585_v7, %v1819_v45 }
 0x1d0   :  { %v1808_v47 = vadd.f32 %v3580_v63, %v1490_v35  ;;  %v1824_v12 = vadd.f32 %v3580_v63, %v1554_v18  ;;  %v1822_v22 = vadd.f32 %v3580_v63, %v1546_v60  ;;  %v1493_v61 = vadd.f32 %v3768_v23, %v1203_v33 }
 0x1d1   :  { %v2017_v48 = vsel %vm1882_vm6, %v1818_v26, %v1953_v28  ;;  %2780 = vst [vmem:[%s3897_s4 + $0xb0] sm:$0xff] %v2712_v44   ;;  %2787 = vst [vmem:[%s3897_s4 + $0xe8] sm:$0xff] %v2747_v13   ;;  %v2018_v42 = vsel %vm1883_vm9, %v1819_v45, %v1954_v0  ;;  %v1557_v50 = vadd.f32 %v2909_v39, %v3573_v54 }
 0x1d2   :  { %v1549_v25 = vadd.f32 %v1548_v19, %v3565_v46  ;;  %v2742_v51 = vpack.c.bf16 %v2018_v42, %v2017_v48  ;;  %vm1872_vm10 = vcmp.ge.f32.partialorder %v1808_v47, 0.0  ;;  %v1943_v56 = vmul.f32 %v3585_v7, %v1808_v47 }
 0x1d3   :  { %v1959_v23 = vmul.f32 %v3585_v7, %v1824_v12  ;;  %v1809_v2 = vadd.f32 %v3580_v63, %v1493_v61  ;;  %vm1888_vm11 = vcmp.ge.f32.partialorder %v1824_v12, 0.0  ;;  %v1957_v37 = vmul.f32 %v3585_v7, %v1822_v22 }
 0x1d4   :  { %2786 = vst [vmem:[%s3897_s4 + $0xe0] sm:$0xff] %v2742_v51   ;;  %v1825_v58 = vadd.f32 %v3580_v63, %v1557_v50  ;;  %v1823_v54 = vadd.f32 %v3580_v63, %v1549_v25  ;;  %vm1886_vm12 = vcmp.ge.f32.partialorder %v1822_v22, 0.0  ;;  %v2007_v3 = vsel %vm1872_vm10, %v1808_v47, %v1943_v56 }
 0x1d5   :  { %vm1873_vm13 = vcmp.ge.f32.partialorder %v1809_v2, 0.0  ;;  %v1944_v46 = vmul.f32 %v3585_v7, %v1809_v2  ;;  %v2023_v6 = vsel %vm1888_vm11, %v1824_v12, %v1959_v23  ;;  %v2021_v17 = vsel %vm1886_vm12, %v1822_v22, %v1957_v37 }
 0x1d6   :  { %vm1889_vm14 = vcmp.ge.f32.partialorder %v1825_v58, 0.0  ;;  %v1960_v14 = vmul.f32 %v3585_v7, %v1825_v58  ;;  %vm1887_vm15 = vcmp.ge.f32.partialorder %v1823_v54, 0.0  ;;  %v1958_v29 = vmul.f32 %v3585_v7, %v1823_v54 }
 0x1d7   :  { %v2008_v4 = vsel %vm1873_vm13, %v1809_v2, %v1944_v46 }
 0x1d8   :  { %v2717_v32 = vpack.c.bf16 %v2008_v4, %v2007_v3  ;;  %v2024_v8 = vsel %vm1889_vm14, %v1825_v58, %v1960_v14  ;;  %v2022_v62 = vsel %vm1887_vm15, %v1823_v54, %v1958_v29 }
 0x1d9   :  { %v2757_v59 = vpack.c.bf16 %v2024_v8, %v2023_v6  ;;  %v2752_v63 = vpack.c.bf16 %v2022_v62, %v2021_v17 }
 0x1da   :  { %2781 = vst [vmem:[%s3897_s4 + $0xb8] sm:$0xff] %v2717_v32  }
 0x1db   :  { %2789 = vst [vmem:[%s3897_s4 + $0xf8] sm:$0xff] %v2757_v59   ;;  %2788 = vst [vmem:[%s3897_s4 + $0xf0] sm:$0xff] %v2752_v63  }

// kernel: vxm_dense_forward.22
= control target key start
LH: loop header
LB: loop body
LE: loop exit
PB: predicated region body
PF: predicated region fallthrough
CT: control target
= control target key end

     0   :  { %v2286_v0 = vmov 0   ;;  %s2818_s1 = inlined_call_operand.vmem [shape: bf16[256,128], index: 1, kind: input, shape index: {}]   ;;  %s2819_s0 = inlined_call_operand.vmem [shape: bf16[512,256], index: 0, kind: input, shape index: {}]   ;;  %s2820_s2 = inlined_call_operand.vmem [shape: f32[1,128], index: 2, kind: input, shape index: {}]   ;;  %s2821_s3 = inlined_call_operand.vmem [shape: f32[1,128], index: 3, kind: input, shape index: {}]   ;;  %s2822_s4 = inlined_call_operand.vmem [shape: bf16[512,128], index: 4, kind: output, shape index: {}]  }
   0x1   :  { %662 = vmatprep.subr.bf16.mxu0 %v2286_v0  ;;  %2141 = vmatprep.subr.bf16.mxu1 %v2286_v0  ;;  %v2174_v1 = vld [vmem:[%s2818_s1] sm:$0xff]   ;;  %v2175_v2 = vld [vmem:[%s2818_s1 + $0x8] sm:$0xff]   ;;  %v2176_v3 = vld [vmem:[%s2818_s1 + $0x10] sm:$0xff]  }
   0x2   :  { %663 = vmatpush1.bf16.msra.mxu0 %v2174_v1  ;;  %2157 = vmatpush1.bf16.msra.mxu1 %v2174_v1  ;;  %v2177_v4 = vld [vmem:[%s2818_s1 + $0x18] sm:$0xff]   ;;  %v2178_v5 = vld [vmem:[%s2818_s1 + $0x20] sm:$0xff]   ;;  %v2179_v7 = vld [vmem:[%s2818_s1 + $0x28] sm:$0xff]  }
   0x3   :  { %664 = vmatprep.subr.bf16.mxu0 %v2286_v0  ;;  %2142 = vmatprep.subr.bf16.mxu1 %v2286_v0  ;;  %v2192_v6 = vld [vmem:[%s2819_s0 + $0x4] ss:$8 sps:$4 sm:$0xff]   ;;  %v2180_v9 = vld [vmem:[%s2818_s1 + $0x30] sm:$0xff]   ;;  %v2181_v10 = vld [vmem:[%s2818_s1 + $0x38] sm:$0xff]  }
   0x4   :  { %v2195_v8 = vld [vmem:[%s2819_s0 + $0x104] ss:$8 sps:$4 sm:$0xff]   ;;  %694 = vmatprep.mubr.bf16.mxu0 %v2192_v6  ;;  %v2184_v13 = vld [vmem:[%s2818_s1 + $0x50] sm:$0xff]   ;;  %v2185_v14 = vld [vmem:[%s2818_s1 + $0x58] sm:$0xff]  }
   0x5   :  { %822 = vmatprep.mubr.bf16.mxu1 %v2195_v8  ;;  %v2182_v11 = vld [vmem:[%s2818_s1 + $0x40] sm:$0xff]   ;;  %v2183_v12 = vld [vmem:[%s2818_s1 + $0x48] sm:$0xff]   ;;  %v2188_v17 = vld [vmem:[%s2818_s1 + $0x70] sm:$0xff]  }
   0x6   :  { %665 = vmatpush1.bf16.msra.mxu0 %v2175_v2  ;;  %2158 = vmatpush1.bf16.msra.mxu1 %v2175_v2  ;;  %v2186_v15 = vld [vmem:[%s2818_s1 + $0x60] sm:$0xff]   ;;  %v2187_v16 = vld [vmem:[%s2818_s1 + $0x68] sm:$0xff]   ;;  %v2189_v18 = vld [vmem:[%s2818_s1 + $0x78] sm:$0xff]  }
   0x7   :  { %666 = vmatprep.subr.bf16.mxu0 %v2286_v0  ;;  %2143 = vmatprep.subr.bf16.mxu1 %v2286_v0  ;;  %v2190_v19 = vld [vmem:[%s2819_s0] ss:$8 sps:$4 sm:$0xff]   ;;  %v2196_v21 = vld [vmem:[%s2819_s0 + $0x14] ss:$8 sps:$4 sm:$0xff]   ;;  %v2200_v23 = vld [vmem:[%s2819_s0 + $0x10] ss:$8 sps:$4 sm:$0xff]  }
   0x8   :  { %v2193_v20 = vld [vmem:[%s2819_s0 + $0x100] ss:$8 sps:$4 sm:$0xff]   ;;  %v2198_v22 = vld [vmem:[%s2819_s0 + $0x114] ss:$8 sps:$4 sm:$0xff]   ;;  %v2201_v24 = vld [vmem:[%s2819_s0 + $0x110] ss:$8 sps:$4 sm:$0xff]  }
   0x9   :  { %v2202_v25 = vld [vmem:[%s2819_s0 + $0x24] ss:$8 sps:$4 sm:$0xff]   ;;  %v2206_v27 = vld [vmem:[%s2819_s0 + $0x20] ss:$8 sps:$4 sm:$0xff]   ;;  %v2208_v29 = vld [vmem:[%s2819_s0 + $0x34] ss:$8 sps:$4 sm:$0xff]  }
   0xa   :  { %667 = vmatpush1.bf16.msra.mxu0 %v2176_v3  ;;  %2159 = vmatpush1.bf16.msra.mxu1 %v2176_v3  ;;  %v2204_v26 = vld [vmem:[%s2819_s0 + $0x124] ss:$8 sps:$4 sm:$0xff]   ;;  %v2207_v28 = vld [vmem:[%s2819_s0 + $0x120] ss:$8 sps:$4 sm:$0xff]   ;;  %v2210_v30 = vld [vmem:[%s2819_s0 + $0x134] ss:$8 sps:$4 sm:$0xff]  }
   0xb   :  { %668 = vmatprep.subr.bf16.mxu0 %v2286_v0  ;;  %2144 = vmatprep.subr.bf16.mxu1 %v2286_v0  ;;  %v2212_v31 = vld [vmem:[%s2819_s0 + $0x30] ss:$8 sps:$4 sm:$0xff]   ;;  %v2214_v33 = vld [vmem:[%s2819_s0 + $0x44] ss:$8 sps:$4 sm:$0xff]   ;;  %v2218_v35 = vld [vmem:[%s2819_s0 + $0x40] ss:$8 sps:$4 sm:$0xff]  }
   0xc   :  { %v2213_v32 = vld [vmem:[%s2819_s0 + $0x130] ss:$8 sps:$4 sm:$0xff]   ;;  %v2216_v34 = vld [vmem:[%s2819_s0 + $0x144] ss:$8 sps:$4 sm:$0xff]   ;;  %v2219_v36 = vld [vmem:[%s2819_s0 + $0x140] ss:$8 sps:$4 sm:$0xff]  }
   0xd   :  { %v2220_v37 = vld [vmem:[%s2819_s0 + $0x54] ss:$8 sps:$4 sm:$0xff]   ;;  %v2224_v39 = vld [vmem:[%s2819_s0 + $0x50] ss:$8 sps:$4 sm:$0xff]   ;;  %v2226_v41 = vld [vmem:[%s2819_s0 + $0x64] ss:$8 sps:$4 sm:$0xff]  }
   0xe   :  { %669 = vmatpush1.bf16.msra.mxu0 %v2177_v4  ;;  %2160 = vmatpush1.bf16.msra.mxu1 %v2177_v4  ;;  %v2222_v38 = vld [vmem:[%s2819_s0 + $0x154] ss:$8 sps:$4 sm:$0xff]   ;;  %v2225_v40 = vld [vmem:[%s2819_s0 + $0x150] ss:$8 sps:$4 sm:$0xff]   ;;  %v2228_v42 = vld [vmem:[%s2819_s0 + $0x164] ss:$8 sps:$4 sm:$0xff]  }
   0xf   :  { %670 = vmatprep.subr.bf16.mxu0 %v2286_v0  ;;  %2145 = vmatprep.subr.bf16.mxu1 %v2286_v0  ;;  %v2230_v43 = vld [vmem:[%s2819_s0 + $0x60] ss:$8 sps:$4 sm:$0xff]   ;;  %v2232_v45 = vld [vmem:[%s2819_s0 + $0x74] ss:$8 sps:$4 sm:$0xff]   ;;  %v2236_v47 = vld [vmem:[%s2819_s0 + $0x70] ss:$8 sps:$4 sm:$0xff]  }
  0x10   :  { %v2231_v44 = vld [vmem:[%s2819_s0 + $0x160] ss:$8 sps:$4 sm:$0xff]   ;;  %v2234_v46 = vld [vmem:[%s2819_s0 + $0x174] ss:$8 sps:$4 sm:$0xff]   ;;  %v2237_v48 = vld [vmem:[%s2819_s0 + $0x170] ss:$8 sps:$4 sm:$0xff]  }
  0x11   :  { %v2238_v49 = vld [vmem:[%s2819_s0 + $0x84] ss:$8 sps:$4 sm:$0xff]   ;;  %v2242_v51 = vld [vmem:[%s2819_s0 + $0x80] ss:$8 sps:$4 sm:$0xff]   ;;  %v2244_v53 = vld [vmem:[%s2819_s0 + $0x94] ss:$8 sps:$4 sm:$0xff]  }
  0x12   :  { %671 = vmatpush1.bf16.msra.mxu0 %v2178_v5  ;;  %2161 = vmatpush1.bf16.msra.mxu1 %v2178_v5  ;;  %v2240_v50 = vld [vmem:[%s2819_s0 + $0x184] ss:$8 sps:$4 sm:$0xff]   ;;  %v2243_v52 = vld [vmem:[%s2819_s0 + $0x180] ss:$8 sps:$4 sm:$0xff]   ;;  %v2246_v54 = vld [vmem:[%s2819_s0 + $0x194] ss:$8 sps:$4 sm:$0xff]  }
  0x13   :  { %672 = vmatprep.subr.bf16.mxu0 %v2286_v0  ;;  %2146 = vmatprep.subr.bf16.mxu1 %v2286_v0  ;;  %v2248_v55 = vld [vmem:[%s2819_s0 + $0x90] ss:$8 sps:$4 sm:$0xff]   ;;  %v2250_v57 = vld [vmem:[%s2819_s0 + $0xa4] ss:$8 sps:$4 sm:$0xff]   ;;  %v2254_v59 = vld [vmem:[%s2819_s0 + $0xa0] ss:$8 sps:$4 sm:$0xff]  }
  0x14   :  { %v2249_v56 = vld [vmem:[%s2819_s0 + $0x190] ss:$8 sps:$4 sm:$0xff]   ;;  %v2252_v58 = vld [vmem:[%s2819_s0 + $0x1a4] ss:$8 sps:$4 sm:$0xff]   ;;  %v2255_v60 = vld [vmem:[%s2819_s0 + $0x1a0] ss:$8 sps:$4 sm:$0xff]  }
  0x15   :  { %v2256_v61 = vld [vmem:[%s2819_s0 + $0xb4] ss:$8 sps:$4 sm:$0xff]   ;;  %v2260_v63 = vld [vmem:[%s2819_s0 + $0xb0] ss:$8 sps:$4 sm:$0xff]   ;;  %v2262_v1 = vld [vmem:[%s2819_s0 + $0xc4] ss:$8 sps:$4 sm:$0xff]  }
  0x16   :  { %673 = vmatpush1.bf16.msra.mxu0 %v2179_v7  ;;  %2162 = vmatpush1.bf16.msra.mxu1 %v2179_v7  ;;  %v2258_v62 = vld [vmem:[%s2819_s0 + $0x1b4] ss:$8 sps:$4 sm:$0xff]   ;;  %v2264_v2 = vld [vmem:[%s2819_s0 + $0x1c4] ss:$8 sps:$4 sm:$0xff]   ;;  %v2266_v3 = vld [vmem:[%s2819_s0 + $0xc0] ss:$8 sps:$4 sm:$0xff]  }
  0x17   :  { %674 = vmatprep.subr.bf16.mxu0 %v2286_v0  ;;  %2147 = vmatprep.subr.bf16.mxu1 %v2286_v0  ;;  %v2267_v4 = vld [vmem:[%s2819_s0 + $0x1c0] ss:$8 sps:$4 sm:$0xff]   ;;  %v2268_v5 = vld [vmem:[%s2819_s0 + $0xd4] ss:$8 sps:$4 sm:$0xff]   ;;  %v2272_v7 = vld [vmem:[%s2819_s0 + $0xd0] ss:$8 sps:$4 sm:$0xff]  }
  0x18   :  { %v2270_v6 = vld [vmem:[%s2819_s0 + $0x1d4] ss:$8 sps:$4 sm:$0xff]   ;;  %v2273_v8 = vld [vmem:[%s2819_s0 + $0x1d0] ss:$8 sps:$4 sm:$0xff]  }
  0x1a   :  { %675 = vmatpush1.bf16.msra.mxu0 %v2180_v9  ;;  %2163 = vmatpush1.bf16.msra.mxu1 %v2180_v9  ;;  %v2274_v9 = vld [vmem:[%s2819_s0 + $0xe4] ss:$8 sps:$4 sm:$0xff]  }
  0x1b   :  { %676 = vmatprep.subr.bf16.mxu0 %v2286_v0  ;;  %2148 = vmatprep.subr.bf16.mxu1 %v2286_v0 }
  0x1e   :  { %677 = vmatpush1.bf16.msra.mxu0 %v2181_v10  ;;  %2164 = vmatpush1.bf16.msra.mxu1 %v2181_v10  ;;  %v2276_v10 = vld [vmem:[%s2819_s0 + $0x1e4] ss:$8 sps:$4 sm:$0xff]  }
  0x1f   :  { %678 = vmatprep.subr.bf16.mxu0 %v2286_v0  ;;  %2149 = vmatprep.subr.bf16.mxu1 %v2286_v0 }
  0x22   :  { %679 = vmatpush1.bf16.msra.mxu0 %v2182_v11  ;;  %2165 = vmatpush1.bf16.msra.mxu1 %v2182_v11  ;;  %v2278_v11 = vld [vmem:[%s2819_s0 + $0xe0] ss:$8 sps:$4 sm:$0xff]  }
  0x23   :  { %680 = vmatprep.subr.bf16.mxu0 %v2286_v0  ;;  %2150 = vmatprep.subr.bf16.mxu1 %v2286_v0 }
  0x26   :  { %681 = vmatpush1.bf16.msra.mxu0 %v2183_v12  ;;  %2166 = vmatpush1.bf16.msra.mxu1 %v2183_v12  ;;  %v2279_v12 = vld [vmem:[%s2819_s0 + $0x1e0] ss:$8 sps:$4 sm:$0xff]  }
  0x27   :  { %682 = vmatprep.subr.bf16.mxu0 %v2286_v0  ;;  %2151 = vmatprep.subr.bf16.mxu1 %v2286_v0 }
  0x2a   :  { %683 = vmatpush1.bf16.msra.mxu0 %v2184_v13  ;;  %2167 = vmatpush1.bf16.msra.mxu1 %v2184_v13  ;;  %v2280_v13 = vld [vmem:[%s2819_s0 + $0xf4] ss:$8 sps:$4 sm:$0xff]  }
  0x2b   :  { %684 = vmatprep.subr.bf16.mxu0 %v2286_v0  ;;  %2152 = vmatprep.subr.bf16.mxu1 %v2286_v0 }
  0x2e   :  { %685 = vmatpush1.bf16.msra.mxu0 %v2185_v14  ;;  %2168 = vmatpush1.bf16.msra.mxu1 %v2185_v14  ;;  %v2282_v14 = vld [vmem:[%s2819_s0 + $0x1f4] ss:$8 sps:$4 sm:$0xff]  }
  0x2f   :  { %686 = vmatprep.subr.bf16.mxu0 %v2286_v0  ;;  %2153 = vmatprep.subr.bf16.mxu1 %v2286_v0 }
  0x32   :  { %687 = vmatpush1.bf16.msra.mxu0 %v2186_v15  ;;  %2169 = vmatpush1.bf16.msra.mxu1 %v2186_v15  ;;  %v2284_v15 = vld [vmem:[%s2819_s0 + $0xf0] ss:$8 sps:$4 sm:$0xff]  }
  0x33   :  { %688 = vmatprep.subr.bf16.mxu0 %v2286_v0  ;;  %2154 = vmatprep.subr.bf16.mxu1 %v2286_v0 }
  0x36   :  { %689 = vmatpush1.bf16.msra.mxu0 %v2187_v16  ;;  %2170 = vmatpush1.bf16.msra.mxu1 %v2187_v16  ;;  %v2285_v16 = vld [vmem:[%s2819_s0 + $0x1f0] ss:$8 sps:$4 sm:$0xff]  }
  0x37   :  { %690 = vmatprep.subr.bf16.mxu0 %v2286_v0  ;;  %2155 = vmatprep.subr.bf16.mxu1 %v2286_v0 }
  0x3a   :  { %691 = vmatpush1.bf16.msra.mxu0 %v2188_v17  ;;  %2171 = vmatpush1.bf16.msra.mxu1 %v2188_v17  ;;  %v2587_v17 = vld [vmem:[%s2820_s2] ss:$0 sm:$0xff] }
  0x3b   :  { %692 = vmatprep.subr.bf16.mxu0 %v2286_v0  ;;  %2156 = vmatprep.subr.bf16.mxu1 %v2286_v0  ;;  %v2261_v0 = vld [vmem:[%s2819_s0 + $0x1b0] ss:$8 sps:$4 sm:$0xff]  }
  0x3e   :  { %693 = vmatpush1.bf16.msra.mxu0 %v2189_v18  ;;  %2172 = vmatpush1.bf16.msra.mxu1 %v2189_v18 }
  0x41   :  { %695 = vmatmul.mubr.bf16.vlgmr.msra.gmra.mrb[0].mxu0 %v2190_v19  ;;  %823 = vmatmul.mubr.bf16.vlgmr.msra.gmra.mrb[0].mxu1 %v2193_v20 }
  0x42   :  { %702 = vmatprep.mubr.bf16.mxu0 %v2196_v21  ;;  %830 = vmatprep.mubr.bf16.mxu1 %v2198_v22  ;;  %v2593_v21 = vld [vmem:[%s2821_s3] ss:$0 sm:$0xff] }
  0x49   :  { %703 = vmatmul.mubr.bf16.gmra.mrb[4].mxu0 %v2200_v23  ;;  %831 = vmatmul.mubr.bf16.gmra.mrb[4].mxu1 %v2201_v24 }
  0x4a   :  { %710 = vmatprep.mubr.bf16.mxu0 %v2202_v25  ;;  %838 = vmatprep.mubr.bf16.mxu1 %v2204_v26 }
  0x51   :  { %711 = vmatmul.mubr.bf16.gmra.mrb[8].mxu0 %v2206_v27  ;;  %839 = vmatmul.mubr.bf16.gmra.mrb[8].mxu1 %v2207_v28 }
  0x52   :  { %718 = vmatprep.mubr.bf16.mxu0 %v2208_v29  ;;  %846 = vmatprep.mubr.bf16.mxu1 %v2210_v30 }
  0x59   :  { %719 = vmatmul.mubr.bf16.gmra.mrb[12].mxu0 %v2212_v31  ;;  %847 = vmatmul.mubr.bf16.gmra.mrb[12].mxu1 %v2213_v32 }
  0x5a   :  { %726 = vmatprep.mubr.bf16.mxu0 %v2214_v33  ;;  %854 = vmatprep.mubr.bf16.mxu1 %v2216_v34 }
  0x61   :  { %727 = vmatmul.mubr.bf16.gmra.mrb[16].mxu0 %v2218_v35  ;;  %855 = vmatmul.mubr.bf16.gmra.mrb[16].mxu1 %v2219_v36 }
  0x62   :  { %734 = vmatprep.mubr.bf16.mxu0 %v2220_v37  ;;  %862 = vmatprep.mubr.bf16.mxu1 %v2222_v38 }
  0x69   :  { %735 = vmatmul.mubr.bf16.gmra.mrb[20].mxu0 %v2224_v39  ;;  %863 = vmatmul.mubr.bf16.gmra.mrb[20].mxu1 %v2225_v40 }
  0x6a   :  { %742 = vmatprep.mubr.bf16.mxu0 %v2226_v41  ;;  %870 = vmatprep.mubr.bf16.mxu1 %v2228_v42 }
  0x71   :  { %743 = vmatmul.mubr.bf16.gmra.mrb[24].mxu0 %v2230_v43  ;;  %871 = vmatmul.mubr.bf16.gmra.mrb[24].mxu1 %v2231_v44 }
  0x72   :  { %750 = vmatprep.mubr.bf16.mxu0 %v2232_v45  ;;  %878 = vmatprep.mubr.bf16.mxu1 %v2234_v46 }
  0x79   :  { %751 = vmatmul.mubr.bf16.gmra.mrb[28].mxu0 %v2236_v47  ;;  %879 = vmatmul.mubr.bf16.gmra.mrb[28].mxu1 %v2237_v48 }
  0x7a   :  { %758 = vmatprep.mubr.bf16.mxu0 %v2238_v49  ;;  %886 = vmatprep.mubr.bf16.mxu1 %v2240_v50 }
  0x81   :  { %759 = vmatmul.mubr.bf16.gmra.mrb[32].mxu0 %v2242_v51  ;;  %887 = vmatmul.mubr.bf16.gmra.mrb[32].mxu1 %v2243_v52 }
  0x82   :  { %766 = vmatprep.mubr.bf16.mxu0 %v2244_v53  ;;  %894 = vmatprep.mubr.bf16.mxu1 %v2246_v54 }
  0x89   :  { %767 = vmatmul.mubr.bf16.gmra.mrb[36].mxu0 %v2248_v55  ;;  %895 = vmatmul.mubr.bf16.gmra.mrb[36].mxu1 %v2249_v56 }
  0x8a   :  { %774 = vmatprep.mubr.bf16.mxu0 %v2250_v57  ;;  %902 = vmatprep.mubr.bf16.mxu1 %v2252_v58 }
  0x91   :  { %775 = vmatmul.mubr.bf16.gmra.mrb[40].mxu0 %v2254_v59  ;;  %903 = vmatmul.mubr.bf16.gmra.mrb[40].mxu1 %v2255_v60 }
  0x92   :  { %782 = vmatprep.mubr.bf16.mxu0 %v2256_v61  ;;  %910 = vmatprep.mubr.bf16.mxu1 %v2258_v62 }
  0x99   :  { %783 = vmatmul.mubr.bf16.gmra.mrb[44].mxu0 %v2260_v63  ;;  %911 = vmatmul.mubr.bf16.gmra.mrb[44].mxu1 %v2261_v0 }
  0x9a   :  { %790 = vmatprep.mubr.bf16.mxu0 %v2262_v1  ;;  %918 = vmatprep.mubr.bf16.mxu1 %v2264_v2 }
  0xa1   :  { %791 = vmatmul.mubr.bf16.gmra.mrb[48].mxu0 %v2266_v3  ;;  %919 = vmatmul.mubr.bf16.gmra.mrb[48].mxu1 %v2267_v4 }
  0xa2   :  { %798 = vmatprep.mubr.bf16.mxu0 %v2268_v5  ;;  %926 = vmatprep.mubr.bf16.mxu1 %v2270_v6 }
  0xa9   :  { %799 = vmatmul.mubr.bf16.gmra.mrb[52].mxu0 %v2272_v7  ;;  %927 = vmatmul.mubr.bf16.gmra.mrb[52].mxu1 %v2273_v8 }
  0xaa   :  { %806 = vmatprep.mubr.bf16.mxu0 %v2274_v9  ;;  %934 = vmatprep.mubr.bf16.mxu1 %v2276_v10 }
  0xb1   :  { %807 = vmatmul.mubr.bf16.gmra.mrb[56].mxu0 %v2278_v11  ;;  %935 = vmatmul.mubr.bf16.gmra.mrb[56].mxu1 %v2279_v12 }
  0xb2   :  { %814 = vmatprep.mubr.bf16.mxu0 %v2280_v13  ;;  %942 = vmatprep.mubr.bf16.mxu1 %v2282_v14 }
  0xb9   :  { %815 = vmatmul.mubr.bf16.gmra.mrb[60].mxu0 %v2284_v15  ;;  %943 = vmatmul.mubr.bf16.gmra.mrb[60].mxu1 %v2285_v16 }
 0x114   :  { %v696_v18 = vpop.f32.mrb[0].mxu0  ;;  %v824_v19 = vpop.f32.mrb[0].mxu1 }
 0x115   :  { %v1153_v20 = vadd.f32 %v2587_v17, %v696_v18  ;;  %v1185_v22 = vadd.f32 %v2587_v17, %v824_v19  ;;  %v698_v23 = vpop.f32.mrb[1].mxu0  ;;  %v826_v24 = vpop.f32.mrb[1].mxu1 }
 0x116   :  { %v699_v25 = vpop.f32.mrb[2].mxu0  ;;  %v827_v26 = vpop.f32.mrb[2].mxu1 }
 0x117   :  { %v701_v27 = vpop.f32.mrb[3].mxu0  ;;  %v829_v28 = vpop.f32.mrb[3].mxu1  ;;  %v1288_v29 = vmul.f32 %v2593_v21, %v1153_v20  ;;  %v1320_v30 = vmul.f32 %v2593_v21, %v1185_v22  ;;  %v1154_v31 = vadd.f32 %v2587_v17, %v699_v25  ;;  %v1186_v32 = vadd.f32 %v2587_v17, %v827_v26 }
 0x118   :  { %vm1217_vm0 = vcmp.ge.f32.partialorder %v1153_v20, 0.0  ;;  %vm1249_vm1 = vcmp.ge.f32.partialorder %v1185_v22, 0.0 }
 0x119   :  { %vm1218_vm2 = vcmp.ge.f32.partialorder %v1154_v31, 0.0  ;;  %v1289_v33 = vmul.f32 %v2593_v21, %v1154_v31  ;;  %vm1250_vm3 = vcmp.ge.f32.partialorder %v1186_v32, 0.0  ;;  %v1321_v34 = vmul.f32 %v2593_v21, %v1186_v32 }
 0x11a   :  { %v1352_v35 = vsel %vm1217_vm0, %v1153_v20, %v1288_v29  ;;  %v1384_v36 = vsel %vm1249_vm1, %v1185_v22, %v1320_v30 }
 0x11b   :  { %v1353_v37 = vsel %vm1218_vm2, %v1154_v31, %v1289_v33  ;;  %v1385_v38 = vsel %vm1250_vm3, %v1186_v32, %v1321_v34 }
 0x11c   :  { %v704_v39 = vpop.f32.mrb[4].mxu0  ;;  %v832_v40 = vpop.f32.mrb[4].mxu1  ;;  %v1953_v41 = vpack.c.bf16 %v1353_v37, %v1352_v35  ;;  %v2033_v42 = vpack.c.bf16 %v1385_v38, %v1384_v36 }
 0x11d   :  { %v1155_v43 = vadd.f32 %v2587_v17, %v704_v39  ;;  %v1187_v44 = vadd.f32 %v2587_v17, %v832_v40  ;;  %v706_v45 = vpop.f32.mrb[5].mxu0  ;;  %v834_v46 = vpop.f32.mrb[5].mxu1 }
 0x11e   :  { %v707_v47 = vpop.f32.mrb[6].mxu0  ;;  %v835_v48 = vpop.f32.mrb[6].mxu1  ;;  %1954 = vst [vmem:[%s2822_s4] sm:$0xff] %v1953_v41   ;;  %2125 = vst [vmem:[%s2822_s4 + $0x80] sm:$0xff] %v2033_v42  }
 0x11f   :  { %v709_v49 = vpop.f32.mrb[7].mxu0  ;;  %v837_v50 = vpop.f32.mrb[7].mxu1  ;;  %v1290_v51 = vmul.f32 %v2593_v21, %v1155_v43  ;;  %v1322_v52 = vmul.f32 %v2593_v21, %v1187_v44  ;;  %v1156_v53 = vadd.f32 %v2587_v17, %v707_v47  ;;  %v1188_v54 = vadd.f32 %v2587_v17, %v835_v48 }
 0x120   :  { %vm1219_vm4 = vcmp.ge.f32.partialorder %v1155_v43, 0.0  ;;  %vm1251_vm5 = vcmp.ge.f32.partialorder %v1187_v44, 0.0 }
 0x121   :  { %vm1220_vm6 = vcmp.ge.f32.partialorder %v1156_v53, 0.0  ;;  %v1291_v55 = vmul.f32 %v2593_v21, %v1156_v53  ;;  %vm1252_vm7 = vcmp.ge.f32.partialorder %v1188_v54, 0.0  ;;  %v1323_v56 = vmul.f32 %v2593_v21, %v1188_v54 }
 0x122   :  { %v1354_v57 = vsel %vm1219_vm4, %v1155_v43, %v1290_v51  ;;  %v1386_v58 = vsel %vm1251_vm5, %v1187_v44, %v1322_v52 }
 0x123   :  { %v1355_v59 = vsel %vm1220_vm6, %v1156_v53, %v1291_v55  ;;  %v1387_v60 = vsel %vm1252_vm7, %v1188_v54, %v1323_v56 }
 0x124   :  { %v712_v61 = vpop.f32.mrb[8].mxu0  ;;  %v840_v62 = vpop.f32.mrb[8].mxu1  ;;  %v1958_v63 = vpack.c.bf16 %v1355_v59, %v1354_v57  ;;  %v2038_v0 = vpack.c.bf16 %v1387_v60, %v1386_v58 }
 0x125   :  { %v1157_v1 = vadd.f32 %v2587_v17, %v712_v61  ;;  %v1189_v2 = vadd.f32 %v2587_v17, %v840_v62  ;;  %v714_v3 = vpop.f32.mrb[9].mxu0  ;;  %v842_v4 = vpop.f32.mrb[9].mxu1 }
 0x126   :  { %v715_v5 = vpop.f32.mrb[10].mxu0  ;;  %v843_v6 = vpop.f32.mrb[10].mxu1  ;;  %2110 = vst [vmem:[%s2822_s4 + $0x8] sm:$0xff] %v1958_v63   ;;  %2126 = vst [vmem:[%s2822_s4 + $0x88] sm:$0xff] %v2038_v0  }
 0x127   :  { %v717_v7 = vpop.f32.mrb[11].mxu0  ;;  %v845_v8 = vpop.f32.mrb[11].mxu1  ;;  %v1292_v9 = vmul.f32 %v2593_v21, %v1157_v1  ;;  %v1324_v10 = vmul.f32 %v2593_v21, %v1189_v2  ;;  %v1158_v11 = vadd.f32 %v2587_v17, %v715_v5  ;;  %v1190_v12 = vadd.f32 %v2587_v17, %v843_v6 }
 0x128   :  { %vm1221_vm8 = vcmp.ge.f32.partialorder %v1157_v1, 0.0  ;;  %vm1253_vm9 = vcmp.ge.f32.partialorder %v1189_v2, 0.0 }
 0x129   :  { %vm1222_vm10 = vcmp.ge.f32.partialorder %v1158_v11, 0.0  ;;  %v1293_v13 = vmul.f32 %v2593_v21, %v1158_v11  ;;  %vm1254_vm11 = vcmp.ge.f32.partialorder %v1190_v12, 0.0  ;;  %v1325_v14 = vmul.f32 %v2593_v21, %v1190_v12 }
 0x12a   :  { %v1356_v15 = vsel %vm1221_vm8, %v1157_v1, %v1292_v9  ;;  %v1388_v16 = vsel %vm1253_vm9, %v1189_v2, %v1324_v10 }
 0x12b   :  { %v1357_v18 = vsel %vm1222_vm10, %v1158_v11, %v1293_v13  ;;  %v1389_v19 = vsel %vm1254_vm11, %v1190_v12, %v1325_v14 }
 0x12c   :  { %v720_v20 = vpop.f32.mrb[12].mxu0  ;;  %v848_v22 = vpop.f32.mrb[12].mxu1  ;;  %v1963_v23 = vpack.c.bf16 %v1357_v18, %v1356_v15  ;;  %v2043_v24 = vpack.c.bf16 %v1389_v19, %v1388_v16 }
 0x12d   :  { %v1159_v25 = vadd.f32 %v2587_v17, %v720_v20  ;;  %v1191_v26 = vadd.f32 %v2587_v17, %v848_v22  ;;  %v722_v27 = vpop.f32.mrb[13].mxu0  ;;  %v850_v28 = vpop.f32.mrb[13].mxu1 }
 0x12e   :  { %v723_v29 = vpop.f32.mrb[14].mxu0  ;;  %v851_v30 = vpop.f32.mrb[14].mxu1  ;;  %2111 = vst [vmem:[%s2822_s4 + $0x10] sm:$0xff] %v1963_v23   ;;  %2127 = vst [vmem:[%s2822_s4 + $0x90] sm:$0xff] %v2043_v24  }
 0x12f   :  { %v725_v31 = vpop.f32.mrb[15].mxu0  ;;  %v853_v32 = vpop.f32.mrb[15].mxu1  ;;  %v1294_v33 = vmul.f32 %v2593_v21, %v1159_v25  ;;  %v1326_v34 = vmul.f32 %v2593_v21, %v1191_v26  ;;  %v1160_v35 = vadd.f32 %v2587_v17, %v723_v29  ;;  %v1192_v36 = vadd.f32 %v2587_v17, %v851_v30 }
 0x130   :  { %vm1223_vm12 = vcmp.ge.f32.partialorder %v1159_v25, 0.0  ;;  %vm1255_vm13 = vcmp.ge.f32.partialorder %v1191_v26, 0.0 }
 0x131   :  { %vm1224_vm14 = vcmp.ge.f32.partialorder %v1160_v35, 0.0  ;;  %v1295_v37 = vmul.f32 %v2593_v21, %v1160_v35  ;;  %vm1256_vm15 = vcmp.ge.f32.partialorder %v1192_v36, 0.0  ;;  %v1327_v38 = vmul.f32 %v2593_v21, %v1192_v36 }
 0x132   :  { %v1358_v39 = vsel %vm1223_vm12, %v1159_v25, %v1294_v33  ;;  %v1390_v40 = vsel %vm1255_vm13, %v1191_v26, %v1326_v34 }
 0x133   :  { %v1359_v41 = vsel %vm1224_vm14, %v1160_v35, %v1295_v37  ;;  %v1391_v42 = vsel %vm1256_vm15, %v1192_v36, %v1327_v38 }
 0x134   :  { %v728_v43 = vpop.f32.mrb[16].mxu0  ;;  %v856_v44 = vpop.f32.mrb[16].mxu1  ;;  %v1968_v45 = vpack.c.bf16 %v1359_v41, %v1358_v39  ;;  %v2048_v46 = vpack.c.bf16 %v1391_v42, %v1390_v40 }
 0x135   :  { %v1161_v47 = vadd.f32 %v2587_v17, %v728_v43  ;;  %v1193_v48 = vadd.f32 %v2587_v17, %v856_v44  ;;  %v730_v49 = vpop.f32.mrb[17].mxu0  ;;  %v858_v50 = vpop.f32.mrb[17].mxu1 }
 0x136   :  { %v731_v51 = vpop.f32.mrb[18].mxu0  ;;  %v859_v52 = vpop.f32.mrb[18].mxu1  ;;  %2112 = vst [vmem:[%s2822_s4 + $0x18] sm:$0xff] %v1968_v45   ;;  %2128 = vst [vmem:[%s2822_s4 + $0x98] sm:$0xff] %v2048_v46  }
 0x137   :  { %v733_v53 = vpop.f32.mrb[19].mxu0  ;;  %v861_v54 = vpop.f32.mrb[19].mxu1  ;;  %v1296_v55 = vmul.f32 %v2593_v21, %v1161_v47  ;;  %v1328_v56 = vmul.f32 %v2593_v21, %v1193_v48  ;;  %v1162_v57 = vadd.f32 %v2587_v17, %v731_v51  ;;  %v1194_v58 = vadd.f32 %v2587_v17, %v859_v52 }
 0x138   :  { %vm1225_vm0 = vcmp.ge.f32.partialorder %v1161_v47, 0.0  ;;  %vm1257_vm1 = vcmp.ge.f32.partialorder %v1193_v48, 0.0 }
 0x139   :  { %vm1226_vm2 = vcmp.ge.f32.partialorder %v1162_v57, 0.0  ;;  %v1297_v59 = vmul.f32 %v2593_v21, %v1162_v57  ;;  %vm1258_vm3 = vcmp.ge.f32.partialorder %v1194_v58, 0.0  ;;  %v1329_v60 = vmul.f32 %v2593_v21, %v1194_v58 }
 0x13a   :  { %v1360_v61 = vsel %vm1225_vm0, %v1161_v47, %v1296_v55  ;;  %v1392_v62 = vsel %vm1257_vm1, %v1193_v48, %v1328_v56 }
 0x13b   :  { %v1361_v63 = vsel %vm1226_vm2, %v1162_v57, %v1297_v59  ;;  %v1393_v0 = vsel %vm1258_vm3, %v1194_v58, %v1329_v60 }
 0x13c   :  { %v736_v1 = vpop.f32.mrb[20].mxu0  ;;  %v864_v2 = vpop.f32.mrb[20].mxu1  ;;  %v1973_v3 = vpack.c.bf16 %v1361_v63, %v1360_v61  ;;  %v2053_v4 = vpack.c.bf16 %v1393_v0, %v1392_v62 }
 0x13d   :  { %v1163_v5 = vadd.f32 %v2587_v17, %v736_v1  ;;  %v1195_v6 = vadd.f32 %v2587_v17, %v864_v2  ;;  %v738_v7 = vpop.f32.mrb[21].mxu0  ;;  %v866_v8 = vpop.f32.mrb[21].mxu1 }
 0x13e   :  { %v739_v9 = vpop.f32.mrb[22].mxu0  ;;  %v867_v10 = vpop.f32.mrb[22].mxu1  ;;  %2113 = vst [vmem:[%s2822_s4 + $0x20] sm:$0xff] %v1973_v3   ;;  %2129 = vst [vmem:[%s2822_s4 + $0xa0] sm:$0xff] %v2053_v4  }
 0x13f   :  { %v741_v11 = vpop.f32.mrb[23].mxu0  ;;  %v869_v12 = vpop.f32.mrb[23].mxu1  ;;  %v1298_v13 = vmul.f32 %v2593_v21, %v1163_v5  ;;  %v1330_v14 = vmul.f32 %v2593_v21, %v1195_v6  ;;  %v1164_v15 = vadd.f32 %v2587_v17, %v739_v9  ;;  %v1196_v16 = vadd.f32 %v2587_v17, %v867_v10 }
 0x140   :  { %vm1227_vm4 = vcmp.ge.f32.partialorder %v1163_v5, 0.0  ;;  %vm1259_vm5 = vcmp.ge.f32.partialorder %v1195_v6, 0.0 }
 0x141   :  { %vm1228_vm6 = vcmp.ge.f32.partialorder %v1164_v15, 0.0  ;;  %v1299_v18 = vmul.f32 %v2593_v21, %v1164_v15  ;;  %vm1260_vm7 = vcmp.ge.f32.partialorder %v1196_v16, 0.0  ;;  %v1331_v19 = vmul.f32 %v2593_v21, %v1196_v16 }
 0x142   :  { %v1362_v20 = vsel %vm1227_vm4, %v1163_v5, %v1298_v13  ;;  %v1394_v22 = vsel %vm1259_vm5, %v1195_v6, %v1330_v14 }
 0x143   :  { %v1363_v23 = vsel %vm1228_vm6, %v1164_v15, %v1299_v18  ;;  %v1395_v24 = vsel %vm1260_vm7, %v1196_v16, %v1331_v19 }
 0x144   :  { %v744_v25 = vpop.f32.mrb[24].mxu0  ;;  %v872_v26 = vpop.f32.mrb[24].mxu1  ;;  %v1978_v27 = vpack.c.bf16 %v1363_v23, %v1362_v20  ;;  %v2058_v28 = vpack.c.bf16 %v1395_v24, %v1394_v22 }
 0x145   :  { %v1165_v29 = vadd.f32 %v2587_v17, %v744_v25  ;;  %v1197_v30 = vadd.f32 %v2587_v17, %v872_v26  ;;  %v746_v31 = vpop.f32.mrb[25].mxu0  ;;  %v874_v32 = vpop.f32.mrb[25].mxu1 }
 0x146   :  { %v747_v33 = vpop.f32.mrb[26].mxu0  ;;  %v875_v34 = vpop.f32.mrb[26].mxu1  ;;  %2114 = vst [vmem:[%s2822_s4 + $0x28] sm:$0xff] %v1978_v27   ;;  %2130 = vst [vmem:[%s2822_s4 + $0xa8] sm:$0xff] %v2058_v28  }
 0x147   :  { %v749_v35 = vpop.f32.mrb[27].mxu0  ;;  %v877_v36 = vpop.f32.mrb[27].mxu1  ;;  %v1300_v37 = vmul.f32 %v2593_v21, %v1165_v29  ;;  %v1332_v38 = vmul.f32 %v2593_v21, %v1197_v30  ;;  %v1166_v39 = vadd.f32 %v2587_v17, %v747_v33  ;;  %v1198_v40 = vadd.f32 %v2587_v17, %v875_v34 }
 0x148   :  { %vm1229_vm8 = vcmp.ge.f32.partialorder %v1165_v29, 0.0  ;;  %vm1261_vm9 = vcmp.ge.f32.partialorder %v1197_v30, 0.0 }
 0x149   :  { %vm1230_vm10 = vcmp.ge.f32.partialorder %v1166_v39, 0.0  ;;  %v1301_v41 = vmul.f32 %v2593_v21, %v1166_v39  ;;  %vm1262_vm11 = vcmp.ge.f32.partialorder %v1198_v40, 0.0  ;;  %v1333_v42 = vmul.f32 %v2593_v21, %v1198_v40 }
 0x14a   :  { %v1364_v43 = vsel %vm1229_vm8, %v1165_v29, %v1300_v37  ;;  %v1396_v44 = vsel %vm1261_vm9, %v1197_v30, %v1332_v38 }
 0x14b   :  { %v1365_v45 = vsel %vm1230_vm10, %v1166_v39, %v1301_v41  ;;  %v1397_v46 = vsel %vm1262_vm11, %v1198_v40, %v1333_v42 }
 0x14c   :  { %v752_v47 = vpop.f32.mrb[28].mxu0  ;;  %v880_v48 = vpop.f32.mrb[28].mxu1  ;;  %v1983_v49 = vpack.c.bf16 %v1365_v45, %v1364_v43  ;;  %v2063_v50 = vpack.c.bf16 %v1397_v46, %v1396_v44 }
 0x14d   :  { %v1167_v51 = vadd.f32 %v2587_v17, %v752_v47  ;;  %v1199_v52 = vadd.f32 %v2587_v17, %v880_v48  ;;  %v754_v53 = vpop.f32.mrb[29].mxu0  ;;  %v882_v54 = vpop.f32.mrb[29].mxu1 }
 0x14e   :  { %v755_v55 = vpop.f32.mrb[30].mxu0  ;;  %v883_v56 = vpop.f32.mrb[30].mxu1  ;;  %2115 = vst [vmem:[%s2822_s4 + $0x30] sm:$0xff] %v1983_v49   ;;  %2131 = vst [vmem:[%s2822_s4 + $0xb0] sm:$0xff] %v2063_v50  }
 0x14f   :  { %v757_v57 = vpop.f32.mrb[31].mxu0  ;;  %v885_v58 = vpop.f32.mrb[31].mxu1  ;;  %v1302_v59 = vmul.f32 %v2593_v21, %v1167_v51  ;;  %v1334_v60 = vmul.f32 %v2593_v21, %v1199_v52  ;;  %v1168_v61 = vadd.f32 %v2587_v17, %v755_v55  ;;  %v1200_v62 = vadd.f32 %v2587_v17, %v883_v56 }
 0x150   :  { %vm1231_vm12 = vcmp.ge.f32.partialorder %v1167_v51, 0.0  ;;  %vm1263_vm13 = vcmp.ge.f32.partialorder %v1199_v52, 0.0 }
 0x151   :  { %vm1232_vm14 = vcmp.ge.f32.partialorder %v1168_v61, 0.0  ;;  %v1303_v63 = vmul.f32 %v2593_v21, %v1168_v61  ;;  %vm1264_vm15 = vcmp.ge.f32.partialorder %v1200_v62, 0.0  ;;  %v1335_v0 = vmul.f32 %v2593_v21, %v1200_v62 }
 0x152   :  { %v1366_v1 = vsel %vm1231_vm12, %v1167_v51, %v1302_v59  ;;  %v1398_v2 = vsel %vm1263_vm13, %v1199_v52, %v1334_v60 }
 0x153   :  { %v1367_v3 = vsel %vm1232_vm14, %v1168_v61, %v1303_v63  ;;  %v1399_v4 = vsel %vm1264_vm15, %v1200_v62, %v1335_v0 }
 0x154   :  { %v760_v5 = vpop.f32.mrb[32].mxu0  ;;  %v888_v6 = vpop.f32.mrb[32].mxu1  ;;  %v1988_v7 = vpack.c.bf16 %v1367_v3, %v1366_v1  ;;  %v2068_v8 = vpack.c.bf16 %v1399_v4, %v1398_v2 }
 0x155   :  { %v1169_v9 = vadd.f32 %v2587_v17, %v760_v5  ;;  %v1201_v10 = vadd.f32 %v2587_v17, %v888_v6  ;;  %v762_v11 = vpop.f32.mrb[33].mxu0  ;;  %v890_v12 = vpop.f32.mrb[33].mxu1 }
 0x156   :  { %v763_v13 = vpop.f32.mrb[34].mxu0  ;;  %v891_v14 = vpop.f32.mrb[34].mxu1  ;;  %2116 = vst [vmem:[%s2822_s4 + $0x38] sm:$0xff] %v1988_v7   ;;  %2132 = vst [vmem:[%s2822_s4 + $0xb8] sm:$0xff] %v2068_v8  }
 0x157   :  { %v765_v15 = vpop.f32.mrb[35].mxu0  ;;  %v893_v16 = vpop.f32.mrb[35].mxu1  ;;  %v1304_v18 = vmul.f32 %v2593_v21, %v1169_v9  ;;  %v1336_v19 = vmul.f32 %v2593_v21, %v1201_v10  ;;  %v1170_v20 = vadd.f32 %v2587_v17, %v763_v13  ;;  %v1202_v22 = vadd.f32 %v2587_v17, %v891_v14 }
 0x158   :  { %vm1233_vm0 = vcmp.ge.f32.partialorder %v1169_v9, 0.0  ;;  %vm1265_vm1 = vcmp.ge.f32.partialorder %v1201_v10, 0.0 }
 0x159   :  { %vm1234_vm2 = vcmp.ge.f32.partialorder %v1170_v20, 0.0  ;;  %v1305_v23 = vmul.f32 %v2593_v21, %v1170_v20  ;;  %vm1266_vm3 = vcmp.ge.f32.partialorder %v1202_v22, 0.0  ;;  %v1337_v24 = vmul.f32 %v2593_v21, %v1202_v22 }
 0x15a   :  { %v1368_v25 = vsel %vm1233_vm0, %v1169_v9, %v1304_v18  ;;  %v1400_v26 = vsel %vm1265_vm1, %v1201_v10, %v1336_v19 }
 0x15b   :  { %v1369_v27 = vsel %vm1234_vm2, %v1170_v20, %v1305_v23  ;;  %v1401_v28 = vsel %vm1266_vm3, %v1202_v22, %v1337_v24 }
 0x15c   :  { %v768_v29 = vpop.f32.mrb[36].mxu0  ;;  %v896_v30 = vpop.f32.mrb[36].mxu1  ;;  %v1993_v31 = vpack.c.bf16 %v1369_v27, %v1368_v25  ;;  %v2073_v32 = vpack.c.bf16 %v1401_v28, %v1400_v26 }
 0x15d   :  { %v1171_v33 = vadd.f32 %v2587_v17, %v768_v29  ;;  %v1203_v34 = vadd.f32 %v2587_v17, %v896_v30  ;;  %v770_v35 = vpop.f32.mrb[37].mxu0  ;;  %v898_v36 = vpop.f32.mrb[37].mxu1 }
 0x15e   :  { %v771_v37 = vpop.f32.mrb[38].mxu0  ;;  %v899_v38 = vpop.f32.mrb[38].mxu1  ;;  %2117 = vst [vmem:[%s2822_s4 + $0x40] sm:$0xff] %v1993_v31   ;;  %2133 = vst [vmem:[%s2822_s4 + $0xc0] sm:$0xff] %v2073_v32  }
 0x15f   :  { %v773_v39 = vpop.f32.mrb[39].mxu0  ;;  %v901_v40 = vpop.f32.mrb[39].mxu1  ;;  %v1306_v41 = vmul.f32 %v2593_v21, %v1171_v33  ;;  %v1338_v42 = vmul.f32 %v2593_v21, %v1203_v34  ;;  %v1172_v43 = vadd.f32 %v2587_v17, %v771_v37  ;;  %v1204_v44 = vadd.f32 %v2587_v17, %v899_v38 }
 0x160   :  { %vm1235_vm4 = vcmp.ge.f32.partialorder %v1171_v33, 0.0  ;;  %vm1267_vm5 = vcmp.ge.f32.partialorder %v1203_v34, 0.0 }
 0x161   :  { %vm1236_vm6 = vcmp.ge.f32.partialorder %v1172_v43, 0.0  ;;  %v1307_v45 = vmul.f32 %v2593_v21, %v1172_v43  ;;  %vm1268_vm7 = vcmp.ge.f32.partialorder %v1204_v44, 0.0  ;;  %v1339_v46 = vmul.f32 %v2593_v21, %v1204_v44 }
 0x162   :  { %v1370_v47 = vsel %vm1235_vm4, %v1171_v33, %v1306_v41  ;;  %v1402_v48 = vsel %vm1267_vm5, %v1203_v34, %v1338_v42 }
 0x163   :  { %v1371_v49 = vsel %vm1236_vm6, %v1172_v43, %v1307_v45  ;;  %v1403_v50 = vsel %vm1268_vm7, %v1204_v44, %v1339_v46 }
 0x164   :  { %v776_v51 = vpop.f32.mrb[40].mxu0  ;;  %v904_v52 = vpop.f32.mrb[40].mxu1  ;;  %v1998_v53 = vpack.c.bf16 %v1371_v49, %v1370_v47  ;;  %v2078_v54 = vpack.c.bf16 %v1403_v50, %v1402_v48 }
 0x165   :  { %v1173_v55 = vadd.f32 %v2587_v17, %v776_v51  ;;  %v1205_v56 = vadd.f32 %v2587_v17, %v904_v52  ;;  %v778_v57 = vpop.f32.mrb[41].mxu0  ;;  %v906_v58 = vpop.f32.mrb[41].mxu1 }
 0x166   :  { %v779_v59 = vpop.f32.mrb[42].mxu0  ;;  %v907_v60 = vpop.f32.mrb[42].mxu1  ;;  %2118 = vst [vmem:[%s2822_s4 + $0x48] sm:$0xff] %v1998_v53   ;;  %2134 = vst [vmem:[%s2822_s4 + $0xc8] sm:$0xff] %v2078_v54  }
 0x167   :  { %v781_v61 = vpop.f32.mrb[43].mxu0  ;;  %v909_v62 = vpop.f32.mrb[43].mxu1  ;;  %v1308_v63 = vmul.f32 %v2593_v21, %v1173_v55  ;;  %v1340_v0 = vmul.f32 %v2593_v21, %v1205_v56  ;;  %v1174_v1 = vadd.f32 %v2587_v17, %v779_v59  ;;  %v1206_v2 = vadd.f32 %v2587_v17, %v907_v60 }
 0x168   :  { %vm1237_vm8 = vcmp.ge.f32.partialorder %v1173_v55, 0.0  ;;  %vm1269_vm9 = vcmp.ge.f32.partialorder %v1205_v56, 0.0 }
 0x169   :  { %vm1238_vm10 = vcmp.ge.f32.partialorder %v1174_v1, 0.0  ;;  %v1309_v3 = vmul.f32 %v2593_v21, %v1174_v1  ;;  %vm1270_vm11 = vcmp.ge.f32.partialorder %v1206_v2, 0.0  ;;  %v1341_v4 = vmul.f32 %v2593_v21, %v1206_v2 }
 0x16a   :  { %v1372_v5 = vsel %vm1237_vm8, %v1173_v55, %v1308_v63  ;;  %v1404_v6 = vsel %vm1269_vm9, %v1205_v56, %v1340_v0 }
 0x16b   :  { %v1373_v7 = vsel %vm1238_vm10, %v1174_v1, %v1309_v3  ;;  %v1405_v8 = vsel %vm1270_vm11, %v1206_v2, %v1341_v4 }
 0x16c   :  { %v784_v9 = vpop.f32.mrb[44].mxu0  ;;  %v912_v10 = vpop.f32.mrb[44].mxu1  ;;  %v2003_v11 = vpack.c.bf16 %v1373_v7, %v1372_v5  ;;  %v2083_v12 = vpack.c.bf16 %v1405_v8, %v1404_v6 }
 0x16d   :  { %v1175_v13 = vadd.f32 %v2587_v17, %v784_v9  ;;  %v1207_v14 = vadd.f32 %v2587_v17, %v912_v10  ;;  %v786_v15 = vpop.f32.mrb[45].mxu0  ;;  %v914_v16 = vpop.f32.mrb[45].mxu1 }
 0x16e   :  { %v787_v18 = vpop.f32.mrb[46].mxu0  ;;  %v915_v19 = vpop.f32.mrb[46].mxu1  ;;  %2119 = vst [vmem:[%s2822_s4 + $0x50] sm:$0xff] %v2003_v11   ;;  %2135 = vst [vmem:[%s2822_s4 + $0xd0] sm:$0xff] %v2083_v12  }
 0x16f   :  { %v789_v20 = vpop.f32.mrb[47].mxu0  ;;  %v917_v22 = vpop.f32.mrb[47].mxu1  ;;  %v1310_v23 = vmul.f32 %v2593_v21, %v1175_v13  ;;  %v1342_v24 = vmul.f32 %v2593_v21, %v1207_v14  ;;  %v1176_v25 = vadd.f32 %v2587_v17, %v787_v18  ;;  %v1208_v26 = vadd.f32 %v2587_v17, %v915_v19 }
 0x170   :  { %vm1239_vm12 = vcmp.ge.f32.partialorder %v1175_v13, 0.0  ;;  %vm1271_vm13 = vcmp.ge.f32.partialorder %v1207_v14, 0.0 }
 0x171   :  { %vm1240_vm14 = vcmp.ge.f32.partialorder %v1176_v25, 0.0  ;;  %v1311_v27 = vmul.f32 %v2593_v21, %v1176_v25  ;;  %vm1272_vm15 = vcmp.ge.f32.partialorder %v1208_v26, 0.0  ;;  %v1343_v28 = vmul.f32 %v2593_v21, %v1208_v26 }
 0x172   :  { %v1374_v29 = vsel %vm1239_vm12, %v1175_v13, %v1310_v23  ;;  %v1406_v30 = vsel %vm1271_vm13, %v1207_v14, %v1342_v24 }
 0x173   :  { %v1375_v31 = vsel %vm1240_vm14, %v1176_v25, %v1311_v27  ;;  %v1407_v32 = vsel %vm1272_vm15, %v1208_v26, %v1343_v28 }
 0x174   :  { %v792_v33 = vpop.f32.mrb[48].mxu0  ;;  %v920_v34 = vpop.f32.mrb[48].mxu1  ;;  %v2008_v35 = vpack.c.bf16 %v1375_v31, %v1374_v29  ;;  %v2088_v36 = vpack.c.bf16 %v1407_v32, %v1406_v30 }
 0x175   :  { %v1177_v37 = vadd.f32 %v2587_v17, %v792_v33  ;;  %v1209_v38 = vadd.f32 %v2587_v17, %v920_v34  ;;  %v794_v39 = vpop.f32.mrb[49].mxu0  ;;  %v922_v40 = vpop.f32.mrb[49].mxu1 }
 0x176   :  { %v795_v41 = vpop.f32.mrb[50].mxu0  ;;  %v923_v42 = vpop.f32.mrb[50].mxu1  ;;  %2120 = vst [vmem:[%s2822_s4 + $0x58] sm:$0xff] %v2008_v35   ;;  %2136 = vst [vmem:[%s2822_s4 + $0xd8] sm:$0xff] %v2088_v36  }
 0x177   :  { %v797_v43 = vpop.f32.mrb[51].mxu0  ;;  %v925_v44 = vpop.f32.mrb[51].mxu1  ;;  %v1312_v45 = vmul.f32 %v2593_v21, %v1177_v37  ;;  %v1344_v46 = vmul.f32 %v2593_v21, %v1209_v38  ;;  %v1178_v47 = vadd.f32 %v2587_v17, %v795_v41  ;;  %v1210_v48 = vadd.f32 %v2587_v17, %v923_v42 }
 0x178   :  { %vm1241_vm0 = vcmp.ge.f32.partialorder %v1177_v37, 0.0  ;;  %vm1273_vm1 = vcmp.ge.f32.partialorder %v1209_v38, 0.0 }
 0x179   :  { %vm1242_vm2 = vcmp.ge.f32.partialorder %v1178_v47, 0.0  ;;  %v1313_v49 = vmul.f32 %v2593_v21, %v1178_v47  ;;  %vm1274_vm3 = vcmp.ge.f32.partialorder %v1210_v48, 0.0  ;;  %v1345_v50 = vmul.f32 %v2593_v21, %v1210_v48 }
 0x17a   :  { %v1376_v51 = vsel %vm1241_vm0, %v1177_v37, %v1312_v45  ;;  %v1408_v52 = vsel %vm1273_vm1, %v1209_v38, %v1344_v46 }
 0x17b   :  { %v1377_v53 = vsel %vm1242_vm2, %v1178_v47, %v1313_v49  ;;  %v1409_v54 = vsel %vm1274_vm3, %v1210_v48, %v1345_v50 }
 0x17c   :  { %v800_v55 = vpop.f32.mrb[52].mxu0  ;;  %v928_v56 = vpop.f32.mrb[52].mxu1  ;;  %v2013_v57 = vpack.c.bf16 %v1377_v53, %v1376_v51  ;;  %v2093_v58 = vpack.c.bf16 %v1409_v54, %v1408_v52 }
 0x17d   :  { %v1179_v59 = vadd.f32 %v2587_v17, %v800_v55  ;;  %v1211_v60 = vadd.f32 %v2587_v17, %v928_v56  ;;  %v802_v61 = vpop.f32.mrb[53].mxu0  ;;  %v930_v62 = vpop.f32.mrb[53].mxu1 }
 0x17e   :  { %v803_v63 = vpop.f32.mrb[54].mxu0  ;;  %v931_v0 = vpop.f32.mrb[54].mxu1  ;;  %2121 = vst [vmem:[%s2822_s4 + $0x60] sm:$0xff] %v2013_v57   ;;  %2137 = vst [vmem:[%s2822_s4 + $0xe0] sm:$0xff] %v2093_v58  }
 0x17f   :  { %v805_v1 = vpop.f32.mrb[55].mxu0  ;;  %v933_v2 = vpop.f32.mrb[55].mxu1  ;;  %v1314_v3 = vmul.f32 %v2593_v21, %v1179_v59  ;;  %v1346_v4 = vmul.f32 %v2593_v21, %v1211_v60  ;;  %v1180_v5 = vadd.f32 %v2587_v17, %v803_v63  ;;  %v1212_v6 = vadd.f32 %v2587_v17, %v931_v0 }
 0x180   :  { %vm1243_vm4 = vcmp.ge.f32.partialorder %v1179_v59, 0.0  ;;  %vm1275_vm5 = vcmp.ge.f32.partialorder %v1211_v60, 0.0 }
 0x181   :  { %vm1244_vm6 = vcmp.ge.f32.partialorder %v1180_v5, 0.0  ;;  %v1315_v7 = vmul.f32 %v2593_v21, %v1180_v5  ;;  %vm1276_vm7 = vcmp.ge.f32.partialorder %v1212_v6, 0.0  ;;  %v1347_v8 = vmul.f32 %v2593_v21, %v1212_v6 }
 0x182   :  { %v1378_v9 = vsel %vm1243_vm4, %v1179_v59, %v1314_v3  ;;  %v1410_v10 = vsel %vm1275_vm5, %v1211_v60, %v1346_v4 }
 0x183   :  { %v1379_v11 = vsel %vm1244_vm6, %v1180_v5, %v1315_v7  ;;  %v1411_v12 = vsel %vm1276_vm7, %v1212_v6, %v1347_v8 }
 0x184   :  { %v808_v13 = vpop.f32.mrb[56].mxu0  ;;  %v936_v14 = vpop.f32.mrb[56].mxu1  ;;  %v2018_v15 = vpack.c.bf16 %v1379_v11, %v1378_v9  ;;  %v2098_v16 = vpack.c.bf16 %v1411_v12, %v1410_v10 }
 0x185   :  { %v1181_v18 = vadd.f32 %v2587_v17, %v808_v13  ;;  %v1213_v19 = vadd.f32 %v2587_v17, %v936_v14  ;;  %v810_v20 = vpop.f32.mrb[57].mxu0  ;;  %v938_v22 = vpop.f32.mrb[57].mxu1 }
 0x186   :  { %v811_v23 = vpop.f32.mrb[58].mxu0  ;;  %v939_v24 = vpop.f32.mrb[58].mxu1  ;;  %2122 = vst [vmem:[%s2822_s4 + $0x68] sm:$0xff] %v2018_v15   ;;  %2138 = vst [vmem:[%s2822_s4 + $0xe8] sm:$0xff] %v2098_v16  }
 0x187   :  { %v813_v25 = vpop.f32.mrb[59].mxu0  ;;  %v941_v26 = vpop.f32.mrb[59].mxu1  ;;  %v1316_v27 = vmul.f32 %v2593_v21, %v1181_v18  ;;  %v1348_v28 = vmul.f32 %v2593_v21, %v1213_v19  ;;  %v1182_v29 = vadd.f32 %v2587_v17, %v811_v23  ;;  %v1214_v30 = vadd.f32 %v2587_v17, %v939_v24 }
 0x188   :  { %vm1245_vm8 = vcmp.ge.f32.partialorder %v1181_v18, 0.0  ;;  %vm1277_vm9 = vcmp.ge.f32.partialorder %v1213_v19, 0.0 }
 0x189   :  { %vm1246_vm10 = vcmp.ge.f32.partialorder %v1182_v29, 0.0  ;;  %v1317_v31 = vmul.f32 %v2593_v21, %v1182_v29  ;;  %vm1278_vm11 = vcmp.ge.f32.partialorder %v1214_v30, 0.0  ;;  %v1349_v32 = vmul.f32 %v2593_v21, %v1214_v30 }
 0x18a   :  { %v1380_v33 = vsel %vm1245_vm8, %v1181_v18, %v1316_v27  ;;  %v1412_v34 = vsel %vm1277_vm9, %v1213_v19, %v1348_v28 }
 0x18b   :  { %v1381_v35 = vsel %vm1246_vm10, %v1182_v29, %v1317_v31  ;;  %v1413_v36 = vsel %vm1278_vm11, %v1214_v30, %v1349_v32 }
 0x18c   :  { %v816_v37 = vpop.f32.mrb[60].mxu0  ;;  %v944_v38 = vpop.f32.mrb[60].mxu1  ;;  %v2023_v39 = vpack.c.bf16 %v1381_v35, %v1380_v33  ;;  %v2103_v40 = vpack.c.bf16 %v1413_v36, %v1412_v34 }
 0x18d   :  { %v1183_v41 = vadd.f32 %v2587_v17, %v816_v37  ;;  %v1215_v42 = vadd.f32 %v2587_v17, %v944_v38  ;;  %v818_v43 = vpop.f32.mrb[61].mxu0  ;;  %v946_v44 = vpop.f32.mrb[61].mxu1 }
 0x18e   :  { %v819_v45 = vpop.f32.mrb[62].mxu0  ;;  %v947_v46 = vpop.f32.mrb[62].mxu1  ;;  %2123 = vst [vmem:[%s2822_s4 + $0x70] sm:$0xff] %v2023_v39   ;;  %2139 = vst [vmem:[%s2822_s4 + $0xf0] sm:$0xff] %v2103_v40  }
 0x18f   :  { %v821_v47 = vpop.f32.mrb[63].mxu0  ;;  %v949_v48 = vpop.f32.mrb[63].mxu1  ;;  %v1318_v49 = vmul.f32 %v2593_v21, %v1183_v41  ;;  %v1350_v50 = vmul.f32 %v2593_v21, %v1215_v42  ;;  %v1184_v51 = vadd.f32 %v2587_v17, %v819_v45  ;;  %v1216_v52 = vadd.f32 %v2587_v17, %v947_v46 }
 0x190   :  { %vm1247_vm12 = vcmp.ge.f32.partialorder %v1183_v41, 0.0  ;;  %vm1279_vm13 = vcmp.ge.f32.partialorder %v1215_v42, 0.0 }
 0x191   :  { %vm1248_vm14 = vcmp.ge.f32.partialorder %v1184_v51, 0.0  ;;  %v1319_v53 = vmul.f32 %v2593_v21, %v1184_v51  ;;  %vm1280_vm15 = vcmp.ge.f32.partialorder %v1216_v52, 0.0  ;;  %v1351_v54 = vmul.f32 %v2593_v21, %v1216_v52 }
 0x192   :  { %v1382_v55 = vsel %vm1247_vm12, %v1183_v41, %v1318_v49  ;;  %v1414_v56 = vsel %vm1279_vm13, %v1215_v42, %v1350_v50 }
 0x193   :  { %v1383_v57 = vsel %vm1248_vm14, %v1184_v51, %v1319_v53  ;;  %v1415_v58 = vsel %vm1280_vm15, %v1216_v52, %v1351_v54 }
 0x194   :  { %v2028_v59 = vpack.c.bf16 %v1383_v57, %v1382_v55  ;;  %v2108_v60 = vpack.c.bf16 %v1415_v58, %v1414_v56 }
 0x196   :  { %2124 = vst [vmem:[%s2822_s4 + $0x78] sm:$0xff] %v2028_v59   ;;  %2140 = vst [vmem:[%s2822_s4 + $0xf8] sm:$0xff] %v2108_v60  }

// kernel: vxm_dense_forward.23
= control target key start
LH: loop header
LB: loop body
LE: loop exit
PB: predicated region body
PF: predicated region fallthrough
CT: control target
= control target key end

     0   :  { %v2086_v0 = vmov 0   ;;  %s2549_s3 = inlined_call_operand.vmem [shape: f32[1,128], index: 3, kind: input, shape index: {}]   ;;  %s2550_s1 = inlined_call_operand.vmem [shape: bf16[256,128], index: 1, kind: input, shape index: {}]   ;;  %s2551_s0 = inlined_call_operand.vmem [shape: bf16[512,256], index: 0, kind: input, shape index: {}]   ;;  %s2552_s2 = inlined_call_operand.vmem [shape: f32[1,128], index: 2, kind: input, shape index: {}]   ;;  %s2553_s4 = inlined_call_operand.vmem [shape: bf16[512,128], index: 4, kind: output, shape index: {}]  }
   0x1   :  { %662 = vmatprep.subr.bf16.mxu0 %v2086_v0  ;;  %1941 = vmatprep.subr.bf16.mxu1 %v2086_v0  ;;  %v1974_v1 = vld [vmem:[%s2550_s1] sm:$0xff]   ;;  %v1975_v2 = vld [vmem:[%s2550_s1 + $0x8] sm:$0xff]   ;;  %v1976_v3 = vld [vmem:[%s2550_s1 + $0x10] sm:$0xff]  }
   0x2   :  { %663 = vmatpush1.bf16.msra.mxu0 %v1974_v1  ;;  %1957 = vmatpush1.bf16.msra.mxu1 %v1974_v1  ;;  %v1977_v4 = vld [vmem:[%s2550_s1 + $0x18] sm:$0xff]   ;;  %v1978_v5 = vld [vmem:[%s2550_s1 + $0x20] sm:$0xff]   ;;  %v1979_v7 = vld [vmem:[%s2550_s1 + $0x28] sm:$0xff]  }
   0x3   :  { %664 = vmatprep.subr.bf16.mxu0 %v2086_v0  ;;  %1942 = vmatprep.subr.bf16.mxu1 %v2086_v0  ;;  %v1992_v6 = vld [vmem:[%s2551_s0 + $0x4] ss:$8 sps:$4 sm:$0xff]   ;;  %v1980_v9 = vld [vmem:[%s2550_s1 + $0x30] sm:$0xff]   ;;  %v1981_v10 = vld [vmem:[%s2550_s1 + $0x38] sm:$0xff]  }
   0x4   :  { %v1995_v8 = vld [vmem:[%s2551_s0 + $0x104] ss:$8 sps:$4 sm:$0xff]   ;;  %694 = vmatprep.mubr.bf16.mxu0 %v1992_v6  ;;  %v1984_v13 = vld [vmem:[%s2550_s1 + $0x50] sm:$0xff]   ;;  %v1985_v14 = vld [vmem:[%s2550_s1 + $0x58] sm:$0xff]  }
   0x5   :  { %822 = vmatprep.mubr.bf16.mxu1 %v1995_v8  ;;  %v1982_v11 = vld [vmem:[%s2550_s1 + $0x40] sm:$0xff]   ;;  %v1983_v12 = vld [vmem:[%s2550_s1 + $0x48] sm:$0xff]   ;;  %v1988_v17 = vld [vmem:[%s2550_s1 + $0x70] sm:$0xff]  }
   0x6   :  { %665 = vmatpush1.bf16.msra.mxu0 %v1975_v2  ;;  %1958 = vmatpush1.bf16.msra.mxu1 %v1975_v2  ;;  %v1986_v15 = vld [vmem:[%s2550_s1 + $0x60] sm:$0xff]   ;;  %v1987_v16 = vld [vmem:[%s2550_s1 + $0x68] sm:$0xff]   ;;  %v1989_v18 = vld [vmem:[%s2550_s1 + $0x78] sm:$0xff]  }
   0x7   :  { %666 = vmatprep.subr.bf16.mxu0 %v2086_v0  ;;  %1943 = vmatprep.subr.bf16.mxu1 %v2086_v0  ;;  %v1990_v19 = vld [vmem:[%s2551_s0] ss:$8 sps:$4 sm:$0xff]   ;;  %v1996_v21 = vld [vmem:[%s2551_s0 + $0x14] ss:$8 sps:$4 sm:$0xff]   ;;  %v2000_v23 = vld [vmem:[%s2551_s0 + $0x10] ss:$8 sps:$4 sm:$0xff]  }
   0x8   :  { %v1993_v20 = vld [vmem:[%s2551_s0 + $0x100] ss:$8 sps:$4 sm:$0xff]   ;;  %v1998_v22 = vld [vmem:[%s2551_s0 + $0x114] ss:$8 sps:$4 sm:$0xff]   ;;  %v2001_v24 = vld [vmem:[%s2551_s0 + $0x110] ss:$8 sps:$4 sm:$0xff]  }
   0x9   :  { %v2002_v25 = vld [vmem:[%s2551_s0 + $0x24] ss:$8 sps:$4 sm:$0xff]   ;;  %v2006_v27 = vld [vmem:[%s2551_s0 + $0x20] ss:$8 sps:$4 sm:$0xff]   ;;  %v2008_v29 = vld [vmem:[%s2551_s0 + $0x34] ss:$8 sps:$4 sm:$0xff]  }
   0xa   :  { %667 = vmatpush1.bf16.msra.mxu0 %v1976_v3  ;;  %1959 = vmatpush1.bf16.msra.mxu1 %v1976_v3  ;;  %v2004_v26 = vld [vmem:[%s2551_s0 + $0x124] ss:$8 sps:$4 sm:$0xff]   ;;  %v2007_v28 = vld [vmem:[%s2551_s0 + $0x120] ss:$8 sps:$4 sm:$0xff]   ;;  %v2010_v30 = vld [vmem:[%s2551_s0 + $0x134] ss:$8 sps:$4 sm:$0xff]  }
   0xb   :  { %668 = vmatprep.subr.bf16.mxu0 %v2086_v0  ;;  %1944 = vmatprep.subr.bf16.mxu1 %v2086_v0  ;;  %v2012_v31 = vld [vmem:[%s2551_s0 + $0x30] ss:$8 sps:$4 sm:$0xff]   ;;  %v2014_v33 = vld [vmem:[%s2551_s0 + $0x44] ss:$8 sps:$4 sm:$0xff]   ;;  %v2018_v35 = vld [vmem:[%s2551_s0 + $0x40] ss:$8 sps:$4 sm:$0xff]  }
   0xc   :  { %v2013_v32 = vld [vmem:[%s2551_s0 + $0x130] ss:$8 sps:$4 sm:$0xff]   ;;  %v2016_v34 = vld [vmem:[%s2551_s0 + $0x144] ss:$8 sps:$4 sm:$0xff]   ;;  %v2019_v36 = vld [vmem:[%s2551_s0 + $0x140] ss:$8 sps:$4 sm:$0xff]  }
   0xd   :  { %v2020_v37 = vld [vmem:[%s2551_s0 + $0x54] ss:$8 sps:$4 sm:$0xff]   ;;  %v2024_v39 = vld [vmem:[%s2551_s0 + $0x50] ss:$8 sps:$4 sm:$0xff]   ;;  %v2026_v41 = vld [vmem:[%s2551_s0 + $0x64] ss:$8 sps:$4 sm:$0xff]  }
   0xe   :  { %669 = vmatpush1.bf16.msra.mxu0 %v1977_v4  ;;  %1960 = vmatpush1.bf16.msra.mxu1 %v1977_v4  ;;  %v2022_v38 = vld [vmem:[%s2551_s0 + $0x154] ss:$8 sps:$4 sm:$0xff]   ;;  %v2025_v40 = vld [vmem:[%s2551_s0 + $0x150] ss:$8 sps:$4 sm:$0xff]   ;;  %v2028_v42 = vld [vmem:[%s2551_s0 + $0x164] ss:$8 sps:$4 sm:$0xff]  }
   0xf   :  { %670 = vmatprep.subr.bf16.mxu0 %v2086_v0  ;;  %1945 = vmatprep.subr.bf16.mxu1 %v2086_v0  ;;  %v2030_v43 = vld [vmem:[%s2551_s0 + $0x60] ss:$8 sps:$4 sm:$0xff]   ;;  %v2032_v45 = vld [vmem:[%s2551_s0 + $0x74] ss:$8 sps:$4 sm:$0xff]   ;;  %v2036_v47 = vld [vmem:[%s2551_s0 + $0x70] ss:$8 sps:$4 sm:$0xff]  }
  0x10   :  { %v2031_v44 = vld [vmem:[%s2551_s0 + $0x160] ss:$8 sps:$4 sm:$0xff]   ;;  %v2034_v46 = vld [vmem:[%s2551_s0 + $0x174] ss:$8 sps:$4 sm:$0xff]   ;;  %v2037_v48 = vld [vmem:[%s2551_s0 + $0x170] ss:$8 sps:$4 sm:$0xff]  }
  0x11   :  { %v2038_v49 = vld [vmem:[%s2551_s0 + $0x84] ss:$8 sps:$4 sm:$0xff]   ;;  %v2042_v51 = vld [vmem:[%s2551_s0 + $0x80] ss:$8 sps:$4 sm:$0xff]   ;;  %v2044_v53 = vld [vmem:[%s2551_s0 + $0x94] ss:$8 sps:$4 sm:$0xff]  }
  0x12   :  { %671 = vmatpush1.bf16.msra.mxu0 %v1978_v5  ;;  %1961 = vmatpush1.bf16.msra.mxu1 %v1978_v5  ;;  %v2040_v50 = vld [vmem:[%s2551_s0 + $0x184] ss:$8 sps:$4 sm:$0xff]   ;;  %v2043_v52 = vld [vmem:[%s2551_s0 + $0x180] ss:$8 sps:$4 sm:$0xff]   ;;  %v2046_v54 = vld [vmem:[%s2551_s0 + $0x194] ss:$8 sps:$4 sm:$0xff]  }
  0x13   :  { %672 = vmatprep.subr.bf16.mxu0 %v2086_v0  ;;  %1946 = vmatprep.subr.bf16.mxu1 %v2086_v0  ;;  %v2048_v55 = vld [vmem:[%s2551_s0 + $0x90] ss:$8 sps:$4 sm:$0xff]   ;;  %v2050_v57 = vld [vmem:[%s2551_s0 + $0xa4] ss:$8 sps:$4 sm:$0xff]   ;;  %v2054_v59 = vld [vmem:[%s2551_s0 + $0xa0] ss:$8 sps:$4 sm:$0xff]  }
  0x14   :  { %v2049_v56 = vld [vmem:[%s2551_s0 + $0x190] ss:$8 sps:$4 sm:$0xff]   ;;  %v2052_v58 = vld [vmem:[%s2551_s0 + $0x1a4] ss:$8 sps:$4 sm:$0xff]   ;;  %v2055_v60 = vld [vmem:[%s2551_s0 + $0x1a0] ss:$8 sps:$4 sm:$0xff]  }
  0x15   :  { %v2056_v61 = vld [vmem:[%s2551_s0 + $0xb4] ss:$8 sps:$4 sm:$0xff]   ;;  %v2060_v63 = vld [vmem:[%s2551_s0 + $0xb0] ss:$8 sps:$4 sm:$0xff]   ;;  %v2062_v1 = vld [vmem:[%s2551_s0 + $0xc4] ss:$8 sps:$4 sm:$0xff]  }
  0x16   :  { %673 = vmatpush1.bf16.msra.mxu0 %v1979_v7  ;;  %1962 = vmatpush1.bf16.msra.mxu1 %v1979_v7  ;;  %v2058_v62 = vld [vmem:[%s2551_s0 + $0x1b4] ss:$8 sps:$4 sm:$0xff]   ;;  %v2064_v2 = vld [vmem:[%s2551_s0 + $0x1c4] ss:$8 sps:$4 sm:$0xff]   ;;  %v2066_v3 = vld [vmem:[%s2551_s0 + $0xc0] ss:$8 sps:$4 sm:$0xff]  }
  0x17   :  { %674 = vmatprep.subr.bf16.mxu0 %v2086_v0  ;;  %1947 = vmatprep.subr.bf16.mxu1 %v2086_v0  ;;  %v2067_v4 = vld [vmem:[%s2551_s0 + $0x1c0] ss:$8 sps:$4 sm:$0xff]   ;;  %v2068_v5 = vld [vmem:[%s2551_s0 + $0xd4] ss:$8 sps:$4 sm:$0xff]   ;;  %v2072_v7 = vld [vmem:[%s2551_s0 + $0xd0] ss:$8 sps:$4 sm:$0xff]  }
  0x18   :  { %v2070_v6 = vld [vmem:[%s2551_s0 + $0x1d4] ss:$8 sps:$4 sm:$0xff]   ;;  %v2073_v8 = vld [vmem:[%s2551_s0 + $0x1d0] ss:$8 sps:$4 sm:$0xff]  }
  0x1a   :  { %675 = vmatpush1.bf16.msra.mxu0 %v1980_v9  ;;  %1963 = vmatpush1.bf16.msra.mxu1 %v1980_v9  ;;  %v2074_v9 = vld [vmem:[%s2551_s0 + $0xe4] ss:$8 sps:$4 sm:$0xff]  }
  0x1b   :  { %676 = vmatprep.subr.bf16.mxu0 %v2086_v0  ;;  %1948 = vmatprep.subr.bf16.mxu1 %v2086_v0 }
  0x1e   :  { %677 = vmatpush1.bf16.msra.mxu0 %v1981_v10  ;;  %1964 = vmatpush1.bf16.msra.mxu1 %v1981_v10  ;;  %v2076_v10 = vld [vmem:[%s2551_s0 + $0x1e4] ss:$8 sps:$4 sm:$0xff]  }
  0x1f   :  { %678 = vmatprep.subr.bf16.mxu0 %v2086_v0  ;;  %1949 = vmatprep.subr.bf16.mxu1 %v2086_v0 }
  0x22   :  { %679 = vmatpush1.bf16.msra.mxu0 %v1982_v11  ;;  %1965 = vmatpush1.bf16.msra.mxu1 %v1982_v11  ;;  %v2078_v11 = vld [vmem:[%s2551_s0 + $0xe0] ss:$8 sps:$4 sm:$0xff]  }
  0x23   :  { %680 = vmatprep.subr.bf16.mxu0 %v2086_v0  ;;  %1950 = vmatprep.subr.bf16.mxu1 %v2086_v0 }
  0x26   :  { %681 = vmatpush1.bf16.msra.mxu0 %v1983_v12  ;;  %1966 = vmatpush1.bf16.msra.mxu1 %v1983_v12  ;;  %v2079_v12 = vld [vmem:[%s2551_s0 + $0x1e0] ss:$8 sps:$4 sm:$0xff]  }
  0x27   :  { %682 = vmatprep.subr.bf16.mxu0 %v2086_v0  ;;  %1951 = vmatprep.subr.bf16.mxu1 %v2086_v0 }
  0x2a   :  { %683 = vmatpush1.bf16.msra.mxu0 %v1984_v13  ;;  %1967 = vmatpush1.bf16.msra.mxu1 %v1984_v13  ;;  %v2080_v13 = vld [vmem:[%s2551_s0 + $0xf4] ss:$8 sps:$4 sm:$0xff]  }
  0x2b   :  { %684 = vmatprep.subr.bf16.mxu0 %v2086_v0  ;;  %1952 = vmatprep.subr.bf16.mxu1 %v2086_v0 }
  0x2e   :  { %685 = vmatpush1.bf16.msra.mxu0 %v1985_v14  ;;  %1968 = vmatpush1.bf16.msra.mxu1 %v1985_v14  ;;  %v2082_v14 = vld [vmem:[%s2551_s0 + $0x1f4] ss:$8 sps:$4 sm:$0xff]  }
  0x2f   :  { %686 = vmatprep.subr.bf16.mxu0 %v2086_v0  ;;  %1953 = vmatprep.subr.bf16.mxu1 %v2086_v0 }
  0x32   :  { %687 = vmatpush1.bf16.msra.mxu0 %v1986_v15  ;;  %1969 = vmatpush1.bf16.msra.mxu1 %v1986_v15  ;;  %v2084_v15 = vld [vmem:[%s2551_s0 + $0xf0] ss:$8 sps:$4 sm:$0xff]  }
  0x33   :  { %688 = vmatprep.subr.bf16.mxu0 %v2086_v0  ;;  %1954 = vmatprep.subr.bf16.mxu1 %v2086_v0 }
  0x36   :  { %689 = vmatpush1.bf16.msra.mxu0 %v1987_v16  ;;  %1970 = vmatpush1.bf16.msra.mxu1 %v1987_v16  ;;  %v2085_v16 = vld [vmem:[%s2551_s0 + $0x1f0] ss:$8 sps:$4 sm:$0xff]  }
  0x37   :  { %690 = vmatprep.subr.bf16.mxu0 %v2086_v0  ;;  %1955 = vmatprep.subr.bf16.mxu1 %v2086_v0 }
  0x3a   :  { %691 = vmatpush1.bf16.msra.mxu0 %v1988_v17  ;;  %1971 = vmatpush1.bf16.msra.mxu1 %v1988_v17 }
  0x3b   :  { %692 = vmatprep.subr.bf16.mxu0 %v2086_v0  ;;  %1956 = vmatprep.subr.bf16.mxu1 %v2086_v0  ;;  %v2061_v0 = vld [vmem:[%s2551_s0 + $0x1b0] ss:$8 sps:$4 sm:$0xff]  }
  0x3e   :  { %693 = vmatpush1.bf16.msra.mxu0 %v1989_v18  ;;  %1972 = vmatpush1.bf16.msra.mxu1 %v1989_v18  ;;  %v2387_v18 = vld [vmem:[%s2552_s2] ss:$0 sm:$0xff] }
  0x41   :  { %695 = vmatmul.mubr.bf16.vlgmr.msra.gmra.mrb[0].mxu0 %v1990_v19  ;;  %823 = vmatmul.mubr.bf16.vlgmr.msra.gmra.mrb[0].mxu1 %v1993_v20 }
  0x42   :  { %702 = vmatprep.mubr.bf16.mxu0 %v1996_v21  ;;  %830 = vmatprep.mubr.bf16.mxu1 %v1998_v22 }
  0x49   :  { %703 = vmatmul.mubr.bf16.gmra.mrb[4].mxu0 %v2000_v23  ;;  %831 = vmatmul.mubr.bf16.gmra.mrb[4].mxu1 %v2001_v24 }
  0x4a   :  { %710 = vmatprep.mubr.bf16.mxu0 %v2002_v25  ;;  %838 = vmatprep.mubr.bf16.mxu1 %v2004_v26 }
  0x51   :  { %711 = vmatmul.mubr.bf16.gmra.mrb[8].mxu0 %v2006_v27  ;;  %839 = vmatmul.mubr.bf16.gmra.mrb[8].mxu1 %v2007_v28 }
  0x52   :  { %718 = vmatprep.mubr.bf16.mxu0 %v2008_v29  ;;  %846 = vmatprep.mubr.bf16.mxu1 %v2010_v30 }
  0x59   :  { %719 = vmatmul.mubr.bf16.gmra.mrb[12].mxu0 %v2012_v31  ;;  %847 = vmatmul.mubr.bf16.gmra.mrb[12].mxu1 %v2013_v32 }
  0x5a   :  { %726 = vmatprep.mubr.bf16.mxu0 %v2014_v33  ;;  %854 = vmatprep.mubr.bf16.mxu1 %v2016_v34 }
  0x61   :  { %727 = vmatmul.mubr.bf16.gmra.mrb[16].mxu0 %v2018_v35  ;;  %855 = vmatmul.mubr.bf16.gmra.mrb[16].mxu1 %v2019_v36 }
  0x62   :  { %734 = vmatprep.mubr.bf16.mxu0 %v2020_v37  ;;  %862 = vmatprep.mubr.bf16.mxu1 %v2022_v38 }
  0x69   :  { %735 = vmatmul.mubr.bf16.gmra.mrb[20].mxu0 %v2024_v39  ;;  %863 = vmatmul.mubr.bf16.gmra.mrb[20].mxu1 %v2025_v40 }
  0x6a   :  { %742 = vmatprep.mubr.bf16.mxu0 %v2026_v41  ;;  %870 = vmatprep.mubr.bf16.mxu1 %v2028_v42 }
  0x71   :  { %743 = vmatmul.mubr.bf16.gmra.mrb[24].mxu0 %v2030_v43  ;;  %871 = vmatmul.mubr.bf16.gmra.mrb[24].mxu1 %v2031_v44 }
  0x72   :  { %750 = vmatprep.mubr.bf16.mxu0 %v2032_v45  ;;  %878 = vmatprep.mubr.bf16.mxu1 %v2034_v46 }
  0x79   :  { %751 = vmatmul.mubr.bf16.gmra.mrb[28].mxu0 %v2036_v47  ;;  %879 = vmatmul.mubr.bf16.gmra.mrb[28].mxu1 %v2037_v48 }
  0x7a   :  { %758 = vmatprep.mubr.bf16.mxu0 %v2038_v49  ;;  %886 = vmatprep.mubr.bf16.mxu1 %v2040_v50 }
  0x81   :  { %759 = vmatmul.mubr.bf16.gmra.mrb[32].mxu0 %v2042_v51  ;;  %887 = vmatmul.mubr.bf16.gmra.mrb[32].mxu1 %v2043_v52 }
  0x82   :  { %766 = vmatprep.mubr.bf16.mxu0 %v2044_v53  ;;  %894 = vmatprep.mubr.bf16.mxu1 %v2046_v54 }
  0x89   :  { %767 = vmatmul.mubr.bf16.gmra.mrb[36].mxu0 %v2048_v55  ;;  %895 = vmatmul.mubr.bf16.gmra.mrb[36].mxu1 %v2049_v56 }
  0x8a   :  { %774 = vmatprep.mubr.bf16.mxu0 %v2050_v57  ;;  %902 = vmatprep.mubr.bf16.mxu1 %v2052_v58 }
  0x91   :  { %775 = vmatmul.mubr.bf16.gmra.mrb[40].mxu0 %v2054_v59  ;;  %903 = vmatmul.mubr.bf16.gmra.mrb[40].mxu1 %v2055_v60 }
  0x92   :  { %782 = vmatprep.mubr.bf16.mxu0 %v2056_v61  ;;  %910 = vmatprep.mubr.bf16.mxu1 %v2058_v62 }
  0x99   :  { %783 = vmatmul.mubr.bf16.gmra.mrb[44].mxu0 %v2060_v63  ;;  %911 = vmatmul.mubr.bf16.gmra.mrb[44].mxu1 %v2061_v0 }
  0x9a   :  { %790 = vmatprep.mubr.bf16.mxu0 %v2062_v1  ;;  %918 = vmatprep.mubr.bf16.mxu1 %v2064_v2 }
  0xa1   :  { %791 = vmatmul.mubr.bf16.gmra.mrb[48].mxu0 %v2066_v3  ;;  %919 = vmatmul.mubr.bf16.gmra.mrb[48].mxu1 %v2067_v4 }
  0xa2   :  { %798 = vmatprep.mubr.bf16.mxu0 %v2068_v5  ;;  %926 = vmatprep.mubr.bf16.mxu1 %v2070_v6 }
  0xa9   :  { %799 = vmatmul.mubr.bf16.gmra.mrb[52].mxu0 %v2072_v7  ;;  %927 = vmatmul.mubr.bf16.gmra.mrb[52].mxu1 %v2073_v8 }
  0xaa   :  { %806 = vmatprep.mubr.bf16.mxu0 %v2074_v9  ;;  %934 = vmatprep.mubr.bf16.mxu1 %v2076_v10 }
  0xb1   :  { %807 = vmatmul.mubr.bf16.gmra.mrb[56].mxu0 %v2078_v11  ;;  %935 = vmatmul.mubr.bf16.gmra.mrb[56].mxu1 %v2079_v12 }
  0xb2   :  { %814 = vmatprep.mubr.bf16.mxu0 %v2080_v13  ;;  %942 = vmatprep.mubr.bf16.mxu1 %v2082_v14 }
  0xb9   :  { %815 = vmatmul.mubr.bf16.gmra.mrb[60].mxu0 %v2084_v15  ;;  %943 = vmatmul.mubr.bf16.gmra.mrb[60].mxu1 %v2085_v16 }
 0x114   :  { %v696_v17 = vpop.f32.mrb[0].mxu0  ;;  %v824_v19 = vpop.f32.mrb[0].mxu1 }
 0x115   :  { %v698_v20 = vpop.f32.mrb[1].mxu0  ;;  %v826_v21 = vpop.f32.mrb[1].mxu1  ;;  %v1153_v24 = vadd.f32 %v2387_v18, %v696_v17  ;;  %v1185_v25 = vadd.f32 %v2387_v18, %v824_v19 }
 0x116   :  { %v699_v22 = vpop.f32.mrb[2].mxu0  ;;  %v827_v23 = vpop.f32.mrb[2].mxu1 }
 0x117   :  { %v1154_v26 = vadd.f32 %v2387_v18, %v699_v22  ;;  %v1186_v27 = vadd.f32 %v2387_v18, %v827_v23  ;;  %v701_v28 = vpop.f32.mrb[3].mxu0  ;;  %v829_v29 = vpop.f32.mrb[3].mxu1 }
 0x119   :  { %v1753_v30 = vpack.c.bf16 %v1154_v26, %v1153_v24  ;;  %v1833_v31 = vpack.c.bf16 %v1186_v27, %v1185_v25 }
 0x11b   :  { %1754 = vst [vmem:[%s2553_s4] sm:$0xff] %v1753_v30   ;;  %1925 = vst [vmem:[%s2553_s4 + $0x80] sm:$0xff] %v1833_v31  }
 0x11c   :  { %v704_v32 = vpop.f32.mrb[4].mxu0  ;;  %v832_v33 = vpop.f32.mrb[4].mxu1 }
 0x11d   :  { %v706_v34 = vpop.f32.mrb[5].mxu0  ;;  %v834_v35 = vpop.f32.mrb[5].mxu1  ;;  %v1155_v38 = vadd.f32 %v2387_v18, %v704_v32  ;;  %v1187_v39 = vadd.f32 %v2387_v18, %v832_v33 }
 0x11e   :  { %v707_v36 = vpop.f32.mrb[6].mxu0  ;;  %v835_v37 = vpop.f32.mrb[6].mxu1 }
 0x11f   :  { %v1156_v40 = vadd.f32 %v2387_v18, %v707_v36  ;;  %v1188_v41 = vadd.f32 %v2387_v18, %v835_v37  ;;  %v709_v42 = vpop.f32.mrb[7].mxu0  ;;  %v837_v43 = vpop.f32.mrb[7].mxu1 }
 0x121   :  { %v1758_v44 = vpack.c.bf16 %v1156_v40, %v1155_v38  ;;  %v1838_v45 = vpack.c.bf16 %v1188_v41, %v1187_v39 }
 0x123   :  { %1910 = vst [vmem:[%s2553_s4 + $0x8] sm:$0xff] %v1758_v44   ;;  %1926 = vst [vmem:[%s2553_s4 + $0x88] sm:$0xff] %v1838_v45  }
 0x124   :  { %v712_v46 = vpop.f32.mrb[8].mxu0  ;;  %v840_v47 = vpop.f32.mrb[8].mxu1 }
 0x125   :  { %v714_v48 = vpop.f32.mrb[9].mxu0  ;;  %v842_v49 = vpop.f32.mrb[9].mxu1  ;;  %v1157_v52 = vadd.f32 %v2387_v18, %v712_v46  ;;  %v1189_v53 = vadd.f32 %v2387_v18, %v840_v47 }
 0x126   :  { %v715_v50 = vpop.f32.mrb[10].mxu0  ;;  %v843_v51 = vpop.f32.mrb[10].mxu1 }
 0x127   :  { %v1158_v54 = vadd.f32 %v2387_v18, %v715_v50  ;;  %v1190_v55 = vadd.f32 %v2387_v18, %v843_v51  ;;  %v717_v56 = vpop.f32.mrb[11].mxu0  ;;  %v845_v57 = vpop.f32.mrb[11].mxu1 }
 0x129   :  { %v1763_v58 = vpack.c.bf16 %v1158_v54, %v1157_v52  ;;  %v1843_v59 = vpack.c.bf16 %v1190_v55, %v1189_v53 }
 0x12b   :  { %1911 = vst [vmem:[%s2553_s4 + $0x10] sm:$0xff] %v1763_v58   ;;  %1927 = vst [vmem:[%s2553_s4 + $0x90] sm:$0xff] %v1843_v59  }
 0x12c   :  { %v720_v60 = vpop.f32.mrb[12].mxu0  ;;  %v848_v61 = vpop.f32.mrb[12].mxu1 }
 0x12d   :  { %v722_v62 = vpop.f32.mrb[13].mxu0  ;;  %v850_v63 = vpop.f32.mrb[13].mxu1  ;;  %v1159_v2 = vadd.f32 %v2387_v18, %v720_v60  ;;  %v1191_v3 = vadd.f32 %v2387_v18, %v848_v61 }
 0x12e   :  { %v723_v0 = vpop.f32.mrb[14].mxu0  ;;  %v851_v1 = vpop.f32.mrb[14].mxu1 }
 0x12f   :  { %v1160_v4 = vadd.f32 %v2387_v18, %v723_v0  ;;  %v1192_v5 = vadd.f32 %v2387_v18, %v851_v1  ;;  %v725_v6 = vpop.f32.mrb[15].mxu0  ;;  %v853_v7 = vpop.f32.mrb[15].mxu1 }
 0x131   :  { %v1768_v8 = vpack.c.bf16 %v1160_v4, %v1159_v2  ;;  %v1848_v9 = vpack.c.bf16 %v1192_v5, %v1191_v3 }
 0x133   :  { %1912 = vst [vmem:[%s2553_s4 + $0x18] sm:$0xff] %v1768_v8   ;;  %1928 = vst [vmem:[%s2553_s4 + $0x98] sm:$0xff] %v1848_v9  }
 0x134   :  { %v728_v10 = vpop.f32.mrb[16].mxu0  ;;  %v856_v11 = vpop.f32.mrb[16].mxu1 }
 0x135   :  { %v730_v12 = vpop.f32.mrb[17].mxu0  ;;  %v858_v13 = vpop.f32.mrb[17].mxu1  ;;  %v1161_v16 = vadd.f32 %v2387_v18, %v728_v10  ;;  %v1193_v17 = vadd.f32 %v2387_v18, %v856_v11 }
 0x136   :  { %v731_v14 = vpop.f32.mrb[18].mxu0  ;;  %v859_v15 = vpop.f32.mrb[18].mxu1 }
 0x137   :  { %v1162_v19 = vadd.f32 %v2387_v18, %v731_v14  ;;  %v1194_v20 = vadd.f32 %v2387_v18, %v859_v15  ;;  %v733_v21 = vpop.f32.mrb[19].mxu0  ;;  %v861_v22 = vpop.f32.mrb[19].mxu1 }
 0x139   :  { %v1773_v23 = vpack.c.bf16 %v1162_v19, %v1161_v16  ;;  %v1853_v24 = vpack.c.bf16 %v1194_v20, %v1193_v17 }
 0x13b   :  { %1913 = vst [vmem:[%s2553_s4 + $0x20] sm:$0xff] %v1773_v23   ;;  %1929 = vst [vmem:[%s2553_s4 + $0xa0] sm:$0xff] %v1853_v24  }
 0x13c   :  { %v736_v25 = vpop.f32.mrb[20].mxu0  ;;  %v864_v26 = vpop.f32.mrb[20].mxu1 }
 0x13d   :  { %v738_v27 = vpop.f32.mrb[21].mxu0  ;;  %v866_v28 = vpop.f32.mrb[21].mxu1  ;;  %v1163_v31 = vadd.f32 %v2387_v18, %v736_v25  ;;  %v1195_v32 = vadd.f32 %v2387_v18, %v864_v26 }
 0x13e   :  { %v739_v29 = vpop.f32.mrb[22].mxu0  ;;  %v867_v30 = vpop.f32.mrb[22].mxu1 }
 0x13f   :  { %v1164_v33 = vadd.f32 %v2387_v18, %v739_v29  ;;  %v1196_v34 = vadd.f32 %v2387_v18, %v867_v30  ;;  %v741_v35 = vpop.f32.mrb[23].mxu0  ;;  %v869_v36 = vpop.f32.mrb[23].mxu1 }
 0x141   :  { %v1778_v37 = vpack.c.bf16 %v1164_v33, %v1163_v31  ;;  %v1858_v38 = vpack.c.bf16 %v1196_v34, %v1195_v32 }
 0x143   :  { %1914 = vst [vmem:[%s2553_s4 + $0x28] sm:$0xff] %v1778_v37   ;;  %1930 = vst [vmem:[%s2553_s4 + $0xa8] sm:$0xff] %v1858_v38  }
 0x144   :  { %v744_v39 = vpop.f32.mrb[24].mxu0  ;;  %v872_v40 = vpop.f32.mrb[24].mxu1 }
 0x145   :  { %v746_v41 = vpop.f32.mrb[25].mxu0  ;;  %v874_v42 = vpop.f32.mrb[25].mxu1  ;;  %v1165_v45 = vadd.f32 %v2387_v18, %v744_v39  ;;  %v1197_v46 = vadd.f32 %v2387_v18, %v872_v40 }
 0x146   :  { %v747_v43 = vpop.f32.mrb[26].mxu0  ;;  %v875_v44 = vpop.f32.mrb[26].mxu1 }
 0x147   :  { %v1166_v47 = vadd.f32 %v2387_v18, %v747_v43  ;;  %v1198_v48 = vadd.f32 %v2387_v18, %v875_v44  ;;  %v749_v49 = vpop.f32.mrb[27].mxu0  ;;  %v877_v50 = vpop.f32.mrb[27].mxu1 }
 0x149   :  { %v1783_v51 = vpack.c.bf16 %v1166_v47, %v1165_v45  ;;  %v1863_v52 = vpack.c.bf16 %v1198_v48, %v1197_v46 }
 0x14b   :  { %1915 = vst [vmem:[%s2553_s4 + $0x30] sm:$0xff] %v1783_v51   ;;  %1931 = vst [vmem:[%s2553_s4 + $0xb0] sm:$0xff] %v1863_v52  }
 0x14c   :  { %v752_v53 = vpop.f32.mrb[28].mxu0  ;;  %v880_v54 = vpop.f32.mrb[28].mxu1 }
 0x14d   :  { %v754_v55 = vpop.f32.mrb[29].mxu0  ;;  %v882_v56 = vpop.f32.mrb[29].mxu1  ;;  %v1167_v59 = vadd.f32 %v2387_v18, %v752_v53  ;;  %v1199_v60 = vadd.f32 %v2387_v18, %v880_v54 }
 0x14e   :  { %v755_v57 = vpop.f32.mrb[30].mxu0  ;;  %v883_v58 = vpop.f32.mrb[30].mxu1 }
 0x14f   :  { %v1168_v61 = vadd.f32 %v2387_v18, %v755_v57  ;;  %v1200_v62 = vadd.f32 %v2387_v18, %v883_v58  ;;  %v757_v63 = vpop.f32.mrb[31].mxu0  ;;  %v885_v0 = vpop.f32.mrb[31].mxu1 }
 0x151   :  { %v1788_v1 = vpack.c.bf16 %v1168_v61, %v1167_v59  ;;  %v1868_v2 = vpack.c.bf16 %v1200_v62, %v1199_v60 }
 0x153   :  { %1916 = vst [vmem:[%s2553_s4 + $0x38] sm:$0xff] %v1788_v1   ;;  %1932 = vst [vmem:[%s2553_s4 + $0xb8] sm:$0xff] %v1868_v2  }
 0x154   :  { %v760_v3 = vpop.f32.mrb[32].mxu0  ;;  %v888_v4 = vpop.f32.mrb[32].mxu1 }
 0x155   :  { %v762_v5 = vpop.f32.mrb[33].mxu0  ;;  %v890_v6 = vpop.f32.mrb[33].mxu1  ;;  %v1169_v9 = vadd.f32 %v2387_v18, %v760_v3  ;;  %v1201_v10 = vadd.f32 %v2387_v18, %v888_v4 }
 0x156   :  { %v763_v7 = vpop.f32.mrb[34].mxu0  ;;  %v891_v8 = vpop.f32.mrb[34].mxu1 }
 0x157   :  { %v1170_v11 = vadd.f32 %v2387_v18, %v763_v7  ;;  %v1202_v12 = vadd.f32 %v2387_v18, %v891_v8  ;;  %v765_v13 = vpop.f32.mrb[35].mxu0  ;;  %v893_v14 = vpop.f32.mrb[35].mxu1 }
 0x159   :  { %v1793_v15 = vpack.c.bf16 %v1170_v11, %v1169_v9  ;;  %v1873_v16 = vpack.c.bf16 %v1202_v12, %v1201_v10 }
 0x15b   :  { %1917 = vst [vmem:[%s2553_s4 + $0x40] sm:$0xff] %v1793_v15   ;;  %1933 = vst [vmem:[%s2553_s4 + $0xc0] sm:$0xff] %v1873_v16  }
 0x15c   :  { %v768_v17 = vpop.f32.mrb[36].mxu0  ;;  %v896_v19 = vpop.f32.mrb[36].mxu1 }
 0x15d   :  { %v770_v20 = vpop.f32.mrb[37].mxu0  ;;  %v898_v21 = vpop.f32.mrb[37].mxu1  ;;  %v1171_v24 = vadd.f32 %v2387_v18, %v768_v17  ;;  %v1203_v25 = vadd.f32 %v2387_v18, %v896_v19 }
 0x15e   :  { %v771_v22 = vpop.f32.mrb[38].mxu0  ;;  %v899_v23 = vpop.f32.mrb[38].mxu1 }
 0x15f   :  { %v1172_v26 = vadd.f32 %v2387_v18, %v771_v22  ;;  %v1204_v27 = vadd.f32 %v2387_v18, %v899_v23  ;;  %v773_v28 = vpop.f32.mrb[39].mxu0  ;;  %v901_v29 = vpop.f32.mrb[39].mxu1 }
 0x161   :  { %v1798_v30 = vpack.c.bf16 %v1172_v26, %v1171_v24  ;;  %v1878_v31 = vpack.c.bf16 %v1204_v27, %v1203_v25 }
 0x163   :  { %1918 = vst [vmem:[%s2553_s4 + $0x48] sm:$0xff] %v1798_v30   ;;  %1934 = vst [vmem:[%s2553_s4 + $0xc8] sm:$0xff] %v1878_v31  }
 0x164   :  { %v776_v32 = vpop.f32.mrb[40].mxu0  ;;  %v904_v33 = vpop.f32.mrb[40].mxu1 }
 0x165   :  { %v778_v34 = vpop.f32.mrb[41].mxu0  ;;  %v906_v35 = vpop.f32.mrb[41].mxu1  ;;  %v1173_v38 = vadd.f32 %v2387_v18, %v776_v32  ;;  %v1205_v39 = vadd.f32 %v2387_v18, %v904_v33 }
 0x166   :  { %v779_v36 = vpop.f32.mrb[42].mxu0  ;;  %v907_v37 = vpop.f32.mrb[42].mxu1 }
 0x167   :  { %v1174_v40 = vadd.f32 %v2387_v18, %v779_v36  ;;  %v1206_v41 = vadd.f32 %v2387_v18, %v907_v37  ;;  %v781_v42 = vpop.f32.mrb[43].mxu0  ;;  %v909_v43 = vpop.f32.mrb[43].mxu1 }
 0x169   :  { %v1803_v44 = vpack.c.bf16 %v1174_v40, %v1173_v38  ;;  %v1883_v45 = vpack.c.bf16 %v1206_v41, %v1205_v39 }
 0x16b   :  { %1919 = vst [vmem:[%s2553_s4 + $0x50] sm:$0xff] %v1803_v44   ;;  %1935 = vst [vmem:[%s2553_s4 + $0xd0] sm:$0xff] %v1883_v45  }
 0x16c   :  { %v784_v46 = vpop.f32.mrb[44].mxu0  ;;  %v912_v47 = vpop.f32.mrb[44].mxu1 }
 0x16d   :  { %v786_v48 = vpop.f32.mrb[45].mxu0  ;;  %v914_v49 = vpop.f32.mrb[45].mxu1  ;;  %v1175_v52 = vadd.f32 %v2387_v18, %v784_v46  ;;  %v1207_v53 = vadd.f32 %v2387_v18, %v912_v47 }
 0x16e   :  { %v787_v50 = vpop.f32.mrb[46].mxu0  ;;  %v915_v51 = vpop.f32.mrb[46].mxu1 }
 0x16f   :  { %v1176_v54 = vadd.f32 %v2387_v18, %v787_v50  ;;  %v1208_v55 = vadd.f32 %v2387_v18, %v915_v51  ;;  %v789_v56 = vpop.f32.mrb[47].mxu0  ;;  %v917_v57 = vpop.f32.mrb[47].mxu1 }
 0x171   :  { %v1808_v58 = vpack.c.bf16 %v1176_v54, %v1175_v52  ;;  %v1888_v59 = vpack.c.bf16 %v1208_v55, %v1207_v53 }
 0x173   :  { %1920 = vst [vmem:[%s2553_s4 + $0x58] sm:$0xff] %v1808_v58   ;;  %1936 = vst [vmem:[%s2553_s4 + $0xd8] sm:$0xff] %v1888_v59  }
 0x174   :  { %v792_v60 = vpop.f32.mrb[48].mxu0  ;;  %v920_v61 = vpop.f32.mrb[48].mxu1 }
 0x175   :  { %v794_v62 = vpop.f32.mrb[49].mxu0  ;;  %v922_v63 = vpop.f32.mrb[49].mxu1  ;;  %v1177_v2 = vadd.f32 %v2387_v18, %v792_v60  ;;  %v1209_v3 = vadd.f32 %v2387_v18, %v920_v61 }
 0x176   :  { %v795_v0 = vpop.f32.mrb[50].mxu0  ;;  %v923_v1 = vpop.f32.mrb[50].mxu1 }
 0x177   :  { %v1178_v4 = vadd.f32 %v2387_v18, %v795_v0  ;;  %v1210_v5 = vadd.f32 %v2387_v18, %v923_v1  ;;  %v797_v6 = vpop.f32.mrb[51].mxu0  ;;  %v925_v7 = vpop.f32.mrb[51].mxu1 }
 0x179   :  { %v1813_v8 = vpack.c.bf16 %v1178_v4, %v1177_v2  ;;  %v1893_v9 = vpack.c.bf16 %v1210_v5, %v1209_v3 }
 0x17b   :  { %1921 = vst [vmem:[%s2553_s4 + $0x60] sm:$0xff] %v1813_v8   ;;  %1937 = vst [vmem:[%s2553_s4 + $0xe0] sm:$0xff] %v1893_v9  }
 0x17c   :  { %v800_v10 = vpop.f32.mrb[52].mxu0  ;;  %v928_v11 = vpop.f32.mrb[52].mxu1 }
 0x17d   :  { %v802_v12 = vpop.f32.mrb[53].mxu0  ;;  %v930_v13 = vpop.f32.mrb[53].mxu1  ;;  %v1179_v16 = vadd.f32 %v2387_v18, %v800_v10  ;;  %v1211_v17 = vadd.f32 %v2387_v18, %v928_v11 }
 0x17e   :  { %v803_v14 = vpop.f32.mrb[54].mxu0  ;;  %v931_v15 = vpop.f32.mrb[54].mxu1 }
 0x17f   :  { %v1180_v19 = vadd.f32 %v2387_v18, %v803_v14  ;;  %v1212_v20 = vadd.f32 %v2387_v18, %v931_v15  ;;  %v805_v21 = vpop.f32.mrb[55].mxu0  ;;  %v933_v22 = vpop.f32.mrb[55].mxu1 }
 0x181   :  { %v1818_v23 = vpack.c.bf16 %v1180_v19, %v1179_v16  ;;  %v1898_v24 = vpack.c.bf16 %v1212_v20, %v1211_v17 }
 0x183   :  { %1922 = vst [vmem:[%s2553_s4 + $0x68] sm:$0xff] %v1818_v23   ;;  %1938 = vst [vmem:[%s2553_s4 + $0xe8] sm:$0xff] %v1898_v24  }
 0x184   :  { %v808_v25 = vpop.f32.mrb[56].mxu0  ;;  %v936_v26 = vpop.f32.mrb[56].mxu1 }
 0x185   :  { %v810_v27 = vpop.f32.mrb[57].mxu0  ;;  %v938_v28 = vpop.f32.mrb[57].mxu1  ;;  %v1181_v31 = vadd.f32 %v2387_v18, %v808_v25  ;;  %v1213_v32 = vadd.f32 %v2387_v18, %v936_v26 }
 0x186   :  { %v811_v29 = vpop.f32.mrb[58].mxu0  ;;  %v939_v30 = vpop.f32.mrb[58].mxu1 }
 0x187   :  { %v1182_v33 = vadd.f32 %v2387_v18, %v811_v29  ;;  %v1214_v34 = vadd.f32 %v2387_v18, %v939_v30  ;;  %v813_v35 = vpop.f32.mrb[59].mxu0  ;;  %v941_v36 = vpop.f32.mrb[59].mxu1 }
 0x189   :  { %v1823_v37 = vpack.c.bf16 %v1182_v33, %v1181_v31  ;;  %v1903_v38 = vpack.c.bf16 %v1214_v34, %v1213_v32 }
 0x18b   :  { %1923 = vst [vmem:[%s2553_s4 + $0x70] sm:$0xff] %v1823_v37   ;;  %1939 = vst [vmem:[%s2553_s4 + $0xf0] sm:$0xff] %v1903_v38  }
 0x18c   :  { %v816_v39 = vpop.f32.mrb[60].mxu0  ;;  %v944_v40 = vpop.f32.mrb[60].mxu1 }
 0x18d   :  { %v818_v41 = vpop.f32.mrb[61].mxu0  ;;  %v946_v42 = vpop.f32.mrb[61].mxu1  ;;  %v1183_v45 = vadd.f32 %v2387_v18, %v816_v39  ;;  %v1215_v46 = vadd.f32 %v2387_v18, %v944_v40 }
 0x18e   :  { %v819_v43 = vpop.f32.mrb[62].mxu0  ;;  %v947_v44 = vpop.f32.mrb[62].mxu1 }
 0x18f   :  { %v1184_v47 = vadd.f32 %v2387_v18, %v819_v43  ;;  %v1216_v48 = vadd.f32 %v2387_v18, %v947_v44  ;;  %v821_v49 = vpop.f32.mrb[63].mxu0  ;;  %v949_v50 = vpop.f32.mrb[63].mxu1 }
 0x191   :  { %v1828_v51 = vpack.c.bf16 %v1184_v47, %v1183_v45  ;;  %v1908_v52 = vpack.c.bf16 %v1216_v48, %v1215_v46 }
 0x193   :  { %1924 = vst [vmem:[%s2553_s4 + $0x78] sm:$0xff] %v1828_v51   ;;  %1940 = vst [vmem:[%s2553_s4 + $0xf8] sm:$0xff] %v1908_v52  }

</bundles_post_ra>
